<compile_context>
chip_gen: v7x
topology: tpu7x:2x2x1
jax: 0.10.0
libtpu: 0.0.40
codegen_flags: <defaults>
</compile_context>

<pallas_src>
import functools

import numpy as np
import jax
import jax.numpy as jnp
from jax.experimental import pallas as pl
from jax.experimental.pallas import tpu as pltpu

BN_EPS = 1e-5


def _round_up(v, m):
    return (v + m - 1) // m * m


def _vmem_spec():
    # small whole-array operands for the gridless tail kernel
    return pl.BlockSpec(memory_space=pltpu.MemorySpace.VMEM)


# ---------------------------------------------------------------------------
# kernel 1: conv1 (as matmul) + bias + ReLU + single-pass BN stats +
#           2x2/stride-2 max pool, pipelined over row tiles of one
#           row-contiguous patch matrix (4 pool phases + leftover rows).
# ---------------------------------------------------------------------------

def conv1_kernel(p_ref, w_ref, bgb_ref, o_ref, y_sc, s_sc, ss_sc,
                 *, tm, rp, n_stat, n_pad):
    i = pl.program_id(0)
    bias = bgb_ref[0:1, :]

    @pl.when(i == 0)
    def _():
        s_sc[...] = jnp.zeros_like(s_sc)
        ss_sc[...] = jnp.zeros_like(ss_sc)

    # one MXU burst per grid step: (tm, K) @ (K, Cout), then conv bias + ReLU
    y = jnp.dot(p_ref[...], w_ref[...], preferred_element_type=jnp.float32)
    y = jnp.maximum(y + bias, 0.0)

    # single-pass batch statistics (zero pad rows are corrected at finalize)
    s_sc[...] += y.sum(axis=0, keepdims=True)
    ss_sc[...] += (y * y).sum(axis=0, keepdims=True)

    # stash pre-BN activations; BN/pool need full-batch stats first
    start = pl.multiple_of(i * tm, tm)
    y_sc[pl.ds(start, tm), :] = y

    @pl.when(i == pl.num_programs(0) - 1)
    def _():
        # every zero pad row contributed exactly relu(bias): subtract it.
        br = jnp.maximum(bias, 0.0)
        inv_n = 1.0 / n_stat
        s = s_sc[...] - n_pad * br
        ss = ss_sc[...] - n_pad * (br * br)
        mean = s * inv_n
        var = jnp.maximum(ss * inv_n - mean * mean, 0.0)   # biased (PyTorch BN)
        a = bgb_ref[1:2, :] * jax.lax.rsqrt(var + BN_EPS)
        b = bgb_ref[2:3, :] - mean * a
        # BN then MaxPool2d(2,2) == elementwise max of the four phase blocks.
        y0 = y_sc[0 * rp:1 * rp, :]
        y1 = y_sc[1 * rp:2 * rp, :]
        y2 = y_sc[2 * rp:3 * rp, :]
        y3 = y_sc[3 * rp:4 * rp, :]
        o_ref[...] = jnp.maximum(jnp.maximum(a * y0 + b, a * y1 + b),
                                 jnp.maximum(a * y2 + b, a * y3 + b))


# ---------------------------------------------------------------------------
# kernel 2: conv2 + ReLU + BN + pool, conv3 (+ReLU+BN+pool) with in-kernel
#           gather-matmul im2col, and the full FC value head — one launch.
# ---------------------------------------------------------------------------

def tail_kernel(p2_ref, lo2_ref, w2_ref, bgb2_ref, sel_ref, w3_ref, bgb3_ref,
                fw1_ref, fb1_ref, fw2_ref, fb2_ref, o_ref,
                *, n_stat2, n_stat3):
    # ---- conv2 (as matmul) + bias + ReLU on 4 pool-phase blocks + leftover
    w2 = w2_ref[...]
    bias2 = bgb2_ref[0:1, :]
    ys = []
    for ph in range(4):
        y = jnp.dot(p2_ref[ph], w2, preferred_element_type=jnp.float32)
        ys.append(jnp.maximum(y + bias2, 0.0))
    ylo = jnp.dot(lo2_ref[...], w2, preferred_element_type=jnp.float32)
    ylo = jnp.maximum(ylo + bias2, 0.0)

    # BatchNorm2d(64): batch stats over ALL conv2 outputs, biased variance
    inv_n = 1.0 / n_stat2
    s = ylo.sum(axis=0, keepdims=True)
    ss = (ylo * ylo).sum(axis=0, keepdims=True)
    for y in ys:
        s = s + y.sum(axis=0, keepdims=True)
        ss = ss + (y * y).sum(axis=0, keepdims=True)
    mean = s * inv_n
    var = jnp.maximum(ss * inv_n - mean * mean, 0.0)
    a2 = bgb2_ref[1:2, :] * jax.lax.rsqrt(var + BN_EPS)
    b2 = bgb2_ref[2:3, :] - mean * a2
    pooled2 = jnp.maximum(jnp.maximum(a2 * ys[0] + b2, a2 * ys[1] + b2),
                          jnp.maximum(a2 * ys[2] + b2, a2 * ys[3] + b2))
    p2b = pooled2.astype(jnp.bfloat16)            # (N*5*4, 64), rows (n, h, w)

    # ---- conv3: in-kernel im2col via constant 0/1 row-gather matrices; each
    #      tap is a (12,40) gather matmul + a (12,64)@(64,64) weight matmul.
    bias3 = bgb3_ref[0:1, :]
    y3 = jnp.zeros((sel_ref.shape[1], w3_ref.shape[2]), jnp.float32)
    for k in range(sel_ref.shape[0]):
        g = jnp.dot(sel_ref[k], p2b, preferred_element_type=jnp.float32)
        y3 = y3 + jnp.dot(g.astype(jnp.bfloat16), w3_ref[k],
                          preferred_element_type=jnp.float32)
    y3 = jnp.maximum(y3 + bias3, 0.0)             # rows: position-major, n-minor

    inv_n3 = 1.0 / n_stat3
    mean3 = y3.sum(axis=0, keepdims=True) * inv_n3
    var3 = jnp.maximum((y3 * y3).sum(axis=0, keepdims=True) * inv_n3
                       - mean3 * mean3, 0.0)
    a3 = bgb3_ref[1:2, :] * jax.lax.rsqrt(var3 + BN_EPS)
    b3 = bgb3_ref[2:3, :] - mean3 * a3
    z = a3 * y3 + b3

    # MaxPool2d(2,2): rows [0, 4N) are the four pooled conv3 positions; the
    # remaining rows are pool-dropped leftovers that only fed the BN stats.
    n = o_ref.shape[0]
    pooled3 = jnp.maximum(jnp.maximum(z[0:n, :], z[n:2 * n, :]),
                          jnp.maximum(z[2 * n:3 * n, :], z[3 * n:4 * n, :]))

    # ---- FC head: Linear(64,512) + ReLU, then the (512->1) value projection
    #      as broadcast-mul + lane reduction (avoids a 1-column MXU matmul).
    h = jnp.dot(pooled3.astype(jnp.bfloat16), fw1_ref[...],
                preferred_element_type=jnp.float32) + fb1_ref[...]
    h = jnp.maximum(h, 0.0)
    o_ref[...] = jnp.sum(h * fw2_ref[...], axis=-1, keepdims=True) + fb2_ref[...]


# ---------------------------------------------------------------------------
# wrappers (XLA-side glue: cheap patch extraction grouped by pool phase)
# ---------------------------------------------------------------------------

def _patch_blocks(x, k, s):
    """im2col (bf16) grouped by 2x2-pool phase.

    Returns (phase_blocks, leftover, (N, Hp, Wp), n_stat):
      phase_blocks : 4 arrays (N*Hp*Wp, k*k*Cin) for conv positions
                     (2*hh+di, 2*ww+dj), rows ordered (n, hh, ww)
      leftover     : conv positions the pool drops (BN stats only)
      n_stat       : N*Ho*Wo, the BN reduction count
    """
    # TODO(synk): the strided window gather stays XLA-side glue; Mosaic has no
    # clean strided-VMEM mapping for it (conv3's gather is done in-kernel via
    # constant 0/1 matmuls instead).
    x = x.astype(jnp.bfloat16)
    N, H, W, Cin = x.shape
    Ho = (H - k) // s + 1
    Wo = (W - k) // s + 1
    Hp, Wp = Ho // 2, Wo // 2
    K = k * k * Cin
    cols = [x[:, i:i + s * (Ho - 1) + 1:s, j:j + s * (Wo - 1) + 1:s, :]
            for i in range(k) for j in range(k)]
    P = jnp.concatenate(cols, axis=-1)      # (N, Ho, Wo, K), (kh, kw, cin) order
    blocks = [P[:, di:2 * Hp:2, dj:2 * Wp:2, :].reshape(N * Hp * Wp, K)
              for di in (0, 1) for dj in (0, 1)]
    leftover = []
    if Ho > 2 * Hp:
        leftover.append(P[:, 2 * Hp:, :, :].reshape(-1, K))
    if Wo > 2 * Wp:
        leftover.append(P[:, :2 * Hp, 2 * Wp:, :].reshape(-1, K))
    lo = (jnp.concatenate(leftover, axis=0) if leftover
          else jnp.zeros((0, K), jnp.bfloat16))
    return blocks, lo, (N, Hp, Wp), float(N * Ho * Wo)


def conv1_stage(x_nhwc, w1, bgb1, *, tm=1024):
    """Conv(3->32,k8,s4) + ReLU + BN + 2x2 maxpool as one pipelined kernel."""
    N, H, W, C = x_nhwc.shape
    # space-to-depth(4): crop H to a multiple of 4 (conv1 never reads the
    # dropped rows), -> (N, H/4, W/4, 16*C); conv1 becomes k=2, s=1, K=192.
    Hc = (H // 4) * 4
    x = x_nhwc[:, :Hc].astype(jnp.bfloat16)
    x = x.reshape(N, Hc // 4, 4, W // 4, 4, C)
    x = x.transpose(0, 1, 3, 2, 4, 5).reshape(N, Hc // 4, W // 4, 16 * C)

    blocks, lo, (N, Hp, Wp), n_stat = _patch_blocks(x, k=2, s=1)
    K = blocks[0].shape[1]
    rp = _round_up(blocks[0].shape[0], 16)            # padded rows per phase
    total = _round_up(4 * rp + lo.shape[0], tm)       # grid-aligned row count

    pieces = []
    for b in blocks:
        pieces.append(b)
        if rp > b.shape[0]:
            pieces.append(jnp.zeros((rp - b.shape[0], K), jnp.bfloat16))
    pieces.append(lo)
    tail_pad = total - 4 * rp - lo.shape[0]
    if tail_pad > 0:
        pieces.append(jnp.zeros((tail_pad, K), jnp.bfloat16))
    p1 = jnp.concatenate(pieces, axis=0)              # (total, K) bf16

    # weight rearranged to the (tap, s2d-channel) K order of the patches
    w2d = w1.reshape(2, 4, 2, 4, C, -1).transpose(0, 2, 1, 3, 4, 5)
    w2d = w2d.reshape(K, -1).astype(jnp.bfloat16)     # (192, 32)
    cout = w2d.shape[1]
    n_pad = float(total) - n_stat
    grid = (total // tm,)

    kern = functools.partial(conv1_kernel, tm=tm, rp=rp,
                             n_stat=n_stat, n_pad=n_pad)
    out = pl.pallas_call(
        kern,
        out_shape=jax.ShapeDtypeStruct((rp, cout), jnp.float32),
        grid_spec=pltpu.PrefetchScalarGridSpec(
            num_scalar_prefetch=0,
            grid=grid,
            in_specs=[pl.BlockSpec((tm, K), lambda i: (i, 0)),
                      pl.BlockSpec((K, cout), lambda i: (0, 0)),
                      pl.BlockSpec((3, cout), lambda i: (0, 0))],
            out_specs=pl.BlockSpec((rp, cout), lambda i: (0, 0)),
            scratch_shapes=[pltpu.VMEM((total, cout), jnp.float32),
                            pltpu.VMEM((1, cout), jnp.float32),
                            pltpu.VMEM((1, cout), jnp.float32)]),
        compiler_params=pltpu.CompilerParams(
            dimension_semantics=("arbitrary",)),
    )(p1, w2d, bgb1)
    return out[:N * Hp * Wp].reshape(N, Hp, Wp, cout)


def tail_stage(x1, w2, bgb2, w3, bgb3, fw1, fb1, fw2, fb2):
    """conv2+ReLU+BN+pool, conv3+ReLU+BN+pool, FC head — one fused kernel."""
    blocks2, lo2, (N, Hp2, Wp2), n_stat2 = _patch_blocks(x1, k=4, s=2)
    p2 = jnp.stack(blocks2, axis=0)                   # (4, N*Hp2*Wp2, 512)
    K2 = p2.shape[-1]
    w2d = w2.reshape(K2, -1).astype(jnp.bfloat16)     # (512, 64)

    # conv3 (k=3, s=1) over the (N, Hp2, Wp2, 64) pooled map: constant 0/1
    # row-gather matrices (one per tap) applied on the MXU in-kernel.
    Ho3, Wo3 = Hp2 - 2, Wp2 - 2
    assert Wo3 == 2 and Ho3 in (2, 3), "FC fusion assumes a 1x1 pooled map"
    m2 = N * Hp2 * Wp2
    m3 = N * Ho3 * Wo3
    sel = np.zeros((9, m3, m2), np.float32)
    for kh in range(3):
        for kw in range(3):
            k = kh * 3 + kw
            for ho in range(Ho3):
                for wo in range(Wo3):
                    for n in range(N):
                        r = (ho * Wo3 + wo) * N + n                 # pos-major
                        m = (n * Hp2 + ho + kh) * Wp2 + (wo + kw)
                        sel[k, r, m] = 1.0
    sel = jnp.asarray(sel, jnp.bfloat16)
    w3k = w3.reshape(9, w3.shape[2], w3.shape[3]).astype(jnp.bfloat16)

    args = (p2, lo2, w2d, bgb2, sel, w3k, bgb3,
            fw1.astype(jnp.bfloat16),
            fb1.reshape(1, -1).astype(jnp.float32),
            fw2.reshape(1, -1).astype(jnp.float32),
            fb2.reshape(1, 1).astype(jnp.float32))
    kern = functools.partial(tail_kernel, n_stat2=n_stat2, n_stat3=float(m3))
    return pl.pallas_call(
        kern,
        out_shape=jax.ShapeDtypeStruct((N, 1), jnp.float32),
        in_specs=[_vmem_spec() for _ in args],
        out_specs=_vmem_spec(),
    )(*args)


def critic_forward(x_nchw, p):
    x = jnp.transpose(x_nchw, (0, 2, 3, 1)).astype(jnp.float32)   # NCHW -> NHWC
    x1 = conv1_stage(x, p["w1"], p["bgb1"])
    return tail_stage(x1, p["w2"], p["bgb2"], p["w3"], p["bgb3"],
                      p["fw1"], p["fb1"], p["fw2"], p["fb2"])


# ---------------------------------------------------------------------------
# deterministic synthetic parameters (no checkpoint)
# ---------------------------------------------------------------------------

def init_params(key):
    ks = jax.random.split(key, 16)

    def nrm(k, shape, scale=0.05):
        return scale * jax.random.normal(k, shape, dtype=jnp.float32)

    def pack(b, g, be):          # (3, C): rows = conv bias, BN gamma, BN beta
        return jnp.stack([b, g, be], axis=0)

    p = {}
    p["w1"] = nrm(ks[0], (8, 8, 3, 32))
    p["bgb1"] = pack(nrm(ks[1], (32,)), 1.0 + nrm(ks[2], (32,)), nrm(ks[3], (32,)))
    p["w2"] = nrm(ks[4], (4, 4, 32, 64))
    p["bgb2"] = pack(nrm(ks[5], (64,)), 1.0 + nrm(ks[6], (64,)), nrm(ks[7], (64,)))
    p["w3"] = nrm(ks[8], (3, 3, 64, 64))
    p["bgb3"] = pack(nrm(ks[9], (64,)), 1.0 + nrm(ks[10], (64,)), nrm(ks[11], (64,)))
    p["fw1"] = nrm(ks[12], (64, 512)); p["fb1"] = nrm(ks[13], (512,))
    p["fw2"] = nrm(ks[14], (512, 1));  p["fb2"] = nrm(ks[15], (1,))
    return p


if __name__ == "__main__":
    key = jax.random.PRNGKey(0)
    pk, xk = jax.random.split(key)
    params = init_params(pk)

    # Input shape implied by the module's FC sizing (Atari Pong frames),
    # NCHW (N, 3, 210, 160) with a small batch of 2.
    x = jax.random.normal(xk, (2, 3, 210, 160), dtype=jnp.float32)

    out = jax.jit(critic_forward)(x, params)
    out = jax.block_until_ready(out)
    assert out.shape == (2, 1) and out.dtype == jnp.float32
    print("KERNEL_OK")
</pallas_src>

<mosaic_0001>
module attributes {stable_mosaic.version = 11 : i64} {
  func.func @conv1_kernel(%arg0: i32, %arg1: memref<1024x192xbf16, #tpu.memory_space<vmem>>, %arg2: memref<192x32xbf16, #tpu.memory_space<vmem>>, %arg3: memref<3x32xf32, #tpu.memory_space<vmem>>, %arg4: memref<960x32xf32, #tpu.memory_space<vmem>>, %arg5: memref<4096x32xf32, #tpu.memory_space<vmem>>, %arg6: memref<1x32xf32, #tpu.memory_space<vmem>>, %arg7: memref<1x32xf32, #tpu.memory_space<vmem>>) attributes {dimension_semantics = [#tpu.dimension_semantics<arbitrary>], iteration_bounds = array<i64: 4>, scalar_prefetch = 0 : i64, scratch_operands = 3 : i64, tpu.core_type = #tpu.core_type<tc>, window_params = [{transform_indices = @transform_0, window_bounds = array<i64: 1024, 192>}, {pipeline_mode = #tpu.pipeline_mode<synchronous>, transform_indices = @transform_1, window_bounds = array<i64: 192, 32>}, {pipeline_mode = #tpu.pipeline_mode<synchronous>, transform_indices = @transform_2, window_bounds = array<i64: 3, 32>}, {pipeline_mode = #tpu.pipeline_mode<synchronous>, transform_indices = @transform_3, window_bounds = array<i64: 960, 32>}]} {
    %c0 = arith.constant 0 : index
    %c0_0 = arith.constant 0 : index
    %0 = vector.load %arg3[%c0, %c0_0] : memref<3x32xf32, #tpu.memory_space<vmem>>, vector<1x32xf32>
    %c0_i32 = arith.constant 0 : i32
    %1 = arith.cmpi eq, %arg0, %c0_i32 : i32
    %2 = arith.extui %1 : i1 to i32
    %c0_i32_1 = arith.constant 0 : i32
    %3 = arith.cmpi ne, %2, %c0_i32_1 : i32
    scf.if %3 {
      %cst_19 = arith.constant 0.000000e+00 : f32
      %29 = vector.broadcast %cst_19 : f32 to vector<1x32xf32>
      %c0_20 = arith.constant 0 : index
      %c0_21 = arith.constant 0 : index
      %30 = vector.load %arg6[%c0_20, %c0_21] : memref<1x32xf32, #tpu.memory_space<vmem>>, vector<1x32xf32>
      tpu.vector_store %arg6[%c0_20, %c0_21], %29 {strides = array<i32>} : memref<1x32xf32, #tpu.memory_space<vmem>>, vector<1x32xf32>,
      %cst_22 = arith.constant 0.000000e+00 : f32
      %31 = vector.broadcast %cst_22 : f32 to vector<1x32xf32>
      %c0_23 = arith.constant 0 : index
      %c0_24 = arith.constant 0 : index
      %32 = vector.load %arg7[%c0_23, %c0_24] : memref<1x32xf32, #tpu.memory_space<vmem>>, vector<1x32xf32>
      tpu.vector_store %arg7[%c0_23, %c0_24], %31 {strides = array<i32>} : memref<1x32xf32, #tpu.memory_space<vmem>>, vector<1x32xf32>,
    } else {
    }
    %c0_2 = arith.constant 0 : index
    %c0_3 = arith.constant 0 : index
    %4 = vector.load %arg1[%c0_2, %c0_3] : memref<1024x192xbf16, #tpu.memory_space<vmem>>, vector<1024x192xbf16>
    %c0_4 = arith.constant 0 : index
    %c0_5 = arith.constant 0 : index
    %5 = vector.load %arg2[%c0_4, %c0_5] : memref<192x32xbf16, #tpu.memory_space<vmem>>, vector<192x32xbf16>
    %cst = arith.constant dense<0.000000e+00> : vector<1024x32xf32>
    %6 = tpu.matmul %4, %5, %cst {dimension_numbers = #tpu.dot_dimension_numbers<[1], [0], [0], [1], [0, 0, 1, 1], [], []>} : vector<1024x192xbf16>, vector<192x32xbf16>, vector<1024x32xf32> -> vector<1024x32xf32>
    %7 = vector.broadcast %0 : vector<1x32xf32> to vector<1024x32xf32>
    %8 = arith.addf %6, %7 : vector<1024x32xf32>
    %cst_6 = arith.constant 0.000000e+00 : f32
    %9 = vector.broadcast %cst_6 : f32 to vector<1024x32xf32>
    %10 = arith.maximumf %8, %9 : vector<1024x32xf32>
    %c0_7 = arith.constant 0 : index
    %c0_8 = arith.constant 0 : index
    %11 = vector.load %arg6[%c0_7, %c0_8] : memref<1x32xf32, #tpu.memory_space<vmem>>, vector<1x32xf32>
    %cst_9 = arith.constant dense<0.000000e+00> : vector<32xf32>
    %12 = vector.multi_reduction <add>, %10, %cst_9 [0] : vector<1024x32xf32> to vector<32xf32>
    %13 = vector.shape_cast %12 : vector<32xf32> to vector<1x32xf32>
    %14 = arith.addf %11, %13 : vector<1x32xf32>
    %c0_10 = arith.constant 0 : index
    %c0_11 = arith.constant 0 : index
    %15 = vector.load %arg6[%c0_10, %c0_11] : memref<1x32xf32, #tpu.memory_space<vmem>>, vector<1x32xf32>
    tpu.vector_store %arg6[%c0_10, %c0_11], %14 {strides = array<i32>} : memref<1x32xf32, #tpu.memory_space<vmem>>, vector<1x32xf32>,
    %c0_12 = arith.constant 0 : index
    %c0_13 = arith.constant 0 : index
    %16 = vector.load %arg7[%c0_12, %c0_13] : memref<1x32xf32, #tpu.memory_space<vmem>>, vector<1x32xf32>
    %17 = arith.mulf %10, %10 : vector<1024x32xf32>
    %cst_14 = arith.constant dense<0.000000e+00> : vector<32xf32>
    %18 = vector.multi_reduction <add>, %17, %cst_14 [0] : vector<1024x32xf32> to vector<32xf32>
    %19 = vector.shape_cast %18 : vector<32xf32> to vector<1x32xf32>
    %20 = arith.addf %16, %19 : vector<1x32xf32>
    %c0_15 = arith.constant 0 : index
    %c0_16 = arith.constant 0 : index
    %21 = vector.load %arg7[%c0_15, %c0_16] : memref<1x32xf32, #tpu.memory_space<vmem>>, vector<1x32xf32>
    tpu.vector_store %arg7[%c0_15, %c0_16], %20 {strides = array<i32>} : memref<1x32xf32, #tpu.memory_space<vmem>>, vector<1x32xf32>,
    %c1024_i32 = arith.constant 1024 : i32
    %22 = arith.muli %arg0, %c1024_i32 : i32
    %23 = tpu.assume_multiple %22, 1024 : i32
    %24 = arith.index_cast %23 : i32 to index
    %c0_17 = arith.constant 0 : index
    %25 = vector.load %arg5[%24, %c0_17] : memref<4096x32xf32, #tpu.memory_space<vmem>>, vector<1024x32xf32>
    tpu.vector_store %arg5[%24, %c0_17], %10 {strides = array<i32>} : memref<4096x32xf32, #tpu.memory_space<vmem>>, vector<1024x32xf32>,
    %c3_i32 = arith.constant 3 : i32
    %26 = arith.cmpi eq, %arg0, %c3_i32 : i32
    %27 = arith.extui %26 : i1 to i32
    %c0_i32_18 = arith.constant 0 : i32
    %28 = arith.cmpi ne, %27, %c0_i32_18 : i32
    scf.if %28 {
      %cst_19 = arith.constant 0.000000e+00 : f32
      %29 = vector.broadcast %cst_19 : f32 to vector<1x32xf32>
      %30 = arith.maximumf %0, %29 : vector<1x32xf32>
      %c0_20 = arith.constant 0 : index
      %c0_21 = arith.constant 0 : index
      %31 = vector.load %arg6[%c0_20, %c0_21] : memref<1x32xf32, #tpu.memory_space<vmem>>, vector<1x32xf32>
      %cst_22 = arith.constant 1.180000e+02 : f32
      %32 = vector.broadcast %cst_22 : f32 to vector<1x32xf32>
      %33 = arith.mulf %32, %30 : vector<1x32xf32>
      %34 = arith.subf %31, %33 : vector<1x32xf32>
      %c0_23 = arith.constant 0 : index
      %c0_24 = arith.constant 0 : index
      %35 = vector.load %arg7[%c0_23, %c0_24] : memref<1x32xf32, #tpu.memory_space<vmem>>, vector<1x32xf32>
      %36 = arith.mulf %30, %30 : vector<1x32xf32>
      %cst_25 = arith.constant 1.180000e+02 : f32
      %37 = vector.broadcast %cst_25 : f32 to vector<1x32xf32>
      %38 = arith.mulf %37, %36 : vector<1x32xf32>
      %39 = arith.subf %35, %38 : vector<1x32xf32>
      %cst_26 = arith.constant 2.51382618E-4 : f32
      %40 = vector.broadcast %cst_26 : f32 to vector<1x32xf32>
      %41 = arith.mulf %34, %40 : vector<1x32xf32>
      %cst_27 = arith.constant 2.51382618E-4 : f32
      %42 = vector.broadcast %cst_27 : f32 to vector<1x32xf32>
      %43 = arith.mulf %39, %42 : vector<1x32xf32>
      %44 = arith.mulf %41, %41 : vector<1x32xf32>
      %45 = arith.subf %43, %44 : vector<1x32xf32>
      %cst_28 = arith.constant 0.000000e+00 : f32
      %46 = vector.broadcast %cst_28 : f32 to vector<1x32xf32>
      %47 = arith.maximumf %45, %46 : vector<1x32xf32>
      %c1 = arith.constant 1 : index
      %c0_29 = arith.constant 0 : index
      %48 = vector.load %arg3[%c1, %c0_29] : memref<3x32xf32, #tpu.memory_space<vmem>>, vector<1x32xf32>
      %cst_30 = arith.constant 9.99999974E-6 : f32
      %49 = vector.broadcast %cst_30 : f32 to vector<1x32xf32>
      %50 = arith.addf %47, %49 : vector<1x32xf32>
      %51 = math.rsqrt %50 : vector<1x32xf32>
      %52 = arith.mulf %48, %51 : vector<1x32xf32>
      %c2 = arith.constant 2 : index
      %c0_31 = arith.constant 0 : index
      %53 = vector.load %arg3[%c2, %c0_31] : memref<3x32xf32, #tpu.memory_space<vmem>>, vector<1x32xf32>
      %54 = arith.mulf %41, %52 : vector<1x32xf32>
      %55 = arith.subf %53, %54 : vector<1x32xf32>
      %c0_32 = arith.constant 0 : index
      %c0_33 = arith.constant 0 : index
      %56 = vector.load %arg5[%c0_32, %c0_33] : memref<4096x32xf32, #tpu.memory_space<vmem>>, vector<960x32xf32>
      %c960 = arith.constant 960 : index
      %c0_34 = arith.constant 0 : index
      %57 = vector.load %arg5[%c960, %c0_34] : memref<4096x32xf32, #tpu.memory_space<vmem>>, vector<960x32xf32>
      %c1920 = arith.constant 1920 : index
      %c0_35 = arith.constant 0 : index
      %58 = vector.load %arg5[%c1920, %c0_35] : memref<4096x32xf32, #tpu.memory_space<vmem>>, vector<960x32xf32>
      %c2880 = arith.constant 2880 : index
      %c0_36 = arith.constant 0 : index
      %59 = vector.load %arg5[%c2880, %c0_36] : memref<4096x32xf32, #tpu.memory_space<vmem>>, vector<960x32xf32>
      %60 = vector.broadcast %52 : vector<1x32xf32> to vector<960x32xf32>
      %61 = arith.mulf %60, %56 : vector<960x32xf32>
      %62 = vector.broadcast %55 : vector<1x32xf32> to vector<960x32xf32>
      %63 = arith.addf %61, %62 : vector<960x32xf32>
      %64 = vector.broadcast %52 : vector<1x32xf32> to vector<960x32xf32>
      %65 = arith.mulf %64, %57 : vector<960x32xf32>
      %66 = vector.broadcast %55 : vector<1x32xf32> to vector<960x32xf32>
      %67 = arith.addf %65, %66 : vector<960x32xf32>
      %68 = arith.maximumf %63, %67 : vector<960x32xf32>
      %69 = vector.broadcast %52 : vector<1x32xf32> to vector<960x32xf32>
      %70 = arith.mulf %69, %58 : vector<960x32xf32>
      %71 = vector.broadcast %55 : vector<1x32xf32> to vector<960x32xf32>
      %72 = arith.addf %70, %71 : vector<960x32xf32>
      %73 = vector.broadcast %52 : vector<1x32xf32> to vector<960x32xf32>
      %74 = arith.mulf %73, %59 : vector<960x32xf32>
      %75 = vector.broadcast %55 : vector<1x32xf32> to vector<960x32xf32>
      %76 = arith.addf %74, %75 : vector<960x32xf32>
      %77 = arith.maximumf %72, %76 : vector<960x32xf32>
      %78 = arith.maximumf %68, %77 : vector<960x32xf32>
      %c0_37 = arith.constant 0 : index
      %c0_38 = arith.constant 0 : index
      %79 = vector.load %arg4[%c0_37, %c0_38] : memref<960x32xf32, #tpu.memory_space<vmem>>, vector<960x32xf32>
      tpu.vector_store %arg4[%c0_37, %c0_38], %78 {strides = array<i32>} : memref<960x32xf32, #tpu.memory_space<vmem>>, vector<960x32xf32>,
    } else {
    }
    return
  }
  func.func @transform_0(%arg0: i32) -> (i32, i32) {
    %c0_i32 = arith.constant 0 : i32
    %c0_i32_0 = arith.constant 0 : i32
    return %arg0, %c0_i32 : i32, i32
  }
  func.func @transform_1(%arg0: i32) -> (i32, i32) {
    %c0_i32 = arith.constant 0 : i32
    %c0_i32_0 = arith.constant 0 : i32
    %c0_i32_1 = arith.constant 0 : i32
    return %c0_i32, %c0_i32_0 : i32, i32
  }
  func.func @transform_2(%arg0: i32) -> (i32, i32) {
    %c0_i32 = arith.constant 0 : i32
    %c0_i32_0 = arith.constant 0 : i32
    %c0_i32_1 = arith.constant 0 : i32
    return %c0_i32, %c0_i32_0 : i32, i32
  }
  func.func @transform_3(%arg0: i32) -> (i32, i32) {
    %c0_i32 = arith.constant 0 : i32
    %c0_i32_0 = arith.constant 0 : i32
    %c0_i32_1 = arith.constant 0 : i32
    return %c0_i32, %c0_i32_0 : i32, i32
  }
}

module attributes {stable_mosaic.version = 11 : i64} {
  func.func @tail_kernel(%arg0: memref<4x40x512xbf16, #tpu.memory_space<vmem>>, %arg1: memref<16x512xbf16, #tpu.memory_space<vmem>>, %arg2: memref<512x64xbf16, #tpu.memory_space<vmem>>, %arg3: memref<3x64xf32, #tpu.memory_space<vmem>>, %arg4: memref<9x12x40xbf16, #tpu.memory_space<vmem>>, %arg5: memref<9x64x64xbf16, #tpu.memory_space<vmem>>, %arg6: memref<3x64xf32, #tpu.memory_space<vmem>>, %arg7: memref<64x512xbf16, #tpu.memory_space<vmem>>, %arg8: memref<1x512xf32, #tpu.memory_space<vmem>>, %arg9: memref<1x512xf32, #tpu.memory_space<vmem>>, %arg10: memref<1x1xf32, #tpu.memory_space<vmem>>, %arg11: memref<2x1xf32, #tpu.memory_space<vmem>>) attributes {dimension_semantics = [], scalar_prefetch = 0 : i64, scratch_operands = 0 : i64, tpu.core_type = #tpu.core_type<tc>} {
    %c0 = arith.constant 0 : index
    %c0_0 = arith.constant 0 : index
    %0 = vector.load %arg2[%c0, %c0_0] : memref<512x64xbf16, #tpu.memory_space<vmem>>, vector<512x64xbf16>
    %c0_1 = arith.constant 0 : index
    %c0_2 = arith.constant 0 : index
    %1 = vector.load %arg3[%c0_1, %c0_2] : memref<3x64xf32, #tpu.memory_space<vmem>>, vector<1x64xf32>
    %c0_3 = arith.constant 0 : index
    %c0_4 = arith.constant 0 : index
    %c0_5 = arith.constant 0 : index
    %2 = vector.load %arg0[%c0_3, %c0_4, %c0_5] : memref<4x40x512xbf16, #tpu.memory_space<vmem>>, vector<1x40x512xbf16>
    %3 = vector.shape_cast %2 : vector<1x40x512xbf16> to vector<40x512xbf16>
    %cst = arith.constant dense<0.000000e+00> : vector<40x64xf32>
    %4 = tpu.matmul %3, %0, %cst {dimension_numbers = #tpu.dot_dimension_numbers<[1], [0], [0], [1], [0, 0, 1, 1], [], []>} : vector<40x512xbf16>, vector<512x64xbf16>, vector<40x64xf32> -> vector<40x64xf32>
    %5 = vector.broadcast %1 : vector<1x64xf32> to vector<40x64xf32>
    %6 = arith.addf %4, %5 : vector<40x64xf32>
    %cst_6 = arith.constant 0.000000e+00 : f32
    %7 = vector.broadcast %cst_6 : f32 to vector<40x64xf32>
    %8 = arith.maximumf %6, %7 : vector<40x64xf32>
    %c1 = arith.constant 1 : index
    %c0_7 = arith.constant 0 : index
    %c0_8 = arith.constant 0 : index
    %9 = vector.load %arg0[%c1, %c0_7, %c0_8] : memref<4x40x512xbf16, #tpu.memory_space<vmem>>, vector<1x40x512xbf16>
    %10 = vector.shape_cast %9 : vector<1x40x512xbf16> to vector<40x512xbf16>
    %cst_9 = arith.constant dense<0.000000e+00> : vector<40x64xf32>
    %11 = tpu.matmul %10, %0, %cst_9 {dimension_numbers = #tpu.dot_dimension_numbers<[1], [0], [0], [1], [0, 0, 1, 1], [], []>} : vector<40x512xbf16>, vector<512x64xbf16>, vector<40x64xf32> -> vector<40x64xf32>
    %12 = vector.broadcast %1 : vector<1x64xf32> to vector<40x64xf32>
    %13 = arith.addf %11, %12 : vector<40x64xf32>
    %cst_10 = arith.constant 0.000000e+00 : f32
    %14 = vector.broadcast %cst_10 : f32 to vector<40x64xf32>
    %15 = arith.maximumf %13, %14 : vector<40x64xf32>
    %c2 = arith.constant 2 : index
    %c0_11 = arith.constant 0 : index
    %c0_12 = arith.constant 0 : index
    %16 = vector.load %arg0[%c2, %c0_11, %c0_12] : memref<4x40x512xbf16, #tpu.memory_space<vmem>>, vector<1x40x512xbf16>
    %17 = vector.shape_cast %16 : vector<1x40x512xbf16> to vector<40x512xbf16>
    %cst_13 = arith.constant dense<0.000000e+00> : vector<40x64xf32>
    %18 = tpu.matmul %17, %0, %cst_13 {dimension_numbers = #tpu.dot_dimension_numbers<[1], [0], [0], [1], [0, 0, 1, 1], [], []>} : vector<40x512xbf16>, vector<512x64xbf16>, vector<40x64xf32> -> vector<40x64xf32>
    %19 = vector.broadcast %1 : vector<1x64xf32> to vector<40x64xf32>
    %20 = arith.addf %18, %19 : vector<40x64xf32>
    %cst_14 = arith.constant 0.000000e+00 : f32
    %21 = vector.broadcast %cst_14 : f32 to vector<40x64xf32>
    %22 = arith.maximumf %20, %21 : vector<40x64xf32>
    %c3 = arith.constant 3 : index
    %c0_15 = arith.constant 0 : index
    %c0_16 = arith.constant 0 : index
    %23 = vector.load %arg0[%c3, %c0_15, %c0_16] : memref<4x40x512xbf16, #tpu.memory_space<vmem>>, vector<1x40x512xbf16>
    %24 = vector.shape_cast %23 : vector<1x40x512xbf16> to vector<40x512xbf16>
    %cst_17 = arith.constant dense<0.000000e+00> : vector<40x64xf32>
    %25 = tpu.matmul %24, %0, %cst_17 {dimension_numbers = #tpu.dot_dimension_numbers<[1], [0], [0], [1], [0, 0, 1, 1], [], []>} : vector<40x512xbf16>, vector<512x64xbf16>, vector<40x64xf32> -> vector<40x64xf32>
    %26 = vector.broadcast %1 : vector<1x64xf32> to vector<40x64xf32>
    %27 = arith.addf %25, %26 : vector<40x64xf32>
    %cst_18 = arith.constant 0.000000e+00 : f32
    %28 = vector.broadcast %cst_18 : f32 to vector<40x64xf32>
    %29 = arith.maximumf %27, %28 : vector<40x64xf32>
    %c0_19 = arith.constant 0 : index
    %c0_20 = arith.constant 0 : index
    %30 = vector.load %arg1[%c0_19, %c0_20] : memref<16x512xbf16, #tpu.memory_space<vmem>>, vector<16x512xbf16>
    %cst_21 = arith.constant dense<0.000000e+00> : vector<16x64xf32>
    %31 = tpu.matmul %30, %0, %cst_21 {dimension_numbers = #tpu.dot_dimension_numbers<[1], [0], [0], [1], [0, 0, 1, 1], [], []>} : vector<16x512xbf16>, vector<512x64xbf16>, vector<16x64xf32> -> vector<16x64xf32>
    %32 = vector.broadcast %1 : vector<1x64xf32> to vector<16x64xf32>
    %33 = arith.addf %31, %32 : vector<16x64xf32>
    %cst_22 = arith.constant 0.000000e+00 : f32
    %34 = vector.broadcast %cst_22 : f32 to vector<16x64xf32>
    %35 = arith.maximumf %33, %34 : vector<16x64xf32>
    %cst_23 = arith.constant dense<0.000000e+00> : vector<64xf32>
    %36 = vector.multi_reduction <add>, %35, %cst_23 [0] : vector<16x64xf32> to vector<64xf32>
    %37 = vector.shape_cast %36 : vector<64xf32> to vector<1x64xf32>
    %38 = arith.mulf %35, %35 : vector<16x64xf32>
    %cst_24 = arith.constant dense<0.000000e+00> : vector<64xf32>
    %39 = vector.multi_reduction <add>, %38, %cst_24 [0] : vector<16x64xf32> to vector<64xf32>
    %40 = vector.shape_cast %39 : vector<64xf32> to vector<1x64xf32>
    %cst_25 = arith.constant dense<0.000000e+00> : vector<64xf32>
    %41 = vector.multi_reduction <add>, %8, %cst_25 [0] : vector<40x64xf32> to vector<64xf32>
    %42 = vector.shape_cast %41 : vector<64xf32> to vector<1x64xf32>
    %43 = arith.addf %37, %42 : vector<1x64xf32>
    %44 = arith.mulf %8, %8 : vector<40x64xf32>
    %cst_26 = arith.constant dense<0.000000e+00> : vector<64xf32>
    %45 = vector.multi_reduction <add>, %44, %cst_26 [0] : vector<40x64xf32> to vector<64xf32>
    %46 = vector.shape_cast %45 : vector<64xf32> to vector<1x64xf32>
    %47 = arith.addf %40, %46 : vector<1x64xf32>
    %cst_27 = arith.constant dense<0.000000e+00> : vector<64xf32>
    %48 = vector.multi_reduction <add>, %15, %cst_27 [0] : vector<40x64xf32> to vector<64xf32>
    %49 = vector.shape_cast %48 : vector<64xf32> to vector<1x64xf32>
    %50 = arith.addf %43, %49 : vector<1x64xf32>
    %51 = arith.mulf %15, %15 : vector<40x64xf32>
    %cst_28 = arith.constant dense<0.000000e+00> : vector<64xf32>
    %52 = vector.multi_reduction <add>, %51, %cst_28 [0] : vector<40x64xf32> to vector<64xf32>
    %53 = vector.shape_cast %52 : vector<64xf32> to vector<1x64xf32>
    %54 = arith.addf %47, %53 : vector<1x64xf32>
    %cst_29 = arith.constant dense<0.000000e+00> : vector<64xf32>
    %55 = vector.multi_reduction <add>, %22, %cst_29 [0] : vector<40x64xf32> to vector<64xf32>
    %56 = vector.shape_cast %55 : vector<64xf32> to vector<1x64xf32>
    %57 = arith.addf %50, %56 : vector<1x64xf32>
    %58 = arith.mulf %22, %22 : vector<40x64xf32>
    %cst_30 = arith.constant dense<0.000000e+00> : vector<64xf32>
    %59 = vector.multi_reduction <add>, %58, %cst_30 [0] : vector<40x64xf32> to vector<64xf32>
    %60 = vector.shape_cast %59 : vector<64xf32> to vector<1x64xf32>
    %61 = arith.addf %54, %60 : vector<1x64xf32>
    %cst_31 = arith.constant dense<0.000000e+00> : vector<64xf32>
    %62 = vector.multi_reduction <add>, %29, %cst_31 [0] : vector<40x64xf32> to vector<64xf32>
    %63 = vector.shape_cast %62 : vector<64xf32> to vector<1x64xf32>
    %64 = arith.addf %57, %63 : vector<1x64xf32>
    %65 = arith.mulf %29, %29 : vector<40x64xf32>
    %cst_32 = arith.constant dense<0.000000e+00> : vector<64xf32>
    %66 = vector.multi_reduction <add>, %65, %cst_32 [0] : vector<40x64xf32> to vector<64xf32>
    %67 = vector.shape_cast %66 : vector<64xf32> to vector<1x64xf32>
    %68 = arith.addf %61, %67 : vector<1x64xf32>
    %cst_33 = arith.constant 0.00568181835 : f32
    %69 = vector.broadcast %cst_33 : f32 to vector<1x64xf32>
    %70 = arith.mulf %64, %69 : vector<1x64xf32>
    %cst_34 = arith.constant 0.00568181835 : f32
    %71 = vector.broadcast %cst_34 : f32 to vector<1x64xf32>
    %72 = arith.mulf %68, %71 : vector<1x64xf32>
    %73 = arith.mulf %70, %70 : vector<1x64xf32>
    %74 = arith.subf %72, %73 : vector<1x64xf32>
    %cst_35 = arith.constant 0.000000e+00 : f32
    %75 = vector.broadcast %cst_35 : f32 to vector<1x64xf32>
    %76 = arith.maximumf %74, %75 : vector<1x64xf32>
    %c1_36 = arith.constant 1 : index
    %c0_37 = arith.constant 0 : index
    %77 = vector.load %arg3[%c1_36, %c0_37] : memref<3x64xf32, #tpu.memory_space<vmem>>, vector<1x64xf32>
    %cst_38 = arith.constant 9.99999974E-6 : f32
    %78 = vector.broadcast %cst_38 : f32 to vector<1x64xf32>
    %79 = arith.addf %76, %78 : vector<1x64xf32>
    %80 = math.rsqrt %79 : vector<1x64xf32>
    %81 = arith.mulf %77, %80 : vector<1x64xf32>
    %c2_39 = arith.constant 2 : index
    %c0_40 = arith.constant 0 : index
    %82 = vector.load %arg3[%c2_39, %c0_40] : memref<3x64xf32, #tpu.memory_space<vmem>>, vector<1x64xf32>
    %83 = arith.mulf %70, %81 : vector<1x64xf32>
    %84 = arith.subf %82, %83 : vector<1x64xf32>
    %85 = vector.broadcast %81 : vector<1x64xf32> to vector<40x64xf32>
    %86 = arith.mulf %85, %8 : vector<40x64xf32>
    %87 = vector.broadcast %84 : vector<1x64xf32> to vector<40x64xf32>
    %88 = arith.addf %86, %87 : vector<40x64xf32>
    %89 = vector.broadcast %81 : vector<1x64xf32> to vector<40x64xf32>
    %90 = arith.mulf %89, %15 : vector<40x64xf32>
    %91 = vector.broadcast %84 : vector<1x64xf32> to vector<40x64xf32>
    %92 = arith.addf %90, %91 : vector<40x64xf32>
    %93 = arith.maximumf %88, %92 : vector<40x64xf32>
    %94 = vector.broadcast %81 : vector<1x64xf32> to vector<40x64xf32>
    %95 = arith.mulf %94, %22 : vector<40x64xf32>
    %96 = vector.broadcast %84 : vector<1x64xf32> to vector<40x64xf32>
    %97 = arith.addf %95, %96 : vector<40x64xf32>
    %98 = vector.broadcast %81 : vector<1x64xf32> to vector<40x64xf32>
    %99 = arith.mulf %98, %29 : vector<40x64xf32>
    %100 = vector.broadcast %84 : vector<1x64xf32> to vector<40x64xf32>
    %101 = arith.addf %99, %100 : vector<40x64xf32>
    %102 = arith.maximumf %97, %101 : vector<40x64xf32>
    %103 = arith.maximumf %93, %102 : vector<40x64xf32>
    %104 = arith.truncf %103 : vector<40x64xf32> to vector<40x64xbf16>
    %c0_41 = arith.constant 0 : index
    %c0_42 = arith.constant 0 : index
    %105 = vector.load %arg6[%c0_41, %c0_42] : memref<3x64xf32, #tpu.memory_space<vmem>>, vector<1x64xf32>
    %cst_43 = arith.constant 0.000000e+00 : f32
    %106 = vector.broadcast %cst_43 : f32 to vector<12x64xf32>
    %c0_44 = arith.constant 0 : index
    %c0_45 = arith.constant 0 : index
    %c0_46 = arith.constant 0 : index
    %107 = vector.load %arg4[%c0_44, %c0_45, %c0_46] : memref<9x12x40xbf16, #tpu.memory_space<vmem>>, vector<1x12x40xbf16>
    %108 = vector.shape_cast %107 : vector<1x12x40xbf16> to vector<12x40xbf16>
    %cst_47 = arith.constant dense<0.000000e+00> : vector<12x64xf32>
    %109 = tpu.matmul %108, %104, %cst_47 {dimension_numbers = #tpu.dot_dimension_numbers<[1], [0], [0], [1], [0, 0, 1, 1], [], []>} : vector<12x40xbf16>, vector<40x64xbf16>, vector<12x64xf32> -> vector<12x64xf32>
    %110 = arith.truncf %109 : vector<12x64xf32> to vector<12x64xbf16>
    %c0_48 = arith.constant 0 : index
    %c0_49 = arith.constant 0 : index
    %c0_50 = arith.constant 0 : index
    %111 = vector.load %arg5[%c0_48, %c0_49, %c0_50] : memref<9x64x64xbf16, #tpu.memory_space<vmem>>, vector<1x64x64xbf16>
    %112 = vector.shape_cast %111 : vector<1x64x64xbf16> to vector<64x64xbf16>
    %cst_51 = arith.constant dense<0.000000e+00> : vector<12x64xf32>
    %113 = tpu.matmul %110, %112, %cst_51 {dimension_numbers = #tpu.dot_dimension_numbers<[1], [0], [0], [1], [0, 0, 1, 1], [], []>} : vector<12x64xbf16>, vector<64x64xbf16>, vector<12x64xf32> -> vector<12x64xf32>
    %114 = arith.addf %106, %113 : vector<12x64xf32>
    %c1_52 = arith.constant 1 : index
    %c0_53 = arith.constant 0 : index
    %c0_54 = arith.constant 0 : index
    %115 = vector.load %arg4[%c1_52, %c0_53, %c0_54] : memref<9x12x40xbf16, #tpu.memory_space<vmem>>, vector<1x12x40xbf16>
    %116 = vector.shape_cast %115 : vector<1x12x40xbf16> to vector<12x40xbf16>
    %cst_55 = arith.constant dense<0.000000e+00> : vector<12x64xf32>
    %117 = tpu.matmul %116, %104, %cst_55 {dimension_numbers = #tpu.dot_dimension_numbers<[1], [0], [0], [1], [0, 0, 1, 1], [], []>} : vector<12x40xbf16>, vector<40x64xbf16>, vector<12x64xf32> -> vector<12x64xf32>
    %118 = arith.truncf %117 : vector<12x64xf32> to vector<12x64xbf16>
    %c1_56 = arith.constant 1 : index
    %c0_57 = arith.constant 0 : index
    %c0_58 = arith.constant 0 : index
    %119 = vector.load %arg5[%c1_56, %c0_57, %c0_58] : memref<9x64x64xbf16, #tpu.memory_space<vmem>>, vector<1x64x64xbf16>
    %120 = vector.shape_cast %119 : vector<1x64x64xbf16> to vector<64x64xbf16>
    %cst_59 = arith.constant dense<0.000000e+00> : vector<12x64xf32>
    %121 = tpu.matmul %118, %120, %cst_59 {dimension_numbers = #tpu.dot_dimension_numbers<[1], [0], [0], [1], [0, 0, 1, 1], [], []>} : vector<12x64xbf16>, vector<64x64xbf16>, vector<12x64xf32> -> vector<12x64xf32>
    %122 = arith.addf %114, %121 : vector<12x64xf32>
    %c2_60 = arith.constant 2 : index
    %c0_61 = arith.constant 0 : index
    %c0_62 = arith.constant 0 : index
    %123 = vector.load %arg4[%c2_60, %c0_61, %c0_62] : memref<9x12x40xbf16, #tpu.memory_space<vmem>>, vector<1x12x40xbf16>
    %124 = vector.shape_cast %123 : vector<1x12x40xbf16> to vector<12x40xbf16>
    %cst_63 = arith.constant dense<0.000000e+00> : vector<12x64xf32>
    %125 = tpu.matmul %124, %104, %cst_63 {dimension_numbers = #tpu.dot_dimension_numbers<[1], [0], [0], [1], [0, 0, 1, 1], [], []>} : vector<12x40xbf16>, vector<40x64xbf16>, vector<12x64xf32> -> vector<12x64xf32>
    %126 = arith.truncf %125 : vector<12x64xf32> to vector<12x64xbf16>
    %c2_64 = arith.constant 2 : index
    %c0_65 = arith.constant 0 : index
    %c0_66 = arith.constant 0 : index
    %127 = vector.load %arg5[%c2_64, %c0_65, %c0_66] : memref<9x64x64xbf16, #tpu.memory_space<vmem>>, vector<1x64x64xbf16>
    %128 = vector.shape_cast %127 : vector<1x64x64xbf16> to vector<64x64xbf16>
    %cst_67 = arith.constant dense<0.000000e+00> : vector<12x64xf32>
    %129 = tpu.matmul %126, %128, %cst_67 {dimension_numbers = #tpu.dot_dimension_numbers<[1], [0], [0], [1], [0, 0, 1, 1], [], []>} : vector<12x64xbf16>, vector<64x64xbf16>, vector<12x64xf32> -> vector<12x64xf32>
    %130 = arith.addf %122, %129 : vector<12x64xf32>
    %c3_68 = arith.constant 3 : index
    %c0_69 = arith.constant 0 : index
    %c0_70 = arith.constant 0 : index
    %131 = vector.load %arg4[%c3_68, %c0_69, %c0_70] : memref<9x12x40xbf16, #tpu.memory_space<vmem>>, vector<1x12x40xbf16>
    %132 = vector.shape_cast %131 : vector<1x12x40xbf16> to vector<12x40xbf16>
    %cst_71 = arith.constant dense<0.000000e+00> : vector<12x64xf32>
    %133 = tpu.matmul %132, %104, %cst_71 {dimension_numbers = #tpu.dot_dimension_numbers<[1], [0], [0], [1], [0, 0, 1, 1], [], []>} : vector<12x40xbf16>, vector<40x64xbf16>, vector<12x64xf32> -> vector<12x64xf32>
    %134 = arith.truncf %133 : vector<12x64xf32> to vector<12x64xbf16>
    %c3_72 = arith.constant 3 : index
    %c0_73 = arith.constant 0 : index
    %c0_74 = arith.constant 0 : index
    %135 = vector.load %arg5[%c3_72, %c0_73, %c0_74] : memref<9x64x64xbf16, #tpu.memory_space<vmem>>, vector<1x64x64xbf16>
    %136 = vector.shape_cast %135 : vector<1x64x64xbf16> to vector<64x64xbf16>
    %cst_75 = arith.constant dense<0.000000e+00> : vector<12x64xf32>
    %137 = tpu.matmul %134, %136, %cst_75 {dimension_numbers = #tpu.dot_dimension_numbers<[1], [0], [0], [1], [0, 0, 1, 1], [], []>} : vector<12x64xbf16>, vector<64x64xbf16>, vector<12x64xf32> -> vector<12x64xf32>
    %138 = arith.addf %130, %137 : vector<12x64xf32>
    %c4 = arith.constant 4 : index
    %c0_76 = arith.constant 0 : index
    %c0_77 = arith.constant 0 : index
    %139 = vector.load %arg4[%c4, %c0_76, %c0_77] : memref<9x12x40xbf16, #tpu.memory_space<vmem>>, vector<1x12x40xbf16>
    %140 = vector.shape_cast %139 : vector<1x12x40xbf16> to vector<12x40xbf16>
    %cst_78 = arith.constant dense<0.000000e+00> : vector<12x64xf32>
    %141 = tpu.matmul %140, %104, %cst_78 {dimension_numbers = #tpu.dot_dimension_numbers<[1], [0], [0], [1], [0, 0, 1, 1], [], []>} : vector<12x40xbf16>, vector<40x64xbf16>, vector<12x64xf32> -> vector<12x64xf32>
    %142 = arith.truncf %141 : vector<12x64xf32> to vector<12x64xbf16>
    %c4_79 = arith.constant 4 : index
    %c0_80 = arith.constant 0 : index
    %c0_81 = arith.constant 0 : index
    %143 = vector.load %arg5[%c4_79, %c0_80, %c0_81] : memref<9x64x64xbf16, #tpu.memory_space<vmem>>, vector<1x64x64xbf16>
    %144 = vector.shape_cast %143 : vector<1x64x64xbf16> to vector<64x64xbf16>
    %cst_82 = arith.constant dense<0.000000e+00> : vector<12x64xf32>
    %145 = tpu.matmul %142, %144, %cst_82 {dimension_numbers = #tpu.dot_dimension_numbers<[1], [0], [0], [1], [0, 0, 1, 1], [], []>} : vector<12x64xbf16>, vector<64x64xbf16>, vector<12x64xf32> -> vector<12x64xf32>
    %146 = arith.addf %138, %145 : vector<12x64xf32>
    %c5 = arith.constant 5 : index
    %c0_83 = arith.constant 0 : index
    %c0_84 = arith.constant 0 : index
    %147 = vector.load %arg4[%c5, %c0_83, %c0_84] : memref<9x12x40xbf16, #tpu.memory_space<vmem>>, vector<1x12x40xbf16>
    %148 = vector.shape_cast %147 : vector<1x12x40xbf16> to vector<12x40xbf16>
    %cst_85 = arith.constant dense<0.000000e+00> : vector<12x64xf32>
    %149 = tpu.matmul %148, %104, %cst_85 {dimension_numbers = #tpu.dot_dimension_numbers<[1], [0], [0], [1], [0, 0, 1, 1], [], []>} : vector<12x40xbf16>, vector<40x64xbf16>, vector<12x64xf32> -> vector<12x64xf32>
    %150 = arith.truncf %149 : vector<12x64xf32> to vector<12x64xbf16>
    %c5_86 = arith.constant 5 : index
    %c0_87 = arith.constant 0 : index
    %c0_88 = arith.constant 0 : index
    %151 = vector.load %arg5[%c5_86, %c0_87, %c0_88] : memref<9x64x64xbf16, #tpu.memory_space<vmem>>, vector<1x64x64xbf16>
    %152 = vector.shape_cast %151 : vector<1x64x64xbf16> to vector<64x64xbf16>
    %cst_89 = arith.constant dense<0.000000e+00> : vector<12x64xf32>
    %153 = tpu.matmul %150, %152, %cst_89 {dimension_numbers = #tpu.dot_dimension_numbers<[1], [0], [0], [1], [0, 0, 1, 1], [], []>} : vector<12x64xbf16>, vector<64x64xbf16>, vector<12x64xf32> -> vector<12x64xf32>
    %154 = arith.addf %146, %153 : vector<12x64xf32>
    %c6 = arith.constant 6 : index
    %c0_90 = arith.constant 0 : index
    %c0_91 = arith.constant 0 : index
    %155 = vector.load %arg4[%c6, %c0_90, %c0_91] : memref<9x12x40xbf16, #tpu.memory_space<vmem>>, vector<1x12x40xbf16>
    %156 = vector.shape_cast %155 : vector<1x12x40xbf16> to vector<12x40xbf16>
    %cst_92 = arith.constant dense<0.000000e+00> : vector<12x64xf32>
    %157 = tpu.matmul %156, %104, %cst_92 {dimension_numbers = #tpu.dot_dimension_numbers<[1], [0], [0], [1], [0, 0, 1, 1], [], []>} : vector<12x40xbf16>, vector<40x64xbf16>, vector<12x64xf32> -> vector<12x64xf32>
    %158 = arith.truncf %157 : vector<12x64xf32> to vector<12x64xbf16>
    %c6_93 = arith.constant 6 : index
    %c0_94 = arith.constant 0 : index
    %c0_95 = arith.constant 0 : index
    %159 = vector.load %arg5[%c6_93, %c0_94, %c0_95] : memref<9x64x64xbf16, #tpu.memory_space<vmem>>, vector<1x64x64xbf16>
    %160 = vector.shape_cast %159 : vector<1x64x64xbf16> to vector<64x64xbf16>
    %cst_96 = arith.constant dense<0.000000e+00> : vector<12x64xf32>
    %161 = tpu.matmul %158, %160, %cst_96 {dimension_numbers = #tpu.dot_dimension_numbers<[1], [0], [0], [1], [0, 0, 1, 1], [], []>} : vector<12x64xbf16>, vector<64x64xbf16>, vector<12x64xf32> -> vector<12x64xf32>
    %162 = arith.addf %154, %161 : vector<12x64xf32>
    %c7 = arith.constant 7 : index
    %c0_97 = arith.constant 0 : index
    %c0_98 = arith.constant 0 : index
    %163 = vector.load %arg4[%c7, %c0_97, %c0_98] : memref<9x12x40xbf16, #tpu.memory_space<vmem>>, vector<1x12x40xbf16>
    %164 = vector.shape_cast %163 : vector<1x12x40xbf16> to vector<12x40xbf16>
    %cst_99 = arith.constant dense<0.000000e+00> : vector<12x64xf32>
    %165 = tpu.matmul %164, %104, %cst_99 {dimension_numbers = #tpu.dot_dimension_numbers<[1], [0], [0], [1], [0, 0, 1, 1], [], []>} : vector<12x40xbf16>, vector<40x64xbf16>, vector<12x64xf32> -> vector<12x64xf32>
    %166 = arith.truncf %165 : vector<12x64xf32> to vector<12x64xbf16>
    %c7_100 = arith.constant 7 : index
    %c0_101 = arith.constant 0 : index
    %c0_102 = arith.constant 0 : index
    %167 = vector.load %arg5[%c7_100, %c0_101, %c0_102] : memref<9x64x64xbf16, #tpu.memory_space<vmem>>, vector<1x64x64xbf16>
    %168 = vector.shape_cast %167 : vector<1x64x64xbf16> to vector<64x64xbf16>
    %cst_103 = arith.constant dense<0.000000e+00> : vector<12x64xf32>
    %169 = tpu.matmul %166, %168, %cst_103 {dimension_numbers = #tpu.dot_dimension_numbers<[1], [0], [0], [1], [0, 0, 1, 1], [], []>} : vector<12x64xbf16>, vector<64x64xbf16>, vector<12x64xf32> -> vector<12x64xf32>
    %170 = arith.addf %162, %169 : vector<12x64xf32>
    %c8 = arith.constant 8 : index
    %c0_104 = arith.constant 0 : index
    %c0_105 = arith.constant 0 : index
    %171 = vector.load %arg4[%c8, %c0_104, %c0_105] : memref<9x12x40xbf16, #tpu.memory_space<vmem>>, vector<1x12x40xbf16>
    %172 = vector.shape_cast %171 : vector<1x12x40xbf16> to vector<12x40xbf16>
    %cst_106 = arith.constant dense<0.000000e+00> : vector<12x64xf32>
    %173 = tpu.matmul %172, %104, %cst_106 {dimension_numbers = #tpu.dot_dimension_numbers<[1], [0], [0], [1], [0, 0, 1, 1], [], []>} : vector<12x40xbf16>, vector<40x64xbf16>, vector<12x64xf32> -> vector<12x64xf32>
    %174 = arith.truncf %173 : vector<12x64xf32> to vector<12x64xbf16>
    %c8_107 = arith.constant 8 : index
    %c0_108 = arith.constant 0 : index
    %c0_109 = arith.constant 0 : index
    %175 = vector.load %arg5[%c8_107, %c0_108, %c0_109] : memref<9x64x64xbf16, #tpu.memory_space<vmem>>, vector<1x64x64xbf16>
    %176 = vector.shape_cast %175 : vector<1x64x64xbf16> to vector<64x64xbf16>
    %cst_110 = arith.constant dense<0.000000e+00> : vector<12x64xf32>
    %177 = tpu.matmul %174, %176, %cst_110 {dimension_numbers = #tpu.dot_dimension_numbers<[1], [0], [0], [1], [0, 0, 1, 1], [], []>} : vector<12x64xbf16>, vector<64x64xbf16>, vector<12x64xf32> -> vector<12x64xf32>
    %178 = arith.addf %170, %177 : vector<12x64xf32>
    %179 = vector.broadcast %105 : vector<1x64xf32> to vector<12x64xf32>
    %180 = arith.addf %178, %179 : vector<12x64xf32>
    %cst_111 = arith.constant 0.000000e+00 : f32
    %181 = vector.broadcast %cst_111 : f32 to vector<12x64xf32>
    %182 = arith.maximumf %180, %181 : vector<12x64xf32>
    %cst_112 = arith.constant dense<0.000000e+00> : vector<64xf32>
    %183 = vector.multi_reduction <add>, %182, %cst_112 [0] : vector<12x64xf32> to vector<64xf32>
    %184 = vector.shape_cast %183 : vector<64xf32> to vector<1x64xf32>
    %cst_113 = arith.constant 0.0833333358 : f32
    %185 = vector.broadcast %cst_113 : f32 to vector<1x64xf32>
    %186 = arith.mulf %184, %185 : vector<1x64xf32>
    %187 = arith.mulf %182, %182 : vector<12x64xf32>
    %cst_114 = arith.constant dense<0.000000e+00> : vector<64xf32>
    %188 = vector.multi_reduction <add>, %187, %cst_114 [0] : vector<12x64xf32> to vector<64xf32>
    %189 = vector.shape_cast %188 : vector<64xf32> to vector<1x64xf32>
    %cst_115 = arith.constant 0.0833333358 : f32
    %190 = vector.broadcast %cst_115 : f32 to vector<1x64xf32>
    %191 = arith.mulf %189, %190 : vector<1x64xf32>
    %192 = arith.mulf %186, %186 : vector<1x64xf32>
    %193 = arith.subf %191, %192 : vector<1x64xf32>
    %cst_116 = arith.constant 0.000000e+00 : f32
    %194 = vector.broadcast %cst_116 : f32 to vector<1x64xf32>
    %195 = arith.maximumf %193, %194 : vector<1x64xf32>
    %c1_117 = arith.constant 1 : index
    %c0_118 = arith.constant 0 : index
    %196 = vector.load %arg6[%c1_117, %c0_118] : memref<3x64xf32, #tpu.memory_space<vmem>>, vector<1x64xf32>
    %cst_119 = arith.constant 9.99999974E-6 : f32
    %197 = vector.broadcast %cst_119 : f32 to vector<1x64xf32>
    %198 = arith.addf %195, %197 : vector<1x64xf32>
    %199 = math.rsqrt %198 : vector<1x64xf32>
    %200 = arith.mulf %196, %199 : vector<1x64xf32>
    %c2_120 = arith.constant 2 : index
    %c0_121 = arith.constant 0 : index
    %201 = vector.load %arg6[%c2_120, %c0_121] : memref<3x64xf32, #tpu.memory_space<vmem>>, vector<1x64xf32>
    %202 = arith.mulf %186, %200 : vector<1x64xf32>
    %203 = arith.subf %201, %202 : vector<1x64xf32>
    %204 = vector.broadcast %200 : vector<1x64xf32> to vector<12x64xf32>
    %205 = arith.mulf %204, %182 : vector<12x64xf32>
    %206 = vector.broadcast %203 : vector<1x64xf32> to vector<12x64xf32>
    %207 = arith.addf %205, %206 : vector<12x64xf32>
    %208 = vector.extract_strided_slice %207 {offsets = [0, 0], sizes = [2, 64], strides = [1, 1]} : vector<12x64xf32> to vector<2x64xf32>
    %209 = vector.extract_strided_slice %207 {offsets = [2, 0], sizes = [2, 64], strides = [1, 1]} : vector<12x64xf32> to vector<2x64xf32>
    %210 = arith.maximumf %208, %209 : vector<2x64xf32>
    %211 = vector.extract_strided_slice %207 {offsets = [4, 0], sizes = [2, 64], strides = [1, 1]} : vector<12x64xf32> to vector<2x64xf32>
    %212 = vector.extract_strided_slice %207 {offsets = [6, 0], sizes = [2, 64], strides = [1, 1]} : vector<12x64xf32> to vector<2x64xf32>
    %213 = arith.maximumf %211, %212 : vector<2x64xf32>
    %214 = arith.maximumf %210, %213 : vector<2x64xf32>
    %215 = arith.truncf %214 : vector<2x64xf32> to vector<2x64xbf16>
    %c0_122 = arith.constant 0 : index
    %c0_123 = arith.constant 0 : index
    %216 = vector.load %arg7[%c0_122, %c0_123] : memref<64x512xbf16, #tpu.memory_space<vmem>>, vector<64x512xbf16>
    %cst_124 = arith.constant dense<0.000000e+00> : vector<2x512xf32>
    %217 = tpu.matmul %215, %216, %cst_124 {dimension_numbers = #tpu.dot_dimension_numbers<[1], [0], [0], [1], [0, 0, 1, 1], [], []>} : vector<2x64xbf16>, vector<64x512xbf16>, vector<2x512xf32> -> vector<2x512xf32>
    %c0_125 = arith.constant 0 : index
    %c0_126 = arith.constant 0 : index
    %218 = vector.load %arg8[%c0_125, %c0_126] : memref<1x512xf32, #tpu.memory_space<vmem>>, vector<1x512xf32>
    %219 = vector.broadcast %218 : vector<1x512xf32> to vector<2x512xf32>
    %220 = arith.addf %217, %219 : vector<2x512xf32>
    %cst_127 = arith.constant 0.000000e+00 : f32
    %221 = vector.broadcast %cst_127 : f32 to vector<2x512xf32>
    %222 = arith.maximumf %220, %221 : vector<2x512xf32>
    %c0_128 = arith.constant 0 : index
    %c0_129 = arith.constant 0 : index
    %223 = vector.load %arg9[%c0_128, %c0_129] : memref<1x512xf32, #tpu.memory_space<vmem>>, vector<1x512xf32>
    %224 = vector.broadcast %223 : vector<1x512xf32> to vector<2x512xf32>
    %225 = arith.mulf %222, %224 : vector<2x512xf32>
    %cst_130 = arith.constant dense<0.000000e+00> : vector<2xf32>
    %226 = vector.multi_reduction <add>, %225, %cst_130 [1] : vector<2x512xf32> to vector<2xf32>
    %227 = vector.shape_cast %226 : vector<2xf32> to vector<2x1xf32>
    %c0_131 = arith.constant 0 : index
    %c0_132 = arith.constant 0 : index
    %228 = vector.load %arg10[%c0_131, %c0_132] : memref<1x1xf32, #tpu.memory_space<vmem>>, vector<1x1xf32>
    %229 = vector.broadcast %228 : vector<1x1xf32> to vector<2x1xf32>
    %230 = arith.addf %227, %229 : vector<2x1xf32>
    %c0_133 = arith.constant 0 : index
    %c0_134 = arith.constant 0 : index
    %231 = vector.load %arg11[%c0_133, %c0_134] : memref<2x1xf32, #tpu.memory_space<vmem>>, vector<2x1xf32>
    tpu.vector_store %arg11[%c0_133, %c0_134], %230 {strides = array<i32>} : memref<2x1xf32, #tpu.memory_space<vmem>>, vector<2x1xf32>,
    return
  }
}

</mosaic_0001>

<bundles_post_ra>
// kernel: critic_forward.2
= control target key start
LH: loop header
LB: loop body
LE: loop exit
PB: predicated region body
PF: predicated region fallthrough
CT: control target
= control target key end

     0   :  { %s5076_s12 = smov 0   ;;  %s7837_s0 = inlined_call_operand.vmem [shape: bf16[4096,192], index: 0, kind: input, shape index: {}]   ;;  %s7838_s1 = inlined_call_operand.vmem [shape: bf16[192,32], index: 1, kind: input, shape index: {}]   ;;  %s7839_s2 = inlined_call_operand.vmem [shape: f32[3,32], index: 2, kind: input, shape index: {}]   ;;  %s7840_s3 = inlined_call_operand.vmem [shape: f32[960,32], index: 3, kind: output, shape index: {}]  }
   0x1 LB: > { %s5082_s13 = sadd.s32 4294967295, %s5052_s12   ;;  %p4613_p0 = scmp.ge.s32.totalorder %s5052_s12, 1  ;;  %s5052_s12 = sphi %s5076_s12, %s13_s12  }
   0x2   : > { %p134_p1 = scmp.lt.s32.totalorder %s5052_s12, 5 }
   0x4   : > { %p135_p2 = pnand %p4613_p0, %p134_p1 }
   0x6   : > { %138 = sbr.rel (%p135_p2) target bundleno = 1053 (0x41d), region = 32 }
   0xd   : > { %s4614_s14 = sshll.u32 %s5082_s13, 7  ;;  %v5090_v0 = vld [vmem:[%s7839_s2] sm:$0x1]  ;;  %p4617_p4 = scmp.ne.s32.totalorder %s5082_s13, 0 }
   0xe   : > { %7878 = vst [vmem:[#allocation5_spill] sm:$0xff] %v5090_v0  ;;  %p155_p3 = scmp.lt.s32.totalorder %s4614_s14, 511  ;;  %vm167_vm0 = vcmask (!%p4617_p4), 253952   ;;  %v5054_v1 = vmov (!%p4617_p4), 0.0  }
   0xf   : > { %166 = sbr.rel (%p4617_p4) target bundleno = 22 (0x16), region = 36  ;;  %168 = vst.msk [vmem:[#allocation3] sm:$0x1] (!%p4617_p4), %vm167_vm0, %v5054_v1  ;;  %169 = vst.msk [vmem:[#allocation4] sm:$0x1] (!%p4617_p4), %vm167_vm0, %v5054_v1 }
  0x10   : > { %s7917_s14 = smov (!%p155_p3, %s4614_s14), 511 }
  0x11   : > { %s4826_s17 = sshll.u32 %s7917_s14, 3 }
  0x12   : > { %s5095_s20 = scalar_lea.vmem %s7837_s0, %s4826_s17 }
  0x16 PF: > { %v4861_v2 = vld [vmem:[%s7838_s1] sm:$0xff]   ;;  %v5055_v3 = vmov 0   ;;  %v4862_v4 = vld [vmem:[%s7838_s1 + $0x8] sm:$0xff]   ;;  %v4863_v5 = vld [vmem:[%s7838_s1 + $0x10] sm:$0xff]   ;;  %vm974_vm1 = vcmask 523264   ;;  %s4822_s21 = sshll.u32 %s5082_s13, 10 }
  0x17   : > { %1167 = vmatprep.subr.bf16.mxu0 %v5055_v3  ;;  %4827 = vmatprep.subr.bf16.mxu1 %v5055_v3  ;;  %v4864_v6 = vld [vmem:[%s7838_s1 + $0x18] sm:$0xff]   ;;  %v4875_v7 = vld [vmem:[%s5095_s20 + $0x4] ss:$8 sps:$4 sm:$0xff]   ;;  %v4867_v10 = vld [vmem:[%s7838_s1 + $0x30] sm:$0xff]   ;;  %vm1841_vm2 = vcmask 261120   ;;  %s5333_s22 = scalar_lea.vmem [#allocation2], %s4822_s21 }
  0x18   : > { %1168 = vmatpush1.bf16.msra.mxu0 %v4861_v2  ;;  %4839 = vmatpush1.bf16.msra.mxu1 %v4861_v2  ;;  %v4865_v8 = vld [vmem:[%s7838_s1 + $0x20] sm:$0xff]   ;;  %v4866_v9 = vld [vmem:[%s7838_s1 + $0x28] sm:$0xff]   ;;  %v4868_v11 = vld [vmem:[%s7838_s1 + $0x38] sm:$0xff]   ;;  %vm2104_vm3 = vcmask 253952   ;;  %p4823_p5 = scmp.ne.s32.totalorder %s5082_s13, 3 }
  0x19   : > { %1169 = vmatprep.subr.bf16.mxu0 %v5055_v3  ;;  %4828 = vmatprep.subr.bf16.mxu1 %v5055_v3  ;;  %v4869_v12 = vld [vmem:[%s7838_s1 + $0x40] sm:$0xff]   ;;  %v4870_v13 = vld [vmem:[%s7838_s1 + $0x48] sm:$0xff]   ;;  %v4871_v14 = vld [vmem:[%s7838_s1 + $0x50] sm:$0xff]  }
  0x1a   : > { %4758 = vmatprep.mubr.msk.bf16.mxu0 %vm974_vm1, %v4875_v7  ;;  %v4923_v15 = vld [vmem:[%s5095_s20 + $0x204] ss:$8 sps:$4 sm:$0xff]   ;;  %v4872_v16 = vld [vmem:[%s7838_s1 + $0x58] sm:$0xff]   ;;  %v4873_v17 = vld [vmem:[%s5095_s20] ss:$8 sps:$4 sm:$0xff]  }
  0x1b   : > { %v4921_v18 = vld [vmem:[%s5095_s20 + $0x200] ss:$8 sps:$4 sm:$0xff]   ;;  %v4876_v19 = vld [vmem:[%s5095_s20 + $0x14] ss:$8 sps:$4 sm:$0xff]   ;;  %4790 = vmatprep.mubr.msk.bf16.mxu1 %vm974_vm1, %v4923_v15  ;;  %v4878_v21 = vld [vmem:[%s5095_s20 + $0x10] ss:$8 sps:$4 sm:$0xff]  }
  0x1c   : > { %1170 = vmatpush1.bf16.msra.mxu0 %v4862_v4  ;;  %4840 = vmatpush1.bf16.msra.mxu1 %v4862_v4  ;;  %v4927_v20 = vld [vmem:[%s5095_s20 + $0x214] ss:$8 sps:$4 sm:$0xff]   ;;  %v4929_v22 = vld [vmem:[%s5095_s20 + $0x210] ss:$8 sps:$4 sm:$0xff]   ;;  %v4879_v23 = vld [vmem:[%s5095_s20 + $0x24] ss:$8 sps:$4 sm:$0xff]  }
  0x1d   : > { %1171 = vmatprep.subr.bf16.mxu0 %v5055_v3  ;;  %4829 = vmatprep.subr.bf16.mxu1 %v5055_v3  ;;  %v4933_v24 = vld [vmem:[%s5095_s20 + $0x224] ss:$8 sps:$4 sm:$0xff]   ;;  %v4881_v25 = vld [vmem:[%s5095_s20 + $0x20] ss:$8 sps:$4 sm:$0xff]   ;;  %v4882_v27 = vld [vmem:[%s5095_s20 + $0x34] ss:$8 sps:$4 sm:$0xff]  }
  0x1e   : > { %v4935_v26 = vld [vmem:[%s5095_s20 + $0x220] ss:$8 sps:$4 sm:$0xff]   ;;  %v4939_v28 = vld [vmem:[%s5095_s20 + $0x234] ss:$8 sps:$4 sm:$0xff]   ;;  %v4884_v29 = vld [vmem:[%s5095_s20 + $0x30] ss:$8 sps:$4 sm:$0xff]  }
  0x1f   : > { %v4941_v30 = vld [vmem:[%s5095_s20 + $0x230] ss:$8 sps:$4 sm:$0xff]   ;;  %v4885_v31 = vld [vmem:[%s5095_s20 + $0x44] ss:$8 sps:$4 sm:$0xff]   ;;  %v4887_v33 = vld [vmem:[%s5095_s20 + $0x40] ss:$8 sps:$4 sm:$0xff]  }
  0x20   : > { %1172 = vmatpush1.bf16.msra.mxu0 %v4863_v5  ;;  %4841 = vmatpush1.bf16.msra.mxu1 %v4863_v5  ;;  %v4945_v32 = vld [vmem:[%s5095_s20 + $0x244] ss:$8 sps:$4 sm:$0xff]   ;;  %v4947_v34 = vld [vmem:[%s5095_s20 + $0x240] ss:$8 sps:$4 sm:$0xff]   ;;  %v4888_v35 = vld [vmem:[%s5095_s20 + $0x54] ss:$8 sps:$4 sm:$0xff]  }
  0x21   : > { %1173 = vmatprep.subr.bf16.mxu0 %v5055_v3  ;;  %4830 = vmatprep.subr.bf16.mxu1 %v5055_v3  ;;  %v4951_v36 = vld [vmem:[%s5095_s20 + $0x254] ss:$8 sps:$4 sm:$0xff]   ;;  %v4890_v37 = vld [vmem:[%s5095_s20 + $0x50] ss:$8 sps:$4 sm:$0xff]   ;;  %v4891_v39 = vld [vmem:[%s5095_s20 + $0x64] ss:$8 sps:$4 sm:$0xff]  }
  0x22   : > { %v4953_v38 = vld [vmem:[%s5095_s20 + $0x250] ss:$8 sps:$4 sm:$0xff]   ;;  %v4957_v40 = vld [vmem:[%s5095_s20 + $0x264] ss:$8 sps:$4 sm:$0xff]   ;;  %v4893_v41 = vld [vmem:[%s5095_s20 + $0x60] ss:$8 sps:$4 sm:$0xff]  }
  0x23   : > { %v4959_v42 = vld [vmem:[%s5095_s20 + $0x260] ss:$8 sps:$4 sm:$0xff]   ;;  %v4894_v43 = vld [vmem:[%s5095_s20 + $0x74] ss:$8 sps:$4 sm:$0xff]   ;;  %v4896_v45 = vld [vmem:[%s5095_s20 + $0x70] ss:$8 sps:$4 sm:$0xff]  }
  0x24   : > { %1174 = vmatpush1.bf16.msra.mxu0 %v4864_v6  ;;  %4842 = vmatpush1.bf16.msra.mxu1 %v4864_v6  ;;  %v4963_v44 = vld [vmem:[%s5095_s20 + $0x274] ss:$8 sps:$4 sm:$0xff]   ;;  %v4965_v46 = vld [vmem:[%s5095_s20 + $0x270] ss:$8 sps:$4 sm:$0xff]   ;;  %v4897_v47 = vld [vmem:[%s5095_s20 + $0x84] ss:$8 sps:$4 sm:$0xff]  }
  0x25   : > { %1175 = vmatprep.subr.bf16.mxu0 %v5055_v3  ;;  %4831 = vmatprep.subr.bf16.mxu1 %v5055_v3  ;;  %v4969_v48 = vld [vmem:[%s5095_s20 + $0x284] ss:$8 sps:$4 sm:$0xff]   ;;  %v4899_v49 = vld [vmem:[%s5095_s20 + $0x80] ss:$8 sps:$4 sm:$0xff]   ;;  %v4900_v51 = vld [vmem:[%s5095_s20 + $0x94] ss:$8 sps:$4 sm:$0xff]  }
  0x26   : > { %v4971_v50 = vld [vmem:[%s5095_s20 + $0x280] ss:$8 sps:$4 sm:$0xff]   ;;  %v4975_v52 = vld [vmem:[%s5095_s20 + $0x294] ss:$8 sps:$4 sm:$0xff]   ;;  %v4902_v53 = vld [vmem:[%s5095_s20 + $0x90] ss:$8 sps:$4 sm:$0xff]  }
  0x27   : > { %v4977_v54 = vld [vmem:[%s5095_s20 + $0x290] ss:$8 sps:$4 sm:$0xff]   ;;  %v4903_v55 = vld [vmem:[%s5095_s20 + $0xa4] ss:$8 sps:$4 sm:$0xff]   ;;  %v4905_v57 = vld [vmem:[%s5095_s20 + $0xa0] ss:$8 sps:$4 sm:$0xff]  }
  0x28   : > { %1176 = vmatpush1.bf16.msra.mxu0 %v4865_v8  ;;  %4843 = vmatpush1.bf16.msra.mxu1 %v4865_v8  ;;  %v4981_v56 = vld [vmem:[%s5095_s20 + $0x2a4] ss:$8 sps:$4 sm:$0xff]   ;;  %v4983_v58 = vld [vmem:[%s5095_s20 + $0x2a0] ss:$8 sps:$4 sm:$0xff]   ;;  %v4906_v59 = vld [vmem:[%s5095_s20 + $0xb4] ss:$8 sps:$4 sm:$0xff]  }
  0x29   : > { %1177 = vmatprep.subr.bf16.mxu0 %v5055_v3  ;;  %4832 = vmatprep.subr.bf16.mxu1 %v5055_v3  ;;  %v256_v60 = vld [vmem:[%s5095_s20 + $0x2b0] sm:$0xff]  ;;  %v257_v61 = vld [vmem:[%s5095_s20 + $0x2b8] sm:$0xff]  ;;  %v4909_v2 = vld [vmem:[%s5095_s20 + $0xc4] ss:$8 sps:$4 sm:$0xff]  }
  0x2a   : > { %v4987_v62 = vld [vmem:[%s5095_s20 + $0x2b4] ss:$8 sps:$4 sm:$0xff]   ;;  %v4908_v63 = vld [vmem:[%s5095_s20 + $0xb0] ss:$8 sps:$4 sm:$0xff]   ;;  %v4704_v1 = vcombine.low %v256_v60, %v257_v61  ;;  %v259_v4 = vld [vmem:[%s5095_s20 + $0x2c8] sm:$0xff] }
  0x2b   : > { %v4992_v5 = vld [vmem:[%s5095_s20 + $0x2c4] ss:$8 sps:$4 sm:$0xff]   ;;  %v4911_v6 = vld [vmem:[%s5095_s20 + $0xc0] ss:$8 sps:$4 sm:$0xff]   ;;  %v4912_v8 = vld [vmem:[%s5095_s20 + $0xd4] ss:$8 sps:$4 sm:$0xff]  }
  0x2c   : > { %1178 = vmatpush1.bf16.msra.mxu0 %v4866_v9  ;;  %4844 = vmatpush1.bf16.msra.mxu1 %v4866_v9  ;;  %v260_v9 = vld [vmem:[%s5095_s20 + $0x2d0] sm:$0xff]  ;;  %v262_v15 = vld [vmem:[%s5095_s20 + $0x2e0] sm:$0xff] }
  0x2d   : > { %1179 = vmatprep.subr.bf16.mxu0 %v5055_v3  ;;  %4833 = vmatprep.subr.bf16.mxu1 %v5055_v3  ;;  %v4956_v60 = vld [vmem:[%s5095_s20 + $0x150] ss:$8 sps:$4 sm:$0xff]  }
  0x30   : > { %1180 = vmatpush1.bf16.msra.mxu0 %v4867_v10  ;;  %4845 = vmatpush1.bf16.msra.mxu1 %v4867_v10  ;;  %v261_v10 = vld [vmem:[%s5095_s20 + $0x2d8] sm:$0xff] }
  0x31   : > { %1181 = vmatprep.subr.bf16.mxu0 %v5055_v3  ;;  %4834 = vmatprep.subr.bf16.mxu1 %v5055_v3 }
  0x34   : > { %1182 = vmatpush1.bf16.msra.mxu0 %v4868_v11  ;;  %4846 = vmatpush1.bf16.msra.mxu1 %v4868_v11  ;;  %v4997_v11 = vld [vmem:[%s5095_s20 + $0x2d4] ss:$8 sps:$4 sm:$0xff]  }
  0x35   : > { %1183 = vmatprep.subr.bf16.mxu0 %v5055_v3  ;;  %4835 = vmatprep.subr.bf16.mxu1 %v5055_v3 }
  0x38   : > { %1184 = vmatpush1.bf16.msra.mxu0 %v4869_v12  ;;  %4847 = vmatpush1.bf16.msra.mxu1 %v4869_v12  ;;  %v4914_v12 = vld [vmem:[%s5095_s20 + $0xd0] ss:$8 sps:$4 sm:$0xff]  }
  0x39   : > { %1185 = vmatprep.subr.bf16.mxu0 %v5055_v3  ;;  %4836 = vmatprep.subr.bf16.mxu1 %v5055_v3 }
  0x3c   : > { %1186 = vmatpush1.bf16.msra.mxu0 %v4870_v13  ;;  %4848 = vmatpush1.bf16.msra.mxu1 %v4870_v13  ;;  %v4708_v13 = vcombine.low %v260_v9, %v261_v10  ;;  %v4968_v9 = vld [vmem:[%s5095_s20 + $0x170] ss:$8 sps:$4 sm:$0xff]  }
  0x3d   : > { %1187 = vmatprep.subr.bf16.mxu0 %v5055_v3  ;;  %4837 = vmatprep.subr.bf16.mxu1 %v5055_v3 }
  0x40   : > { %1188 = vmatpush1.bf16.msra.mxu0 %v4871_v14  ;;  %4849 = vmatpush1.bf16.msra.mxu1 %v4871_v14  ;;  %v4915_v14 = vld [vmem:[%s5095_s20 + $0xe4] ss:$8 sps:$4 sm:$0xff]  }
  0x41   : > { %1189 = vmatprep.subr.bf16.mxu0 %v5055_v3  ;;  %4838 = vmatprep.subr.bf16.mxu1 %v5055_v3  ;;  %v258_v3 = vld [vmem:[%s5095_s20 + $0x2c0] sm:$0xff] }
  0x42   : > { %v4706_v7 = vcombine.low %v258_v3, %v259_v4  ;;  %v4962_v3 = vld [vmem:[%s5095_s20 + $0x160] ss:$8 sps:$4 sm:$0xff]  }
  0x44   : > { %1190 = vmatpush1.bf16.msra.mxu0 %v4872_v16  ;;  %4850 = vmatpush1.bf16.msra.mxu1 %v4872_v16  ;;  %v263_v16 = vld [vmem:[%s5095_s20 + $0x2e8] sm:$0xff] }
  0x47   : > { %1200 = vmatmul.mubr.bf16.vlgmr.msra.gmra.mrb[0].mxu0 %v4873_v17  ;;  %1456 = vmatmul.mubr.bf16.vlgmr.msra.gmra.mrb[0].mxu1 %v4921_v18  ;;  %v5002_v17 = vld [vmem:[%s5095_s20 + $0x2e4] ss:$8 sps:$4 sm:$0xff]   ;;  %v4917_v18 = vld [vmem:[%s5095_s20 + $0xe0] ss:$8 sps:$4 sm:$0xff]  }
  0x48   : > { %4759 = vmatprep.mubr.msk.bf16.mxu0 %vm974_vm1, %v4876_v19  ;;  %4791 = vmatprep.mubr.msk.bf16.mxu1 %vm974_vm1, %v4927_v20  ;;  %v4710_v19 = vcombine.low %v262_v15, %v263_v16  ;;  %v4918_v20 = vld [vmem:[%s5095_s20 + $0xf4] ss:$8 sps:$4 sm:$0xff]   ;;  %v4974_v15 = vld [vmem:[%s5095_s20 + $0x180] ss:$8 sps:$4 sm:$0xff]  }
  0x4f   : > { %1208 = vmatmul.mubr.bf16.gmra.mrb[4].mxu0 %v4878_v21  ;;  %1464 = vmatmul.mubr.bf16.gmra.mrb[4].mxu1 %v4929_v22  ;;  %v264_v21 = vld [vmem:[%s5095_s20 + $0x2f0] sm:$0xff]  ;;  %v265_v22 = vld [vmem:[%s5095_s20 + $0x2f8] sm:$0xff] }
  0x50   : > { %4760 = vmatprep.mubr.msk.bf16.mxu0 %vm974_vm1, %v4879_v23  ;;  %4792 = vmatprep.mubr.msk.bf16.mxu1 %vm974_vm1, %v4933_v24  ;;  %v5007_v23 = vld [vmem:[%s5095_s20 + $0x2f4] ss:$8 sps:$4 sm:$0xff]   ;;  %v4920_v24 = vld [vmem:[%s5095_s20 + $0xf0] ss:$8 sps:$4 sm:$0xff]  }
  0x57   : > { %1216 = vmatmul.mubr.bf16.gmra.mrb[8].mxu0 %v4881_v25  ;;  %1472 = vmatmul.mubr.bf16.gmra.mrb[8].mxu1 %v4935_v26  ;;  %v4712_v25 = vcombine.low %v264_v21, %v265_v22  ;;  %v4924_v26 = vld [vmem:[%s5095_s20 + $0x104] ss:$8 sps:$4 sm:$0xff]   ;;  %v4980_v21 = vld [vmem:[%s5095_s20 + $0x190] ss:$8 sps:$4 sm:$0xff]   ;;  %v322_v22 = vlaneseq }
  0x58   : > { %4761 = vmatprep.mubr.msk.bf16.mxu0 %vm974_vm1, %v4882_v27  ;;  %4793 = vmatprep.mubr.msk.bf16.mxu1 %vm974_vm1, %v4939_v28  ;;  %v266_v27 = vld [vmem:[%s5095_s20 + $0x300] sm:$0xff]  ;;  %v267_v28 = vld [vmem:[%s5095_s20 + $0x308] sm:$0xff] }
  0x5f   : > { %1224 = vmatmul.mubr.bf16.gmra.mrb[12].mxu0 %v4884_v29  ;;  %1480 = vmatmul.mubr.bf16.gmra.mrb[12].mxu1 %v4941_v30  ;;  %v5012_v29 = vld [vmem:[%s5095_s20 + $0x304] ss:$8 sps:$4 sm:$0xff]   ;;  %v4926_v30 = vld [vmem:[%s5095_s20 + $0x100] ss:$8 sps:$4 sm:$0xff]  }
  0x60   : > { %4762 = vmatprep.mubr.msk.bf16.mxu0 %vm974_vm1, %v4885_v31  ;;  %4794 = vmatprep.mubr.msk.bf16.mxu1 %vm974_vm1, %v4945_v32  ;;  %v4714_v31 = vcombine.low %v266_v27, %v267_v28  ;;  %v4930_v32 = vld [vmem:[%s5095_s20 + $0x114] ss:$8 sps:$4 sm:$0xff]   ;;  %v287_v27 = vld [vmem:[%s5095_s20 + $0x3a8] sm:$0xff] }
  0x61   : > { %v5032_v28 = vld [vmem:[%s5095_s20 + $0x3a4] ss:$8 sps:$4 sm:$0xff]  }
  0x67   : > { %1232 = vmatmul.mubr.bf16.gmra.mrb[16].mxu0 %v4887_v33  ;;  %1488 = vmatmul.mubr.bf16.gmra.mrb[16].mxu1 %v4947_v34  ;;  %v268_v33 = vld [vmem:[%s5095_s20 + $0x310] sm:$0xff]  ;;  %v269_v34 = vld [vmem:[%s5095_s20 + $0x318] sm:$0xff] }
  0x68   : > { %4763 = vmatprep.mubr.msk.bf16.mxu0 %vm974_vm1, %v4888_v35  ;;  %4795 = vmatprep.mubr.msk.bf16.mxu1 %vm974_vm1, %v4951_v36  ;;  %v5014_v35 = vld [vmem:[%s5095_s20 + $0x314] ss:$8 sps:$4 sm:$0xff]   ;;  %v4932_v36 = vld [vmem:[%s5095_s20 + $0x110] ss:$8 sps:$4 sm:$0xff]  }
  0x6f   : > { %1240 = vmatmul.mubr.bf16.gmra.mrb[20].mxu0 %v4890_v37  ;;  %1496 = vmatmul.mubr.bf16.gmra.mrb[20].mxu1 %v4953_v38  ;;  %v4716_v37 = vcombine.low %v268_v33, %v269_v34  ;;  %v4936_v38 = vld [vmem:[%s5095_s20 + $0x124] ss:$8 sps:$4 sm:$0xff]   ;;  %v288_v34 = vld [vmem:[%s5095_s20 + $0x3b0] sm:$0xff] }
  0x70   : > { %4764 = vmatprep.mubr.msk.bf16.mxu0 %vm974_vm1, %v4891_v39  ;;  %4796 = vmatprep.mubr.msk.bf16.mxu1 %vm974_vm1, %v4957_v40  ;;  %v270_v39 = vld [vmem:[%s5095_s20 + $0x320] sm:$0xff]  ;;  %v271_v40 = vld [vmem:[%s5095_s20 + $0x328] sm:$0xff] }
  0x77   : > { %1248 = vmatmul.mubr.bf16.gmra.mrb[24].mxu0 %v4893_v41  ;;  %1504 = vmatmul.mubr.bf16.gmra.mrb[24].mxu1 %v4959_v42  ;;  %v5016_v41 = vld [vmem:[%s5095_s20 + $0x324] ss:$8 sps:$4 sm:$0xff]   ;;  %v4938_v42 = vld [vmem:[%s5095_s20 + $0x120] ss:$8 sps:$4 sm:$0xff]  }
  0x78   : > { %4765 = vmatprep.mubr.msk.bf16.mxu0 %vm974_vm1, %v4894_v43  ;;  %4797 = vmatprep.mubr.msk.bf16.mxu1 %vm974_vm1, %v4963_v44  ;;  %v4718_v43 = vcombine.low %v270_v39, %v271_v40  ;;  %v4942_v44 = vld [vmem:[%s5095_s20 + $0x134] ss:$8 sps:$4 sm:$0xff]  }
  0x7f   : > { %1256 = vmatmul.mubr.bf16.gmra.mrb[28].mxu0 %v4896_v45  ;;  %1512 = vmatmul.mubr.bf16.gmra.mrb[28].mxu1 %v4965_v46  ;;  %v272_v45 = vld [vmem:[%s5095_s20 + $0x330] sm:$0xff]  ;;  %v273_v46 = vld [vmem:[%s5095_s20 + $0x338] sm:$0xff] }
  0x80   : > { %4766 = vmatprep.mubr.msk.bf16.mxu0 %vm974_vm1, %v4897_v47  ;;  %4798 = vmatprep.mubr.msk.bf16.mxu1 %vm974_vm1, %v4969_v48  ;;  %v5018_v47 = vld [vmem:[%s5095_s20 + $0x334] ss:$8 sps:$4 sm:$0xff]   ;;  %v4944_v48 = vld [vmem:[%s5095_s20 + $0x130] ss:$8 sps:$4 sm:$0xff]  }
  0x87   : > { %1264 = vmatmul.mubr.bf16.gmra.mrb[32].mxu0 %v4899_v49  ;;  %1520 = vmatmul.mubr.bf16.gmra.mrb[32].mxu1 %v4971_v50  ;;  %v4720_v49 = vcombine.low %v272_v45, %v273_v46  ;;  %v4948_v50 = vld [vmem:[%s5095_s20 + $0x144] ss:$8 sps:$4 sm:$0xff]  }
  0x88   : > { %4767 = vmatprep.mubr.msk.bf16.mxu0 %vm974_vm1, %v4900_v51  ;;  %4799 = vmatprep.mubr.msk.bf16.mxu1 %vm974_vm1, %v4975_v52  ;;  %v274_v51 = vld [vmem:[%s5095_s20 + $0x340] sm:$0xff]  ;;  %v275_v52 = vld [vmem:[%s5095_s20 + $0x348] sm:$0xff] }
  0x89   : > { %v4994_v46 = vld [vmem:[%s5095_s20 + $0x1c4] ss:$8 sps:$4 sm:$0xff]  }
  0x8f   : > { %1272 = vmatmul.mubr.bf16.gmra.mrb[36].mxu0 %v4902_v53  ;;  %1528 = vmatmul.mubr.bf16.gmra.mrb[36].mxu1 %v4977_v54  ;;  %v5020_v53 = vld [vmem:[%s5095_s20 + $0x344] ss:$8 sps:$4 sm:$0xff]   ;;  %v4950_v54 = vld [vmem:[%s5095_s20 + $0x140] ss:$8 sps:$4 sm:$0xff]  }
  0x90   : > { %4768 = vmatprep.mubr.msk.bf16.mxu0 %vm974_vm1, %v4903_v55  ;;  %4800 = vmatprep.mubr.msk.bf16.mxu1 %vm974_vm1, %v4981_v56  ;;  %v4722_v55 = vcombine.low %v274_v51, %v275_v52  ;;  %v4954_v56 = vld [vmem:[%s5095_s20 + $0x154] ss:$8 sps:$4 sm:$0xff]  }
  0x97   : > { %1280 = vmatmul.mubr.bf16.gmra.mrb[40].mxu0 %v4905_v57  ;;  %1536 = vmatmul.mubr.bf16.gmra.mrb[40].mxu1 %v4983_v58  ;;  %v276_v57 = vld [vmem:[%s5095_s20 + $0x350] sm:$0xff]  ;;  %v277_v58 = vld [vmem:[%s5095_s20 + $0x358] sm:$0xff] }
  0x98   : > { %4769 = vmatprep.mubr.msk.bf16.mxu0 %vm974_vm1, %v4906_v59  ;;  %4801 = vmatprep.mubr.msk.bf16.mxu1 %vm974_vm1, %v4987_v62  ;;  %v5022_v59 = vld [vmem:[%s5095_s20 + $0x354] ss:$8 sps:$4 sm:$0xff]   ;;  %v4724_v61 = vcombine.low %v276_v57, %v277_v58  ;;  %v4960_v62 = vld [vmem:[%s5095_s20 + $0x164] ss:$8 sps:$4 sm:$0xff]  }
  0x9f   : > { %1288 = vmatmul.mubr.bf16.gmra.mrb[44].mxu0 %v4908_v63  ;;  %1544 = vmatmul.mubr.bf16.gmra.mrb[44].mxu1 %v4704_v1  ;;  %v278_v63 = vld [vmem:[%s5095_s20 + $0x360] sm:$0xff]  ;;  %v279_v1 = vld [vmem:[%s5095_s20 + $0x368] sm:$0xff] }
  0xa0   : > { %4770 = vmatprep.mubr.msk.bf16.mxu0 %vm974_vm1, %v4909_v2  ;;  %4802 = vmatprep.mubr.msk.bf16.mxu1 %vm974_vm1, %v4992_v5  ;;  %v5024_v2 = vld [vmem:[%s5095_s20 + $0x364] ss:$8 sps:$4 sm:$0xff]   ;;  %v4726_v4 = vcombine.low %v278_v63, %v279_v1  ;;  %v4966_v5 = vld [vmem:[%s5095_s20 + $0x174] ss:$8 sps:$4 sm:$0xff]  }
  0xa7   : > { %1296 = vmatmul.mubr.bf16.gmra.mrb[48].mxu0 %v4911_v6  ;;  %1552 = vmatmul.mubr.bf16.gmra.mrb[48].mxu1 %v4706_v7  ;;  %v280_v6 = vld [vmem:[%s5095_s20 + $0x370] sm:$0xff]  ;;  %v281_v7 = vld [vmem:[%s5095_s20 + $0x378] sm:$0xff] }
  0xa8   : > { %4771 = vmatprep.mubr.msk.bf16.mxu0 %vm974_vm1, %v4912_v8  ;;  %4803 = vmatprep.mubr.msk.bf16.mxu1 %vm974_vm1, %v4997_v11  ;;  %v5026_v8 = vld [vmem:[%s5095_s20 + $0x374] ss:$8 sps:$4 sm:$0xff]   ;;  %v4728_v10 = vcombine.low %v280_v6, %v281_v7  ;;  %v4972_v11 = vld [vmem:[%s5095_s20 + $0x184] ss:$8 sps:$4 sm:$0xff]   ;;  %v4996_v7 = vld [vmem:[%s5095_s20 + $0x1c0] ss:$8 sps:$4 sm:$0xff]  }
  0xaf   : > { %1304 = vmatmul.mubr.bf16.gmra.mrb[52].mxu0 %v4914_v12  ;;  %1560 = vmatmul.mubr.bf16.gmra.mrb[52].mxu1 %v4708_v13  ;;  %v282_v12 = vld [vmem:[%s5095_s20 + $0x380] sm:$0xff]  ;;  %v283_v13 = vld [vmem:[%s5095_s20 + $0x388] sm:$0xff] }
  0xb0   : > { %4772 = vmatprep.mubr.msk.bf16.mxu0 %vm974_vm1, %v4915_v14  ;;  %4804 = vmatprep.mubr.msk.bf16.mxu1 %vm974_vm1, %v5002_v17  ;;  %v5028_v14 = vld [vmem:[%s5095_s20 + $0x384] ss:$8 sps:$4 sm:$0xff]   ;;  %v4730_v16 = vcombine.low %v282_v12, %v283_v13  ;;  %v4978_v17 = vld [vmem:[%s5095_s20 + $0x194] ss:$8 sps:$4 sm:$0xff]  }
  0xb1   : > { %v4999_v13 = vld [vmem:[%s5095_s20 + $0x1d4] ss:$8 sps:$4 sm:$0xff]  }
  0xb7   : > { %1312 = vmatmul.mubr.bf16.gmra.mrb[56].mxu0 %v4917_v18  ;;  %1568 = vmatmul.mubr.bf16.gmra.mrb[56].mxu1 %v4710_v19  ;;  %v284_v18 = vld [vmem:[%s5095_s20 + $0x390] sm:$0xff]  ;;  %v285_v19 = vld [vmem:[%s5095_s20 + $0x398] sm:$0xff] }
  0xb8   : > { %4773 = vmatprep.mubr.msk.bf16.mxu0 %vm974_vm1, %v4918_v20  ;;  %4805 = vmatprep.mubr.msk.bf16.mxu1 %vm974_vm1, %v5007_v23  ;;  %v5030_v20 = vld [vmem:[%s5095_s20 + $0x394] ss:$8 sps:$4 sm:$0xff]   ;;  %v4732_v23 = vcombine.low %v284_v18, %v285_v19 }
  0xbf   : > { %1320 = vmatmul.mubr.bf16.gmra.mrb[60].mxu0 %v4920_v24  ;;  %1576 = vmatmul.mubr.bf16.gmra.mrb[60].mxu1 %v4712_v25  ;;  %v4984_v24 = vld [vmem:[%s5095_s20 + $0x1a4] ss:$8 sps:$4 sm:$0xff]   ;;  %v323_v25 = vshrl.u32 %v322_v22, 7 }
  0xc0   : > { %4774 = vmatprep.mubr.msk.bf16.mxu0 %vm974_vm1, %v4924_v26  ;;  %4806 = vmatprep.mubr.msk.bf16.mxu1 %vm974_vm1, %v5012_v29  ;;  %v286_v26 = vld [vmem:[%s5095_s20 + $0x3a0] sm:$0xff] }
  0xc1   : > { %v4986_v29 = vld [vmem:[%s5095_s20 + $0x1a0] ss:$8 sps:$4 sm:$0xff]  }
  0xc7   : > { %1328 = vmatmul.mubr.bf16.gmra.mrb[64].mxu0 %v4926_v30  ;;  %1584 = vmatmul.mubr.bf16.gmra.mrb[64].mxu1 %v4714_v31  ;;  %v5311_v30 = vsub.s32 0, %v323_v25  ;;  %v4734_v31 = vcombine.low %v286_v26, %v287_v27 }
  0xc8   : > { %4775 = vmatprep.mubr.msk.bf16.mxu0 %vm974_vm1, %v4930_v32  ;;  %4807 = vmatprep.mubr.msk.bf16.mxu1 %vm974_vm1, %v5014_v35  ;;  %v4989_v32 = vld [vmem:[%s5095_s20 + $0x1b4] ss:$8 sps:$4 sm:$0xff]  }
  0xc9   : > { %7879 = vst [vmem:[#allocation6_spill] sm:$0xff] %v5311_v30  ;;  %v5317_v33 = vrot.slane %v5090_v0, %v5311_v30  ;;  %v289_v35 = vld [vmem:[%s5095_s20 + $0x3b8] sm:$0xff] }
  0xcf   : > { %1336 = vmatmul.mubr.bf16.gmra.mrb[68].mxu0 %v4932_v36  ;;  %1592 = vmatmul.mubr.bf16.gmra.mrb[68].mxu1 %v4716_v37  ;;  %v5034_v36 = vld [vmem:[%s5095_s20 + $0x3b4] ss:$8 sps:$4 sm:$0xff]  }
  0xd0   : > { %4776 = vmatprep.mubr.msk.bf16.mxu0 %vm974_vm1, %v4936_v38  ;;  %4808 = vmatprep.mubr.msk.bf16.mxu1 %vm974_vm1, %v5016_v41  ;;  %v4991_v41 = vld [vmem:[%s5095_s20 + $0x1b0] ss:$8 sps:$4 sm:$0xff]  }
  0xd7   : > { %1344 = vmatmul.mubr.bf16.gmra.mrb[72].mxu0 %v4938_v42  ;;  %1600 = vmatmul.mubr.bf16.gmra.mrb[72].mxu1 %v4718_v43 }
  0xd8   : > { %4777 = vmatprep.mubr.msk.bf16.mxu0 %vm974_vm1, %v4942_v44  ;;  %4809 = vmatprep.mubr.msk.bf16.mxu1 %vm974_vm1, %v5018_v47  ;;  %v4736_v44 = vcombine.low %v288_v34, %v289_v35 }
  0xdf   : > { %1352 = vmatmul.mubr.bf16.gmra.mrb[76].mxu0 %v4944_v48  ;;  %1608 = vmatmul.mubr.bf16.gmra.mrb[76].mxu1 %v4720_v49 }
  0xe0   : > { %4778 = vmatprep.mubr.msk.bf16.mxu0 %vm974_vm1, %v4948_v50  ;;  %4810 = vmatprep.mubr.msk.bf16.mxu1 %vm974_vm1, %v5020_v53 }
  0xe7   : > { %1360 = vmatmul.mubr.bf16.gmra.mrb[80].mxu0 %v4950_v54  ;;  %1616 = vmatmul.mubr.bf16.gmra.mrb[80].mxu1 %v4722_v55 }
  0xe8   : > { %4779 = vmatprep.mubr.msk.bf16.mxu0 %vm974_vm1, %v4954_v56  ;;  %4811 = vmatprep.mubr.msk.bf16.mxu1 %vm974_vm1, %v5022_v59 }
  0xef   : > { %1368 = vmatmul.mubr.bf16.gmra.mrb[84].mxu0 %v4956_v60  ;;  %1624 = vmatmul.mubr.bf16.gmra.mrb[84].mxu1 %v4724_v61  ;;  %v290_v60 = vld [vmem:[%s5095_s20 + $0x3c0] sm:$0xff]  ;;  %v291_v61 = vld [vmem:[%s5095_s20 + $0x3c8] sm:$0xff] }
  0xf0   : > { %4780 = vmatprep.mubr.msk.bf16.mxu0 %vm974_vm1, %v4960_v62  ;;  %4812 = vmatprep.mubr.msk.bf16.mxu1 %vm974_vm1, %v5024_v2  ;;  %v5036_v62 = vld [vmem:[%s5095_s20 + $0x3c4] ss:$8 sps:$4 sm:$0xff]  }
  0xf7   : > { %1376 = vmatmul.mubr.bf16.gmra.mrb[88].mxu0 %v4962_v3  ;;  %1632 = vmatmul.mubr.bf16.gmra.mrb[88].mxu1 %v4726_v4 }
  0xf8   : > { %4781 = vmatprep.mubr.msk.bf16.mxu0 %vm974_vm1, %v4966_v5  ;;  %4813 = vmatprep.mubr.msk.bf16.mxu1 %vm974_vm1, %v5026_v8 }
  0xff   : > { %1384 = vmatmul.mubr.bf16.gmra.mrb[92].mxu0 %v4968_v9  ;;  %1640 = vmatmul.mubr.bf16.gmra.mrb[92].mxu1 %v4728_v10  ;;  %v4738_v10 = vcombine.low %v290_v60, %v291_v61 }
 0x100   : > { %4782 = vmatprep.mubr.msk.bf16.mxu0 %vm974_vm1, %v4972_v11  ;;  %4814 = vmatprep.mubr.msk.bf16.mxu1 %vm974_vm1, %v5028_v14 }
 0x107   : > { %1392 = vmatmul.mubr.bf16.gmra.mrb[96].mxu0 %v4974_v15  ;;  %1648 = vmatmul.mubr.bf16.gmra.mrb[96].mxu1 %v4730_v16 }
 0x108   : > { %4783 = vmatprep.mubr.msk.bf16.mxu0 %vm974_vm1, %v4978_v17  ;;  %4815 = vmatprep.mubr.msk.bf16.mxu1 %vm974_vm1, %v5030_v20 }
 0x10f   : > { %1400 = vmatmul.mubr.bf16.gmra.mrb[100].mxu0 %v4980_v21  ;;  %1656 = vmatmul.mubr.bf16.gmra.mrb[100].mxu1 %v4732_v23 }
 0x110   : > { %4784 = vmatprep.mubr.msk.bf16.mxu0 %vm974_vm1, %v4984_v24  ;;  %4816 = vmatprep.mubr.msk.bf16.mxu1 %vm974_vm1, %v5032_v28 }
 0x117   : > { %1408 = vmatmul.mubr.bf16.gmra.mrb[104].mxu0 %v4986_v29  ;;  %1664 = vmatmul.mubr.bf16.gmra.mrb[104].mxu1 %v4734_v31  ;;  %v292_v29 = vld [vmem:[%s5095_s20 + $0x3d0] sm:$0xff]  ;;  %v293_v31 = vld [vmem:[%s5095_s20 + $0x3d8] sm:$0xff] }
 0x118   : > { %4785 = vmatprep.mubr.msk.bf16.mxu0 %vm974_vm1, %v4989_v32  ;;  %4817 = vmatprep.mubr.msk.bf16.mxu1 %vm974_vm1, %v5034_v36  ;;  %v5038_v32 = vld [vmem:[%s5095_s20 + $0x3d4] ss:$8 sps:$4 sm:$0xff]  }
 0x11a   : > { %v1201_v37 = vpop.f32.mrb[0].mxu0  ;;  %v1457_v38 = vpop.f32.mrb[0].mxu1 }
 0x11b   : > { %v1202_v39 = vadd.f32 %v1201_v37, %v5317_v33  ;;  %v1203_v40 = vpop.f32.mrb[1].mxu0  ;;  %v1458_v42 = vadd.f32 %v1457_v38, %v5317_v33  ;;  %v1459_v43 = vpop.f32.mrb[1].mxu1 }
 0x11c   : > { %v1204_v45 = vpop.f32.mrb[2].mxu0  ;;  %v1460_v47 = vpop.f32.mrb[2].mxu1 }
 0x11d   : > { %v1712_v48 = vmax.f32 %v1202_v39, 0.0  ;;  %v1205_v49 = vadd.f32 %v1204_v45, %v5317_v33  ;;  %v1206_v50 = vpop.f32.mrb[3].mxu0  ;;  %v5330_v51 = vmax.f32 %v1458_v42, 0.0  ;;  %v1461_v52 = vadd.f32 %v1460_v47, %v5317_v33  ;;  %v1462_v53 = vpop.f32.mrb[3].mxu1 }
 0x11f   : > { %v2107_v54 = vmul.f32 %v1712_v48, %v1712_v48  ;;  %2500 = vst.msk [vmem:[%s5333_s22] sm:$0xff] %vm1841_vm2, %v1712_v48  ;;  %v1713_v55 = vmax.f32 %v1205_v49, 0.0  ;;  %1416 = vmatmul.mubr.bf16.gmra.mrb[108].mxu0 %v4991_v41  ;;  %2564 = vst.msk [vmem:[%s5333_s22 + $0x200] sm:$0xff] %vm1841_vm2, %v5330_v51  ;;  %1672 = vmatmul.mubr.bf16.gmra.mrb[108].mxu1 %v4736_v44  ;;  %v5341_v56 = vmax.f32 %v1461_v52, 0.0  ;;  %v1842_v57 = vsel %vm1841_vm2, %v1712_v48, 0.0 }
 0x120   : > { %4786 = vmatprep.mubr.msk.bf16.mxu0 %vm974_vm1, %v4994_v46  ;;  %4818 = vmatprep.mubr.msk.bf16.mxu1 %vm974_vm1, %v5036_v62  ;;  %v5001_v41 = vld [vmem:[%s5095_s20 + $0x1d0] ss:$8 sps:$4 sm:$0xff]   ;;  %v5004_v46 = vld [vmem:[%s5095_s20 + $0x1e4] ss:$8 sps:$4 sm:$0xff]   ;;  %v4740_v48 = vcombine.low %v292_v29, %v293_v31 }
 0x121   : > { %v1843_v58 = vsel %vm1841_vm2, %v1713_v55, 0.0  ;;  %v2108_v59 = vmul.f32 %v1713_v55, %v1713_v55  ;;  %2501 = vst.msk [vmem:[%s5333_s22 + $0x8] sm:$0xff] %vm1841_vm2, %v1713_v55  ;;  %v2235_v63 = vsel %vm1841_vm2, %v2107_v54, 0.0  ;;  %2565 = vst.msk [vmem:[%s5333_s22 + $0x208] sm:$0xff] %vm1841_vm2, %v5341_v56 }
 0x122   : > { %v1844_v1 = vadd.f32 %v1843_v58, %v1842_v57  ;;  %v1209_v2 = vpop.f32.mrb[4].mxu0  ;;  %v1465_v3 = vpop.f32.mrb[4].mxu1 }
 0x123   : > { %v2236_v4 = vsel %vm1841_vm2, %v2108_v59, 0.0  ;;  %v1210_v5 = vadd.f32 %v1209_v2, %v5317_v33  ;;  %v1211_v6 = vpop.f32.mrb[5].mxu0  ;;  %v1466_v8 = vadd.f32 %v1465_v3, %v5317_v33  ;;  %v1467_v9 = vpop.f32.mrb[5].mxu1  ;;  %v294_v2 = vld [vmem:[%s5095_s20 + $0x3e0] sm:$0xff]  ;;  %v295_v3 = vld [vmem:[%s5095_s20 + $0x3e8] sm:$0xff] }
 0x124   : > { %v2237_v11 = vadd.f32 %v2236_v4, %v2235_v63  ;;  %v1212_v12 = vpop.f32.mrb[6].mxu0  ;;  %v1468_v14 = vpop.f32.mrb[6].mxu1  ;;  %v5040_v4 = vld [vmem:[%s5095_s20 + $0x3e4] ss:$8 sps:$4 sm:$0xff]  }
 0x125   : > { %v1714_v15 = vmax.f32 %v1210_v5, 0.0  ;;  %v1213_v16 = vadd.f32 %v1212_v12, %v5317_v33  ;;  %v1214_v17 = vpop.f32.mrb[7].mxu0  ;;  %v5361_v18 = vmax.f32 %v1466_v8, 0.0  ;;  %v1469_v19 = vadd.f32 %v1468_v14, %v5317_v33  ;;  %v1470_v20 = vpop.f32.mrb[7].mxu1  ;;  %v5006_v12 = vld [vmem:[%s5095_s20 + $0x1e0] ss:$8 sps:$4 sm:$0xff]  }
 0x126   : > { %v5009_v17 = vld [vmem:[%s5095_s20 + $0x1f4] ss:$8 sps:$4 sm:$0xff]   ;;  %v4742_v20 = vcombine.low %v294_v2, %v295_v3 }
 0x127   : > { %v1845_v21 = vsel %vm1841_vm2, %v1714_v15, 0.0  ;;  %v2109_v22 = vmul.f32 %v1714_v15, %v1714_v15  ;;  %2502 = vst.msk [vmem:[%s5333_s22 + $0x10] sm:$0xff] %vm1841_vm2, %v1714_v15  ;;  %v1715_v23 = vmax.f32 %v1213_v16, 0.0  ;;  %1424 = vmatmul.mubr.bf16.gmra.mrb[112].mxu0 %v4996_v7  ;;  %2566 = vst.msk [vmem:[%s5333_s22 + $0x210] sm:$0xff] %vm1841_vm2, %v5361_v18  ;;  %1680 = vmatmul.mubr.bf16.gmra.mrb[112].mxu1 %v4738_v10  ;;  %v5371_v25 = vmax.f32 %v1469_v19, 0.0 }
 0x128   : > { %v1846_v24 = vadd.f32 %v1845_v21, %v1844_v1  ;;  %4787 = vmatprep.mubr.msk.bf16.mxu0 %vm974_vm1, %v4999_v13  ;;  %4819 = vmatprep.mubr.msk.bf16.mxu1 %vm974_vm1, %v5038_v32 }
 0x129   : > { %v2238_v26 = vsel %vm1841_vm2, %v2109_v22, 0.0  ;;  %v1847_v27 = vsel %vm1841_vm2, %v1715_v23, 0.0  ;;  %v2110_v28 = vmul.f32 %v1715_v23, %v1715_v23  ;;  %2503 = vst.msk [vmem:[%s5333_s22 + $0x18] sm:$0xff] %vm1841_vm2, %v1715_v23  ;;  %2567 = vst.msk [vmem:[%s5333_s22 + $0x218] sm:$0xff] %vm1841_vm2, %v5371_v25 }
 0x12a   : > { %v2239_v34 = vadd.f32 %v2238_v26, %v2237_v11  ;;  %v1848_v35 = vadd.f32 %v1847_v27, %v1846_v24  ;;  %v1217_v36 = vpop.f32.mrb[8].mxu0  ;;  %v1473_v37 = vpop.f32.mrb[8].mxu1 }
 0x12b   : > { %v2240_v38 = vsel %vm1841_vm2, %v2110_v28, 0.0  ;;  %v1218_v39 = vadd.f32 %v1217_v36, %v5317_v33  ;;  %v1219_v40 = vpop.f32.mrb[9].mxu0  ;;  %v1474_v42 = vadd.f32 %v1473_v37, %v5317_v33  ;;  %v1475_v43 = vpop.f32.mrb[9].mxu1 }
 0x12c   : > { %v2241_v44 = vadd.f32 %v2240_v38, %v2239_v34  ;;  %v1220_v45 = vpop.f32.mrb[10].mxu0  ;;  %v1476_v47 = vpop.f32.mrb[10].mxu1  ;;  %v296_v38 = vld [vmem:[%s5095_s20 + $0x3f0] sm:$0xff] }
 0x12d   : > { %v1716_v49 = vmax.f32 %v1218_v39, 0.0  ;;  %v1221_v50 = vadd.f32 %v1220_v45, %v5317_v33  ;;  %v1222_v52 = vpop.f32.mrb[11].mxu0  ;;  %v5390_v53 = vmax.f32 %v1474_v42, 0.0  ;;  %v1478_v54 = vpop.f32.mrb[11].mxu1  ;;  %v1477_v55 = vadd.f32 %v1476_v47, %v5317_v33  ;;  %v297_v39 = vld [vmem:[%s5095_s20 + $0x3f8] sm:$0xff] }
 0x12e   : > { %v5042_v40 = vld [vmem:[%s5095_s20 + $0x3f4] ss:$8 sps:$4 sm:$0xff]  }
 0x12f   : > { %v1849_v57 = vsel %vm1841_vm2, %v1716_v49, 0.0  ;;  %v2111_v58 = vmul.f32 %v1716_v49, %v1716_v49  ;;  %2504 = vst.msk [vmem:[%s5333_s22 + $0x20] sm:$0xff] %vm1841_vm2, %v1716_v49  ;;  %v1717_v59 = vmax.f32 %v1221_v50, 0.0  ;;  %1432 = vmatmul.mubr.bf16.gmra.mrb[116].mxu0 %v5001_v41  ;;  %2568 = vst.msk [vmem:[%s5333_s22 + $0x220] sm:$0xff] %vm1841_vm2, %v5390_v53  ;;  %1688 = vmatmul.mubr.bf16.gmra.mrb[116].mxu1 %v4740_v48  ;;  %v5400_v61 = vmax.f32 %v1477_v55, 0.0 }
 0x130   : > { %v1850_v60 = vadd.f32 %v1849_v57, %v1848_v35  ;;  %4788 = vmatprep.mubr.msk.bf16.mxu0 %vm974_vm1, %v5004_v46  ;;  %4820 = vmatprep.mubr.msk.bf16.mxu1 %vm974_vm1, %v5040_v4  ;;  %v5011_v48 = vld [vmem:[%s5095_s20 + $0x1f0] ss:$8 sps:$4 sm:$0xff]   ;;  %v4744_v57 = vcombine.low %v296_v38, %v297_v39 }
 0x131   : > { %v2242_v62 = vsel %vm1841_vm2, %v2111_v58, 0.0  ;;  %v1851_v63 = vsel %vm1841_vm2, %v1717_v59, 0.0  ;;  %v2112_v1 = vmul.f32 %v1717_v59, %v1717_v59  ;;  %2505 = vst.msk [vmem:[%s5333_s22 + $0x28] sm:$0xff] %vm1841_vm2, %v1717_v59  ;;  %2569 = vst.msk [vmem:[%s5333_s22 + $0x228] sm:$0xff] %vm1841_vm2, %v5400_v61 }
 0x132   : > { %v2243_v5 = vadd.f32 %v2242_v62, %v2241_v44  ;;  %v1852_v6 = vadd.f32 %v1851_v63, %v1850_v60  ;;  %v1225_v7 = vpop.f32.mrb[12].mxu0  ;;  %v1481_v8 = vpop.f32.mrb[12].mxu1 }
 0x133   : > { %v2244_v9 = vsel %vm1841_vm2, %v2112_v1, 0.0  ;;  %v1226_v10 = vadd.f32 %v1225_v7, %v5317_v33  ;;  %v1227_v11 = vpop.f32.mrb[13].mxu0  ;;  %v1482_v13 = vadd.f32 %v1481_v8, %v5317_v33  ;;  %v1483_v14 = vpop.f32.mrb[13].mxu1 }
 0x134   : > { %v2245_v15 = vadd.f32 %v2244_v9, %v2243_v5  ;;  %v1228_v16 = vpop.f32.mrb[14].mxu0  ;;  %v1484_v19 = vpop.f32.mrb[14].mxu1 }
 0x135   : > { %v1718_v21 = vmax.f32 %v1226_v10, 0.0  ;;  %v1229_v22 = vadd.f32 %v1228_v16, %v5317_v33  ;;  %v1230_v23 = vpop.f32.mrb[15].mxu0  ;;  %v5419_v24 = vmax.f32 %v1482_v13, 0.0  ;;  %v1486_v26 = vpop.f32.mrb[15].mxu1  ;;  %v1485_v27 = vadd.f32 %v1484_v19, %v5317_v33 }
 0x137   : > { %v1853_v28 = vsel %vm1841_vm2, %v1718_v21, 0.0  ;;  %v2113_v29 = vmul.f32 %v1718_v21, %v1718_v21  ;;  %2506 = vst.msk [vmem:[%s5333_s22 + $0x30] sm:$0xff] %vm1841_vm2, %v1718_v21  ;;  %v1719_v31 = vmax.f32 %v1229_v22, 0.0  ;;  %1440 = vmatmul.mubr.bf16.gmra.mrb[120].mxu0 %v5006_v12  ;;  %2570 = vst.msk [vmem:[%s5333_s22 + $0x230] sm:$0xff] %vm1841_vm2, %v5419_v24  ;;  %1696 = vmatmul.mubr.bf16.gmra.mrb[120].mxu1 %v4742_v20  ;;  %v5429_v34 = vmax.f32 %v1485_v27, 0.0 }
 0x138   : > { %v1854_v32 = vadd.f32 %v1853_v28, %v1852_v6  ;;  %4789 = vmatprep.mubr.msk.bf16.mxu0 %vm974_vm1, %v5009_v17  ;;  %4821 = vmatprep.mubr.msk.bf16.mxu1 %vm974_vm1, %v5042_v40 }
 0x139   : > { %v2246_v35 = vsel %vm1841_vm2, %v2113_v29, 0.0  ;;  %v1855_v36 = vsel %vm1841_vm2, %v1719_v31, 0.0  ;;  %v2114_v37 = vmul.f32 %v1719_v31, %v1719_v31  ;;  %2507 = vst.msk [vmem:[%s5333_s22 + $0x38] sm:$0xff] %vm1841_vm2, %v1719_v31  ;;  %2571 = vst.msk [vmem:[%s5333_s22 + $0x238] sm:$0xff] %vm1841_vm2, %v5429_v34 }
 0x13a   : > { %v2247_v41 = vadd.f32 %v2246_v35, %v2245_v15  ;;  %v1856_v42 = vadd.f32 %v1855_v36, %v1854_v32  ;;  %v1233_v43 = vpop.f32.mrb[16].mxu0  ;;  %v1489_v44 = vpop.f32.mrb[16].mxu1 }
 0x13b   : > { %v2248_v45 = vsel %vm1841_vm2, %v2114_v37, 0.0  ;;  %v1234_v46 = vadd.f32 %v1233_v43, %v5317_v33  ;;  %v1235_v47 = vpop.f32.mrb[17].mxu0  ;;  %v1490_v49 = vadd.f32 %v1489_v44, %v5317_v33  ;;  %v1491_v50 = vpop.f32.mrb[17].mxu1 }
 0x13c   : > { %v2249_v52 = vadd.f32 %v2248_v45, %v2247_v41  ;;  %v1236_v54 = vpop.f32.mrb[18].mxu0  ;;  %v1492_v55 = vpop.f32.mrb[18].mxu1 }
 0x13d   : > { %v1720_v58 = vmax.f32 %v1234_v46, 0.0  ;;  %v1237_v59 = vadd.f32 %v1236_v54, %v5317_v33  ;;  %v1238_v60 = vpop.f32.mrb[19].mxu0  ;;  %v5447_v62 = vmax.f32 %v1490_v49, 0.0  ;;  %v1494_v63 = vpop.f32.mrb[19].mxu1  ;;  %v1493_v1 = vadd.f32 %v1492_v55, %v5317_v33 }
 0x13f   : > { %v1857_v2 = vsel %vm1841_vm2, %v1720_v58, 0.0  ;;  %v2115_v3 = vmul.f32 %v1720_v58, %v1720_v58  ;;  %2508 = vst.msk [vmem:[%s5333_s22 + $0x40] sm:$0xff] %vm1841_vm2, %v1720_v58  ;;  %v1721_v4 = vmax.f32 %v1237_v59, 0.0  ;;  %1448 = vmatmul.mubr.bf16.gmra.mrb[124].mxu0 %v5011_v48  ;;  %2572 = vst.msk [vmem:[%s5333_s22 + $0x240] sm:$0xff] %vm1841_vm2, %v5447_v62  ;;  %1704 = vmatmul.mubr.bf16.gmra.mrb[124].mxu1 %v4744_v57  ;;  %v5456_v6 = vmax.f32 %v1493_v1, 0.0 }
 0x140   : > { %v1858_v5 = vadd.f32 %v1857_v2, %v1856_v42 }
 0x141   : > { %v2250_v7 = vsel %vm1841_vm2, %v2115_v3, 0.0  ;;  %v1859_v8 = vsel %vm1841_vm2, %v1721_v4, 0.0  ;;  %v2116_v9 = vmul.f32 %v1721_v4, %v1721_v4  ;;  %2509 = vst.msk [vmem:[%s5333_s22 + $0x48] sm:$0xff] %vm1841_vm2, %v1721_v4  ;;  %2573 = vst.msk [vmem:[%s5333_s22 + $0x248] sm:$0xff] %vm1841_vm2, %v5456_v6 }
 0x142   : > { %v2251_v10 = vadd.f32 %v2250_v7, %v2249_v52  ;;  %v1860_v11 = vadd.f32 %v1859_v8, %v1858_v5  ;;  %v1241_v12 = vpop.f32.mrb[20].mxu0  ;;  %v1497_v13 = vpop.f32.mrb[20].mxu1 }
 0x143   : > { %v2252_v14 = vsel %vm1841_vm2, %v2116_v9, 0.0  ;;  %v1242_v15 = vadd.f32 %v1241_v12, %v5317_v33  ;;  %v1243_v16 = vpop.f32.mrb[21].mxu0  ;;  %v1498_v17 = vadd.f32 %v1497_v13, %v5317_v33  ;;  %v1499_v19 = vpop.f32.mrb[21].mxu1 }
 0x144   : > { %v2253_v20 = vadd.f32 %v2252_v14, %v2251_v10  ;;  %v1244_v21 = vpop.f32.mrb[22].mxu0  ;;  %v1500_v22 = vpop.f32.mrb[22].mxu1 }
 0x145   : > { %v1722_v23 = vmax.f32 %v1242_v15, 0.0  ;;  %v1245_v26 = vadd.f32 %v1244_v21, %v5317_v33  ;;  %v1246_v27 = vpop.f32.mrb[23].mxu0  ;;  %v5469_v28 = vmax.f32 %v1498_v17, 0.0  ;;  %v1502_v29 = vpop.f32.mrb[23].mxu1  ;;  %v1501_v31 = vadd.f32 %v1500_v22, %v5317_v33 }
 0x147   : > { %v1861_v32 = vsel %vm1841_vm2, %v1722_v23, 0.0  ;;  %v2117_v35 = vmul.f32 %v1722_v23, %v1722_v23  ;;  %2510 = vst.msk [vmem:[%s5333_s22 + $0x50] sm:$0xff] %vm1841_vm2, %v1722_v23  ;;  %v1723_v36 = vmax.f32 %v1245_v26, 0.0  ;;  %2574 = vst.msk [vmem:[%s5333_s22 + $0x250] sm:$0xff] %vm1841_vm2, %v5469_v28  ;;  %v5478_v38 = vmax.f32 %v1501_v31, 0.0 }
 0x148   : > { %v1862_v37 = vadd.f32 %v1861_v32, %v1860_v11 }
 0x149   : > { %v2254_v39 = vsel %vm1841_vm2, %v2117_v35, 0.0  ;;  %v1863_v40 = vsel %vm1841_vm2, %v1723_v36, 0.0  ;;  %v2118_v41 = vmul.f32 %v1723_v36, %v1723_v36  ;;  %2511 = vst.msk [vmem:[%s5333_s22 + $0x58] sm:$0xff] %vm1841_vm2, %v1723_v36  ;;  %2575 = vst.msk [vmem:[%s5333_s22 + $0x258] sm:$0xff] %vm1841_vm2, %v5478_v38 }
 0x14a   : > { %v2255_v42 = vadd.f32 %v2254_v39, %v2253_v20  ;;  %v1864_v43 = vadd.f32 %v1863_v40, %v1862_v37  ;;  %v1249_v44 = vpop.f32.mrb[24].mxu0  ;;  %v1505_v45 = vpop.f32.mrb[24].mxu1 }
 0x14b   : > { %v2256_v46 = vsel %vm1841_vm2, %v2118_v41, 0.0  ;;  %v1250_v47 = vadd.f32 %v1249_v44, %v5317_v33  ;;  %v1251_v48 = vpop.f32.mrb[25].mxu0  ;;  %v1506_v49 = vadd.f32 %v1505_v45, %v5317_v33  ;;  %v1507_v50 = vpop.f32.mrb[25].mxu1 }
 0x14c   : > { %v2257_v52 = vadd.f32 %v2256_v46, %v2255_v42  ;;  %v1252_v54 = vpop.f32.mrb[26].mxu0  ;;  %v1508_v55 = vpop.f32.mrb[26].mxu1 }
 0x14d   : > { %v1724_v57 = vmax.f32 %v1250_v47, 0.0  ;;  %v1253_v58 = vadd.f32 %v1252_v54, %v5317_v33  ;;  %v1254_v59 = vpop.f32.mrb[27].mxu0  ;;  %v5491_v60 = vmax.f32 %v1506_v49, 0.0  ;;  %v1510_v63 = vpop.f32.mrb[27].mxu1  ;;  %v1509_v1 = vadd.f32 %v1508_v55, %v5317_v33 }
 0x14f   : > { %v1865_v2 = vsel %vm1841_vm2, %v1724_v57, 0.0  ;;  %v2119_v3 = vmul.f32 %v1724_v57, %v1724_v57  ;;  %2512 = vst.msk [vmem:[%s5333_s22 + $0x60] sm:$0xff] %vm1841_vm2, %v1724_v57  ;;  %v1725_v4 = vmax.f32 %v1253_v58, 0.0  ;;  %2576 = vst.msk [vmem:[%s5333_s22 + $0x260] sm:$0xff] %vm1841_vm2, %v5491_v60  ;;  %v5500_v7 = vmax.f32 %v1509_v1, 0.0 }
 0x150   : > { %v1866_v5 = vadd.f32 %v1865_v2, %v1864_v43 }
 0x151   : > { %v2258_v8 = vsel %vm1841_vm2, %v2119_v3, 0.0  ;;  %v1867_v9 = vsel %vm1841_vm2, %v1725_v4, 0.0  ;;  %v2120_v10 = vmul.f32 %v1725_v4, %v1725_v4  ;;  %2513 = vst.msk [vmem:[%s5333_s22 + $0x68] sm:$0xff] %vm1841_vm2, %v1725_v4  ;;  %2577 = vst.msk [vmem:[%s5333_s22 + $0x268] sm:$0xff] %vm1841_vm2, %v5500_v7 }
 0x152   : > { %v2259_v11 = vadd.f32 %v2258_v8, %v2257_v52  ;;  %v1868_v12 = vadd.f32 %v1867_v9, %v1866_v5  ;;  %v1257_v13 = vpop.f32.mrb[28].mxu0  ;;  %v1513_v14 = vpop.f32.mrb[28].mxu1 }
 0x153   : > { %v2260_v15 = vsel %vm1841_vm2, %v2120_v10, 0.0  ;;  %v1258_v16 = vadd.f32 %v1257_v13, %v5317_v33  ;;  %v1259_v17 = vpop.f32.mrb[29].mxu0  ;;  %v1514_v19 = vadd.f32 %v1513_v14, %v5317_v33  ;;  %v1515_v20 = vpop.f32.mrb[29].mxu1 }
 0x154   : > { %v2261_v21 = vadd.f32 %v2260_v15, %v2259_v11  ;;  %v1260_v22 = vpop.f32.mrb[30].mxu0  ;;  %v1516_v23 = vpop.f32.mrb[30].mxu1 }
 0x155   : > { %v1726_v26 = vmax.f32 %v1258_v16, 0.0  ;;  %v1261_v27 = vadd.f32 %v1260_v22, %v5317_v33  ;;  %v1262_v29 = vpop.f32.mrb[31].mxu0  ;;  %v5513_v31 = vmax.f32 %v1514_v19, 0.0  ;;  %v1518_v32 = vpop.f32.mrb[31].mxu1  ;;  %v1517_v35 = vadd.f32 %v1516_v23, %v5317_v33 }
 0x157   : > { %v1869_v36 = vsel %vm1841_vm2, %v1726_v26, 0.0  ;;  %v2121_v37 = vmul.f32 %v1726_v26, %v1726_v26  ;;  %2514 = vst.msk [vmem:[%s5333_s22 + $0x70] sm:$0xff] %vm1841_vm2, %v1726_v26  ;;  %v1727_v39 = vmax.f32 %v1261_v27, 0.0  ;;  %2578 = vst.msk [vmem:[%s5333_s22 + $0x270] sm:$0xff] %vm1841_vm2, %v5513_v31  ;;  %v5522_v41 = vmax.f32 %v1517_v35, 0.0 }
 0x158   : > { %v1870_v40 = vadd.f32 %v1869_v36, %v1868_v12 }
 0x159   : > { %v2262_v42 = vsel %vm1841_vm2, %v2121_v37, 0.0  ;;  %v1871_v43 = vsel %vm1841_vm2, %v1727_v39, 0.0  ;;  %v2122_v44 = vmul.f32 %v1727_v39, %v1727_v39  ;;  %2515 = vst.msk [vmem:[%s5333_s22 + $0x78] sm:$0xff] %vm1841_vm2, %v1727_v39  ;;  %2579 = vst.msk [vmem:[%s5333_s22 + $0x278] sm:$0xff] %vm1841_vm2, %v5522_v41 }
 0x15a   : > { %v2263_v45 = vadd.f32 %v2262_v42, %v2261_v21  ;;  %v1872_v46 = vadd.f32 %v1871_v43, %v1870_v40  ;;  %v1265_v47 = vpop.f32.mrb[32].mxu0  ;;  %v1521_v48 = vpop.f32.mrb[32].mxu1 }
 0x15b   : > { %v2264_v49 = vsel %vm1841_vm2, %v2122_v44, 0.0  ;;  %v1266_v50 = vadd.f32 %v1265_v47, %v5317_v33  ;;  %v1267_v52 = vpop.f32.mrb[33].mxu0  ;;  %v1522_v54 = vadd.f32 %v1521_v48, %v5317_v33  ;;  %v1523_v55 = vpop.f32.mrb[33].mxu1 }
 0x15c   : > { %v2265_v57 = vadd.f32 %v2264_v49, %v2263_v45  ;;  %v1268_v58 = vpop.f32.mrb[34].mxu0  ;;  %v1524_v59 = vpop.f32.mrb[34].mxu1 }
 0x15d   : > { %v1728_v63 = vmax.f32 %v1266_v50, 0.0  ;;  %v1269_v1 = vadd.f32 %v1268_v58, %v5317_v33  ;;  %v1270_v2 = vpop.f32.mrb[35].mxu0  ;;  %v5535_v3 = vmax.f32 %v1522_v54, 0.0  ;;  %v1526_v4 = vpop.f32.mrb[35].mxu1  ;;  %v1525_v5 = vadd.f32 %v1524_v59, %v5317_v33 }
 0x15f   : > { %v1873_v8 = vsel %vm1841_vm2, %v1728_v63, 0.0  ;;  %v2123_v9 = vmul.f32 %v1728_v63, %v1728_v63  ;;  %2516 = vst.msk [vmem:[%s5333_s22 + $0x80] sm:$0xff] %vm1841_vm2, %v1728_v63  ;;  %v1729_v10 = vmax.f32 %v1269_v1, 0.0  ;;  %2580 = vst.msk [vmem:[%s5333_s22 + $0x280] sm:$0xff] %vm1841_vm2, %v5535_v3  ;;  %v5544_v12 = vmax.f32 %v1525_v5, 0.0 }
 0x160   : > { %v1874_v11 = vadd.f32 %v1873_v8, %v1872_v46 }
 0x161   : > { %v2266_v13 = vsel %vm1841_vm2, %v2123_v9, 0.0  ;;  %v1875_v14 = vsel %vm1841_vm2, %v1729_v10, 0.0  ;;  %v2124_v15 = vmul.f32 %v1729_v10, %v1729_v10  ;;  %2517 = vst.msk [vmem:[%s5333_s22 + $0x88] sm:$0xff] %vm1841_vm2, %v1729_v10  ;;  %2581 = vst.msk [vmem:[%s5333_s22 + $0x288] sm:$0xff] %vm1841_vm2, %v5544_v12 }
 0x162   : > { %v2267_v16 = vadd.f32 %v2266_v13, %v2265_v57  ;;  %v1876_v17 = vadd.f32 %v1875_v14, %v1874_v11  ;;  %v1273_v19 = vpop.f32.mrb[36].mxu0  ;;  %v1529_v20 = vpop.f32.mrb[36].mxu1 }
 0x163   : > { %v2268_v21 = vsel %vm1841_vm2, %v2124_v15, 0.0  ;;  %v1274_v22 = vadd.f32 %v1273_v19, %v5317_v33  ;;  %v1275_v23 = vpop.f32.mrb[37].mxu0  ;;  %v1530_v26 = vadd.f32 %v1529_v20, %v5317_v33  ;;  %v1531_v27 = vpop.f32.mrb[37].mxu1 }
 0x164   : > { %v2269_v29 = vadd.f32 %v2268_v21, %v2267_v16  ;;  %v1276_v32 = vpop.f32.mrb[38].mxu0  ;;  %v1532_v35 = vpop.f32.mrb[38].mxu1 }
 0x165   : > { %v1730_v36 = vmax.f32 %v1274_v22, 0.0  ;;  %v1277_v37 = vadd.f32 %v1276_v32, %v5317_v33  ;;  %v1278_v39 = vpop.f32.mrb[39].mxu0  ;;  %v5557_v40 = vmax.f32 %v1530_v26, 0.0  ;;  %v1534_v42 = vpop.f32.mrb[39].mxu1  ;;  %v1533_v43 = vadd.f32 %v1532_v35, %v5317_v33 }
 0x167   : > { %v1877_v44 = vsel %vm1841_vm2, %v1730_v36, 0.0  ;;  %v2125_v45 = vmul.f32 %v1730_v36, %v1730_v36  ;;  %2518 = vst.msk [vmem:[%s5333_s22 + $0x90] sm:$0xff] %vm1841_vm2, %v1730_v36  ;;  %v1731_v46 = vmax.f32 %v1277_v37, 0.0  ;;  %2582 = vst.msk [vmem:[%s5333_s22 + $0x290] sm:$0xff] %vm1841_vm2, %v5557_v40  ;;  %v5566_v48 = vmax.f32 %v1533_v43, 0.0 }
 0x168   : > { %v1878_v47 = vadd.f32 %v1877_v44, %v1876_v17 }
 0x169   : > { %v2270_v49 = vsel %vm1841_vm2, %v2125_v45, 0.0  ;;  %v1879_v50 = vsel %vm1841_vm2, %v1731_v46, 0.0  ;;  %v2126_v52 = vmul.f32 %v1731_v46, %v1731_v46  ;;  %2519 = vst.msk [vmem:[%s5333_s22 + $0x98] sm:$0xff] %vm1841_vm2, %v1731_v46  ;;  %2583 = vst.msk [vmem:[%s5333_s22 + $0x298] sm:$0xff] %vm1841_vm2, %v5566_v48 }
 0x16a   : > { %v2271_v54 = vadd.f32 %v2270_v49, %v2269_v29  ;;  %v1880_v55 = vadd.f32 %v1879_v50, %v1878_v47  ;;  %v1281_v57 = vpop.f32.mrb[40].mxu0  ;;  %v1537_v58 = vpop.f32.mrb[40].mxu1 }
 0x16b   : > { %v2272_v59 = vsel %vm1841_vm2, %v2126_v52, 0.0  ;;  %v1282_v63 = vadd.f32 %v1281_v57, %v5317_v33  ;;  %v1283_v1 = vpop.f32.mrb[41].mxu0  ;;  %v1538_v2 = vadd.f32 %v1537_v58, %v5317_v33  ;;  %v1539_v4 = vpop.f32.mrb[41].mxu1 }
 0x16c   : > { %v2273_v5 = vadd.f32 %v2272_v59, %v2271_v54  ;;  %v1284_v8 = vpop.f32.mrb[42].mxu0  ;;  %v1540_v9 = vpop.f32.mrb[42].mxu1 }
 0x16d   : > { %v1732_v10 = vmax.f32 %v1282_v63, 0.0  ;;  %v1285_v11 = vadd.f32 %v1284_v8, %v5317_v33  ;;  %v1286_v13 = vpop.f32.mrb[43].mxu0  ;;  %v5579_v14 = vmax.f32 %v1538_v2, 0.0  ;;  %v1542_v15 = vpop.f32.mrb[43].mxu1  ;;  %v1541_v16 = vadd.f32 %v1540_v9, %v5317_v33 }
 0x16f   : > { %v1881_v17 = vsel %vm1841_vm2, %v1732_v10, 0.0  ;;  %v2127_v19 = vmul.f32 %v1732_v10, %v1732_v10  ;;  %2520 = vst.msk [vmem:[%s5333_s22 + $0xa0] sm:$0xff] %vm1841_vm2, %v1732_v10  ;;  %v1733_v20 = vmax.f32 %v1285_v11, 0.0  ;;  %2584 = vst.msk [vmem:[%s5333_s22 + $0x2a0] sm:$0xff] %vm1841_vm2, %v5579_v14  ;;  %v5588_v22 = vmax.f32 %v1541_v16, 0.0 }
 0x170   : > { %v1882_v21 = vadd.f32 %v1881_v17, %v1880_v55 }
 0x171   : > { %v2274_v23 = vsel %vm1841_vm2, %v2127_v19, 0.0  ;;  %v1883_v26 = vsel %vm1841_vm2, %v1733_v20, 0.0  ;;  %v2128_v27 = vmul.f32 %v1733_v20, %v1733_v20  ;;  %2521 = vst.msk [vmem:[%s5333_s22 + $0xa8] sm:$0xff] %vm1841_vm2, %v1733_v20  ;;  %2585 = vst.msk [vmem:[%s5333_s22 + $0x2a8] sm:$0xff] %vm1841_vm2, %v5588_v22 }
 0x172   : > { %v2275_v29 = vadd.f32 %v2274_v23, %v2273_v5  ;;  %v1884_v32 = vadd.f32 %v1883_v26, %v1882_v21  ;;  %v1289_v35 = vpop.f32.mrb[44].mxu0  ;;  %v1545_v36 = vpop.f32.mrb[44].mxu1 }
 0x173   : > { %v2276_v37 = vsel %vm1841_vm2, %v2128_v27, 0.0  ;;  %v1290_v39 = vadd.f32 %v1289_v35, %v5317_v33  ;;  %v1291_v42 = vpop.f32.mrb[45].mxu0  ;;  %v1546_v43 = vadd.f32 %v1545_v36, %v5317_v33  ;;  %v1547_v44 = vpop.f32.mrb[45].mxu1 }
 0x174   : > { %v2277_v45 = vadd.f32 %v2276_v37, %v2275_v29  ;;  %v1292_v46 = vpop.f32.mrb[46].mxu0  ;;  %v1548_v47 = vpop.f32.mrb[46].mxu1 }
 0x175   : > { %v1734_v49 = vmax.f32 %v1290_v39, 0.0  ;;  %v1293_v50 = vadd.f32 %v1292_v46, %v5317_v33  ;;  %v1294_v52 = vpop.f32.mrb[47].mxu0  ;;  %v5601_v54 = vmax.f32 %v1546_v43, 0.0  ;;  %v1550_v55 = vpop.f32.mrb[47].mxu1  ;;  %v1549_v57 = vadd.f32 %v1548_v47, %v5317_v33 }
 0x177   : > { %v1885_v58 = vsel %vm1841_vm2, %v1734_v49, 0.0  ;;  %v2129_v59 = vmul.f32 %v1734_v49, %v1734_v49  ;;  %2522 = vst.msk [vmem:[%s5333_s22 + $0xb0] sm:$0xff] %vm1841_vm2, %v1734_v49  ;;  %v1735_v63 = vmax.f32 %v1293_v50, 0.0  ;;  %2586 = vst.msk [vmem:[%s5333_s22 + $0x2b0] sm:$0xff] %vm1841_vm2, %v5601_v54  ;;  %v5610_v2 = vmax.f32 %v1549_v57, 0.0 }
 0x178   : > { %v1886_v1 = vadd.f32 %v1885_v58, %v1884_v32 }
 0x179   : > { %v2278_v4 = vsel %vm1841_vm2, %v2129_v59, 0.0  ;;  %v1887_v5 = vsel %vm1841_vm2, %v1735_v63, 0.0  ;;  %v2130_v8 = vmul.f32 %v1735_v63, %v1735_v63  ;;  %2523 = vst.msk [vmem:[%s5333_s22 + $0xb8] sm:$0xff] %vm1841_vm2, %v1735_v63  ;;  %2587 = vst.msk [vmem:[%s5333_s22 + $0x2b8] sm:$0xff] %vm1841_vm2, %v5610_v2 }
 0x17a   : > { %v2279_v9 = vadd.f32 %v2278_v4, %v2277_v45  ;;  %v1888_v10 = vadd.f32 %v1887_v5, %v1886_v1  ;;  %v1297_v11 = vpop.f32.mrb[48].mxu0  ;;  %v1553_v13 = vpop.f32.mrb[48].mxu1 }
 0x17b   : > { %v2280_v15 = vsel %vm1841_vm2, %v2130_v8, 0.0  ;;  %v1298_v16 = vadd.f32 %v1297_v11, %v5317_v33  ;;  %v1299_v17 = vpop.f32.mrb[49].mxu0  ;;  %v1554_v19 = vadd.f32 %v1553_v13, %v5317_v33  ;;  %v1555_v20 = vpop.f32.mrb[49].mxu1 }
 0x17c   : > { %v2281_v21 = vadd.f32 %v2280_v15, %v2279_v9  ;;  %v1300_v23 = vpop.f32.mrb[50].mxu0  ;;  %v1556_v26 = vpop.f32.mrb[50].mxu1 }
 0x17d   : > { %v1736_v27 = vmax.f32 %v1298_v16, 0.0  ;;  %v1301_v29 = vadd.f32 %v1300_v23, %v5317_v33  ;;  %v1302_v32 = vpop.f32.mrb[51].mxu0  ;;  %v5623_v35 = vmax.f32 %v1554_v19, 0.0  ;;  %v1558_v36 = vpop.f32.mrb[51].mxu1  ;;  %v1557_v37 = vadd.f32 %v1556_v26, %v5317_v33 }
 0x17f   : > { %v1889_v39 = vsel %vm1841_vm2, %v1736_v27, 0.0  ;;  %v2131_v42 = vmul.f32 %v1736_v27, %v1736_v27  ;;  %2524 = vst.msk [vmem:[%s5333_s22 + $0xc0] sm:$0xff] %vm1841_vm2, %v1736_v27  ;;  %v1737_v43 = vmax.f32 %v1301_v29, 0.0  ;;  %2588 = vst.msk [vmem:[%s5333_s22 + $0x2c0] sm:$0xff] %vm1841_vm2, %v5623_v35  ;;  %v5632_v45 = vmax.f32 %v1557_v37, 0.0 }
 0x180   : > { %v1890_v44 = vadd.f32 %v1889_v39, %v1888_v10 }
 0x181   : > { %v2282_v46 = vsel %vm1841_vm2, %v2131_v42, 0.0  ;;  %v1891_v47 = vsel %vm1841_vm2, %v1737_v43, 0.0  ;;  %v2132_v49 = vmul.f32 %v1737_v43, %v1737_v43  ;;  %2525 = vst.msk [vmem:[%s5333_s22 + $0xc8] sm:$0xff] %vm1841_vm2, %v1737_v43  ;;  %2589 = vst.msk [vmem:[%s5333_s22 + $0x2c8] sm:$0xff] %vm1841_vm2, %v5632_v45 }
 0x182   : > { %v2283_v50 = vadd.f32 %v2282_v46, %v2281_v21  ;;  %v1892_v52 = vadd.f32 %v1891_v47, %v1890_v44  ;;  %v1305_v55 = vpop.f32.mrb[52].mxu0  ;;  %v1561_v57 = vpop.f32.mrb[52].mxu1 }
 0x183   : > { %v2284_v58 = vsel %vm1841_vm2, %v2132_v49, 0.0  ;;  %v1306_v59 = vadd.f32 %v1305_v55, %v5317_v33  ;;  %v1307_v63 = vpop.f32.mrb[53].mxu0  ;;  %v1562_v1 = vadd.f32 %v1561_v57, %v5317_v33  ;;  %v1563_v4 = vpop.f32.mrb[53].mxu1 }
 0x184   : > { %v2285_v5 = vadd.f32 %v2284_v58, %v2283_v50  ;;  %v1308_v8 = vpop.f32.mrb[54].mxu0  ;;  %v1564_v9 = vpop.f32.mrb[54].mxu1 }
 0x185   : > { %v1738_v10 = vmax.f32 %v1306_v59, 0.0  ;;  %v1309_v11 = vadd.f32 %v1308_v8, %v5317_v33  ;;  %v1310_v13 = vpop.f32.mrb[55].mxu0  ;;  %v5645_v15 = vmax.f32 %v1562_v1, 0.0  ;;  %v1566_v16 = vpop.f32.mrb[55].mxu1  ;;  %v1565_v17 = vadd.f32 %v1564_v9, %v5317_v33 }
 0x187   : > { %v1893_v19 = vsel %vm1841_vm2, %v1738_v10, 0.0  ;;  %v2133_v20 = vmul.f32 %v1738_v10, %v1738_v10  ;;  %2526 = vst.msk [vmem:[%s5333_s22 + $0xd0] sm:$0xff] %vm1841_vm2, %v1738_v10  ;;  %v1739_v21 = vmax.f32 %v1309_v11, 0.0  ;;  %2590 = vst.msk [vmem:[%s5333_s22 + $0x2d0] sm:$0xff] %vm1841_vm2, %v5645_v15  ;;  %v5654_v26 = vmax.f32 %v1565_v17, 0.0 }
 0x188   : > { %v1894_v23 = vadd.f32 %v1893_v19, %v1892_v52 }
 0x189   : > { %v2286_v27 = vsel %vm1841_vm2, %v2133_v20, 0.0  ;;  %v1895_v29 = vsel %vm1841_vm2, %v1739_v21, 0.0  ;;  %v2134_v32 = vmul.f32 %v1739_v21, %v1739_v21  ;;  %2527 = vst.msk [vmem:[%s5333_s22 + $0xd8] sm:$0xff] %vm1841_vm2, %v1739_v21  ;;  %2591 = vst.msk [vmem:[%s5333_s22 + $0x2d8] sm:$0xff] %vm1841_vm2, %v5654_v26 }
 0x18a   : > { %v2287_v36 = vadd.f32 %v2286_v27, %v2285_v5  ;;  %v1896_v37 = vadd.f32 %v1895_v29, %v1894_v23  ;;  %v1313_v39 = vpop.f32.mrb[56].mxu0  ;;  %v1569_v42 = vpop.f32.mrb[56].mxu1 }
 0x18b   : > { %v2288_v43 = vsel %vm1841_vm2, %v2134_v32, 0.0  ;;  %v1314_v44 = vadd.f32 %v1313_v39, %v5317_v33  ;;  %v1315_v46 = vpop.f32.mrb[57].mxu0  ;;  %v1570_v47 = vadd.f32 %v1569_v42, %v5317_v33  ;;  %v1571_v49 = vpop.f32.mrb[57].mxu1 }
 0x18c   : > { %v2289_v50 = vadd.f32 %v2288_v43, %v2287_v36  ;;  %v1316_v52 = vpop.f32.mrb[58].mxu0  ;;  %v1572_v55 = vpop.f32.mrb[58].mxu1 }
 0x18d   : > { %v1740_v57 = vmax.f32 %v1314_v44, 0.0  ;;  %v1317_v58 = vadd.f32 %v1316_v52, %v5317_v33  ;;  %v1318_v59 = vpop.f32.mrb[59].mxu0  ;;  %v5667_v63 = vmax.f32 %v1570_v47, 0.0  ;;  %v1574_v1 = vpop.f32.mrb[59].mxu1  ;;  %v1573_v4 = vadd.f32 %v1572_v55, %v5317_v33 }
 0x18f   : > { %v1897_v5 = vsel %vm1841_vm2, %v1740_v57, 0.0  ;;  %v2135_v8 = vmul.f32 %v1740_v57, %v1740_v57  ;;  %2528 = vst.msk [vmem:[%s5333_s22 + $0xe0] sm:$0xff] %vm1841_vm2, %v1740_v57  ;;  %v1741_v9 = vmax.f32 %v1317_v58, 0.0  ;;  %2592 = vst.msk [vmem:[%s5333_s22 + $0x2e0] sm:$0xff] %vm1841_vm2, %v5667_v63  ;;  %v5676_v11 = vmax.f32 %v1573_v4, 0.0 }
 0x190   : > { %v1898_v10 = vadd.f32 %v1897_v5, %v1896_v37 }
 0x191   : > { %v2290_v13 = vsel %vm1841_vm2, %v2135_v8, 0.0  ;;  %v1899_v16 = vsel %vm1841_vm2, %v1741_v9, 0.0  ;;  %v2136_v17 = vmul.f32 %v1741_v9, %v1741_v9  ;;  %2529 = vst.msk [vmem:[%s5333_s22 + $0xe8] sm:$0xff] %vm1841_vm2, %v1741_v9  ;;  %2593 = vst.msk [vmem:[%s5333_s22 + $0x2e8] sm:$0xff] %vm1841_vm2, %v5676_v11 }
 0x192   : > { %v2291_v19 = vadd.f32 %v2290_v13, %v2289_v50  ;;  %v1900_v20 = vadd.f32 %v1899_v16, %v1898_v10  ;;  %v1321_v21 = vpop.f32.mrb[60].mxu0  ;;  %v1577_v23 = vpop.f32.mrb[60].mxu1 }
 0x193   : > { %v2292_v27 = vsel %vm1841_vm2, %v2136_v17, 0.0  ;;  %v1322_v29 = vadd.f32 %v1321_v21, %v5317_v33  ;;  %v1323_v32 = vpop.f32.mrb[61].mxu0  ;;  %v1578_v36 = vadd.f32 %v1577_v23, %v5317_v33  ;;  %v1579_v37 = vpop.f32.mrb[61].mxu1 }
 0x194   : > { %v2293_v39 = vadd.f32 %v2292_v27, %v2291_v19  ;;  %v1324_v42 = vpop.f32.mrb[62].mxu0  ;;  %v1580_v43 = vpop.f32.mrb[62].mxu1 }
 0x195   : > { %v1742_v44 = vmax.f32 %v1322_v29, 0.0  ;;  %v1325_v46 = vadd.f32 %v1324_v42, %v5317_v33  ;;  %v1326_v47 = vpop.f32.mrb[63].mxu0  ;;  %v5689_v49 = vmax.f32 %v1578_v36, 0.0  ;;  %v1582_v50 = vpop.f32.mrb[63].mxu1  ;;  %v1581_v52 = vadd.f32 %v1580_v43, %v5317_v33 }
 0x197   : > { %v1901_v55 = vsel %vm1841_vm2, %v1742_v44, 0.0  ;;  %v2137_v57 = vmul.f32 %v1742_v44, %v1742_v44  ;;  %2530 = vst.msk [vmem:[%s5333_s22 + $0xf0] sm:$0xff] %vm1841_vm2, %v1742_v44  ;;  %v1743_v58 = vmax.f32 %v1325_v46, 0.0  ;;  %2594 = vst.msk [vmem:[%s5333_s22 + $0x2f0] sm:$0xff] %vm1841_vm2, %v5689_v49  ;;  %v5698_v1 = vmax.f32 %v1581_v52, 0.0 }
 0x198   : > { %v1902_v59 = vadd.f32 %v1901_v55, %v1900_v20 }
 0x199   : > { %v2294_v4 = vsel %vm1841_vm2, %v2137_v57, 0.0  ;;  %v1903_v5 = vsel %vm1841_vm2, %v1743_v58, 0.0  ;;  %v2138_v8 = vmul.f32 %v1743_v58, %v1743_v58  ;;  %2531 = vst.msk [vmem:[%s5333_s22 + $0xf8] sm:$0xff] %vm1841_vm2, %v1743_v58  ;;  %2595 = vst.msk [vmem:[%s5333_s22 + $0x2f8] sm:$0xff] %vm1841_vm2, %v5698_v1 }
 0x19a   : > { %v2295_v9 = vadd.f32 %v2294_v4, %v2293_v39  ;;  %v1904_v10 = vadd.f32 %v1903_v5, %v1902_v59  ;;  %v1329_v13 = vpop.f32.mrb[64].mxu0  ;;  %v1585_v16 = vpop.f32.mrb[64].mxu1 }
 0x19b   : > { %v2296_v17 = vsel %vm1841_vm2, %v2138_v8, 0.0  ;;  %v1330_v19 = vadd.f32 %v1329_v13, %v5317_v33  ;;  %v1331_v20 = vpop.f32.mrb[65].mxu0  ;;  %v1586_v21 = vadd.f32 %v1585_v16, %v5317_v33  ;;  %v1587_v23 = vpop.f32.mrb[65].mxu1 }
 0x19c   : > { %v2297_v27 = vadd.f32 %v2296_v17, %v2295_v9  ;;  %v1332_v29 = vpop.f32.mrb[66].mxu0  ;;  %v1588_v32 = vpop.f32.mrb[66].mxu1 }
 0x19d   : > { %v1744_v36 = vmax.f32 %v1330_v19, 0.0  ;;  %v1333_v37 = vadd.f32 %v1332_v29, %v5317_v33  ;;  %v1334_v39 = vpop.f32.mrb[67].mxu0  ;;  %v5711_v42 = vmax.f32 %v1586_v21, 0.0  ;;  %v1590_v43 = vpop.f32.mrb[67].mxu1  ;;  %v1589_v44 = vadd.f32 %v1588_v32, %v5317_v33 }
 0x19f   : > { %v1905_v46 = vsel %vm1841_vm2, %v1744_v36, 0.0  ;;  %v2139_v47 = vmul.f32 %v1744_v36, %v1744_v36  ;;  %2532 = vst.msk [vmem:[%s5333_s22 + $0x100] sm:$0xff] %vm1841_vm2, %v1744_v36  ;;  %v1745_v50 = vmax.f32 %v1333_v37, 0.0  ;;  %2596 = vst.msk [vmem:[%s5333_s22 + $0x300] sm:$0xff] %vm1841_vm2, %v5711_v42  ;;  %v5720_v55 = vmax.f32 %v1589_v44, 0.0 }
 0x1a0   : > { %v1906_v52 = vadd.f32 %v1905_v46, %v1904_v10 }
 0x1a1   : > { %v2298_v57 = vsel %vm1841_vm2, %v2139_v47, 0.0  ;;  %v1907_v58 = vsel %vm1841_vm2, %v1745_v50, 0.0  ;;  %v2140_v59 = vmul.f32 %v1745_v50, %v1745_v50  ;;  %2533 = vst.msk [vmem:[%s5333_s22 + $0x108] sm:$0xff] %vm1841_vm2, %v1745_v50  ;;  %2597 = vst.msk [vmem:[%s5333_s22 + $0x308] sm:$0xff] %vm1841_vm2, %v5720_v55 }
 0x1a2   : > { %v2299_v4 = vadd.f32 %v2298_v57, %v2297_v27  ;;  %v1908_v5 = vadd.f32 %v1907_v58, %v1906_v52  ;;  %v1337_v8 = vpop.f32.mrb[68].mxu0  ;;  %v1593_v9 = vpop.f32.mrb[68].mxu1 }
 0x1a3   : > { %v2300_v13 = vsel %vm1841_vm2, %v2140_v59, 0.0  ;;  %v1338_v10 = vadd.f32 %v1337_v8, %v5317_v33  ;;  %v1339_v16 = vpop.f32.mrb[69].mxu0  ;;  %v1594_v17 = vadd.f32 %v1593_v9, %v5317_v33  ;;  %v1595_v19 = vpop.f32.mrb[69].mxu1 }
 0x1a4   : > { %v2301_v20 = vadd.f32 %v2300_v13, %v2299_v4  ;;  %v1340_v21 = vpop.f32.mrb[70].mxu0  ;;  %v1596_v23 = vpop.f32.mrb[70].mxu1 }
 0x1a5   : > { %v1746_v27 = vmax.f32 %v1338_v10, 0.0  ;;  %v1341_v29 = vadd.f32 %v1340_v21, %v5317_v33  ;;  %v1342_v32 = vpop.f32.mrb[71].mxu0  ;;  %v5733_v36 = vmax.f32 %v1594_v17, 0.0  ;;  %v1598_v37 = vpop.f32.mrb[71].mxu1  ;;  %v1597_v39 = vadd.f32 %v1596_v23, %v5317_v33 }
 0x1a7   : > { %v1909_v43 = vsel %vm1841_vm2, %v1746_v27, 0.0  ;;  %v2141_v44 = vmul.f32 %v1746_v27, %v1746_v27  ;;  %2534 = vst.msk [vmem:[%s5333_s22 + $0x110] sm:$0xff] %vm1841_vm2, %v1746_v27  ;;  %v1747_v46 = vmax.f32 %v1341_v29, 0.0  ;;  %2598 = vst.msk [vmem:[%s5333_s22 + $0x310] sm:$0xff] %vm1841_vm2, %v5733_v36  ;;  %v5742_v50 = vmax.f32 %v1597_v39, 0.0 }
 0x1a8   : > { %v1910_v47 = vadd.f32 %v1909_v43, %v1908_v5 }
 0x1a9   : > { %v2302_v52 = vsel %vm1841_vm2, %v2141_v44, 0.0  ;;  %v1911_v57 = vsel %vm1841_vm2, %v1747_v46, 0.0  ;;  %v2142_v58 = vmul.f32 %v1747_v46, %v1747_v46  ;;  %2535 = vst.msk [vmem:[%s5333_s22 + $0x118] sm:$0xff] %vm1841_vm2, %v1747_v46  ;;  %2599 = vst.msk [vmem:[%s5333_s22 + $0x318] sm:$0xff] %vm1841_vm2, %v5742_v50 }
 0x1aa   : > { %v2303_v59 = vadd.f32 %v2302_v52, %v2301_v20  ;;  %v1912_v4 = vadd.f32 %v1911_v57, %v1910_v47  ;;  %v1345_v8 = vpop.f32.mrb[72].mxu0  ;;  %v1601_v9 = vpop.f32.mrb[72].mxu1 }
 0x1ab   : > { %v2304_v13 = vsel %vm1841_vm2, %v2142_v58, 0.0  ;;  %v1346_v5 = vadd.f32 %v1345_v8, %v5317_v33  ;;  %v1347_v10 = vpop.f32.mrb[73].mxu0  ;;  %v1602_v16 = vadd.f32 %v1601_v9, %v5317_v33  ;;  %v1603_v17 = vpop.f32.mrb[73].mxu1 }
 0x1ac   : > { %v2305_v19 = vadd.f32 %v2304_v13, %v2303_v59  ;;  %v1348_v21 = vpop.f32.mrb[74].mxu0  ;;  %v1604_v23 = vpop.f32.mrb[74].mxu1 }
 0x1ad   : > { %v1748_v20 = vmax.f32 %v1346_v5, 0.0  ;;  %v1349_v27 = vadd.f32 %v1348_v21, %v5317_v33  ;;  %v1350_v29 = vpop.f32.mrb[75].mxu0  ;;  %v5755_v32 = vmax.f32 %v1602_v16, 0.0  ;;  %v1606_v37 = vpop.f32.mrb[75].mxu1  ;;  %v1605_v39 = vadd.f32 %v1604_v23, %v5317_v33 }
 0x1af   : > { %v1913_v43 = vsel %vm1841_vm2, %v1748_v20, 0.0  ;;  %v2143_v44 = vmul.f32 %v1748_v20, %v1748_v20  ;;  %2536 = vst.msk [vmem:[%s5333_s22 + $0x120] sm:$0xff] %vm1841_vm2, %v1748_v20  ;;  %v1749_v46 = vmax.f32 %v1349_v27, 0.0  ;;  %2600 = vst.msk [vmem:[%s5333_s22 + $0x320] sm:$0xff] %vm1841_vm2, %v5755_v32  ;;  %v5764_v52 = vmax.f32 %v1605_v39, 0.0 }
 0x1b0   : > { %v1914_v47 = vadd.f32 %v1913_v43, %v1912_v4 }
 0x1b1   : > { %v2306_v57 = vsel %vm1841_vm2, %v2143_v44, 0.0  ;;  %v1915_v58 = vsel %vm1841_vm2, %v1749_v46, 0.0  ;;  %v2144_v59 = vmul.f32 %v1749_v46, %v1749_v46  ;;  %2537 = vst.msk [vmem:[%s5333_s22 + $0x128] sm:$0xff] %vm1841_vm2, %v1749_v46  ;;  %2601 = vst.msk [vmem:[%s5333_s22 + $0x328] sm:$0xff] %vm1841_vm2, %v5764_v52 }
 0x1b2   : > { %v2307_v8 = vadd.f32 %v2306_v57, %v2305_v19  ;;  %v1916_v9 = vadd.f32 %v1915_v58, %v1914_v47  ;;  %v1353_v13 = vpop.f32.mrb[76].mxu0  ;;  %v1609_v5 = vpop.f32.mrb[76].mxu1 }
 0x1b3   : > { %v2308_v10 = vsel %vm1841_vm2, %v2144_v59, 0.0  ;;  %v1354_v4 = vadd.f32 %v1353_v13, %v5317_v33  ;;  %v1355_v16 = vpop.f32.mrb[77].mxu0  ;;  %v1610_v17 = vadd.f32 %v1609_v5, %v5317_v33  ;;  %v1611_v21 = vpop.f32.mrb[77].mxu1 }
 0x1b4   : > { %v2309_v23 = vadd.f32 %v2308_v10, %v2307_v8  ;;  %v1356_v20 = vpop.f32.mrb[78].mxu0  ;;  %v1612_v27 = vpop.f32.mrb[78].mxu1 }
 0x1b5   : > { %v1750_v19 = vmax.f32 %v1354_v4, 0.0  ;;  %v1357_v29 = vadd.f32 %v1356_v20, %v5317_v33  ;;  %v1358_v37 = vpop.f32.mrb[79].mxu0  ;;  %v5777_v39 = vmax.f32 %v1610_v17, 0.0  ;;  %v1614_v43 = vpop.f32.mrb[79].mxu1  ;;  %v1613_v44 = vadd.f32 %v1612_v27, %v5317_v33 }
 0x1b7   : > { %v1917_v46 = vsel %vm1841_vm2, %v1750_v19, 0.0  ;;  %v2145_v47 = vmul.f32 %v1750_v19, %v1750_v19  ;;  %2538 = vst.msk [vmem:[%s5333_s22 + $0x130] sm:$0xff] %vm1841_vm2, %v1750_v19  ;;  %v1751_v57 = vmax.f32 %v1357_v29, 0.0  ;;  %2602 = vst.msk [vmem:[%s5333_s22 + $0x330] sm:$0xff] %vm1841_vm2, %v5777_v39  ;;  %v5786_v59 = vmax.f32 %v1613_v44, 0.0 }
 0x1b8   : > { %v1918_v58 = vadd.f32 %v1917_v46, %v1916_v9 }
 0x1b9   : > { %v2310_v8 = vsel %vm1841_vm2, %v2145_v47, 0.0  ;;  %v1919_v13 = vsel %vm1841_vm2, %v1751_v57, 0.0  ;;  %v2146_v5 = vmul.f32 %v1751_v57, %v1751_v57  ;;  %2539 = vst.msk [vmem:[%s5333_s22 + $0x138] sm:$0xff] %vm1841_vm2, %v1751_v57  ;;  %2603 = vst.msk [vmem:[%s5333_s22 + $0x338] sm:$0xff] %vm1841_vm2, %v5786_v59 }
 0x1ba   : > { %v2311_v10 = vadd.f32 %v2310_v8, %v2309_v23  ;;  %v1920_v4 = vadd.f32 %v1919_v13, %v1918_v58  ;;  %v1361_v16 = vpop.f32.mrb[80].mxu0  ;;  %v1617_v17 = vpop.f32.mrb[80].mxu1 }
 0x1bb   : > { %v2312_v21 = vsel %vm1841_vm2, %v2146_v5, 0.0  ;;  %v1362_v9 = vadd.f32 %v1361_v16, %v5317_v33  ;;  %v1363_v20 = vpop.f32.mrb[81].mxu0  ;;  %v1618_v27 = vadd.f32 %v1617_v17, %v5317_v33  ;;  %v1619_v19 = vpop.f32.mrb[81].mxu1 }
 0x1bc   : > { %v2313_v29 = vadd.f32 %v2312_v21, %v2311_v10  ;;  %v1364_v37 = vpop.f32.mrb[82].mxu0  ;;  %v1620_v43 = vpop.f32.mrb[82].mxu1 }
 0x1bd   : > { %v1752_v23 = vmax.f32 %v1362_v9, 0.0  ;;  %v1365_v44 = vadd.f32 %v1364_v37, %v5317_v33  ;;  %v1366_v46 = vpop.f32.mrb[83].mxu0  ;;  %v5799_v47 = vmax.f32 %v1618_v27, 0.0  ;;  %v1622_v57 = vpop.f32.mrb[83].mxu1  ;;  %v1621_v58 = vadd.f32 %v1620_v43, %v5317_v33 }
 0x1bf   : > { %v1921_v8 = vsel %vm1841_vm2, %v1752_v23, 0.0  ;;  %v2147_v13 = vmul.f32 %v1752_v23, %v1752_v23  ;;  %2540 = vst.msk [vmem:[%s5333_s22 + $0x140] sm:$0xff] %vm1841_vm2, %v1752_v23  ;;  %v1753_v5 = vmax.f32 %v1365_v44, 0.0  ;;  %2604 = vst.msk [vmem:[%s5333_s22 + $0x340] sm:$0xff] %vm1841_vm2, %v5799_v47  ;;  %v5808_v16 = vmax.f32 %v1621_v58, 0.0 }
 0x1c0   : > { %v1922_v10 = vadd.f32 %v1921_v8, %v1920_v4 }
 0x1c1   : > { %v2314_v17 = vsel %vm1841_vm2, %v2147_v13, 0.0  ;;  %v1923_v21 = vsel %vm1841_vm2, %v1753_v5, 0.0  ;;  %v2148_v9 = vmul.f32 %v1753_v5, %v1753_v5  ;;  %2541 = vst.msk [vmem:[%s5333_s22 + $0x148] sm:$0xff] %vm1841_vm2, %v1753_v5  ;;  %2605 = vst.msk [vmem:[%s5333_s22 + $0x348] sm:$0xff] %vm1841_vm2, %v5808_v16 }
 0x1c2   : > { %v2315_v20 = vadd.f32 %v2314_v17, %v2313_v29  ;;  %v1924_v27 = vadd.f32 %v1923_v21, %v1922_v10  ;;  %v1369_v19 = vpop.f32.mrb[84].mxu0  ;;  %v1625_v37 = vpop.f32.mrb[84].mxu1 }
 0x1c3   : > { %v2316_v43 = vsel %vm1841_vm2, %v2148_v9, 0.0  ;;  %v1370_v4 = vadd.f32 %v1369_v19, %v5317_v33  ;;  %v1371_v23 = vpop.f32.mrb[85].mxu0  ;;  %v1626_v44 = vadd.f32 %v1625_v37, %v5317_v33  ;;  %v1627_v46 = vpop.f32.mrb[85].mxu1 }
 0x1c4   : > { %v2317_v57 = vadd.f32 %v2316_v43, %v2315_v20  ;;  %v1372_v58 = vpop.f32.mrb[86].mxu0  ;;  %v1628_v8 = vpop.f32.mrb[86].mxu1 }
 0x1c5   : > { %v1754_v29 = vmax.f32 %v1370_v4, 0.0  ;;  %v1373_v13 = vadd.f32 %v1372_v58, %v5317_v33  ;;  %v1374_v5 = vpop.f32.mrb[87].mxu0  ;;  %v5821_v10 = vmax.f32 %v1626_v44, 0.0  ;;  %v1630_v17 = vpop.f32.mrb[87].mxu1  ;;  %v1629_v21 = vadd.f32 %v1628_v8, %v5317_v33 }
 0x1c7   : > { %v1925_v9 = vsel %vm1841_vm2, %v1754_v29, 0.0  ;;  %v2149_v19 = vmul.f32 %v1754_v29, %v1754_v29  ;;  %2542 = vst.msk [vmem:[%s5333_s22 + $0x150] sm:$0xff] %vm1841_vm2, %v1754_v29  ;;  %v1755_v37 = vmax.f32 %v1373_v13, 0.0  ;;  %2606 = vst.msk [vmem:[%s5333_s22 + $0x350] sm:$0xff] %vm1841_vm2, %v5821_v10  ;;  %v5830_v43 = vmax.f32 %v1629_v21, 0.0 }
 0x1c8   : > { %v1926_v20 = vadd.f32 %v1925_v9, %v1924_v27 }
 0x1c9   : > { %v2318_v4 = vsel %vm1841_vm2, %v2149_v19, 0.0  ;;  %v1927_v23 = vsel %vm1841_vm2, %v1755_v37, 0.0  ;;  %v2150_v44 = vmul.f32 %v1755_v37, %v1755_v37  ;;  %2543 = vst.msk [vmem:[%s5333_s22 + $0x158] sm:$0xff] %vm1841_vm2, %v1755_v37  ;;  %2607 = vst.msk [vmem:[%s5333_s22 + $0x358] sm:$0xff] %vm1841_vm2, %v5830_v43 }
 0x1ca   : > { %v2319_v46 = vadd.f32 %v2318_v4, %v2317_v57  ;;  %v1928_v58 = vadd.f32 %v1927_v23, %v1926_v20  ;;  %v1377_v8 = vpop.f32.mrb[88].mxu0  ;;  %v1633_v29 = vpop.f32.mrb[88].mxu1 }
 0x1cb   : > { %v2320_v13 = vsel %vm1841_vm2, %v2150_v44, 0.0  ;;  %v1378_v27 = vadd.f32 %v1377_v8, %v5317_v33  ;;  %v1379_v5 = vpop.f32.mrb[89].mxu0  ;;  %v1634_v17 = vadd.f32 %v1633_v29, %v5317_v33  ;;  %v1635_v21 = vpop.f32.mrb[89].mxu1 }
 0x1cc   : > { %v2321_v9 = vadd.f32 %v2320_v13, %v2319_v46  ;;  %v1380_v19 = vpop.f32.mrb[90].mxu0  ;;  %v1636_v37 = vpop.f32.mrb[90].mxu1 }
 0x1cd   : > { %v1756_v57 = vmax.f32 %v1378_v27, 0.0  ;;  %v1381_v20 = vadd.f32 %v1380_v19, %v5317_v33  ;;  %v1382_v4 = vpop.f32.mrb[91].mxu0  ;;  %v5843_v23 = vmax.f32 %v1634_v17, 0.0  ;;  %v1638_v30 = vpop.f32.mrb[91].mxu1  ;;  %v1637_v44 = vadd.f32 %v1636_v37, %v5317_v33 }
 0x1cf   : > { %v1929_v8 = vsel %vm1841_vm2, %v1756_v57, 0.0  ;;  %v2151_v5 = vmul.f32 %v1756_v57, %v1756_v57  ;;  %2544 = vst.msk [vmem:[%s5333_s22 + $0x160] sm:$0xff] %vm1841_vm2, %v1756_v57  ;;  %v1757_v29 = vmax.f32 %v1381_v20, 0.0  ;;  %2608 = vst.msk [vmem:[%s5333_s22 + $0x360] sm:$0xff] %vm1841_vm2, %v5843_v23  ;;  %v5852_v13 = vmax.f32 %v1637_v44, 0.0 }
 0x1d0   : > { %v1930_v46 = vadd.f32 %v1929_v8, %v1928_v58 }
 0x1d1   : > { %7880 = vst [vmem:[#allocation7_spill] sm:$0xff] %v5852_v13  ;;  %v2322_v27 = vsel %vm1841_vm2, %v2151_v5, 0.0  ;;  %v1931_v17 = vsel %vm1841_vm2, %v1757_v29, 0.0  ;;  %v2152_v30 = vmul.f32 %v1757_v29, %v1757_v29  ;;  %2545 = vst.msk [vmem:[%s5333_s22 + $0x168] sm:$0xff] %vm1841_vm2, %v1757_v29 }
 0x1d2   : > { %v2323_v21 = vadd.f32 %v2322_v27, %v2321_v9  ;;  %v1932_v19 = vadd.f32 %v1931_v17, %v1930_v46  ;;  %v1385_v37 = vpop.f32.mrb[92].mxu0  ;;  %2609 = vst.msk [vmem:[%s5333_s22 + $0x368] sm:$0xff] %vm1841_vm2, %v5852_v13  ;;  %v1641_v57 = vpop.f32.mrb[92].mxu1 }
 0x1d3   : > { %v2324_v20 = vsel %vm1841_vm2, %v2152_v30, 0.0  ;;  %v1386_v58 = vadd.f32 %v1385_v37, %v5317_v33  ;;  %v1387_v4 = vpop.f32.mrb[93].mxu0  ;;  %v1642_v44 = vadd.f32 %v1641_v57, %v5317_v33  ;;  %v1643_v8 = vpop.f32.mrb[93].mxu1 }
 0x1d4   : > { %v2325_v5 = vadd.f32 %v2324_v20, %v2323_v21  ;;  %v1388_v0 = vpop.f32.mrb[94].mxu0  ;;  %v1644_v29 = vpop.f32.mrb[94].mxu1 }
 0x1d5   : > { %v1758_v9 = vmax.f32 %v1386_v58, 0.0  ;;  %v1389_v46 = vadd.f32 %v1388_v0, %v5317_v33  ;;  %v1390_v27 = vpop.f32.mrb[95].mxu0  ;;  %v5865_v17 = vmax.f32 %v1642_v44, 0.0  ;;  %v1646_v13 = vpop.f32.mrb[95].mxu1  ;;  %v1645_v30 = vadd.f32 %v1644_v29, %v5317_v33 }
 0x1d7   : > { %7881 = vst [vmem:[#allocation8_spill] sm:$0xff] %v5865_v17  ;;  %v1933_v37 = vsel %vm1841_vm2, %v1758_v9, 0.0  ;;  %v2153_v4 = vmul.f32 %v1758_v9, %v1758_v9  ;;  %2546 = vst.msk [vmem:[%s5333_s22 + $0x170] sm:$0xff] %vm1841_vm2, %v1758_v9  ;;  %v1759_v57 = vmax.f32 %v1389_v46, 0.0  ;;  %v5874_v20 = vmax.f32 %v1645_v30, 0.0 }
 0x1d8   : > { %2610 = vst.msk [vmem:[%s5333_s22 + $0x370] sm:$0xff] %vm1841_vm2, %v5865_v17  ;;  %v1934_v21 = vadd.f32 %v1933_v37, %v1932_v19 }
 0x1d9   : > { %7882 = vst [vmem:[#allocation9_spill] sm:$0xff] %v5874_v20  ;;  %v2326_v0 = vsel %vm1841_vm2, %v2153_v4, 0.0  ;;  %v1935_v58 = vsel %vm1841_vm2, %v1759_v57, 0.0  ;;  %v2154_v13 = vmul.f32 %v1759_v57, %v1759_v57  ;;  %2547 = vst.msk [vmem:[%s5333_s22 + $0x178] sm:$0xff] %vm1841_vm2, %v1759_v57 }
 0x1da   : > { %v2327_v44 = vadd.f32 %v2326_v0, %v2325_v5  ;;  %v1936_v8 = vadd.f32 %v1935_v58, %v1934_v21  ;;  %v1393_v29 = vpop.f32.mrb[96].mxu0  ;;  %2611 = vst.msk [vmem:[%s5333_s22 + $0x378] sm:$0xff] %vm1841_vm2, %v5874_v20  ;;  %v1649_v9 = vpop.f32.mrb[96].mxu1 }
 0x1db   : > { %v2328_v46 = vsel %vm1841_vm2, %v2154_v13, 0.0  ;;  %v1394_v19 = vadd.f32 %v1393_v29, %v5317_v33  ;;  %v1395_v27 = vpop.f32.mrb[97].mxu0  ;;  %v1650_v30 = vadd.f32 %v1649_v9, %v5317_v33  ;;  %v1651_v37 = vpop.f32.mrb[97].mxu1 }
 0x1dc   : > { %v2329_v4 = vadd.f32 %v2328_v46, %v2327_v44  ;;  %v1396_v17 = vpop.f32.mrb[98].mxu0  ;;  %v1652_v57 = vpop.f32.mrb[98].mxu1 }
 0x1dd   : > { %v1760_v5 = vmax.f32 %v1394_v19, 0.0  ;;  %v1397_v21 = vadd.f32 %v1396_v17, %v5317_v33  ;;  %v1398_v0 = vpop.f32.mrb[99].mxu0  ;;  %v5887_v58 = vmax.f32 %v1650_v30, 0.0  ;;  %v1654_v20 = vpop.f32.mrb[99].mxu1  ;;  %v1653_v13 = vadd.f32 %v1652_v57, %v5317_v33 }
 0x1df   : > { %7883 = vst [vmem:[#allocation10_spill] sm:$0xff] %v5887_v58  ;;  %v1937_v29 = vsel %vm1841_vm2, %v1760_v5, 0.0  ;;  %v2155_v27 = vmul.f32 %v1760_v5, %v1760_v5  ;;  %2548 = vst.msk [vmem:[%s5333_s22 + $0x180] sm:$0xff] %vm1841_vm2, %v1760_v5  ;;  %v1761_v9 = vmax.f32 %v1397_v21, 0.0  ;;  %v5896_v46 = vmax.f32 %v1653_v13, 0.0 }
 0x1e0   : > { %2612 = vst.msk [vmem:[%s5333_s22 + $0x380] sm:$0xff] %vm1841_vm2, %v5887_v58  ;;  %v1938_v44 = vadd.f32 %v1937_v29, %v1936_v8 }
 0x1e1   : > { %7884 = vst [vmem:[#allocation11_spill] sm:$0xff] %v5896_v46  ;;  %v2330_v17 = vsel %vm1841_vm2, %v2155_v27, 0.0  ;;  %v1939_v19 = vsel %vm1841_vm2, %v1761_v9, 0.0  ;;  %v2156_v20 = vmul.f32 %v1761_v9, %v1761_v9  ;;  %2549 = vst.msk [vmem:[%s5333_s22 + $0x188] sm:$0xff] %vm1841_vm2, %v1761_v9 }
 0x1e2   : > { %v2331_v30 = vadd.f32 %v2330_v17, %v2329_v4  ;;  %v1940_v37 = vadd.f32 %v1939_v19, %v1938_v44  ;;  %v1401_v57 = vpop.f32.mrb[100].mxu0  ;;  %2613 = vst.msk [vmem:[%s5333_s22 + $0x388] sm:$0xff] %vm1841_vm2, %v5896_v46  ;;  %v1657_v5 = vpop.f32.mrb[100].mxu1 }
 0x1e3   : > { %v2332_v21 = vsel %vm1841_vm2, %v2156_v20, 0.0  ;;  %v1402_v8 = vadd.f32 %v1401_v57, %v5317_v33  ;;  %v1403_v0 = vpop.f32.mrb[101].mxu0  ;;  %v1658_v13 = vadd.f32 %v1657_v5, %v5317_v33  ;;  %v1659_v29 = vpop.f32.mrb[101].mxu1 }
 0x1e4   : > { %v2333_v27 = vadd.f32 %v2332_v21, %v2331_v30  ;;  %v1404_v58 = vpop.f32.mrb[102].mxu0  ;;  %v1660_v9 = vpop.f32.mrb[102].mxu1 }
 0x1e5   : > { %v1762_v4 = vmax.f32 %v1402_v8, 0.0  ;;  %v1405_v44 = vadd.f32 %v1404_v58, %v5317_v33  ;;  %v1406_v17 = vpop.f32.mrb[103].mxu0  ;;  %v5909_v19 = vmax.f32 %v1658_v13, 0.0  ;;  %v1662_v46 = vpop.f32.mrb[103].mxu1  ;;  %v1661_v20 = vadd.f32 %v1660_v9, %v5317_v33 }
 0x1e7   : > { %7885 = vst [vmem:[#allocation12_spill] sm:$0xff] %v5909_v19  ;;  %v1941_v57 = vsel %vm1841_vm2, %v1762_v4, 0.0  ;;  %v2157_v0 = vmul.f32 %v1762_v4, %v1762_v4  ;;  %2550 = vst.msk [vmem:[%s5333_s22 + $0x190] sm:$0xff] %vm1841_vm2, %v1762_v4  ;;  %v1763_v5 = vmax.f32 %v1405_v44, 0.0  ;;  %v5918_v21 = vmax.f32 %v1661_v20, 0.0 }
 0x1e8   : > { %2614 = vst.msk [vmem:[%s5333_s22 + $0x390] sm:$0xff] %vm1841_vm2, %v5909_v19  ;;  %v1942_v30 = vadd.f32 %v1941_v57, %v1940_v37 }
 0x1e9   : > { %7886 = vst [vmem:[#allocation13_spill] sm:$0xff] %v5918_v21  ;;  %v2334_v58 = vsel %vm1841_vm2, %v2157_v0, 0.0  ;;  %v1943_v8 = vsel %vm1841_vm2, %v1763_v5, 0.0  ;;  %v2158_v46 = vmul.f32 %v1763_v5, %v1763_v5  ;;  %2551 = vst.msk [vmem:[%s5333_s22 + $0x198] sm:$0xff] %vm1841_vm2, %v1763_v5 }
 0x1ea   : > { %v2335_v13 = vadd.f32 %v2334_v58, %v2333_v27  ;;  %v1944_v29 = vadd.f32 %v1943_v8, %v1942_v30  ;;  %v1409_v9 = vpop.f32.mrb[104].mxu0  ;;  %2615 = vst.msk [vmem:[%s5333_s22 + $0x398] sm:$0xff] %vm1841_vm2, %v5918_v21  ;;  %v1665_v4 = vpop.f32.mrb[104].mxu1 }
 0x1eb   : > { %v2336_v44 = vsel %vm1841_vm2, %v2158_v46, 0.0  ;;  %v1410_v37 = vadd.f32 %v1409_v9, %v5317_v33  ;;  %v1411_v17 = vpop.f32.mrb[105].mxu0  ;;  %v1666_v20 = vadd.f32 %v1665_v4, %v5317_v33  ;;  %v1667_v57 = vpop.f32.mrb[105].mxu1 }
 0x1ec   : > { %v2337_v0 = vadd.f32 %v2336_v44, %v2335_v13  ;;  %v1412_v19 = vpop.f32.mrb[106].mxu0  ;;  %v1668_v5 = vpop.f32.mrb[106].mxu1 }
 0x1ed   : > { %v1764_v27 = vmax.f32 %v1410_v37, 0.0  ;;  %v1413_v30 = vadd.f32 %v1412_v19, %v5317_v33  ;;  %v1414_v58 = vpop.f32.mrb[107].mxu0  ;;  %v5931_v8 = vmax.f32 %v1666_v20, 0.0  ;;  %v1670_v21 = vpop.f32.mrb[107].mxu1  ;;  %v1669_v46 = vadd.f32 %v1668_v5, %v5317_v33 }
 0x1ef   : > { %7887 = vst [vmem:[#allocation14_spill] sm:$0xff] %v5931_v8  ;;  %v1945_v9 = vsel %vm1841_vm2, %v1764_v27, 0.0  ;;  %v2159_v17 = vmul.f32 %v1764_v27, %v1764_v27  ;;  %2552 = vst.msk [vmem:[%s5333_s22 + $0x1a0] sm:$0xff] %vm1841_vm2, %v1764_v27  ;;  %v1765_v4 = vmax.f32 %v1413_v30, 0.0  ;;  %v5940_v44 = vmax.f32 %v1669_v46, 0.0 }
 0x1f0   : > { %2616 = vst.msk [vmem:[%s5333_s22 + $0x3a0] sm:$0xff] %vm1841_vm2, %v5931_v8  ;;  %v1946_v13 = vadd.f32 %v1945_v9, %v1944_v29 }
 0x1f1   : > { %7888 = vst [vmem:[#allocation15_spill] sm:$0xff] %v5940_v44  ;;  %v2338_v19 = vsel %vm1841_vm2, %v2159_v17, 0.0  ;;  %v1947_v37 = vsel %vm1841_vm2, %v1765_v4, 0.0  ;;  %v2160_v21 = vmul.f32 %v1765_v4, %v1765_v4  ;;  %2553 = vst.msk [vmem:[%s5333_s22 + $0x1a8] sm:$0xff] %vm1841_vm2, %v1765_v4 }
 0x1f2   : > { %v2339_v20 = vadd.f32 %v2338_v19, %v2337_v0  ;;  %v1948_v57 = vadd.f32 %v1947_v37, %v1946_v13  ;;  %v1417_v5 = vpop.f32.mrb[108].mxu0  ;;  %2617 = vst.msk [vmem:[%s5333_s22 + $0x3a8] sm:$0xff] %vm1841_vm2, %v5940_v44  ;;  %v1673_v27 = vpop.f32.mrb[108].mxu1 }
 0x1f3   : > { %v2340_v30 = vsel %vm1841_vm2, %v2160_v21, 0.0  ;;  %v1418_v29 = vadd.f32 %v1417_v5, %v5317_v33  ;;  %v1419_v58 = vpop.f32.mrb[109].mxu0  ;;  %v1674_v46 = vadd.f32 %v1673_v27, %v5317_v33  ;;  %v1675_v9 = vpop.f32.mrb[109].mxu1 }
 0x1f4   : > { %v2341_v17 = vadd.f32 %v2340_v30, %v2339_v20  ;;  %v1420_v8 = vpop.f32.mrb[110].mxu0  ;;  %v1676_v4 = vpop.f32.mrb[110].mxu1 }
 0x1f5   : > { %v1766_v0 = vmax.f32 %v1418_v29, 0.0  ;;  %v1421_v13 = vadd.f32 %v1420_v8, %v5317_v33  ;;  %v1422_v19 = vpop.f32.mrb[111].mxu0  ;;  %v5953_v37 = vmax.f32 %v1674_v46, 0.0  ;;  %v1678_v44 = vpop.f32.mrb[111].mxu1  ;;  %v1677_v21 = vadd.f32 %v1676_v4, %v5317_v33 }
 0x1f7   : > { %7889 = vst [vmem:[#allocation16_spill] sm:$0xff] %v5953_v37  ;;  %v1949_v5 = vsel %vm1841_vm2, %v1766_v0, 0.0  ;;  %v2161_v58 = vmul.f32 %v1766_v0, %v1766_v0  ;;  %2554 = vst.msk [vmem:[%s5333_s22 + $0x1b0] sm:$0xff] %vm1841_vm2, %v1766_v0  ;;  %v1767_v27 = vmax.f32 %v1421_v13, 0.0  ;;  %v5962_v30 = vmax.f32 %v1677_v21, 0.0 }
 0x1f8   : > { %2618 = vst.msk [vmem:[%s5333_s22 + $0x3b0] sm:$0xff] %vm1841_vm2, %v5953_v37  ;;  %v1950_v20 = vadd.f32 %v1949_v5, %v1948_v57 }
 0x1f9   : > { %7890 = vst [vmem:[#allocation17_spill] sm:$0xff] %v5962_v30  ;;  %v2342_v8 = vsel %vm1841_vm2, %v2161_v58, 0.0  ;;  %v1951_v29 = vsel %vm1841_vm2, %v1767_v27, 0.0  ;;  %v2162_v44 = vmul.f32 %v1767_v27, %v1767_v27  ;;  %2555 = vst.msk [vmem:[%s5333_s22 + $0x1b8] sm:$0xff] %vm1841_vm2, %v1767_v27 }
 0x1fa   : > { %v2343_v46 = vadd.f32 %v2342_v8, %v2341_v17  ;;  %v1952_v9 = vadd.f32 %v1951_v29, %v1950_v20  ;;  %v1425_v4 = vpop.f32.mrb[112].mxu0  ;;  %2619 = vst.msk [vmem:[%s5333_s22 + $0x3b8] sm:$0xff] %vm1841_vm2, %v5962_v30  ;;  %v1681_v0 = vpop.f32.mrb[112].mxu1 }
 0x1fb   : > { %v2344_v13 = vsel %vm1841_vm2, %v2162_v44, 0.0  ;;  %v1426_v57 = vadd.f32 %v1425_v4, %v5317_v33  ;;  %v1427_v19 = vpop.f32.mrb[113].mxu0  ;;  %v1682_v21 = vadd.f32 %v1681_v0, %v5317_v33  ;;  %v1683_v5 = vpop.f32.mrb[113].mxu1 }
 0x1fc   : > { %v2345_v58 = vadd.f32 %v2344_v13, %v2343_v46  ;;  %v1428_v37 = vpop.f32.mrb[114].mxu0  ;;  %v1684_v27 = vpop.f32.mrb[114].mxu1 }
 0x1fd   : > { %v1768_v17 = vmax.f32 %v1426_v57, 0.0  ;;  %v1429_v20 = vadd.f32 %v1428_v37, %v5317_v33  ;;  %v1430_v8 = vpop.f32.mrb[115].mxu0  ;;  %v5975_v29 = vmax.f32 %v1682_v21, 0.0  ;;  %v1686_v30 = vpop.f32.mrb[115].mxu1  ;;  %v1685_v44 = vadd.f32 %v1684_v27, %v5317_v33 }
 0x1ff   : > { %7891 = vst [vmem:[#allocation18_spill] sm:$0xff] %v5975_v29  ;;  %v1953_v4 = vsel %vm1841_vm2, %v1768_v17, 0.0  ;;  %v2163_v19 = vmul.f32 %v1768_v17, %v1768_v17  ;;  %2556 = vst.msk [vmem:[%s5333_s22 + $0x1c0] sm:$0xff] %vm1841_vm2, %v1768_v17  ;;  %v1769_v0 = vmax.f32 %v1429_v20, 0.0  ;;  %v5984_v13 = vmax.f32 %v1685_v44, 0.0 }
 0x200   : > { %2620 = vst.msk [vmem:[%s5333_s22 + $0x3c0] sm:$0xff] %vm1841_vm2, %v5975_v29  ;;  %v1954_v46 = vadd.f32 %v1953_v4, %v1952_v9 }
 0x201   : > { %7892 = vst [vmem:[#allocation19_spill] sm:$0xff] %v5984_v13  ;;  %v2346_v37 = vsel %vm1841_vm2, %v2163_v19, 0.0  ;;  %v1955_v57 = vsel %vm1841_vm2, %v1769_v0, 0.0  ;;  %v2164_v30 = vmul.f32 %v1769_v0, %v1769_v0  ;;  %2557 = vst.msk [vmem:[%s5333_s22 + $0x1c8] sm:$0xff] %vm1841_vm2, %v1769_v0 }
 0x202   : > { %v2347_v21 = vadd.f32 %v2346_v37, %v2345_v58  ;;  %v1956_v5 = vadd.f32 %v1955_v57, %v1954_v46  ;;  %v1433_v27 = vpop.f32.mrb[116].mxu0  ;;  %2621 = vst.msk [vmem:[%s5333_s22 + $0x3c8] sm:$0xff] %vm1841_vm2, %v5984_v13  ;;  %v1689_v17 = vpop.f32.mrb[116].mxu1 }
 0x203   : > { %v2348_v20 = vsel %vm1841_vm2, %v2164_v30, 0.0  ;;  %v1434_v9 = vadd.f32 %v1433_v27, %v5317_v33  ;;  %v1435_v8 = vpop.f32.mrb[117].mxu0  ;;  %v1690_v44 = vadd.f32 %v1689_v17, %v5317_v33  ;;  %v1691_v4 = vpop.f32.mrb[117].mxu1 }
 0x204   : > { %v2349_v19 = vadd.f32 %v2348_v20, %v2347_v21  ;;  %v1436_v29 = vpop.f32.mrb[118].mxu0  ;;  %v1692_v0 = vpop.f32.mrb[118].mxu1 }
 0x205   : > { %v1770_v58 = vmax.f32 %v1434_v9, 0.0  ;;  %v1437_v46 = vadd.f32 %v1436_v29, %v5317_v33  ;;  %v1438_v37 = vpop.f32.mrb[119].mxu0  ;;  %v5997_v57 = vmax.f32 %v1690_v44, 0.0  ;;  %v1694_v13 = vpop.f32.mrb[119].mxu1  ;;  %v1693_v30 = vadd.f32 %v1692_v0, %v5317_v33 }
 0x207   : > { %7893 = vst [vmem:[#allocation20_spill] sm:$0xff] %v5997_v57  ;;  %v1957_v27 = vsel %vm1841_vm2, %v1770_v58, 0.0  ;;  %v2165_v8 = vmul.f32 %v1770_v58, %v1770_v58  ;;  %2558 = vst.msk [vmem:[%s5333_s22 + $0x1d0] sm:$0xff] %vm1841_vm2, %v1770_v58  ;;  %v1771_v17 = vmax.f32 %v1437_v46, 0.0  ;;  %v6006_v20 = vmax.f32 %v1693_v30, 0.0 }
 0x208   : > { %2622 = vst.msk [vmem:[%s5333_s22 + $0x3d0] sm:$0xff] %vm1841_vm2, %v5997_v57  ;;  %v1958_v21 = vadd.f32 %v1957_v27, %v1956_v5 }
 0x209   : > { %7894 = vst [vmem:[#allocation21_spill] sm:$0xff] %v6006_v20  ;;  %v2350_v29 = vsel %vm1841_vm2, %v2165_v8, 0.0  ;;  %v1959_v9 = vsel %vm1841_vm2, %v1771_v17, 0.0  ;;  %v2166_v13 = vmul.f32 %v1771_v17, %v1771_v17  ;;  %2559 = vst.msk [vmem:[%s5333_s22 + $0x1d8] sm:$0xff] %vm1841_vm2, %v1771_v17 }
 0x20a   : > { %v2351_v44 = vadd.f32 %v2350_v29, %v2349_v19  ;;  %v1960_v4 = vadd.f32 %v1959_v9, %v1958_v21  ;;  %v1441_v0 = vpop.f32.mrb[120].mxu0  ;;  %2623 = vst.msk [vmem:[%s5333_s22 + $0x3d8] sm:$0xff] %vm1841_vm2, %v6006_v20  ;;  %v1697_v58 = vpop.f32.mrb[120].mxu1 }
 0x20b   : > { %v2352_v46 = vsel %vm1841_vm2, %v2166_v13, 0.0  ;;  %v1442_v5 = vadd.f32 %v1441_v0, %v5317_v33  ;;  %v1443_v37 = vpop.f32.mrb[121].mxu0  ;;  %v1698_v30 = vadd.f32 %v1697_v58, %v5317_v33  ;;  %v1699_v27 = vpop.f32.mrb[121].mxu1 }
 0x20c   : > { %v2353_v8 = vadd.f32 %v2352_v46, %v2351_v44  ;;  %v1444_v57 = vpop.f32.mrb[122].mxu0  ;;  %v1700_v17 = vpop.f32.mrb[122].mxu1 }
 0x20d   : > { %v1772_v19 = vmax.f32 %v1442_v5, 0.0  ;;  %v1445_v21 = vadd.f32 %v1444_v57, %v5317_v33  ;;  %v1446_v29 = vpop.f32.mrb[123].mxu0  ;;  %v6019_v9 = vmax.f32 %v1698_v30, 0.0  ;;  %v1702_v20 = vpop.f32.mrb[123].mxu1  ;;  %v1701_v13 = vadd.f32 %v1700_v17, %v5317_v33 }
 0x20f   : > { %7895 = vst [vmem:[#allocation22_spill] sm:$0xff] %v6019_v9  ;;  %v1961_v0 = vsel %vm1841_vm2, %v1772_v19, 0.0  ;;  %v2167_v37 = vmul.f32 %v1772_v19, %v1772_v19  ;;  %2560 = vst.msk [vmem:[%s5333_s22 + $0x1e0] sm:$0xff] %vm1841_vm2, %v1772_v19  ;;  %v1773_v58 = vmax.f32 %v1445_v21, 0.0  ;;  %v6028_v46 = vmax.f32 %v1701_v13, 0.0 }
 0x210   : > { %2624 = vst.msk [vmem:[%s5333_s22 + $0x3e0] sm:$0xff] %vm1841_vm2, %v6019_v9  ;;  %v1962_v44 = vadd.f32 %v1961_v0, %v1960_v4 }
 0x211   : > { %7896 = vst [vmem:[#allocation23_spill] sm:$0xff] %v6028_v46  ;;  %v2354_v57 = vsel %vm1841_vm2, %v2167_v37, 0.0  ;;  %v1963_v5 = vsel %vm1841_vm2, %v1773_v58, 0.0  ;;  %v2168_v20 = vmul.f32 %v1773_v58, %v1773_v58  ;;  %2561 = vst.msk [vmem:[%s5333_s22 + $0x1e8] sm:$0xff] %vm1841_vm2, %v1773_v58 }
 0x212   : > { %v2355_v30 = vadd.f32 %v2354_v57, %v2353_v8  ;;  %v1964_v27 = vadd.f32 %v1963_v5, %v1962_v44  ;;  %v1449_v17 = vpop.f32.mrb[124].mxu0  ;;  %2625 = vst.msk [vmem:[%s5333_s22 + $0x3e8] sm:$0xff] %vm1841_vm2, %v6028_v46  ;;  %v1705_v19 = vpop.f32.mrb[124].mxu1 }
 0x213   : > { %v2356_v21 = vsel %vm1841_vm2, %v2168_v20, 0.0  ;;  %v1450_v4 = vadd.f32 %v1449_v17, %v5317_v33  ;;  %v1451_v29 = vpop.f32.mrb[125].mxu0  ;;  %v1706_v13 = vadd.f32 %v1705_v19, %v5317_v33  ;;  %v1707_v0 = vpop.f32.mrb[125].mxu1 }
 0x214   : > { %v2357_v37 = vadd.f32 %v2356_v21, %v2355_v30  ;;  %v1452_v9 = vpop.f32.mrb[126].mxu0  ;;  %v1708_v58 = vpop.f32.mrb[126].mxu1 }
 0x215   : > { %v1774_v8 = vmax.f32 %v1450_v4, 0.0  ;;  %v1453_v44 = vadd.f32 %v1452_v9, %v5317_v33  ;;  %v1454_v57 = vpop.f32.mrb[127].mxu0  ;;  %v6041_v5 = vmax.f32 %v1706_v13, 0.0  ;;  %v1710_v46 = vpop.f32.mrb[127].mxu1  ;;  %v1709_v20 = vadd.f32 %v1708_v58, %v5317_v33 }
 0x216   : > { %v2171_v9 = vmul.f32 %v5330_v51, %v5330_v51  ;;  %v2172_v58 = vmul.f32 %v5341_v56, %v5341_v56 }
 0x217   : > { %v1965_v17 = vsel %vm1841_vm2, %v1774_v8, 0.0  ;;  %v2169_v29 = vmul.f32 %v1774_v8, %v1774_v8  ;;  %2562 = vst.msk [vmem:[%s5333_s22 + $0x1f0] sm:$0xff] %vm1841_vm2, %v1774_v8  ;;  %v1775_v19 = vmax.f32 %v1453_v44, 0.0  ;;  %2626 = vst.msk [vmem:[%s5333_s22 + $0x3f0] sm:$0xff] %vm1841_vm2, %v6041_v5  ;;  %v6050_v21 = vmax.f32 %v1709_v20, 0.0 }
 0x218   : > { %v1966_v30 = vadd.f32 %v1965_v17, %v1964_v27  ;;  %v1969_v27 = vsel %vm1841_vm2, %v5330_v51, 0.0  ;;  %v2362_v20 = vsel %vm1841_vm2, %v2171_v9, 0.0  ;;  %v1971_v17 = vsel %vm1841_vm2, %v5341_v56, 0.0 }
 0x219   : > { %v2358_v46 = vsel %vm1841_vm2, %v2169_v29, 0.0  ;;  %v1967_v4 = vsel %vm1841_vm2, %v1775_v19, 0.0  ;;  %v2170_v33 = vmul.f32 %v1775_v19, %v1775_v19  ;;  %2563 = vst.msk [vmem:[%s5333_s22 + $0x1f8] sm:$0xff] %vm1841_vm2, %v1775_v19  ;;  %2627 = vst.msk [vmem:[%s5333_s22 + $0x3f8] sm:$0xff] %vm1841_vm2, %v6050_v21  ;;  %v1973_v51 = vsel %vm1841_vm2, %v5361_v18, 0.0 }
 0x21a   : > { %v2359_v13 = vadd.f32 %v2358_v46, %v2357_v37  ;;  %v1968_v0 = vadd.f32 %v1967_v4, %v1966_v30  ;;  %v2173_v37 = vmul.f32 %v5361_v18, %v5361_v18  ;;  %v2364_v30 = vsel %vm1841_vm2, %v2172_v58, 0.0 }
 0x21b   : > { %v2360_v8 = vsel %vm1841_vm2, %v2170_v33, 0.0  ;;  %v2174_v46 = vmul.f32 %v5371_v25, %v5371_v25  ;;  %v1975_v56 = vsel %vm1841_vm2, %v5371_v25, 0.0  ;;  %v1977_v18 = vsel %vm1841_vm2, %v5390_v53, 0.0 }
 0x21c   : > { %v1970_v44 = vadd.f32 %v1969_v27, %v1968_v0  ;;  %v2361_v57 = vadd.f32 %v2360_v8, %v2359_v13  ;;  %v2366_v9 = vsel %vm1841_vm2, %v2173_v37, 0.0  ;;  %v2175_v13 = vmul.f32 %v5390_v53, %v5390_v53 }
 0x21d   : > { %v2368_v58 = vsel %vm1841_vm2, %v2174_v46, 0.0  ;;  %v2176_v8 = vmul.f32 %v5400_v61, %v5400_v61  ;;  %v1979_v25 = vsel %vm1841_vm2, %v5400_v61, 0.0  ;;  %v1981_v53 = vsel %vm1841_vm2, %v5419_v24, 0.0 }
 0x21e   : > { %v1972_v29 = vadd.f32 %v1971_v17, %v1970_v44  ;;  %v2363_v19 = vadd.f32 %v2362_v20, %v2361_v57  ;;  %v2370_v20 = vsel %vm1841_vm2, %v2175_v13, 0.0  ;;  %v2177_v17 = vmul.f32 %v5419_v24, %v5419_v24 }
 0x21f   : > { %v1983_v61 = vsel %vm1841_vm2, %v5429_v34, 0.0  ;;  %v1985_v24 = vsel %vm1841_vm2, %v5447_v62, 0.0 }
 0x220   : > { %v1974_v4 = vadd.f32 %v1973_v51, %v1972_v29  ;;  %v2365_v33 = vadd.f32 %v2364_v30, %v2363_v19  ;;  %v2372_v19 = vsel %vm1841_vm2, %v2176_v8, 0.0  ;;  %v2178_v30 = vmul.f32 %v5429_v34, %v5429_v34 }
 0x221   : > { %v1987_v34 = vsel %vm1841_vm2, %v5456_v6, 0.0  ;;  %v2181_v8 = vmul.f32 %v5469_v28, %v5469_v28 }
 0x222   : > { %v1976_v0 = vadd.f32 %v1975_v56, %v1974_v4  ;;  %v2367_v27 = vadd.f32 %v2366_v9, %v2365_v33  ;;  %v2374_v4 = vsel %vm1841_vm2, %v2177_v17, 0.0  ;;  %v2179_v33 = vmul.f32 %v5447_v62, %v5447_v62 }
 0x223   : > { %v2376_v13 = vsel %vm1841_vm2, %v2178_v30, 0.0  ;;  %v1989_v62 = vsel %vm1841_vm2, %v5469_v28, 0.0  ;;  %v1993_v28 = vsel %vm1841_vm2, %v5491_v60, 0.0 }
 0x224   : > { %v1978_v44 = vadd.f32 %v1977_v18, %v1976_v0  ;;  %v2369_v57 = vadd.f32 %v2368_v58, %v2367_v27  ;;  %v2180_v0 = vmul.f32 %v5456_v6, %v5456_v6  ;;  %v2378_v18 = vsel %vm1841_vm2, %v2179_v33, 0.0 }
 0x225   : > { %v1991_v6 = vsel %vm1841_vm2, %v5478_v38, 0.0 }
 0x226   : > { %v1980_v37 = vadd.f32 %v1979_v25, %v1978_v44  ;;  %v2371_v29 = vadd.f32 %v2370_v20, %v2369_v57  ;;  %v2380_v20 = vsel %vm1841_vm2, %v2180_v0, 0.0  ;;  %v2182_v25 = vmul.f32 %v5478_v38, %v5478_v38 }
 0x227   : > { %v1995_v38 = vsel %vm1841_vm2, %v5500_v7, 0.0  ;;  %v2186_v0 = vmul.f32 %v5522_v41, %v5522_v41 }
 0x228   : > { %v1982_v51 = vadd.f32 %v1981_v53, %v1980_v37  ;;  %v2373_v46 = vadd.f32 %v2372_v19, %v2371_v29  ;;  %v2382_v29 = vsel %vm1841_vm2, %v2181_v8, 0.0  ;;  %v2183_v19 = vmul.f32 %v5491_v60, %v5491_v60 }
 0x229   : > { %v1997_v60 = vsel %vm1841_vm2, %v5513_v31, 0.0 }
 0x22a   : > { %v1984_v9 = vadd.f32 %v1983_v61, %v1982_v51  ;;  %v2375_v56 = vadd.f32 %v2374_v4, %v2373_v46  ;;  %v2384_v51 = vsel %vm1841_vm2, %v2182_v25, 0.0  ;;  %v2184_v46 = vmul.f32 %v5500_v7, %v5500_v7 }
 0x22b   : > { %v2386_v33 = vsel %vm1841_vm2, %v2183_v19, 0.0  ;;  %v1999_v7 = vsel %vm1841_vm2, %v5522_v41, 0.0  ;;  %v2003_v41 = vsel %vm1841_vm2, %v5544_v12, 0.0 }
 0x22c   : > { %v1986_v27 = vadd.f32 %v1985_v24, %v1984_v9  ;;  %v2377_v58 = vadd.f32 %v2376_v13, %v2375_v56  ;;  %v2185_v9 = vmul.f32 %v5513_v31, %v5513_v31  ;;  %v2388_v24 = vsel %vm1841_vm2, %v2184_v46, 0.0 }
 0x22d   : > { %v2001_v31 = vsel %vm1841_vm2, %v5535_v3, 0.0  ;;  %v2191_v46 = vmul.f32 %v5579_v14, %v5579_v14 }
 0x22e   : > { %v1988_v44 = vadd.f32 %v1987_v34, %v1986_v27  ;;  %v2379_v57 = vadd.f32 %v2378_v18, %v2377_v58  ;;  %v2390_v18 = vsel %vm1841_vm2, %v2185_v9, 0.0  ;;  %v2187_v34 = vmul.f32 %v5535_v3, %v5535_v3 }
 0x22f   : > { %v2005_v3 = vsel %vm1841_vm2, %v5557_v40, 0.0 }
 0x230   : > { %v1990_v17 = vadd.f32 %v1989_v62, %v1988_v44  ;;  %v2381_v37 = vadd.f32 %v2380_v20, %v2379_v57  ;;  %v2392_v57 = vsel %vm1841_vm2, %v2186_v0, 0.0  ;;  %v2188_v20 = vmul.f32 %v5544_v12, %v5544_v12 }
 0x231   : > { %v2007_v12 = vsel %vm1841_vm2, %v5566_v48, 0.0 }
 0x232   : > { %v1992_v53 = vadd.f32 %v1991_v6, %v1990_v17  ;;  %v2383_v30 = vadd.f32 %v2382_v29, %v2381_v37  ;;  %v2394_v17 = vsel %vm1841_vm2, %v2187_v34, 0.0  ;;  %v2189_v37 = vmul.f32 %v5557_v40, %v5557_v40 }
 0x233   : > { %v2396_v19 = vsel %vm1841_vm2, %v2188_v20, 0.0  ;;  %v2009_v40 = vsel %vm1841_vm2, %v5579_v14, 0.0  ;;  %v2013_v14 = vsel %vm1841_vm2, %v5601_v54, 0.0  ;;  %v2196_v20 = vmul.f32 %v5632_v45, %v5632_v45 }
 0x234   : > { %v1994_v4 = vadd.f32 %v1993_v28, %v1992_v53  ;;  %v2385_v61 = vadd.f32 %v2384_v51, %v2383_v30  ;;  %v2190_v53 = vmul.f32 %v5566_v48, %v5566_v48  ;;  %v2398_v28 = vsel %vm1841_vm2, %v2189_v37, 0.0 }
 0x235   : > { %v2011_v48 = vsel %vm1841_vm2, %v5588_v22, 0.0 }
 0x236   : > { %v1996_v56 = vadd.f32 %v1995_v38, %v1994_v4  ;;  %v2387_v13 = vadd.f32 %v2386_v33, %v2385_v61  ;;  %v2400_v33 = vsel %vm1841_vm2, %v2190_v53, 0.0  ;;  %v2192_v38 = vmul.f32 %v5588_v22, %v5588_v22 }
 0x237   : > { %v2015_v22 = vsel %vm1841_vm2, %v5610_v2, 0.0 }
 0x238   : > { %v1998_v27 = vadd.f32 %v1997_v60, %v1996_v56  ;;  %v2389_v58 = vadd.f32 %v2388_v24, %v2387_v13  ;;  %v2402_v13 = vsel %vm1841_vm2, %v2191_v46, 0.0  ;;  %v2193_v24 = vmul.f32 %v5601_v54, %v5601_v54 }
 0x239   : > { %v2017_v54 = vsel %vm1841_vm2, %v5623_v35, 0.0 }
 0x23a   : > { %v2000_v8 = vadd.f32 %v1999_v7, %v1998_v27  ;;  %v2391_v44 = vadd.f32 %v2390_v18, %v2389_v58  ;;  %v2404_v27 = vsel %vm1841_vm2, %v2192_v38, 0.0  ;;  %v2194_v58 = vmul.f32 %v5610_v2, %v5610_v2 }
 0x23b   : > { %v2406_v34 = vsel %vm1841_vm2, %v2193_v24, 0.0  ;;  %v2019_v2 = vsel %vm1841_vm2, %v5632_v45, 0.0  ;;  %v2023_v45 = vsel %vm1841_vm2, %v5654_v26, 0.0  ;;  %v2201_v38 = vmul.f32 %v5689_v49, %v5689_v49 }
 0x23c   : > { %v2002_v62 = vadd.f32 %v2001_v31, %v2000_v8  ;;  %v2393_v25 = vadd.f32 %v2392_v57, %v2391_v44  ;;  %v2195_v8 = vmul.f32 %v5623_v35, %v5623_v35  ;;  %v2408_v31 = vsel %vm1841_vm2, %v2194_v58, 0.0 }
 0x23d   : > { %v2021_v35 = vsel %vm1841_vm2, %v5645_v15, 0.0 }
 0x23e   : > { %v2395_v29 = vadd.f32 %v2394_v17, %v2393_v25  ;;  %v2004_v6 = vadd.f32 %v2003_v41, %v2002_v62  ;;  %v2410_v17 = vsel %vm1841_vm2, %v2195_v8, 0.0  ;;  %v2197_v41 = vmul.f32 %v5645_v15, %v5645_v15 }
 0x23f   : > { %v2025_v15 = vsel %vm1841_vm2, %v5667_v63, 0.0 }
 0x240   : > { %v2006_v30 = vadd.f32 %v2005_v3, %v2004_v6  ;;  %v2397_v51 = vadd.f32 %v2396_v19, %v2395_v29  ;;  %v2412_v6 = vsel %vm1841_vm2, %v2196_v20, 0.0  ;;  %v2198_v19 = vmul.f32 %v5654_v26, %v5654_v26 }
 0x241   : > { %v2027_v26 = vsel %vm1841_vm2, %v5676_v11, 0.0  ;;  %v2206_v20 = vmul.f32 %v5742_v50, %v5742_v50 }
 0x242   : > { %v2008_v4 = vadd.f32 %v2007_v12, %v2006_v30  ;;  %v2399_v61 = vadd.f32 %v2398_v28, %v2397_v51  ;;  %v2414_v30 = vsel %vm1841_vm2, %v2197_v41, 0.0  ;;  %v2199_v51 = vmul.f32 %v5667_v63, %v5667_v63 }
 0x243   : > { %v2416_v46 = vsel %vm1841_vm2, %v2198_v19, 0.0  ;;  %v2029_v63 = vsel %vm1841_vm2, %v5689_v49, 0.0  ;;  %v2033_v49 = vsel %vm1841_vm2, %v5711_v42, 0.0 }
 0x244   : > { %v2010_v9 = vadd.f32 %v2009_v40, %v2008_v4  ;;  %v2401_v56 = vadd.f32 %v2400_v33, %v2399_v61  ;;  %v2200_v4 = vmul.f32 %v5676_v11, %v5676_v11  ;;  %v2418_v40 = vsel %vm1841_vm2, %v2199_v51, 0.0 }
 0x245   : > { %v2031_v11 = vsel %vm1841_vm2, %v5698_v1, 0.0 }
 0x246   : > { %v2012_v60 = vadd.f32 %v2011_v48, %v2010_v9  ;;  %v2403_v0 = vadd.f32 %v2402_v13, %v2401_v56  ;;  %v2420_v13 = vsel %vm1841_vm2, %v2200_v4, 0.0  ;;  %v2202_v48 = vmul.f32 %v5698_v1, %v5698_v1 }
 0x247   : > { %v2035_v1 = vsel %vm1841_vm2, %v5720_v55, 0.0  ;;  %v2211_v4 = vmul.f32 %v5799_v47, %v5799_v47 }
 0x248   : > { %v2014_v18 = vadd.f32 %v2013_v14, %v2012_v60  ;;  %v2405_v7 = vadd.f32 %v2404_v27, %v2403_v0  ;;  %v2422_v0 = vsel %vm1841_vm2, %v2201_v38, 0.0  ;;  %v2203_v27 = vmul.f32 %v5711_v42, %v5711_v42 }
 0x249   : > { %v2037_v42 = vsel %vm1841_vm2, %v5733_v36, 0.0 }
 0x24a   : > { %v2016_v44 = vadd.f32 %v2015_v22, %v2014_v18  ;;  %v2407_v57 = vadd.f32 %v2406_v34, %v2405_v7  ;;  %v2424_v18 = vsel %vm1841_vm2, %v2202_v48, 0.0  ;;  %v2204_v7 = vmul.f32 %v5720_v55, %v5720_v55 }
 0x24b   : > { %v2426_v8 = vsel %vm1841_vm2, %v2203_v27, 0.0  ;;  %v2039_v55 = vsel %vm1841_vm2, %v5742_v50, 0.0  ;;  %v2043_v50 = vsel %vm1841_vm2, %v5764_v52, 0.0 }
 0x24c   : > { %v2018_v62 = vadd.f32 %v2017_v54, %v2016_v44  ;;  %v2409_v25 = vadd.f32 %v2408_v31, %v2407_v57  ;;  %v2205_v44 = vmul.f32 %v5733_v36, %v5733_v36  ;;  %v2428_v54 = vsel %vm1841_vm2, %v2204_v7, 0.0  ;;  %v7897_v7 = vld [vmem:[#allocation7_spill] sm:$0xff] }
 0x24d   : > { %v2041_v36 = vsel %vm1841_vm2, %v5755_v32, 0.0 }
 0x24e   : > { %v2020_v37 = vadd.f32 %v2019_v2, %v2018_v62  ;;  %v2411_v29 = vadd.f32 %v2410_v17, %v2409_v25  ;;  %v2430_v17 = vsel %vm1841_vm2, %v2205_v44, 0.0  ;;  %v2207_v2 = vmul.f32 %v5755_v32, %v5755_v32  ;;  %v7898_v44 = vld [vmem:[#allocation8_spill] sm:$0xff] }
 0x24f   : > { %v2045_v32 = vsel %vm1841_vm2, %v5777_v39, 0.0 }
 0x250   : > { %v2022_v3 = vadd.f32 %v2021_v35, %v2020_v37  ;;  %v2413_v53 = vadd.f32 %v2412_v6, %v2411_v29  ;;  %v2432_v29 = vsel %vm1841_vm2, %v2206_v20, 0.0  ;;  %v2208_v6 = vmul.f32 %v5764_v52, %v5764_v52  ;;  %v7899_v20 = vld [vmem:[#allocation9_spill] sm:$0xff] }
 0x251   : > { %v2047_v52 = vsel %vm1841_vm2, %v5786_v59, 0.0 }
 0x252   : > { %v2024_v28 = vadd.f32 %v2023_v45, %v2022_v3  ;;  %v2415_v12 = vadd.f32 %v2414_v30, %v2413_v53  ;;  %v2434_v3 = vsel %vm1841_vm2, %v2207_v2, 0.0  ;;  %v2209_v53 = vmul.f32 %v5777_v39, %v5777_v39 }
 0x253   : > { %v2436_v51 = vsel %vm1841_vm2, %v2208_v6, 0.0  ;;  %v2049_v39 = vsel %vm1841_vm2, %v5799_v47, 0.0  ;;  %v2053_v47 = vsel %vm1841_vm2, %v5821_v10, 0.0  ;;  %v2063_v2 = vsel %vm1841_vm2, %v7899_v20, 0.0 }
 0x254   : > { %v2026_v61 = vadd.f32 %v2025_v15, %v2024_v28  ;;  %v2417_v33 = vadd.f32 %v2416_v46, %v2415_v12  ;;  %v2210_v28 = vmul.f32 %v5786_v59, %v5786_v59  ;;  %v2438_v15 = vsel %vm1841_vm2, %v2209_v53, 0.0 }
 0x255   : > { %v2051_v59 = vsel %vm1841_vm2, %v5808_v16, 0.0 }
 0x256   : > { %v2028_v9 = vadd.f32 %v2027_v26, %v2026_v61  ;;  %v2419_v56 = vadd.f32 %v2418_v40, %v2417_v33  ;;  %v2440_v40 = vsel %vm1841_vm2, %v2210_v28, 0.0  ;;  %v2212_v26 = vmul.f32 %v5808_v16, %v5808_v16 }
 0x257   : > { %v2055_v16 = vsel %vm1841_vm2, %v5830_v43, 0.0 }
 0x258   : > { %v2030_v24 = vadd.f32 %v2029_v63, %v2028_v9  ;;  %v2421_v60 = vadd.f32 %v2420_v13, %v2419_v56  ;;  %v2442_v56 = vsel %vm1841_vm2, %v2211_v4, 0.0  ;;  %v2213_v13 = vmul.f32 %v5821_v10, %v5821_v10 }
 0x259   : > { %v2057_v10 = vsel %vm1841_vm2, %v5843_v23, 0.0 }
 0x25a   : > { %v2032_v14 = vadd.f32 %v2031_v11, %v2030_v24  ;;  %v2423_v58 = vadd.f32 %v2422_v0, %v2421_v60  ;;  %v2444_v24 = vsel %vm1841_vm2, %v2212_v26, 0.0  ;;  %v2214_v60 = vmul.f32 %v5830_v43, %v5830_v43  ;;  %v7904_v26 = vld [vmem:[#allocation14_spill] sm:$0xff] }
 0x25b   : > { %v2446_v27 = vsel %vm1841_vm2, %v2213_v13, 0.0  ;;  %v2059_v43 = vsel %vm1841_vm2, %v7897_v7, 0.0  ;;  %v2073_v13 = vsel %vm1841_vm2, %v7904_v26, 0.0 }
 0x25c   : > { %v2034_v34 = vadd.f32 %v2033_v49, %v2032_v14  ;;  %v2425_v22 = vadd.f32 %v2424_v18, %v2423_v58  ;;  %v2215_v14 = vmul.f32 %v5843_v23, %v5843_v23  ;;  %v2448_v49 = vsel %vm1841_vm2, %v2214_v60, 0.0 }
 0x25d   : > { %v2061_v23 = vsel %vm1841_vm2, %v7898_v44, 0.0 }
 0x25e   : > { %v2427_v57 = vadd.f32 %v2426_v8, %v2425_v22  ;;  %v2036_v31 = vadd.f32 %v2035_v1, %v2034_v34  ;;  %v2216_v34 = vmul.f32 %v7897_v7, %v7897_v7  ;;  %v2450_v1 = vsel %vm1841_vm2, %v2215_v14, 0.0 }
 0x260   : > { %v2429_v62 = vadd.f32 %v2428_v54, %v2427_v57  ;;  %v2038_v25 = vadd.f32 %v2037_v42, %v2036_v31  ;;  %v2217_v57 = vmul.f32 %v7898_v44, %v7898_v44  ;;  %v2452_v42 = vsel %vm1841_vm2, %v2216_v34, 0.0 }
 0x262   : > { %v2431_v41 = vadd.f32 %v2430_v17, %v2429_v62  ;;  %v2040_v37 = vadd.f32 %v2039_v55, %v2038_v25  ;;  %v2218_v62 = vmul.f32 %v7899_v20, %v7899_v20  ;;  %v2454_v55 = vsel %vm1841_vm2, %v2217_v57, 0.0 }
 0x264   : > { %v2433_v35 = vadd.f32 %v2432_v29, %v2431_v41  ;;  %v2042_v19 = vadd.f32 %v2041_v36, %v2040_v37  ;;  %v7900_v41 = vld [vmem:[#allocation10_spill] sm:$0xff]  ;;  %v2456_v6 = vsel %vm1841_vm2, %v2218_v62, 0.0 }
 0x265   : > { %v2219_v37 = vmul.f32 %v7900_v41, %v7900_v41 }
 0x266   : > { %v2435_v30 = vadd.f32 %v2434_v3, %v2433_v35  ;;  %v2044_v45 = vadd.f32 %v2043_v50, %v2042_v19  ;;  %v2065_v35 = vsel %vm1841_vm2, %v7900_v41, 0.0  ;;  %v7901_v19 = vld [vmem:[#allocation11_spill] sm:$0xff] }
 0x267   : > { %v2220_v3 = vmul.f32 %v7901_v19, %v7901_v19 }
 0x268   : > { %v2437_v12 = vadd.f32 %v2436_v51, %v2435_v30  ;;  %v2046_v46 = vadd.f32 %v2045_v32, %v2044_v45  ;;  %v2458_v30 = vsel %vm1841_vm2, %v2219_v37, 0.0  ;;  %v2067_v45 = vsel %vm1841_vm2, %v7901_v19, 0.0  ;;  %v7902_v51 = vld [vmem:[#allocation12_spill] sm:$0xff] }
 0x269   : > { %v2221_v32 = vmul.f32 %v7902_v51, %v7902_v51 }
 0x26a   : > { %v2439_v61 = vadd.f32 %v2438_v15, %v2437_v12  ;;  %v2048_v33 = vadd.f32 %v2047_v52, %v2046_v46  ;;  %v2460_v46 = vsel %vm1841_vm2, %v2220_v3, 0.0  ;;  %v2069_v15 = vsel %vm1841_vm2, %v7902_v51, 0.0  ;;  %v7903_v52 = vld [vmem:[#allocation13_spill] sm:$0xff] }
 0x26b   : > { %v2222_v4 = vmul.f32 %v7903_v52, %v7903_v52 }
 0x26c   : > { %v2441_v38 = vadd.f32 %v2440_v40, %v2439_v61  ;;  %v2050_v9 = vadd.f32 %v2049_v39, %v2048_v33  ;;  %v2462_v40 = vsel %vm1841_vm2, %v2221_v32, 0.0  ;;  %v2071_v39 = vsel %vm1841_vm2, %v7903_v52, 0.0 }
 0x26d   : > { %v2233_v52 = vmul.f32 %v6041_v5, %v6041_v5 }
 0x26e   : > { %v2443_v63 = vadd.f32 %v2442_v56, %v2441_v38  ;;  %v2052_v48 = vadd.f32 %v2051_v59, %v2050_v9  ;;  %v2223_v38 = vmul.f32 %v7904_v26, %v7904_v26  ;;  %v2464_v59 = vsel %vm1841_vm2, %v2222_v4, 0.0 }
 0x270   : > { %v2445_v0 = vadd.f32 %v2444_v24, %v2443_v63  ;;  %v2054_v11 = vadd.f32 %v2053_v47, %v2052_v48  ;;  %v7905_v63 = vld [vmem:[#allocation15_spill] sm:$0xff]  ;;  %v2466_v60 = vsel %vm1841_vm2, %v2223_v38, 0.0 }
 0x271   : > { %v2224_v48 = vmul.f32 %v7905_v63, %v7905_v63 }
 0x272   : > { %v2447_v58 = vadd.f32 %v2446_v27, %v2445_v0  ;;  %v2056_v18 = vadd.f32 %v2055_v16, %v2054_v11  ;;  %v2075_v0 = vsel %vm1841_vm2, %v7905_v63, 0.0  ;;  %v7906_v11 = vld [vmem:[#allocation16_spill] sm:$0xff] }
 0x273   : > { %v2225_v27 = vmul.f32 %v7906_v11, %v7906_v11 }
 0x274   : > { %v2449_v22 = vadd.f32 %v2448_v49, %v2447_v58  ;;  %v2058_v8 = vadd.f32 %v2057_v10, %v2056_v18  ;;  %v2468_v58 = vsel %vm1841_vm2, %v2224_v48, 0.0  ;;  %v2077_v18 = vsel %vm1841_vm2, %v7906_v11, 0.0  ;;  %v7907_v49 = vld [vmem:[#allocation17_spill] sm:$0xff] }
 0x275   : > { %v2226_v10 = vmul.f32 %v7907_v49, %v7907_v49  ;;  %v2095_v48 = vsel %vm1841_vm2, %v6050_v21, 0.0 }
 0x276   : > { %v2451_v31 = vadd.f32 %v2450_v1, %v2449_v22  ;;  %v2060_v54 = vadd.f32 %v2059_v43, %v2058_v8  ;;  %v2470_v22 = vsel %vm1841_vm2, %v2225_v27, 0.0  ;;  %v2079_v8 = vsel %vm1841_vm2, %v7907_v49, 0.0  ;;  %v7908_v1 = vld [vmem:[#allocation18_spill] sm:$0xff] }
 0x277   : > { %v2227_v43 = vmul.f32 %v7908_v1, %v7908_v1 }
 0x278   : > { %v2453_v25 = vadd.f32 %v2452_v42, %v2451_v31  ;;  %v2062_v17 = vadd.f32 %v2061_v23, %v2060_v54  ;;  %v2472_v31 = vsel %vm1841_vm2, %v2226_v10, 0.0  ;;  %v2081_v54 = vsel %vm1841_vm2, %v7908_v1, 0.0  ;;  %v7909_v42 = vld [vmem:[#allocation19_spill] sm:$0xff] }
 0x279   : > { %v2228_v23 = vmul.f32 %v7909_v42, %v7909_v42 }
 0x27a   : > { %v2455_v29 = vadd.f32 %v2454_v55, %v2453_v25  ;;  %v2064_v36 = vadd.f32 %v2063_v2, %v2062_v17  ;;  %v2474_v25 = vsel %vm1841_vm2, %v2227_v43, 0.0  ;;  %v2083_v17 = vsel %vm1841_vm2, %v7909_v42, 0.0  ;;  %v7910_v55 = vld [vmem:[#allocation20_spill] sm:$0xff] }
 0x27b   : > { %v2229_v2 = vmul.f32 %v7910_v55, %v7910_v55 }
 0x27c   : > { %v2457_v50 = vadd.f32 %v2456_v6, %v2455_v29  ;;  %v2066_v53 = vadd.f32 %v2065_v35, %v2064_v36  ;;  %v2476_v29 = vsel %vm1841_vm2, %v2228_v23, 0.0  ;;  %v2085_v36 = vsel %vm1841_vm2, %v7910_v55, 0.0  ;;  %v7911_v6 = vld [vmem:[#allocation21_spill] sm:$0xff] }
 0x27d   : > { %v2230_v35 = vmul.f32 %v7911_v6, %v7911_v6 }
 0x27e   : > { %v2459_v28 = vadd.f32 %v2458_v30, %v2457_v50  ;;  %v2068_v12 = vadd.f32 %v2067_v45, %v2066_v53  ;;  %v2478_v50 = vsel %vm1841_vm2, %v2229_v2, 0.0  ;;  %v2087_v53 = vsel %vm1841_vm2, %v7911_v6, 0.0  ;;  %v7912_v30 = vld [vmem:[#allocation22_spill] sm:$0xff] }
 0x27f   : > { %v2231_v45 = vmul.f32 %v7912_v30, %v7912_v30 }
 0x280   : > { %v2461_v61 = vadd.f32 %v2460_v46, %v2459_v28  ;;  %v2070_v33 = vadd.f32 %v2069_v15, %v2068_v12  ;;  %v2480_v28 = vsel %vm1841_vm2, %v2230_v35, 0.0  ;;  %v2089_v12 = vsel %vm1841_vm2, %v7912_v30, 0.0  ;;  %v7913_v46 = vld [vmem:[#allocation23_spill] sm:$0xff]  ;;  %v3012_v30 = vld [vmem:[#allocation2 + $0xb40] sm:$0xff] (!%p4823_p5) }
 0x281   : > { %v2232_v15 = vmul.f32 %v7913_v46, %v7913_v46 }
 0x282   : > { %v2463_v9 = vadd.f32 %v2462_v40, %v2461_v61  ;;  %v2072_v56 = vadd.f32 %v2071_v39, %v2070_v33  ;;  %v2482_v33 = vsel %vm1841_vm2, %v2231_v45, 0.0  ;;  %v2091_v40 = vsel %vm1841_vm2, %v7913_v46, 0.0  ;;  %v2653_v45 = vld [vmem:[#allocation2 + $0x8] sm:$0xff] (!%p4823_p5) }
 0x283   : > { %v2093_v39 = vsel %vm1841_vm2, %v6041_v5, 0.0  ;;  %v2893_v46 = vld [vmem:[#allocation2 + $0x788] sm:$0xff] (!%p4823_p5) }
 0x284   : > { %v2465_v24 = vadd.f32 %v2464_v59, %v2463_v9  ;;  %v2074_v47 = vadd.f32 %v2073_v13, %v2072_v56  ;;  %v2484_v9 = vsel %vm1841_vm2, %v2232_v15, 0.0  ;;  %v2486_v56 = vsel %vm1841_vm2, %v2233_v52, 0.0  ;;  %v3013_v15 = vld [vmem:[#allocation2 + $0xb48] sm:$0xff] (!%p4823_p5)  ;;  %v2654_v52 = vld [vmem:[#allocation2 + $0x10] sm:$0xff] (!%p4823_p5) }
 0x285   : > { %v2234_v59 = vmul.f32 %v6050_v21, %v6050_v21 }
 0x286   : > { %v2467_v16 = vadd.f32 %v2466_v60, %v2465_v24  ;;  %v2076_v14 = vadd.f32 %v2075_v0, %v2074_v47 }
 0x287   : > { %v2488_v60 = vsel %vm1841_vm2, %v2234_v59, 0.0 }
 0x288   : > { %v2469_v7 = vadd.f32 %v2468_v58, %v2467_v16  ;;  %v2078_v34 = vadd.f32 %v2077_v18, %v2076_v14 }
 0x28a   : > { %v2471_v44 = vadd.f32 %v2470_v22, %v2469_v7  ;;  %v2080_v57 = vadd.f32 %v2079_v8, %v2078_v34  ;;  %v1840_v7 = vld [vmem:[#allocation3] sm:$0x1]  ;;  %v2106_v8 = vld [vmem:[#allocation4] sm:$0x1] }
 0x28c   : > { %v2473_v20 = vadd.f32 %v2472_v31, %v2471_v44  ;;  %v2082_v62 = vadd.f32 %v2081_v54, %v2080_v57  ;;  %v7914_v44 = vld [vmem:[#allocation5_spill] sm:$0xff] (!%p4823_p5) }
 0x28d   : > { %v2632_v57 = vmax.f32 (!%p4823_p5), %v7914_v44, 0.0  ;;  %v2895_v44 = vld [vmem:[#allocation2 + $0x798] sm:$0xff] (!%p4823_p5) }
 0x28e   : > { %v2475_v41 = vadd.f32 %v2474_v25, %v2473_v20  ;;  %v2084_v37 = vadd.f32 %v2083_v17, %v2082_v62 }
 0x28f   : > { %v2634_v54 = vmul.f32 (!%p4823_p5), 118.0, %v2632_v57  ;;  %v2637_v42 = vmul.f32 (!%p4823_p5), %v2632_v57, %v2632_v57  ;;  %v3015_v57 = vld [vmem:[#allocation2 + $0xb58] sm:$0xff] (!%p4823_p5) }
 0x290   : > { %v2477_v19 = vadd.f32 %v2476_v29, %v2475_v41  ;;  %v2086_v3 = vadd.f32 %v2085_v36, %v2084_v37  ;;  %v2645_v36 = vld [vmem:[%s7839_s2 + $0x1] sm:$0x1] (!%p4823_p5) }
 0x291   : > { %v2638_v62 = vmul.f32 (!%p4823_p5), 118.0, %v2637_v42 }
 0x292   : > { %v2479_v51 = vadd.f32 %v2478_v50, %v2477_v19  ;;  %v2088_v32 = vadd.f32 %v2087_v53, %v2086_v3  ;;  %v2649_v19 = vld [vmem:[%s7839_s2 + $0x2] sm:$0x1] (!%p4823_p5) }
 0x293   : > { %v2652_v3 = vld [vmem:[#allocation2] sm:$0xff] (!%p4823_p5) }
 0x294   : > { %v2481_v4 = vadd.f32 %v2480_v28, %v2479_v51  ;;  %v2090_v61 = vadd.f32 %v2089_v12, %v2088_v32  ;;  %v2772_v50 = vld [vmem:[#allocation2 + $0x3c0] sm:$0xff] (!%p4823_p5)  ;;  %v7915_v32 = vld [vmem:[#allocation6_spill] sm:$0xff] (!%p4823_p5) }
 0x295   : > { %v2892_v53 = vld [vmem:[#allocation2 + $0x780] sm:$0xff] (!%p4823_p5)  ;;  %v2773_v12 = vld [vmem:[#allocation2 + $0x3c8] sm:$0xff] (!%p4823_p5) }
 0x296   : > { %v2483_v26 = vadd.f32 %v2482_v33, %v2481_v4  ;;  %v2092_v38 = vadd.f32 %v2091_v40, %v2090_v61  ;;  %v2774_v4 = vld [vmem:[#allocation2 + $0x3d0] sm:$0xff] (!%p4823_p5) }
 0x297   : > { %v2894_v61 = vld [vmem:[#allocation2 + $0x790] sm:$0xff] (!%p4823_p5) }
 0x298   : > { %v2485_v13 = vadd.f32 %v2484_v9, %v2483_v26  ;;  %v2094_v63 = vadd.f32 %v2093_v39, %v2092_v38  ;;  %v3014_v38 = vld [vmem:[#allocation2 + $0xb50] sm:$0xff] (!%p4823_p5)  ;;  %v2655_v9 = vld [vmem:[#allocation2 + $0x18] sm:$0xff] (!%p4823_p5) }
 0x29a   : > { %v2487_v24 = vadd.f32 %v2486_v56, %v2485_v13  ;;  %v2096_v47 = vadd.f32 %v2095_v48, %v2094_v63  ;;  %v2775_v56 = vld [vmem:[#allocation2 + $0x3d8] sm:$0xff] (!%p4823_p5) }
 0x29c   : > { %v2097_v0 = vrot.slane %v2096_v47, 4  ;;  %v2489_v5 = vadd.f32 %v2488_v60, %v2487_v24 }
 0x29e   : > { %v2098_v11 = vadd.f32 %v2097_v0, %v2096_v47  ;;  %v2490_v27 = vrot.slane %v2489_v5, 4 }
 0x2a0   : > { %v2099_v16 = vrot.slane %v2098_v11, 2  ;;  %v2491_v14 = vadd.f32 %v2490_v27, %v2489_v5 }
 0x2a2   : > { %v2100_v58 = vadd.f32 %v2099_v16, %v2098_v11  ;;  %v2492_v18 = vrot.slane %v2491_v14, 2 }
 0x2a4   : > { %v2101_v49 = vrot.slane %v2100_v58, 1  ;;  %v2493_v10 = vadd.f32 %v2492_v18, %v2491_v14 }
 0x2a6   : > { %v2102_v34 = vadd.f32 %v2101_v49, %v2100_v58  ;;  %v2494_v22 = vrot.slane %v2493_v10, 1  ;;  %2631 = sbr.rel (%p4823_p5) target bundleno = 1053 (0x41d), region = 40 }
 0x2a8   : > { %v2103_v21 = vadd.f32 %v2102_v34, %v1840_v7  ;;  %v2495_v1 = vadd.f32 %v2494_v22, %v2493_v10 }
 0x2aa   : > { %2105 = vst.msk [vmem:[#allocation3] sm:$0x1] %vm2104_vm3, %v2103_v21  ;;  %v2496_v43 = vadd.f32 %v2495_v1, %v2106_v8 }
 0x2ac   : > { %2497 = vst.msk [vmem:[#allocation4] sm:$0x1] %vm2104_vm3, %v2496_v43 }
 0x2b1   : > { %v2633_v31 = vld [vmem:[#allocation3] sm:$0x1] }
 0x2b2   : > { %v2635_v20 = vsub.f32 %v2633_v31, %v2634_v54 }
 0x2b3   : > { %v2636_v23 = vld [vmem:[#allocation4] sm:$0x1] }
 0x2b4   : > { %v2639_v25 = vsub.f32 %v2636_v23, %v2638_v62  ;;  %v2640_v17 = vmul.f32 0.00025138262, %v2635_v20  ;;  %v2656_v20 = vld [vmem:[#allocation2 + $0x20] sm:$0xff] }
 0x2b5   : > { %v2776_v62 = vld [vmem:[#allocation2 + $0x3e0] sm:$0xff] }
 0x2b6   : > { %v2641_v55 = vmul.f32 0.00025138262, %v2639_v25  ;;  %v2642_v2 = vmul.f32 %v2640_v17, %v2640_v17  ;;  %v2896_v25 = vld [vmem:[#allocation2 + $0x7a0] sm:$0xff] }
 0x2b8   : > { %v2643_v41 = vsub.f32 %v2641_v55, %v2642_v2 }
 0x2ba   : > { %v2644_v37 = vmax.f32 %v2643_v41, 0.0 }
 0x2bc   : > { %v2646_v29 = vadd.f32 1e-05, %v2644_v37  ;;  %v3016_v37 = vld [vmem:[#allocation2 + $0xb60] sm:$0xff] }
 0x2be   : > { %5044 = vrsqrt.f32 %v2646_v29 }
 0x2c8   : > { %v5045_v6 = vpop.eup %5044 }
 0x2c9   : > { %v2648_v35 = vmul.f32 %v5045_v6, %v2645_v36 }
 0x2cb   : > { %v2650_v51 = vmul.f32 %v2648_v35, %v2640_v17  ;;  %v6389_v28 = vrot.slane %v2648_v35, %v7915_v32 }
 0x2cd   : > { %v2651_v33 = vsub.f32 %v2649_v19, %v2650_v51  ;;  %v3136_v40 = vmul.f32 %v6389_v28, %v2652_v3  ;;  %v3380_v39 = vmul.f32 %v6389_v28, %v2772_v50  ;;  %v3740_v26 = vmul.f32 %v6389_v28, %v2892_v53  ;;  %v2657_v19 = vld [vmem:[#allocation2 + $0x28] sm:$0xff] }
 0x2ce   : > { %v3980_v59 = vmul.f32 %v6389_v28, %v3012_v30  ;;  %v3137_v13 = vmul.f32 %v6389_v28, %v2653_v45  ;;  %v3381_v63 = vmul.f32 %v6389_v28, %v2773_v12  ;;  %v3741_v48 = vmul.f32 %v6389_v28, %v2893_v46  ;;  %v2777_v45 = vld [vmem:[#allocation2 + $0x3e8] sm:$0xff] }
 0x2cf   : > { %v6399_v24 = vrot.slane %v2651_v33, %v7915_v32  ;;  %v3981_v47 = vmul.f32 %v6389_v28, %v3013_v15  ;;  %v3138_v60 = vmul.f32 %v6389_v28, %v2654_v52  ;;  %v3382_v0 = vmul.f32 %v6389_v28, %v2774_v4  ;;  %v2897_v51 = vld [vmem:[#allocation2 + $0x7a8] sm:$0xff]  ;;  %v2658_v4 = vld [vmem:[#allocation2 + $0x30] sm:$0xff] }
 0x2d0   : > { %v3742_v5 = vmul.f32 %v6389_v28, %v2894_v61  ;;  %v3982_v11 = vmul.f32 %v6389_v28, %v3014_v38  ;;  %v3139_v27 = vmul.f32 %v6389_v28, %v2655_v9  ;;  %v3383_v16 = vmul.f32 %v6389_v28, %v2775_v56  ;;  %v3017_v52 = vld [vmem:[#allocation2 + $0xb68] sm:$0xff] }
 0x2d1   : > { %v3260_v14 = vadd.f32 %v6399_v24, %v3136_v40  ;;  %v3500_v58 = vadd.f32 %v3380_v39, %v6399_v24  ;;  %v3860_v18 = vadd.f32 %v3740_v26, %v6399_v24  ;;  %v4100_v49 = vadd.f32 %v3980_v59, %v6399_v24  ;;  %v2778_v59 = vld [vmem:[#allocation2 + $0x3f0] sm:$0xff] }
 0x2d2   : > { %v3261_v10 = vadd.f32 %v6399_v24, %v3137_v13  ;;  %v3501_v7 = vadd.f32 %v3381_v63, %v6399_v24  ;;  %v3861_v34 = vadd.f32 %v3741_v48, %v6399_v24  ;;  %v4101_v22 = vadd.f32 %v3981_v47, %v6399_v24  ;;  %v2898_v13 = vld [vmem:[#allocation2 + $0x7b0] sm:$0xff] }
 0x2d3   : > { %v3620_v8 = vmax.f32 %v3260_v14, %v3500_v58  ;;  %v4220_v21 = vmax.f32 %v3860_v18, %v4100_v49  ;;  %v3262_v1 = vadd.f32 %v6399_v24, %v3138_v60  ;;  %v3502_v43 = vadd.f32 %v3382_v0, %v6399_v24  ;;  %v3018_v60 = vld [vmem:[#allocation2 + $0xb70] sm:$0xff]  ;;  %v2779_v58 = vld [vmem:[#allocation2 + $0x3f8] sm:$0xff] }
 0x2d4   : > { %v3621_v31 = vmax.f32 %v3261_v10, %v3501_v7  ;;  %v4221_v54 = vmax.f32 %v3861_v34, %v4101_v22  ;;  %v3862_v42 = vadd.f32 %v3742_v5, %v6399_v24  ;;  %v4102_v23 = vadd.f32 %v3982_v11, %v6399_v24  ;;  %v2659_v5 = vld [vmem:[#allocation2 + $0x38] sm:$0xff] }
 0x2d5   : > { %v4340_v17 = vmax.f32 %v3620_v8, %v4220_v21  ;;  %v3622_v55 = vmax.f32 %v3262_v1, %v3502_v43  ;;  %v3263_v2 = vadd.f32 %v6399_v24, %v3139_v27  ;;  %v3503_v41 = vadd.f32 %v3383_v16, %v6399_v24  ;;  %v2899_v34 = vld [vmem:[#allocation2 + $0x7b8] sm:$0xff] }
 0x2d6   : > { %v4341_v29 = vmax.f32 %v3621_v31, %v4221_v54  ;;  %v4222_v36 = vmax.f32 %v3862_v42, %v4102_v23  ;;  %v3743_v6 = vmul.f32 %v6389_v28, %v2895_v44  ;;  %v3983_v35 = vmul.f32 %v6389_v28, %v3015_v57  ;;  %v3019_v22 = vld [vmem:[#allocation2 + $0xb78] sm:$0xff]  ;;  %v2660_v44 = vld [vmem:[#allocation2 + $0x40] sm:$0xff] }
 0x2d7   : > { %4460 = vst.msk [vmem:[%s7840_s3] sm:$0xff] %vm1841_vm2, %v4340_v17  ;;  %v3623_v3 = vmax.f32 %v3263_v2, %v3503_v41  ;;  %v3140_v50 = vmul.f32 %v6389_v28, %v2656_v20  ;;  %v3384_v53 = vmul.f32 %v6389_v28, %v2776_v62  ;;  %v3744_v30 = vmul.f32 %v6389_v28, %v2896_v25  ;;  %v2780_v23 = vld [vmem:[#allocation2 + $0x400] sm:$0xff] }
 0x2d8   : > { %4461 = vst.msk [vmem:[%s7840_s3 + $0x8] sm:$0xff] %vm1841_vm2, %v4341_v29  ;;  %v4342_v32 = vmax.f32 %v3622_v55, %v4222_v36  ;;  %v3863_v12 = vadd.f32 %v3743_v6, %v6399_v24  ;;  %v4103_v46 = vadd.f32 %v3983_v35, %v6399_v24  ;;  %v3984_v15 = vmul.f32 %v6389_v28, %v3016_v37  ;;  %v2900_v55 = vld [vmem:[#allocation2 + $0x7c0] sm:$0xff]  ;;  %v2661_v6 = vld [vmem:[#allocation2 + $0x48] sm:$0xff] }
 0x2d9   : > { %v3264_v61 = vadd.f32 %v6399_v24, %v3140_v50  ;;  %v3504_v33 = vadd.f32 %v3384_v53, %v6399_v24  ;;  %v3864_v40 = vadd.f32 %v3744_v30, %v6399_v24  ;;  %v3141_v39 = vmul.f32 %v6389_v28, %v2657_v19  ;;  %v3020_v2 = vld [vmem:[#allocation2 + $0xb80] sm:$0xff]  ;;  %v2781_v53 = vld [vmem:[#allocation2 + $0x408] sm:$0xff] }
 0x2da   : > { %4462 = vst.msk [vmem:[%s7840_s3 + $0x10] sm:$0xff] %vm1841_vm2, %v4342_v32  ;;  %v4223_v26 = vmax.f32 %v3863_v12, %v4103_v46  ;;  %v4104_v38 = vadd.f32 %v3984_v15, %v6399_v24  ;;  %v3385_v9 = vmul.f32 %v6389_v28, %v2777_v45  ;;  %v3745_v56 = vmul.f32 %v6389_v28, %v2897_v51  ;;  %v2901_v30 = vld [vmem:[#allocation2 + $0x7c8] sm:$0xff] }
 0x2db   : > { %v3624_v63 = vmax.f32 %v3264_v61, %v3504_v33  ;;  %v3265_v48 = vadd.f32 %v6399_v24, %v3141_v39  ;;  %v3985_v47 = vmul.f32 %v6389_v28, %v3017_v52  ;;  %v3142_v0 = vmul.f32 %v6389_v28, %v2658_v4  ;;  %v3021_v46 = vld [vmem:[#allocation2 + $0xb88] sm:$0xff]  ;;  %v2662_v33 = vld [vmem:[#allocation2 + $0x50] sm:$0xff] }
 0x2dc   : > { %v4343_v11 = vmax.f32 %v3623_v3, %v4223_v26  ;;  %v4224_v27 = vmax.f32 %v3864_v40, %v4104_v38  ;;  %v3505_v16 = vadd.f32 %v3385_v9, %v6399_v24  ;;  %v3865_v14 = vadd.f32 %v3745_v56, %v6399_v24  ;;  %v2782_v9 = vld [vmem:[#allocation2 + $0x410] sm:$0xff] }
 0x2dd   : > { %v4105_v18 = vadd.f32 %v3985_v47, %v6399_v24  ;;  %v3266_v49 = vadd.f32 %v6399_v24, %v3142_v0  ;;  %v3386_v10 = vmul.f32 %v6389_v28, %v2778_v59  ;;  %v3746_v7 = vmul.f32 %v6389_v28, %v2898_v13  ;;  %v2902_v56 = vld [vmem:[#allocation2 + $0x7d0] sm:$0xff] }
 0x2de   : > { %4463 = vst.msk [vmem:[%s7840_s3 + $0x18] sm:$0xff] %vm1841_vm2, %v4343_v11  ;;  %v4344_v8 = vmax.f32 %v3624_v63, %v4224_v27  ;;  %v3625_v21 = vmax.f32 %v3265_v48, %v3505_v16  ;;  %v3986_v1 = vmul.f32 %v6389_v28, %v3018_v60  ;;  %v3143_v43 = vmul.f32 %v6389_v28, %v2659_v5  ;;  %v3022_v59 = vld [vmem:[#allocation2 + $0xb90] sm:$0xff]  ;;  %v2663_v60 = vld [vmem:[#allocation2 + $0x58] sm:$0xff] }
 0x2df   : > { %v4225_v57 = vmax.f32 %v3865_v14, %v4105_v18  ;;  %v3506_v31 = vadd.f32 %v3386_v10, %v6399_v24  ;;  %v3866_v54 = vadd.f32 %v3746_v7, %v6399_v24  ;;  %v3387_v42 = vmul.f32 %v6389_v28, %v2779_v58  ;;  %v2903_v10 = vld [vmem:[#allocation2 + $0x7d8] sm:$0xff] }
 0x2e0   : > { %4464 = vst.msk [vmem:[%s7840_s3 + $0x20] sm:$0xff] %vm1841_vm2, %v4344_v8  ;;  %v4106_v20 = vadd.f32 %v3986_v1, %v6399_v24  ;;  %v3267_v62 = vadd.f32 %v6399_v24, %v3143_v43  ;;  %v3747_v25 = vmul.f32 %v6389_v28, %v2899_v34  ;;  %v3987_v17 = vmul.f32 %v6389_v28, %v3019_v22  ;;  %v3023_v7 = vld [vmem:[#allocation2 + $0xb98] sm:$0xff]  ;;  %v2664_v1 = vld [vmem:[#allocation2 + $0x60] sm:$0xff] }
 0x2e1   : > { %v4345_v41 = vmax.f32 %v3625_v21, %v4225_v57  ;;  %v3626_v37 = vmax.f32 %v3266_v49, %v3506_v31  ;;  %v3507_v29 = vadd.f32 %v3387_v42, %v6399_v24  ;;  %v3144_v36 = vmul.f32 %v6389_v28, %v2660_v44  ;;  %v2783_v49 = vld [vmem:[#allocation2 + $0x418] sm:$0xff] }
 0x2e2   : > { %v4226_v35 = vmax.f32 %v3866_v54, %v4106_v20  ;;  %v3867_v19 = vadd.f32 %v3747_v25, %v6399_v24  ;;  %v4107_v3 = vadd.f32 %v3987_v17, %v6399_v24  ;;  %v3388_v50 = vmul.f32 %v6389_v28, %v2780_v23  ;;  %v2784_v54 = vld [vmem:[#allocation2 + $0x420] sm:$0xff] }
 0x2e3   : > { %4465 = vst.msk [vmem:[%s7840_s3 + $0x28] sm:$0xff] %vm1841_vm2, %v4345_v41  ;;  %v3627_v45 = vmax.f32 %v3267_v62, %v3507_v29  ;;  %v3268_v51 = vadd.f32 %v6399_v24, %v3144_v36  ;;  %v3748_v32 = vmul.f32 %v6389_v28, %v2900_v55  ;;  %v3988_v12 = vmul.f32 %v6389_v28, %v3020_v2  ;;  %v2904_v25 = vld [vmem:[#allocation2 + $0x7e0] sm:$0xff]  ;;  %v2665_v29 = vld [vmem:[#allocation2 + $0x68] sm:$0xff] }
 0x2e4   : > { %v4346_v15 = vmax.f32 %v3626_v37, %v4226_v35  ;;  %v4227_v52 = vmax.f32 %v3867_v19, %v4107_v3  ;;  %v3508_v4 = vadd.f32 %v3388_v50, %v6399_v24  ;;  %v3145_v61 = vmul.f32 %v6389_v28, %v2661_v6  ;;  %v3024_v17 = vld [vmem:[#allocation2 + $0xba0] sm:$0xff]  ;;  %v2785_v3 = vld [vmem:[#allocation2 + $0x428] sm:$0xff] }
 0x2e5   : > { %v3868_v40 = vadd.f32 %v3748_v32, %v6399_v24  ;;  %v4108_v39 = vadd.f32 %v3988_v12, %v6399_v24  ;;  %v3389_v26 = vmul.f32 %v6389_v28, %v2781_v53  ;;  %v3749_v38 = vmul.f32 %v6389_v28, %v2901_v30  ;;  %v2905_v50 = vld [vmem:[#allocation2 + $0x7e8] sm:$0xff] }
 0x2e6   : > { %4466 = vst.msk [vmem:[%s7840_s3 + $0x30] sm:$0xff] %vm1841_vm2, %v4346_v15  ;;  %v4347_v13 = vmax.f32 %v3627_v45, %v4227_v52  ;;  %v3628_v63 = vmax.f32 %v3268_v51, %v3508_v4  ;;  %v3269_v48 = vadd.f32 %v6399_v24, %v3145_v61  ;;  %v3989_v47 = vmul.f32 %v6389_v28, %v3021_v46  ;;  %v3025_v32 = vld [vmem:[#allocation2 + $0xba8] sm:$0xff]  ;;  %v2666_v4 = vld [vmem:[#allocation2 + $0x70] sm:$0xff] }
 0x2e7   : > { %v4228_v0 = vmax.f32 %v3868_v40, %v4108_v39  ;;  %v3509_v5 = vadd.f32 %v3389_v26, %v6399_v24  ;;  %v3869_v11 = vadd.f32 %v3749_v38, %v6399_v24  ;;  %v3146_v27 = vmul.f32 %v6389_v28, %v2662_v33  ;;  %v2786_v26 = vld [vmem:[#allocation2 + $0x430] sm:$0xff] }
 0x2e8   : > { %4467 = vst.msk [vmem:[%s7840_s3 + $0x38] sm:$0xff] %vm1841_vm2, %v4347_v13  ;;  %v4109_v16 = vadd.f32 %v3989_v47, %v6399_v24  ;;  %v3390_v14 = vmul.f32 %v6389_v28, %v2782_v9  ;;  %v3750_v58 = vmul.f32 %v6389_v28, %v2902_v56  ;;  %v3990_v18 = vmul.f32 %v6389_v28, %v3022_v59  ;;  %v2906_v38 = vld [vmem:[#allocation2 + $0x7f0] sm:$0xff] }
 0x2e9   : > { %v4348_v34 = vmax.f32 %v3628_v63, %v4228_v0  ;;  %v3629_v22 = vmax.f32 %v3269_v48, %v3509_v5  ;;  %v3270_v8 = vadd.f32 %v6399_v24, %v3146_v27  ;;  %v3147_v21 = vmul.f32 %v6389_v28, %v2663_v60  ;;  %v3026_v9 = vld [vmem:[#allocation2 + $0xbb0] sm:$0xff]  ;;  %v2667_v48 = vld [vmem:[#allocation2 + $0x78] sm:$0xff] }
 0x2ea   : > { %v4229_v43 = vmax.f32 %v3869_v11, %v4109_v16  ;;  %v3510_v44 = vadd.f32 %v3390_v14, %v6399_v24  ;;  %v3870_v57 = vadd.f32 %v3750_v58, %v6399_v24  ;;  %v4110_v31 = vadd.f32 %v3990_v18, %v6399_v24  ;;  %v2787_v58 = vld [vmem:[#allocation2 + $0x438] sm:$0xff] }
 0x2eb   : > { %4468 = vst.msk [vmem:[%s7840_s3 + $0x40] sm:$0xff] %vm1841_vm2, %v4348_v34  ;;  %v3271_v42 = vadd.f32 %v6399_v24, %v3147_v21  ;;  %v3391_v23 = vmul.f32 %v6389_v28, %v2783_v49  ;;  %v3751_v20 = vmul.f32 %v6389_v28, %v2903_v10  ;;  %v3991_v62 = vmul.f32 %v6389_v28, %v3023_v7  ;;  %v2907_v18 = vld [vmem:[#allocation2 + $0x7f8] sm:$0xff] }
 0x2ec   : > { %v4349_v55 = vmax.f32 %v3629_v22, %v4229_v43  ;;  %v3630_v2 = vmax.f32 %v3270_v8, %v3510_v44  ;;  %v4230_v41 = vmax.f32 %v3870_v57, %v4110_v31  ;;  %v3148_v37 = vmul.f32 %v6389_v28, %v2664_v1  ;;  %v3027_v49 = vld [vmem:[#allocation2 + $0xbb8] sm:$0xff]  ;;  %v2668_v8 = vld [vmem:[#allocation2 + $0x80] sm:$0xff] }
 0x2ed   : > { %v3511_v36 = vadd.f32 %v3391_v23, %v6399_v24  ;;  %v3871_v6 = vadd.f32 %v3751_v20, %v6399_v24  ;;  %v4111_v35 = vadd.f32 %v3991_v62, %v6399_v24  ;;  %v3392_v19 = vmul.f32 %v6389_v28, %v2784_v54  ;;  %v2788_v57 = vld [vmem:[#allocation2 + $0x440] sm:$0xff] }
 0x2ee   : > { %4469 = vst.msk [vmem:[%s7840_s3 + $0x48] sm:$0xff] %vm1841_vm2, %v4349_v55  ;;  %v4350_v53 = vmax.f32 %v3630_v2, %v4230_v41  ;;  %v3272_v30 = vadd.f32 %v6399_v24, %v3148_v37  ;;  %v3752_v45 = vmul.f32 %v6389_v28, %v2904_v25  ;;  %v3992_v51 = vmul.f32 %v6389_v28, %v3024_v17  ;;  %v2908_v20 = vld [vmem:[#allocation2 + $0x800] sm:$0xff]  ;;  %v2669_v41 = vld [vmem:[#allocation2 + $0x88] sm:$0xff] }
 0x2ef   : > { %v3631_v12 = vmax.f32 %v3271_v42, %v3511_v36  ;;  %v4231_v46 = vmax.f32 %v3871_v6, %v4111_v35  ;;  %v3512_v15 = vadd.f32 %v3392_v19, %v6399_v24  ;;  %v3149_v52 = vmul.f32 %v6389_v28, %v2665_v29  ;;  %v3028_v62 = vld [vmem:[#allocation2 + $0xbc0] sm:$0xff]  ;;  %v2789_v35 = vld [vmem:[#allocation2 + $0x448] sm:$0xff] }
 0x2f0   : > { %4470 = vst.msk [vmem:[%s7840_s3 + $0x50] sm:$0xff] %vm1841_vm2, %v4350_v53  ;;  %v3872_v61 = vadd.f32 %v3752_v45, %v6399_v24  ;;  %v4112_v33 = vadd.f32 %v3992_v51, %v6399_v24  ;;  %v3393_v40 = vmul.f32 %v6389_v28, %v2785_v3  ;;  %v3753_v39 = vmul.f32 %v6389_v28, %v2905_v50  ;;  %v2909_v19 = vld [vmem:[#allocation2 + $0x808] sm:$0xff] }
 0x2f1   : > { %v4351_v56 = vmax.f32 %v3631_v12, %v4231_v46  ;;  %v3632_v59 = vmax.f32 %v3272_v30, %v3512_v15  ;;  %v3273_v13 = vadd.f32 %v6399_v24, %v3149_v52  ;;  %v3993_v63 = vmul.f32 %v6389_v28, %v3025_v32  ;;  %v3029_v45 = vld [vmem:[#allocation2 + $0xbc8] sm:$0xff]  ;;  %v2670_v15 = vld [vmem:[#allocation2 + $0x90] sm:$0xff] }
 0x2f2   : > { %v4232_v47 = vmax.f32 %v3872_v61, %v4112_v33  ;;  %v3513_v60 = vadd.f32 %v3393_v40, %v6399_v24  ;;  %v3873_v0 = vadd.f32 %v3753_v39, %v6399_v24  ;;  %v3150_v5 = vmul.f32 %v6389_v28, %v2666_v4  ;;  %v2790_v40 = vld [vmem:[#allocation2 + $0x450] sm:$0xff] }
 0x2f3   : > { %4471 = vst.msk [vmem:[%s7840_s3 + $0x58] sm:$0xff] %vm1841_vm2, %v4351_v56  ;;  %v4113_v11 = vadd.f32 %v3993_v63, %v6399_v24  ;;  %v3394_v27 = vmul.f32 %v6389_v28, %v2786_v26  ;;  %v3754_v16 = vmul.f32 %v6389_v28, %v2906_v38  ;;  %v3994_v14 = vmul.f32 %v6389_v28, %v3026_v9  ;;  %v2910_v39 = vld [vmem:[#allocation2 + $0x810] sm:$0xff] }
 0x2f4   : > { %v4352_v10 = vmax.f32 %v3632_v59, %v4232_v47  ;;  %v3633_v7 = vmax.f32 %v3273_v13, %v3513_v60  ;;  %v3274_v34 = vadd.f32 %v6399_v24, %v3150_v5  ;;  %v3151_v22 = vmul.f32 %v6389_v28, %v2667_v48  ;;  %v3030_v26 = vld [vmem:[#allocation2 + $0xbd0] sm:$0xff]  ;;  %v2671_v13 = vld [vmem:[#allocation2 + $0x98] sm:$0xff] }
 0x2f5   : > { %v4233_v21 = vmax.f32 %v3873_v0, %v4113_v11  ;;  %v3514_v1 = vadd.f32 %v3394_v27, %v6399_v24  ;;  %v3874_v43 = vadd.f32 %v3754_v16, %v6399_v24  ;;  %v4114_v44 = vadd.f32 %v3994_v14, %v6399_v24  ;;  %v2791_v16 = vld [vmem:[#allocation2 + $0x458] sm:$0xff] }
 0x2f6   : > { %4472 = vst.msk [vmem:[%s7840_s3 + $0x60] sm:$0xff] %vm1841_vm2, %v4352_v10  ;;  %v3275_v31 = vadd.f32 %v6399_v24, %v3151_v22  ;;  %v3395_v54 = vmul.f32 %v6389_v28, %v2787_v58  ;;  %v3755_v42 = vmul.f32 %v6389_v28, %v2907_v18  ;;  %v3995_v23 = vmul.f32 %v6389_v28, %v3027_v49  ;;  %v2911_v14 = vld [vmem:[#allocation2 + $0x818] sm:$0xff] }
 0x2f7   : > { %v4353_v25 = vmax.f32 %v3633_v7, %v4233_v21  ;;  %v3634_v17 = vmax.f32 %v3274_v34, %v3514_v1  ;;  %v4234_v55 = vmax.f32 %v3874_v43, %v4114_v44  ;;  %v3152_v2 = vmul.f32 %v6389_v28, %v2668_v8  ;;  %v3031_v58 = vld [vmem:[#allocation2 + $0xbd8] sm:$0xff]  ;;  %v2672_v34 = vld [vmem:[#allocation2 + $0xa0] sm:$0xff] }
 0x2f8   : > { %v3515_v37 = vadd.f32 %v3395_v54, %v6399_v24  ;;  %v3875_v29 = vadd.f32 %v3755_v42, %v6399_v24  ;;  %v4115_v36 = vadd.f32 %v3995_v23, %v6399_v24  ;;  %v3396_v6 = vmul.f32 %v6389_v28, %v2788_v57  ;;  %v2792_v43 = vld [vmem:[#allocation2 + $0x460] sm:$0xff] }
 0x2f9   : > { %4473 = vst.msk [vmem:[%s7840_s3 + $0x68] sm:$0xff] %vm1841_vm2, %v4353_v25  ;;  %v4354_v3 = vmax.f32 %v3634_v17, %v4234_v55  ;;  %v3276_v50 = vadd.f32 %v6399_v24, %v3152_v2  ;;  %v3756_v53 = vmul.f32 %v6389_v28, %v2908_v20  ;;  %v3996_v30 = vmul.f32 %v6389_v28, %v3028_v62  ;;  %v2912_v42 = vld [vmem:[#allocation2 + $0x820] sm:$0xff]  ;;  %v2673_v55 = vld [vmem:[#allocation2 + $0xa8] sm:$0xff] }
 0x2fa   : > { %v3635_v51 = vmax.f32 %v3275_v31, %v3515_v37  ;;  %v4235_v32 = vmax.f32 %v3875_v29, %v4115_v36  ;;  %v3516_v12 = vadd.f32 %v3396_v6, %v6399_v24  ;;  %v3153_v46 = vmul.f32 %v6389_v28, %v2669_v41  ;;  %v3032_v23 = vld [vmem:[#allocation2 + $0xbe0] sm:$0xff]  ;;  %v2793_v36 = vld [vmem:[#allocation2 + $0x468] sm:$0xff] }
 0x2fb   : > { %4474 = vst.msk [vmem:[%s7840_s3 + $0x70] sm:$0xff] %vm1841_vm2, %v4354_v3  ;;  %v3876_v52 = vadd.f32 %v3756_v53, %v6399_v24  ;;  %v4116_v4 = vadd.f32 %v3996_v30, %v6399_v24  ;;  %v3397_v61 = vmul.f32 %v6389_v28, %v2789_v35  ;;  %v3757_v33 = vmul.f32 %v6389_v28, %v2909_v19  ;;  %v2913_v6 = vld [vmem:[#allocation2 + $0x828] sm:$0xff] }
 0x2fc   : > { %v4355_v38 = vmax.f32 %v3635_v51, %v4235_v32  ;;  %v3636_v9 = vmax.f32 %v3276_v50, %v3516_v12  ;;  %v3277_v56 = vadd.f32 %v6399_v24, %v3153_v46  ;;  %v3997_v59 = vmul.f32 %v6389_v28, %v3029_v45  ;;  %v3033_v53 = vld [vmem:[#allocation2 + $0xbe8] sm:$0xff]  ;;  %v2674_v12 = vld [vmem:[#allocation2 + $0xb0] sm:$0xff] }
 0x2fd   : > { %v4236_v63 = vmax.f32 %v3876_v52, %v4116_v4  ;;  %v3517_v48 = vadd.f32 %v3397_v61, %v6399_v24  ;;  %v3877_v47 = vadd.f32 %v3757_v33, %v6399_v24  ;;  %v3154_v60 = vmul.f32 %v6389_v28, %v2670_v15  ;;  %v2794_v61 = vld [vmem:[#allocation2 + $0x470] sm:$0xff] }
 0x2fe   : > { %4475 = vst.msk [vmem:[%s7840_s3 + $0x78] sm:$0xff] %vm1841_vm2, %v4355_v38  ;;  %v4117_v0 = vadd.f32 %v3997_v59, %v6399_v24  ;;  %v3398_v5 = vmul.f32 %v6389_v28, %v2790_v40  ;;  %v3758_v11 = vmul.f32 %v6389_v28, %v2910_v39  ;;  %v3998_v27 = vmul.f32 %v6389_v28, %v3030_v26  ;;  %v2914_v33 = vld [vmem:[#allocation2 + $0x830] sm:$0xff] }
 0x2ff   : > { %v4356_v18 = vmax.f32 %v3636_v9, %v4236_v63  ;;  %v3637_v49 = vmax.f32 %v3277_v56, %v3517_v48  ;;  %v3278_v10 = vadd.f32 %v6399_v24, %v3154_v60  ;;  %v3155_v7 = vmul.f32 %v6389_v28, %v2671_v13  ;;  %v3034_v40 = vld [vmem:[#allocation2 + $0xbf0] sm:$0xff]  ;;  %v2675_v56 = vld [vmem:[#allocation2 + $0xb8] sm:$0xff] }
 0x300   : > { %v4237_v22 = vmax.f32 %v3877_v47, %v4117_v0  ;;  %v3518_v8 = vadd.f32 %v3398_v5, %v6399_v24  ;;  %v3878_v21 = vadd.f32 %v3758_v11, %v6399_v24  ;;  %v4118_v1 = vadd.f32 %v3998_v27, %v6399_v24  ;;  %v2795_v11 = vld [vmem:[#allocation2 + $0x478] sm:$0xff] }
 0x301   : > { %4476 = vst.msk [vmem:[%s7840_s3 + $0x80] sm:$0xff] %vm1841_vm2, %v4356_v18  ;;  %v3279_v44 = vadd.f32 %v6399_v24, %v3155_v7  ;;  %v3399_v57 = vmul.f32 %v6389_v28, %v2791_v16  ;;  %v3759_v31 = vmul.f32 %v6389_v28, %v2911_v14  ;;  %v3999_v54 = vmul.f32 %v6389_v28, %v3031_v58  ;;  %v2915_v27 = vld [vmem:[#allocation2 + $0x838] sm:$0xff] }
 0x302   : > { %v4357_v20 = vmax.f32 %v3637_v49, %v4237_v22  ;;  %v3638_v62 = vmax.f32 %v3278_v10, %v3518_v8  ;;  %v4238_v25 = vmax.f32 %v3878_v21, %v4118_v1  ;;  %v3156_v17 = vmul.f32 %v6389_v28, %v2672_v34  ;;  %v3035_v16 = vld [vmem:[#allocation2 + $0xbf8] sm:$0xff]  ;;  %v2676_v10 = vld [vmem:[#allocation2 + $0xc0] sm:$0xff] }
 0x303   : > { %v3519_v2 = vadd.f32 %v3399_v57, %v6399_v24  ;;  %v3879_v41 = vadd.f32 %v3759_v31, %v6399_v24  ;;  %v4119_v37 = vadd.f32 %v3999_v54, %v6399_v24  ;;  %v3400_v29 = vmul.f32 %v6389_v28, %v2792_v43  ;;  %v2796_v21 = vld [vmem:[#allocation2 + $0x480] sm:$0xff] }
 0x304   : > { %4477 = vst.msk [vmem:[%s7840_s3 + $0x88] sm:$0xff] %vm1841_vm2, %v4357_v20  ;;  %v4358_v35 = vmax.f32 %v3638_v62, %v4238_v25  ;;  %v3280_v19 = vadd.f32 %v6399_v24, %v3156_v17  ;;  %v3760_v3 = vmul.f32 %v6389_v28, %v2912_v42  ;;  %v4000_v50 = vmul.f32 %v6389_v28, %v3032_v23  ;;  %v2916_v31 = vld [vmem:[#allocation2 + $0x840] sm:$0xff]  ;;  %v2677_v25 = vld [vmem:[#allocation2 + $0xc8] sm:$0xff] }
 0x305   : > { %v3639_v30 = vmax.f32 %v3279_v44, %v3519_v2  ;;  %v4239_v45 = vmax.f32 %v3879_v41, %v4119_v37  ;;  %v3520_v51 = vadd.f32 %v3400_v29, %v6399_v24  ;;  %v3157_v32 = vmul.f32 %v6389_v28, %v2673_v55  ;;  %v3036_v54 = vld [vmem:[#allocation2 + $0xc00] sm:$0xff]  ;;  %v2797_v37 = vld [vmem:[#allocation2 + $0x488] sm:$0xff] }
 0x306   : > { %4478 = vst.msk [vmem:[%s7840_s3 + $0x90] sm:$0xff] %vm1841_vm2, %v4358_v35  ;;  %v3880_v46 = vadd.f32 %v3760_v3, %v6399_v24  ;;  %v4120_v15 = vadd.f32 %v4000_v50, %v6399_v24  ;;  %v3401_v52 = vmul.f32 %v6389_v28, %v2793_v36  ;;  %v3761_v4 = vmul.f32 %v6389_v28, %v2913_v6  ;;  %v2917_v29 = vld [vmem:[#allocation2 + $0x848] sm:$0xff] }
 0x307   : > { %v4359_v39 = vmax.f32 %v3639_v30, %v4239_v45  ;;  %v3640_v26 = vmax.f32 %v3280_v19, %v3520_v51  ;;  %v3281_v38 = vadd.f32 %v6399_v24, %v3157_v32  ;;  %v4001_v9 = vmul.f32 %v6389_v28, %v3033_v53  ;;  %v3037_v3 = vld [vmem:[#allocation2 + $0xc08] sm:$0xff]  ;;  %v2678_v51 = vld [vmem:[#allocation2 + $0xd0] sm:$0xff] }
 0x308   : > { %v4240_v59 = vmax.f32 %v3880_v46, %v4120_v15  ;;  %v3521_v13 = vadd.f32 %v3401_v52, %v6399_v24  ;;  %v3881_v63 = vadd.f32 %v3761_v4, %v6399_v24  ;;  %v3158_v48 = vmul.f32 %v6389_v28, %v2674_v12  ;;  %v2798_v52 = vld [vmem:[#allocation2 + $0x490] sm:$0xff] }
 0x309   : > { %4479 = vst.msk [vmem:[%s7840_s3 + $0x98] sm:$0xff] %vm1841_vm2, %v4359_v39  ;;  %v4121_v47 = vadd.f32 %v4001_v9, %v6399_v24  ;;  %v3402_v60 = vmul.f32 %v6389_v28, %v2794_v61  ;;  %v3762_v0 = vmul.f32 %v6389_v28, %v2914_v33  ;;  %v4002_v5 = vmul.f32 %v6389_v28, %v3034_v40  ;;  %v2918_v4 = vld [vmem:[#allocation2 + $0x850] sm:$0xff] }
 0x30a   : > { %v4360_v14 = vmax.f32 %v3640_v26, %v4240_v59  ;;  %v3641_v58 = vmax.f32 %v3281_v38, %v3521_v13  ;;  %v3282_v18 = vadd.f32 %v6399_v24, %v3158_v48  ;;  %v3159_v49 = vmul.f32 %v6389_v28, %v2675_v56  ;;  %v3038_v61 = vld [vmem:[#allocation2 + $0xc10] sm:$0xff]  ;;  %v2679_v38 = vld [vmem:[#allocation2 + $0xd8] sm:$0xff] }
 0x30b   : > { %v4241_v7 = vmax.f32 %v3881_v63, %v4121_v47  ;;  %v3522_v34 = vadd.f32 %v3402_v60, %v6399_v24  ;;  %v3882_v22 = vadd.f32 %v3762_v0, %v6399_v24  ;;  %v4122_v8 = vadd.f32 %v4002_v5, %v6399_v24  ;;  %v2799_v0 = vld [vmem:[#allocation2 + $0x498] sm:$0xff] }
 0x30c   : > { %4480 = vst.msk [vmem:[%s7840_s3 + $0xa0] sm:$0xff] %vm1841_vm2, %v4360_v14  ;;  %v3283_v1 = vadd.f32 %v6399_v24, %v3159_v49  ;;  %v3403_v43 = vmul.f32 %v6389_v28, %v2795_v11  ;;  %v3763_v44 = vmul.f32 %v6389_v28, %v2915_v27  ;;  %v4003_v57 = vmul.f32 %v6389_v28, %v3035_v16  ;;  %v2919_v5 = vld [vmem:[#allocation2 + $0x858] sm:$0xff] }
 0x30d   : > { %v4361_v42 = vmax.f32 %v3641_v58, %v4241_v7  ;;  %v3642_v23 = vmax.f32 %v3282_v18, %v3522_v34  ;;  %v4242_v20 = vmax.f32 %v3882_v22, %v4122_v8  ;;  %v3160_v62 = vmul.f32 %v6389_v28, %v2676_v10  ;;  %v3039_v11 = vld [vmem:[#allocation2 + $0xc18] sm:$0xff]  ;;  %v2680_v18 = vld [vmem:[#allocation2 + $0xe0] sm:$0xff] }
 0x30e   : > { %v3523_v17 = vadd.f32 %v3403_v43, %v6399_v24  ;;  %v3883_v55 = vadd.f32 %v3763_v44, %v6399_v24  ;;  %v4123_v2 = vadd.f32 %v4003_v57, %v6399_v24  ;;  %v3404_v41 = vmul.f32 %v6389_v28, %v2796_v21  ;;  %v2800_v22 = vld [vmem:[#allocation2 + $0x4a0] sm:$0xff] }
 0x30f   : > { %4481 = vst.msk [vmem:[%s7840_s3 + $0xa8] sm:$0xff] %vm1841_vm2, %v4361_v42  ;;  %v4362_v36 = vmax.f32 %v3642_v23, %v4242_v20  ;;  %v3284_v6 = vadd.f32 %v6399_v24, %v3160_v62  ;;  %v3764_v35 = vmul.f32 %v6389_v28, %v2916_v31  ;;  %v4004_v19 = vmul.f32 %v6389_v28, %v3036_v54  ;;  %v2920_v44 = vld [vmem:[#allocation2 + $0x860] sm:$0xff]  ;;  %v2681_v20 = vld [vmem:[#allocation2 + $0xe8] sm:$0xff] }
 0x310   : > { %v3643_v50 = vmax.f32 %v3283_v1, %v3523_v17  ;;  %v4243_v53 = vmax.f32 %v3883_v55, %v4123_v2  ;;  %v3524_v30 = vadd.f32 %v3404_v41, %v6399_v24  ;;  %v3161_v45 = vmul.f32 %v6389_v28, %v2677_v25  ;;  %v3040_v57 = vld [vmem:[#allocation2 + $0xc20] sm:$0xff]  ;;  %v2801_v2 = vld [vmem:[#allocation2 + $0x4a8] sm:$0xff] }
 0x311   : > { %4482 = vst.msk [vmem:[%s7840_s3 + $0xb0] sm:$0xff] %vm1841_vm2, %v4362_v36  ;;  %v3884_v32 = vadd.f32 %v3764_v35, %v6399_v24  ;;  %v4124_v12 = vadd.f32 %v4004_v19, %v6399_v24  ;;  %v3405_v46 = vmul.f32 %v6389_v28, %v2797_v37  ;;  %v3765_v15 = vmul.f32 %v6389_v28, %v2917_v29  ;;  %v2921_v41 = vld [vmem:[#allocation2 + $0x868] sm:$0xff] }
 0x312   : > { %v4363_v33 = vmax.f32 %v3643_v50, %v4243_v53  ;;  %v3644_v40 = vmax.f32 %v3284_v6, %v3524_v30  ;;  %v3285_v39 = vadd.f32 %v6399_v24, %v3161_v45  ;;  %v4005_v26 = vmul.f32 %v6389_v28, %v3037_v3  ;;  %v3041_v35 = vld [vmem:[#allocation2 + $0xc28] sm:$0xff]  ;;  %v2682_v30 = vld [vmem:[#allocation2 + $0xf0] sm:$0xff] }
 0x313   : > { %v4244_v9 = vmax.f32 %v3884_v32, %v4124_v12  ;;  %v3525_v56 = vadd.f32 %v3405_v46, %v6399_v24  ;;  %v3885_v59 = vadd.f32 %v3765_v15, %v6399_v24  ;;  %v3162_v13 = vmul.f32 %v6389_v28, %v2678_v51  ;;  %v2802_v46 = vld [vmem:[#allocation2 + $0x4b0] sm:$0xff] }
 0x314   : > { %4483 = vst.msk [vmem:[%s7840_s3 + $0xb8] sm:$0xff] %vm1841_vm2, %v4363_v33  ;;  %v4125_v63 = vadd.f32 %v4005_v26, %v6399_v24  ;;  %v3406_v48 = vmul.f32 %v6389_v28, %v2798_v52  ;;  %v3766_v47 = vmul.f32 %v6389_v28, %v2918_v4  ;;  %v4006_v60 = vmul.f32 %v6389_v28, %v3038_v61  ;;  %v2922_v15 = vld [vmem:[#allocation2 + $0x870] sm:$0xff] }
 0x315   : > { %v4364_v27 = vmax.f32 %v3644_v40, %v4244_v9  ;;  %v3645_v16 = vmax.f32 %v3285_v39, %v3525_v56  ;;  %v3286_v14 = vadd.f32 %v6399_v24, %v3162_v13  ;;  %v3163_v58 = vmul.f32 %v6389_v28, %v2679_v38  ;;  %v3042_v52 = vld [vmem:[#allocation2 + $0xc30] sm:$0xff]  ;;  %v2683_v39 = vld [vmem:[#allocation2 + $0xf8] sm:$0xff] }
 0x316   : > { %v4245_v49 = vmax.f32 %v3885_v59, %v4125_v63  ;;  %v3526_v10 = vadd.f32 %v3406_v48, %v6399_v24  ;;  %v3886_v7 = vadd.f32 %v3766_v47, %v6399_v24  ;;  %v4126_v34 = vadd.f32 %v4006_v60, %v6399_v24  ;;  %v2803_v47 = vld [vmem:[#allocation2 + $0x4b8] sm:$0xff] }
 0x317   : > { %4484 = vst.msk [vmem:[%s7840_s3 + $0xc0] sm:$0xff] %vm1841_vm2, %v4364_v27  ;;  %v3287_v8 = vadd.f32 %v6399_v24, %v3163_v58  ;;  %v3407_v21 = vmul.f32 %v6389_v28, %v2799_v0  ;;  %v3767_v1 = vmul.f32 %v6389_v28, %v2919_v5  ;;  %v4007_v43 = vmul.f32 %v6389_v28, %v3039_v11  ;;  %v2923_v60 = vld [vmem:[#allocation2 + $0x878] sm:$0xff] }
 0x318   : > { %v4365_v31 = vmax.f32 %v3645_v16, %v4245_v49  ;;  %v3646_v54 = vmax.f32 %v3286_v14, %v3526_v10  ;;  %v4246_v42 = vmax.f32 %v3886_v7, %v4126_v34  ;;  %v3164_v23 = vmul.f32 %v6389_v28, %v2680_v18  ;;  %v3043_v0 = vld [vmem:[#allocation2 + $0xc38] sm:$0xff]  ;;  %v2684_v14 = vld [vmem:[#allocation2 + $0x100] sm:$0xff] }
 0x319   : > { %v3527_v62 = vadd.f32 %v3407_v21, %v6399_v24  ;;  %v3887_v25 = vadd.f32 %v3767_v1, %v6399_v24  ;;  %v4127_v17 = vadd.f32 %v4007_v43, %v6399_v24  ;;  %v3408_v55 = vmul.f32 %v6389_v28, %v2800_v22  ;;  %v2804_v7 = vld [vmem:[#allocation2 + $0x4c0] sm:$0xff] }
 0x31a   : > { %4485 = vst.msk [vmem:[%s7840_s3 + $0xc8] sm:$0xff] %vm1841_vm2, %v4365_v31  ;;  %v4366_v37 = vmax.f32 %v3646_v54, %v4246_v42  ;;  %v3288_v29 = vadd.f32 %v6399_v24, %v3164_v23  ;;  %v3768_v36 = vmul.f32 %v6389_v28, %v2920_v44  ;;  %v4008_v6 = vmul.f32 %v6389_v28, %v3040_v57  ;;  %v2924_v1 = vld [vmem:[#allocation2 + $0x880] sm:$0xff]  ;;  %v2685_v42 = vld [vmem:[#allocation2 + $0x108] sm:$0xff] }
 0x31b   : > { %v3647_v19 = vmax.f32 %v3287_v8, %v3527_v62  ;;  %v4247_v3 = vmax.f32 %v3887_v25, %v4127_v17  ;;  %v3528_v50 = vadd.f32 %v3408_v55, %v6399_v24  ;;  %v3165_v53 = vmul.f32 %v6389_v28, %v2681_v20  ;;  %v3044_v43 = vld [vmem:[#allocation2 + $0xc40] sm:$0xff]  ;;  %v2805_v17 = vld [vmem:[#allocation2 + $0x4c8] sm:$0xff] }
 0x31c   : > { %4486 = vst.msk [vmem:[%s7840_s3 + $0xd0] sm:$0xff] %vm1841_vm2, %v4366_v37  ;;  %v3888_v45 = vadd.f32 %v3768_v36, %v6399_v24  ;;  %v4128_v51 = vadd.f32 %v4008_v6, %v6399_v24  ;;  %v3409_v32 = vmul.f32 %v6389_v28, %v2801_v2  ;;  %v3769_v12 = vmul.f32 %v6389_v28, %v2921_v41  ;;  %v2925_v55 = vld [vmem:[#allocation2 + $0x888] sm:$0xff] }
 0x31d   : > { %v4367_v4 = vmax.f32 %v3647_v19, %v4247_v3  ;;  %v3648_v61 = vmax.f32 %v3288_v29, %v3528_v50  ;;  %v3289_v33 = vadd.f32 %v6399_v24, %v3165_v53  ;;  %v4009_v40 = vmul.f32 %v6389_v28, %v3041_v35  ;;  %v3045_v36 = vld [vmem:[#allocation2 + $0xc48] sm:$0xff]  ;;  %v2686_v50 = vld [vmem:[#allocation2 + $0x110] sm:$0xff] }
 0x31e   : > { %v4248_v26 = vmax.f32 %v3888_v45, %v4128_v51  ;;  %v3529_v38 = vadd.f32 %v3409_v32, %v6399_v24  ;;  %v3889_v9 = vadd.f32 %v3769_v12, %v6399_v24  ;;  %v3166_v56 = vmul.f32 %v6389_v28, %v2682_v30  ;;  %v2806_v32 = vld [vmem:[#allocation2 + $0x4d0] sm:$0xff] }
 0x31f   : > { %4487 = vst.msk [vmem:[%s7840_s3 + $0xd8] sm:$0xff] %vm1841_vm2, %v4367_v4  ;;  %v4129_v59 = vadd.f32 %v4009_v40, %v6399_v24  ;;  %v3410_v13 = vmul.f32 %v6389_v28, %v2802_v46  ;;  %v3770_v63 = vmul.f32 %v6389_v28, %v2922_v15  ;;  %v4010_v48 = vmul.f32 %v6389_v28, %v3042_v52  ;;  %v2926_v12 = vld [vmem:[#allocation2 + $0x890] sm:$0xff] }
 0x320   : > { %v4368_v5 = vmax.f32 %v3648_v61, %v4248_v26  ;;  %v3649_v11 = vmax.f32 %v3289_v33, %v3529_v38  ;;  %v3290_v27 = vadd.f32 %v6399_v24, %v3166_v56  ;;  %v3167_v16 = vmul.f32 %v6389_v28, %v2683_v39  ;;  %v3046_v46 = vld [vmem:[#allocation2 + $0xc50] sm:$0xff]  ;;  %v2687_v33 = vld [vmem:[#allocation2 + $0x118] sm:$0xff] }
 0x321   : > { %v4249_v58 = vmax.f32 %v3889_v9, %v4129_v59  ;;  %v3530_v18 = vadd.f32 %v3410_v13, %v6399_v24  ;;  %v3890_v49 = vadd.f32 %v3770_v63, %v6399_v24  ;;  %v4130_v10 = vadd.f32 %v4010_v48, %v6399_v24  ;;  %v2807_v63 = vld [vmem:[#allocation2 + $0x4d8] sm:$0xff] }
 0x322   : > { %4488 = vst.msk [vmem:[%s7840_s3 + $0xe0] sm:$0xff] %vm1841_vm2, %v4368_v5  ;;  %v3291_v34 = vadd.f32 %v6399_v24, %v3167_v16  ;;  %v3411_v22 = vmul.f32 %v6389_v28, %v2803_v47  ;;  %v3771_v8 = vmul.f32 %v6389_v28, %v2923_v60  ;;  %v4011_v21 = vmul.f32 %v6389_v28, %v3043_v0  ;;  %v2927_v48 = vld [vmem:[#allocation2 + $0x898] sm:$0xff] }
 0x323   : > { %v4369_v44 = vmax.f32 %v3649_v11, %v4249_v58  ;;  %v3650_v57 = vmax.f32 %v3290_v27, %v3530_v18  ;;  %v4250_v31 = vmax.f32 %v3890_v49, %v4130_v10  ;;  %v3168_v54 = vmul.f32 %v6389_v28, %v2684_v14  ;;  %v3047_v47 = vld [vmem:[#allocation2 + $0xc58] sm:$0xff]  ;;  %v2688_v27 = vld [vmem:[#allocation2 + $0x120] sm:$0xff] }
 0x324   : > { %v3531_v23 = vadd.f32 %v3411_v22, %v6399_v24  ;;  %v3891_v20 = vadd.f32 %v3771_v8, %v6399_v24  ;;  %v4131_v62 = vadd.f32 %v4011_v21, %v6399_v24  ;;  %v3412_v25 = vmul.f32 %v6389_v28, %v2804_v7  ;;  %v2808_v49 = vld [vmem:[#allocation2 + $0x4e0] sm:$0xff] }
 0x325   : > { %4489 = vst.msk [vmem:[%s7840_s3 + $0xe8] sm:$0xff] %vm1841_vm2, %v4369_v44  ;;  %v4370_v2 = vmax.f32 %v3650_v57, %v4250_v31  ;;  %v3292_v41 = vadd.f32 %v6399_v24, %v3168_v54  ;;  %v3772_v37 = vmul.f32 %v6389_v28, %v2924_v1  ;;  %v4012_v29 = vmul.f32 %v6389_v28, %v3044_v43  ;;  %v2928_v8 = vld [vmem:[#allocation2 + $0x8a0] sm:$0xff]  ;;  %v2689_v31 = vld [vmem:[#allocation2 + $0x128] sm:$0xff] }
 0x326   : > { %v3651_v6 = vmax.f32 %v3291_v34, %v3531_v23  ;;  %v4251_v35 = vmax.f32 %v3891_v20, %v4131_v62  ;;  %v3532_v19 = vadd.f32 %v3412_v25, %v6399_v24  ;;  %v3169_v3 = vmul.f32 %v6389_v28, %v2685_v42  ;;  %v3048_v21 = vld [vmem:[#allocation2 + $0xc60] sm:$0xff]  ;;  %v2809_v62 = vld [vmem:[#allocation2 + $0x4e8] sm:$0xff] }
 0x327   : > { %4490 = vst.msk [vmem:[%s7840_s3 + $0xf0] sm:$0xff] %vm1841_vm2, %v4370_v2  ;;  %v3892_v53 = vadd.f32 %v3772_v37, %v6399_v24  ;;  %v4132_v30 = vadd.f32 %v4012_v29, %v6399_v24  ;;  %v3413_v45 = vmul.f32 %v6389_v28, %v2805_v17  ;;  %v3773_v51 = vmul.f32 %v6389_v28, %v2925_v55  ;;  %v2929_v25 = vld [vmem:[#allocation2 + $0x8a8] sm:$0xff] }
 0x328   : > { %v4371_v15 = vmax.f32 %v3651_v6, %v4251_v35  ;;  %v3652_v52 = vmax.f32 %v3292_v41, %v3532_v19  ;;  %v3293_v4 = vadd.f32 %v6399_v24, %v3169_v3  ;;  %v4013_v61 = vmul.f32 %v6389_v28, %v3045_v36  ;;  %v3049_v37 = vld [vmem:[#allocation2 + $0xc68] sm:$0xff]  ;;  %v2690_v19 = vld [vmem:[#allocation2 + $0x130] sm:$0xff] }
 0x329   : > { %v4252_v40 = vmax.f32 %v3892_v53, %v4132_v30  ;;  %v3533_v39 = vadd.f32 %v3413_v45, %v6399_v24  ;;  %v3893_v26 = vadd.f32 %v3773_v51, %v6399_v24  ;;  %v3170_v38 = vmul.f32 %v6389_v28, %v2686_v50  ;;  %v2810_v45 = vld [vmem:[#allocation2 + $0x4f0] sm:$0xff] }
 0x32a   : > { %4491 = vst.msk [vmem:[%s7840_s3 + $0xf8] sm:$0xff] %vm1841_vm2, %v4371_v15  ;;  %v4133_v9 = vadd.f32 %v4013_v61, %v6399_v24  ;;  %v3414_v56 = vmul.f32 %v6389_v28, %v2806_v32  ;;  %v3774_v59 = vmul.f32 %v6389_v28, %v2926_v12  ;;  %v4014_v13 = vmul.f32 %v6389_v28, %v3046_v46  ;;  %v2930_v51 = vld [vmem:[#allocation2 + $0x8b0] sm:$0xff] }
 0x32b   : > { %v4372_v60 = vmax.f32 %v3652_v52, %v4252_v40  ;;  %v3653_v0 = vmax.f32 %v3293_v4, %v3533_v39  ;;  %v3294_v5 = vadd.f32 %v6399_v24, %v3170_v38  ;;  %v3171_v11 = vmul.f32 %v6389_v28, %v2687_v33  ;;  %v3050_v32 = vld [vmem:[#allocation2 + $0xc70] sm:$0xff]  ;;  %v2691_v4 = vld [vmem:[#allocation2 + $0x138] sm:$0xff] }
 0x32c   : > { %v4253_v16 = vmax.f32 %v3893_v26, %v4133_v9  ;;  %v3534_v14 = vadd.f32 %v3414_v56, %v6399_v24  ;;  %v3894_v58 = vadd.f32 %v3774_v59, %v6399_v24  ;;  %v4134_v18 = vadd.f32 %v4014_v13, %v6399_v24  ;;  %v2811_v59 = vld [vmem:[#allocation2 + $0x4f8] sm:$0xff] }
 0x32d   : > { %4492 = vst.msk [vmem:[%s7840_s3 + $0x100] sm:$0xff] %vm1841_vm2, %v4372_v60  ;;  %v3295_v10 = vadd.f32 %v6399_v24, %v3171_v11  ;;  %v3415_v7 = vmul.f32 %v6389_v28, %v2807_v63  ;;  %v3775_v34 = vmul.f32 %v6389_v28, %v2927_v48  ;;  %v4015_v22 = vmul.f32 %v6389_v28, %v3047_v47  ;;  %v2931_v13 = vld [vmem:[#allocation2 + $0x8b8] sm:$0xff] }
 0x32e   : > { %v4373_v1 = vmax.f32 %v3653_v0, %v4253_v16  ;;  %v3654_v43 = vmax.f32 %v3294_v5, %v3534_v14  ;;  %v4254_v44 = vmax.f32 %v3894_v58, %v4134_v18  ;;  %v3172_v57 = vmul.f32 %v6389_v28, %v2688_v27  ;;  %v3051_v63 = vld [vmem:[#allocation2 + $0xc78] sm:$0xff]  ;;  %v2692_v5 = vld [vmem:[#allocation2 + $0x140] sm:$0xff] }
 0x32f   : > { %v3535_v54 = vadd.f32 %v3415_v7, %v6399_v24  ;;  %v3895_v42 = vadd.f32 %v3775_v34, %v6399_v24  ;;  %v4135_v23 = vadd.f32 %v4015_v22, %v6399_v24  ;;  %v3416_v20 = vmul.f32 %v6389_v28, %v2808_v49  ;;  %v2812_v58 = vld [vmem:[#allocation2 + $0x500] sm:$0xff] }
 0x330   : > { %4493 = vst.msk [vmem:[%s7840_s3 + $0x108] sm:$0xff] %vm1841_vm2, %v4373_v1  ;;  %v4374_v17 = vmax.f32 %v3654_v43, %v4254_v44  ;;  %v3296_v55 = vadd.f32 %v6399_v24, %v3172_v57  ;;  %v3776_v2 = vmul.f32 %v6389_v28, %v2928_v8  ;;  %v4016_v41 = vmul.f32 %v6389_v28, %v3048_v21  ;;  %v2932_v34 = vld [vmem:[#allocation2 + $0x8c0] sm:$0xff]  ;;  %v2693_v44 = vld [vmem:[#allocation2 + $0x148] sm:$0xff] }
 0x331   : > { %v3655_v29 = vmax.f32 %v3295_v10, %v3535_v54  ;;  %v4255_v36 = vmax.f32 %v3895_v42, %v4135_v23  ;;  %v3536_v6 = vadd.f32 %v3416_v20, %v6399_v24  ;;  %v3173_v35 = vmul.f32 %v6389_v28, %v2689_v31  ;;  %v3052_v22 = vld [vmem:[#allocation2 + $0xc80] sm:$0xff]  ;;  %v2813_v23 = vld [vmem:[#allocation2 + $0x508] sm:$0xff] }
 0x332   : > { %4494 = vst.msk [vmem:[%s7840_s3 + $0x110] sm:$0xff] %vm1841_vm2, %v4374_v17  ;;  %v3896_v3 = vadd.f32 %v3776_v2, %v6399_v24  ;;  %v4136_v50 = vadd.f32 %v4016_v41, %v6399_v24  ;;  %v3417_v53 = vmul.f32 %v6389_v28, %v2809_v62  ;;  %v3777_v30 = vmul.f32 %v6389_v28, %v2929_v25  ;;  %v2933_v20 = vld [vmem:[#allocation2 + $0x8c8] sm:$0xff] }
 0x333   : > { %v4375_v12 = vmax.f32 %v3655_v29, %v4255_v36  ;;  %v3656_v46 = vmax.f32 %v3296_v55, %v3536_v6  ;;  %v3297_v15 = vadd.f32 %v6399_v24, %v3173_v35  ;;  %v4017_v52 = vmul.f32 %v6389_v28, %v3049_v37  ;;  %v3053_v2 = vld [vmem:[#allocation2 + $0xc88] sm:$0xff]  ;;  %v2694_v6 = vld [vmem:[#allocation2 + $0x150] sm:$0xff] }
 0x334   : > { %v4256_v61 = vmax.f32 %v3896_v3, %v4136_v50  ;;  %v3537_v33 = vadd.f32 %v3417_v53, %v6399_v24  ;;  %v3897_v40 = vadd.f32 %v3777_v30, %v6399_v24  ;;  %v3174_v39 = vmul.f32 %v6389_v28, %v2690_v19  ;;  %v2814_v53 = vld [vmem:[#allocation2 + $0x510] sm:$0xff] }
 0x335   : > { %4495 = vst.msk [vmem:[%s7840_s3 + $0x118] sm:$0xff] %vm1841_vm2, %v4375_v12  ;;  %v4137_v26 = vadd.f32 %v4017_v52, %v6399_v24  ;;  %v3418_v38 = vmul.f32 %v6389_v28, %v2810_v45  ;;  %v3778_v9 = vmul.f32 %v6389_v28, %v2930_v51  ;;  %v4018_v56 = vmul.f32 %v6389_v28, %v3050_v32  ;;  %v2934_v30 = vld [vmem:[#allocation2 + $0x8d0] sm:$0xff] }
 0x336   : > { %v4376_v48 = vmax.f32 %v3656_v46, %v4256_v61  ;;  %v3657_v47 = vmax.f32 %v3297_v15, %v3537_v33  ;;  %v3298_v60 = vadd.f32 %v6399_v24, %v3174_v39  ;;  %v3175_v0 = vmul.f32 %v6389_v28, %v2691_v4  ;;  %v3054_v45 = vld [vmem:[#allocation2 + $0xc90] sm:$0xff]  ;;  %v2695_v15 = vld [vmem:[#allocation2 + $0x158] sm:$0xff] }
 0x337   : > { %v4257_v11 = vmax.f32 %v3897_v40, %v4137_v26  ;;  %v3538_v27 = vadd.f32 %v3418_v38, %v6399_v24  ;;  %v3898_v16 = vadd.f32 %v3778_v9, %v6399_v24  ;;  %v4138_v14 = vadd.f32 %v4018_v56, %v6399_v24  ;;  %v2815_v9 = vld [vmem:[#allocation2 + $0x518] sm:$0xff] }
 0x338   : > { %4496 = vst.msk [vmem:[%s7840_s3 + $0x120] sm:$0xff] %vm1841_vm2, %v4376_v48  ;;  %v3299_v18 = vadd.f32 %v6399_v24, %v3175_v0  ;;  %v3419_v49 = vmul.f32 %v6389_v28, %v2811_v59  ;;  %v3779_v10 = vmul.f32 %v6389_v28, %v2931_v13  ;;  %v4019_v7 = vmul.f32 %v6389_v28, %v3051_v63  ;;  %v2935_v56 = vld [vmem:[#allocation2 + $0x8d8] sm:$0xff] }
 0x339   : > { %v4377_v8 = vmax.f32 %v3657_v47, %v4257_v11  ;;  %v3658_v21 = vmax.f32 %v3298_v60, %v3538_v27  ;;  %v4258_v1 = vmax.f32 %v3898_v16, %v4138_v14  ;;  %v3176_v43 = vmul.f32 %v6389_v28, %v2692_v5  ;;  %v3055_v59 = vld [vmem:[#allocation2 + $0xc98] sm:$0xff]  ;;  %v2696_v60 = vld [vmem:[#allocation2 + $0x160] sm:$0xff] }
 0x33a   : > { %v3539_v57 = vadd.f32 %v3419_v49, %v6399_v24  ;;  %v3899_v31 = vadd.f32 %v3779_v10, %v6399_v24  ;;  %v4139_v54 = vadd.f32 %v4019_v7, %v6399_v24  ;;  %v3420_v42 = vmul.f32 %v6389_v28, %v2812_v58  ;;  %v2816_v16 = vld [vmem:[#allocation2 + $0x520] sm:$0xff] }
 0x33b   : > { %4497 = vst.msk [vmem:[%s7840_s3 + $0x128] sm:$0xff] %vm1841_vm2, %v4377_v8  ;;  %v4378_v62 = vmax.f32 %v3658_v21, %v4258_v1  ;;  %v3300_v25 = vadd.f32 %v6399_v24, %v3176_v43  ;;  %v3780_v17 = vmul.f32 %v6389_v28, %v2932_v34  ;;  %v4020_v55 = vmul.f32 %v6389_v28, %v3052_v22  ;;  %v2936_v10 = vld [vmem:[#allocation2 + $0x8e0] sm:$0xff]  ;;  %v2697_v1 = vld [vmem:[#allocation2 + $0x168] sm:$0xff] }
 0x33c   : > { %v3659_v41 = vmax.f32 %v3299_v18, %v3539_v57  ;;  %v4259_v37 = vmax.f32 %v3899_v31, %v4139_v54  ;;  %v3540_v29 = vadd.f32 %v3420_v42, %v6399_v24  ;;  %v3177_v36 = vmul.f32 %v6389_v28, %v2693_v44  ;;  %v3056_v7 = vld [vmem:[#allocation2 + $0xca0] sm:$0xff]  ;;  %v2817_v54 = vld [vmem:[#allocation2 + $0x528] sm:$0xff] }
 0x33d   : > { %4498 = vst.msk [vmem:[%s7840_s3 + $0x130] sm:$0xff] %vm1841_vm2, %v4378_v62  ;;  %v3900_v35 = vadd.f32 %v3780_v17, %v6399_v24  ;;  %v4140_v19 = vadd.f32 %v4020_v55, %v6399_v24  ;;  %v3421_v3 = vmul.f32 %v6389_v28, %v2813_v23  ;;  %v3781_v50 = vmul.f32 %v6389_v28, %v2933_v20  ;;  %v2937_v42 = vld [vmem:[#allocation2 + $0x8e8] sm:$0xff] }
 0x33e   : > { %v4379_v51 = vmax.f32 %v3659_v41, %v4259_v37  ;;  %v3660_v32 = vmax.f32 %v3300_v25, %v3540_v29  ;;  %v3301_v12 = vadd.f32 %v6399_v24, %v3177_v36  ;;  %v4021_v46 = vmul.f32 %v6389_v28, %v3053_v2  ;;  %v3057_v17 = vld [vmem:[#allocation2 + $0xca8] sm:$0xff]  ;;  %v2698_v29 = vld [vmem:[#allocation2 + $0x170] sm:$0xff] }
 0x33f   : > { %v4260_v52 = vmax.f32 %v3900_v35, %v4140_v19  ;;  %v3541_v4 = vadd.f32 %v3421_v3, %v6399_v24  ;;  %v3901_v61 = vadd.f32 %v3781_v50, %v6399_v24  ;;  %v3178_v33 = vmul.f32 %v6389_v28, %v2694_v6  ;;  %v2818_v3 = vld [vmem:[#allocation2 + $0x530] sm:$0xff] }
 0x340   : > { %4499 = vst.msk [vmem:[%s7840_s3 + $0x138] sm:$0xff] %vm1841_vm2, %v4379_v51  ;;  %v4141_v40 = vadd.f32 %v4021_v46, %v6399_v24  ;;  %v3422_v39 = vmul.f32 %v6389_v28, %v2814_v53  ;;  %v3782_v26 = vmul.f32 %v6389_v28, %v2934_v30  ;;  %v4022_v38 = vmul.f32 %v6389_v28, %v3054_v45  ;;  %v2938_v50 = vld [vmem:[#allocation2 + $0x8f0] sm:$0xff] }
 0x341   : > { %v4380_v13 = vmax.f32 %v3660_v32, %v4260_v52  ;;  %v3661_v63 = vmax.f32 %v3301_v12, %v3541_v4  ;;  %v3302_v48 = vadd.f32 %v6399_v24, %v3178_v33  ;;  %v3179_v47 = vmul.f32 %v6389_v28, %v2695_v15  ;;  %v3058_v53 = vld [vmem:[#allocation2 + $0xcb0] sm:$0xff]  ;;  %v2699_v12 = vld [vmem:[#allocation2 + $0x178] sm:$0xff] }
 0x342   : > { %v4261_v0 = vmax.f32 %v3901_v61, %v4141_v40  ;;  %v3542_v5 = vadd.f32 %v3422_v39, %v6399_v24  ;;  %v3902_v11 = vadd.f32 %v3782_v26, %v6399_v24  ;;  %v4142_v27 = vadd.f32 %v4022_v38, %v6399_v24  ;;  %v2819_v26 = vld [vmem:[#allocation2 + $0x538] sm:$0xff] }
 0x343   : > { %4500 = vst.msk [vmem:[%s7840_s3 + $0x140] sm:$0xff] %vm1841_vm2, %v4380_v13  ;;  %v3303_v14 = vadd.f32 %v6399_v24, %v3179_v47  ;;  %v3423_v58 = vmul.f32 %v6389_v28, %v2815_v9  ;;  %v3783_v18 = vmul.f32 %v6389_v28, %v2935_v56  ;;  %v4023_v49 = vmul.f32 %v6389_v28, %v3055_v59  ;;  %v2939_v38 = vld [vmem:[#allocation2 + $0x8f8] sm:$0xff] }
 0x344   : > { %v4381_v34 = vmax.f32 %v3661_v63, %v4261_v0  ;;  %v3662_v22 = vmax.f32 %v3302_v48, %v3542_v5  ;;  %v4262_v8 = vmax.f32 %v3902_v11, %v4142_v27  ;;  %v3180_v21 = vmul.f32 %v6389_v28, %v2696_v60  ;;  %v3059_v9 = vld [vmem:[#allocation2 + $0xcb8] sm:$0xff]  ;;  %v2700_v48 = vld [vmem:[#allocation2 + $0x180] sm:$0xff] }
 0x345   : > { %v3543_v43 = vadd.f32 %v3423_v58, %v6399_v24  ;;  %v3903_v44 = vadd.f32 %v3783_v18, %v6399_v24  ;;  %v4143_v57 = vadd.f32 %v4023_v49, %v6399_v24  ;;  %v3424_v31 = vmul.f32 %v6389_v28, %v2816_v16  ;;  %v2820_v11 = vld [vmem:[#allocation2 + $0x540] sm:$0xff] }
 0x346   : > { %4501 = vst.msk [vmem:[%s7840_s3 + $0x148] sm:$0xff] %vm1841_vm2, %v4381_v34  ;;  %v4382_v23 = vmax.f32 %v3662_v22, %v4262_v8  ;;  %v3304_v20 = vadd.f32 %v6399_v24, %v3180_v21  ;;  %v3784_v62 = vmul.f32 %v6389_v28, %v2936_v10  ;;  %v4024_v25 = vmul.f32 %v6389_v28, %v3056_v7  ;;  %v2940_v18 = vld [vmem:[#allocation2 + $0x900] sm:$0xff]  ;;  %v2701_v8 = vld [vmem:[#allocation2 + $0x188] sm:$0xff] }
 0x347   : > { %v3663_v55 = vmax.f32 %v3303_v14, %v3543_v43  ;;  %v4263_v2 = vmax.f32 %v3903_v44, %v4143_v57  ;;  %v3544_v41 = vadd.f32 %v3424_v31, %v6399_v24  ;;  %v3181_v37 = vmul.f32 %v6389_v28, %v2697_v1  ;;  %v3060_v49 = vld [vmem:[#allocation2 + $0xcc0] sm:$0xff]  ;;  %v2821_v57 = vld [vmem:[#allocation2 + $0x548] sm:$0xff] }
 0x348   : > { %4502 = vst.msk [vmem:[%s7840_s3 + $0x150] sm:$0xff] %vm1841_vm2, %v4382_v23  ;;  %v3904_v36 = vadd.f32 %v3784_v62, %v6399_v24  ;;  %v4144_v6 = vadd.f32 %v4024_v25, %v6399_v24  ;;  %v3425_v35 = vmul.f32 %v6389_v28, %v2817_v54  ;;  %v3785_v19 = vmul.f32 %v6389_v28, %v2937_v42  ;;  %v2941_v31 = vld [vmem:[#allocation2 + $0x908] sm:$0xff] }
 0x349   : > { %v4383_v30 = vmax.f32 %v3663_v55, %v4263_v2  ;;  %v3664_v45 = vmax.f32 %v3304_v20, %v3544_v41  ;;  %v3305_v51 = vadd.f32 %v6399_v24, %v3181_v37  ;;  %v4025_v32 = vmul.f32 %v6389_v28, %v3057_v17  ;;  %v3061_v62 = vld [vmem:[#allocation2 + $0xcc8] sm:$0xff]  ;;  %v2702_v41 = vld [vmem:[#allocation2 + $0x190] sm:$0xff] }
 0x34a   : > { %v4264_v46 = vmax.f32 %v3904_v36, %v4144_v6  ;;  %v3545_v15 = vadd.f32 %v3425_v35, %v6399_v24  ;;  %v3905_v52 = vadd.f32 %v3785_v19, %v6399_v24  ;;  %v3182_v4 = vmul.f32 %v6389_v28, %v2698_v29  ;;  %v2822_v35 = vld [vmem:[#allocation2 + $0x550] sm:$0xff] }
 0x34b   : > { %4503 = vst.msk [vmem:[%s7840_s3 + $0x158] sm:$0xff] %vm1841_vm2, %v4383_v30  ;;  %v4145_v61 = vadd.f32 %v4025_v32, %v6399_v24  ;;  %v3426_v33 = vmul.f32 %v6389_v28, %v2818_v3  ;;  %v3786_v40 = vmul.f32 %v6389_v28, %v2938_v50  ;;  %v4026_v39 = vmul.f32 %v6389_v28, %v3058_v53  ;;  %v2942_v19 = vld [vmem:[#allocation2 + $0x910] sm:$0xff] }
 0x34c   : > { %v4384_v56 = vmax.f32 %v3664_v45, %v4264_v46  ;;  %v3665_v59 = vmax.f32 %v3305_v51, %v3545_v15  ;;  %v3306_v13 = vadd.f32 %v6399_v24, %v3182_v4  ;;  %v3183_v63 = vmul.f32 %v6389_v28, %v2699_v12  ;;  %v3062_v3 = vld [vmem:[#allocation2 + $0xcd0] sm:$0xff]  ;;  %v2703_v51 = vld [vmem:[#allocation2 + $0x198] sm:$0xff] }
 0x34d   : > { %v4265_v47 = vmax.f32 %v3905_v52, %v4145_v61  ;;  %v3546_v60 = vadd.f32 %v3426_v33, %v6399_v24  ;;  %v3906_v0 = vadd.f32 %v3786_v40, %v6399_v24  ;;  %v4146_v5 = vadd.f32 %v4026_v39, %v6399_v24  ;;  %v2823_v40 = vld [vmem:[#allocation2 + $0x558] sm:$0xff] }
 0x34e   : > { %4504 = vst.msk [vmem:[%s7840_s3 + $0x160] sm:$0xff] %vm1841_vm2, %v4384_v56  ;;  %v3307_v27 = vadd.f32 %v6399_v24, %v3183_v63  ;;  %v3427_v16 = vmul.f32 %v6389_v28, %v2819_v26  ;;  %v3787_v14 = vmul.f32 %v6389_v28, %v2939_v38  ;;  %v4027_v58 = vmul.f32 %v6389_v28, %v3059_v9  ;;  %v2943_v39 = vld [vmem:[#allocation2 + $0x918] sm:$0xff] }
 0x34f   : > { %v4385_v10 = vmax.f32 %v3665_v59, %v4265_v47  ;;  %v3666_v7 = vmax.f32 %v3306_v13, %v3546_v60  ;;  %v4266_v34 = vmax.f32 %v3906_v0, %v4146_v5  ;;  %v3184_v22 = vmul.f32 %v6389_v28, %v2700_v48  ;;  %v3063_v26 = vld [vmem:[#allocation2 + $0xcd8] sm:$0xff]  ;;  %v2704_v13 = vld [vmem:[#allocation2 + $0x1a0] sm:$0xff] }
 0x350   : > { %v3547_v21 = vadd.f32 %v3427_v16, %v6399_v24  ;;  %v3907_v1 = vadd.f32 %v3787_v14, %v6399_v24  ;;  %v4147_v43 = vadd.f32 %v4027_v58, %v6399_v24  ;;  %v3428_v44 = vmul.f32 %v6389_v28, %v2820_v11  ;;  %v2824_v0 = vld [vmem:[#allocation2 + $0x560] sm:$0xff] }
 0x351   : > { %4505 = vst.msk [vmem:[%s7840_s3 + $0x168] sm:$0xff] %vm1841_vm2, %v4385_v10  ;;  %v4386_v54 = vmax.f32 %v3666_v7, %v4266_v34  ;;  %v3308_v42 = vadd.f32 %v6399_v24, %v3184_v22  ;;  %v3788_v23 = vmul.f32 %v6389_v28, %v2940_v18  ;;  %v4028_v20 = vmul.f32 %v6389_v28, %v3060_v49  ;;  %v2944_v14 = vld [vmem:[#allocation2 + $0x920] sm:$0xff]  ;;  %v2705_v34 = vld [vmem:[#allocation2 + $0x1a8] sm:$0xff] }
 0x352   : > { %v3667_v25 = vmax.f32 %v3307_v27, %v3547_v21  ;;  %v4267_v17 = vmax.f32 %v3907_v1, %v4147_v43  ;;  %v3548_v55 = vadd.f32 %v3428_v44, %v6399_v24  ;;  %v3185_v2 = vmul.f32 %v6389_v28, %v2701_v8  ;;  %v3064_v58 = vld [vmem:[#allocation2 + $0xce0] sm:$0xff]  ;;  %v2825_v43 = vld [vmem:[#allocation2 + $0x568] sm:$0xff] }
 0x353   : > { %4506 = vst.msk [vmem:[%s7840_s3 + $0x170] sm:$0xff] %vm1841_vm2, %v4386_v54  ;;  %v3908_v37 = vadd.f32 %v3788_v23, %v6399_v24  ;;  %v4148_v29 = vadd.f32 %v4028_v20, %v6399_v24  ;;  %v3429_v36 = vmul.f32 %v6389_v28, %v2821_v57  ;;  %v3789_v6 = vmul.f32 %v6389_v28, %v2941_v31  ;;  %v2945_v44 = vld [vmem:[#allocation2 + $0x928] sm:$0xff] }
 0x354   : > { %v4387_v50 = vmax.f32 %v3667_v25, %v4267_v17  ;;  %v3668_v53 = vmax.f32 %v3308_v42, %v3548_v55  ;;  %v3309_v30 = vadd.f32 %v6399_v24, %v3185_v2  ;;  %v4029_v45 = vmul.f32 %v6389_v28, %v3061_v62  ;;  %v3065_v23 = vld [vmem:[#allocation2 + $0xce8] sm:$0xff]  ;;  %v2706_v55 = vld [vmem:[#allocation2 + $0x1b0] sm:$0xff] }
 0x355   : > { %v4268_v32 = vmax.f32 %v3908_v37, %v4148_v29  ;;  %v3549_v12 = vadd.f32 %v3429_v36, %v6399_v24  ;;  %v3909_v46 = vadd.f32 %v3789_v6, %v6399_v24  ;;  %v3186_v15 = vmul.f32 %v6389_v28, %v2702_v41  ;;  %v2826_v36 = vld [vmem:[#allocation2 + $0x570] sm:$0xff] }
 0x356   : > { %4507 = vst.msk [vmem:[%s7840_s3 + $0x178] sm:$0xff] %vm1841_vm2, %v4387_v50  ;;  %v4149_v52 = vadd.f32 %v4029_v45, %v6399_v24  ;;  %v3430_v4 = vmul.f32 %v6389_v28, %v2822_v35  ;;  %v3790_v61 = vmul.f32 %v6389_v28, %v2942_v19  ;;  %v4030_v33 = vmul.f32 %v6389_v28, %v3062_v3  ;;  %v2946_v6 = vld [vmem:[#allocation2 + $0x930] sm:$0xff] }
 0x357   : > { %v4388_v38 = vmax.f32 %v3668_v53, %v4268_v32  ;;  %v3669_v9 = vmax.f32 %v3309_v30, %v3549_v12  ;;  %v3310_v56 = vadd.f32 %v6399_v24, %v3186_v15  ;;  %v3187_v59 = vmul.f32 %v6389_v28, %v2703_v51  ;;  %v3066_v35 = vld [vmem:[#allocation2 + $0xcf0] sm:$0xff]  ;;  %v2707_v30 = vld [vmem:[#allocation2 + $0x1b8] sm:$0xff] }
 0x358   : > { %v4269_v63 = vmax.f32 %v3909_v46, %v4149_v52  ;;  %v3550_v48 = vadd.f32 %v3430_v4, %v6399_v24  ;;  %v3910_v47 = vadd.f32 %v3790_v61, %v6399_v24  ;;  %v4150_v60 = vadd.f32 %v4030_v33, %v6399_v24  ;;  %v2827_v61 = vld [vmem:[#allocation2 + $0x578] sm:$0xff] }
 0x359   : > { %4508 = vst.msk [vmem:[%s7840_s3 + $0x180] sm:$0xff] %vm1841_vm2, %v4388_v38  ;;  %v3311_v5 = vadd.f32 %v6399_v24, %v3187_v59  ;;  %v3431_v11 = vmul.f32 %v6389_v28, %v2823_v40  ;;  %v3791_v27 = vmul.f32 %v6389_v28, %v2943_v39  ;;  %v4031_v16 = vmul.f32 %v6389_v28, %v3063_v26  ;;  %v2947_v33 = vld [vmem:[#allocation2 + $0x938] sm:$0xff] }
 0x35a   : > { %v4389_v18 = vmax.f32 %v3669_v9, %v4269_v63  ;;  %v3670_v49 = vmax.f32 %v3310_v56, %v3550_v48  ;;  %v4270_v10 = vmax.f32 %v3910_v47, %v4150_v60  ;;  %v3188_v7 = vmul.f32 %v6389_v28, %v2704_v13  ;;  %v3067_v40 = vld [vmem:[#allocation2 + $0xcf8] sm:$0xff]  ;;  %v2708_v56 = vld [vmem:[#allocation2 + $0x1c0] sm:$0xff] }
 0x35b   : > { %v3551_v22 = vadd.f32 %v3431_v11, %v6399_v24  ;;  %v3911_v8 = vadd.f32 %v3791_v27, %v6399_v24  ;;  %v4151_v21 = vadd.f32 %v4031_v16, %v6399_v24  ;;  %v3432_v1 = vmul.f32 %v6389_v28, %v2824_v0  ;;  %v2828_v47 = vld [vmem:[#allocation2 + $0x580] sm:$0xff] }
 0x35c   : > { %4509 = vst.msk [vmem:[%s7840_s3 + $0x188] sm:$0xff] %vm1841_vm2, %v4389_v18  ;;  %v4390_v57 = vmax.f32 %v3670_v49, %v4270_v10  ;;  %v3312_v31 = vadd.f32 %v6399_v24, %v3188_v7  ;;  %v3792_v54 = vmul.f32 %v6389_v28, %v2944_v14  ;;  %v4032_v42 = vmul.f32 %v6389_v28, %v3064_v58  ;;  %v2948_v27 = vld [vmem:[#allocation2 + $0x940] sm:$0xff]  ;;  %v2709_v10 = vld [vmem:[#allocation2 + $0x1c8] sm:$0xff] }
 0x35d   : > { %v3671_v20 = vmax.f32 %v3311_v5, %v3551_v22  ;;  %v4271_v62 = vmax.f32 %v3911_v8, %v4151_v21  ;;  %v3552_v25 = vadd.f32 %v3432_v1, %v6399_v24  ;;  %v3189_v17 = vmul.f32 %v6389_v28, %v2705_v34  ;;  %v3068_v16 = vld [vmem:[#allocation2 + $0xd00] sm:$0xff]  ;;  %v2829_v21 = vld [vmem:[#allocation2 + $0x588] sm:$0xff] }
 0x35e   : > { %4510 = vst.msk [vmem:[%s7840_s3 + $0x190] sm:$0xff] %vm1841_vm2, %v4390_v57  ;;  %v3912_v2 = vadd.f32 %v3792_v54, %v6399_v24  ;;  %v4152_v41 = vadd.f32 %v4032_v42, %v6399_v24  ;;  %v3433_v37 = vmul.f32 %v6389_v28, %v2825_v43  ;;  %v3793_v29 = vmul.f32 %v6389_v28, %v2945_v44  ;;  %v2949_v1 = vld [vmem:[#allocation2 + $0x948] sm:$0xff] }
 0x35f   : > { %v4391_v19 = vmax.f32 %v3671_v20, %v4271_v62  ;;  %v3672_v3 = vmax.f32 %v3312_v31, %v3552_v25  ;;  %v3313_v50 = vadd.f32 %v6399_v24, %v3189_v17  ;;  %v4033_v53 = vmul.f32 %v6389_v28, %v3065_v23  ;;  %v3069_v54 = vld [vmem:[#allocation2 + $0xd08] sm:$0xff]  ;;  %v2710_v25 = vld [vmem:[#allocation2 + $0x1d0] sm:$0xff] }
 0x360   : > { %v4272_v45 = vmax.f32 %v3912_v2, %v4152_v41  ;;  %v3553_v51 = vadd.f32 %v3433_v37, %v6399_v24  ;;  %v3913_v32 = vadd.f32 %v3793_v29, %v6399_v24  ;;  %v3190_v12 = vmul.f32 %v6389_v28, %v2706_v55  ;;  %v2830_v37 = vld [vmem:[#allocation2 + $0x590] sm:$0xff] }
 0x361   : > { %4511 = vst.msk [vmem:[%s7840_s3 + $0x198] sm:$0xff] %vm1841_vm2, %v4391_v19  ;;  %v4153_v46 = vadd.f32 %v4033_v53, %v6399_v24  ;;  %v3434_v15 = vmul.f32 %v6389_v28, %v2826_v36  ;;  %v3794_v52 = vmul.f32 %v6389_v28, %v2946_v6  ;;  %v4034_v4 = vmul.f32 %v6389_v28, %v3066_v35  ;;  %v2950_v29 = vld [vmem:[#allocation2 + $0x950] sm:$0xff] }
 0x362   : > { %v4392_v39 = vmax.f32 %v3672_v3, %v4272_v45  ;;  %v3673_v26 = vmax.f32 %v3313_v50, %v3553_v51  ;;  %v3314_v38 = vadd.f32 %v6399_v24, %v3190_v12  ;;  %v3191_v9 = vmul.f32 %v6389_v28, %v2707_v30  ;;  %v3070_v36 = vld [vmem:[#allocation2 + $0xd10] sm:$0xff]  ;;  %v2711_v50 = vld [vmem:[#allocation2 + $0x1d8] sm:$0xff] }
 0x363   : > { %v4273_v59 = vmax.f32 %v3913_v32, %v4153_v46  ;;  %v3554_v13 = vadd.f32 %v3434_v15, %v6399_v24  ;;  %v3914_v63 = vadd.f32 %v3794_v52, %v6399_v24  ;;  %v4154_v48 = vadd.f32 %v4034_v4, %v6399_v24  ;;  %v2831_v52 = vld [vmem:[#allocation2 + $0x598] sm:$0xff] }
 0x364   : > { %4512 = vst.msk [vmem:[%s7840_s3 + $0x1a0] sm:$0xff] %vm1841_vm2, %v4392_v39  ;;  %v3315_v60 = vadd.f32 %v6399_v24, %v3191_v9  ;;  %v3435_v0 = vmul.f32 %v6389_v28, %v2827_v61  ;;  %v3795_v5 = vmul.f32 %v6389_v28, %v2947_v33  ;;  %v4035_v11 = vmul.f32 %v6389_v28, %v3067_v40  ;;  %v2951_v4 = vld [vmem:[#allocation2 + $0x958] sm:$0xff] }
 0x365   : > { %v4393_v14 = vmax.f32 %v3673_v26, %v4273_v59  ;;  %v3674_v58 = vmax.f32 %v3314_v38, %v3554_v13  ;;  %v4274_v18 = vmax.f32 %v3914_v63, %v4154_v48  ;;  %v3192_v49 = vmul.f32 %v6389_v28, %v2708_v56  ;;  %v3071_v61 = vld [vmem:[#allocation2 + $0xd18] sm:$0xff]  ;;  %v2712_v38 = vld [vmem:[#allocation2 + $0x1e0] sm:$0xff] }
 0x366   : > { %v3555_v7 = vadd.f32 %v3435_v0, %v6399_v24  ;;  %v3915_v34 = vadd.f32 %v3795_v5, %v6399_v24  ;;  %v4155_v22 = vadd.f32 %v4035_v11, %v6399_v24  ;;  %v3436_v8 = vmul.f32 %v6389_v28, %v2828_v47  ;;  %v2832_v63 = vld [vmem:[#allocation2 + $0x5a0] sm:$0xff] }
 0x367   : > { %4513 = vst.msk [vmem:[%s7840_s3 + $0x1a8] sm:$0xff] %vm1841_vm2, %v4393_v14  ;;  %v4394_v43 = vmax.f32 %v3674_v58, %v4274_v18  ;;  %v3316_v44 = vadd.f32 %v6399_v24, %v3192_v49  ;;  %v3796_v57 = vmul.f32 %v6389_v28, %v2948_v27  ;;  %v4036_v31 = vmul.f32 %v6389_v28, %v3068_v16  ;;  %v2952_v5 = vld [vmem:[#allocation2 + $0x960] sm:$0xff]  ;;  %v2713_v18 = vld [vmem:[#allocation2 + $0x1e8] sm:$0xff] }
 0x368   : > { %v3675_v42 = vmax.f32 %v3315_v60, %v3555_v7  ;;  %v4275_v23 = vmax.f32 %v3915_v34, %v4155_v22  ;;  %v3556_v20 = vadd.f32 %v3436_v8, %v6399_v24  ;;  %v3193_v62 = vmul.f32 %v6389_v28, %v2709_v10  ;;  %v3072_v11 = vld [vmem:[#allocation2 + $0xd20] sm:$0xff]  ;;  %v2833_v22 = vld [vmem:[#allocation2 + $0x5a8] sm:$0xff] }
 0x369   : > { %4514 = vst.msk [vmem:[%s7840_s3 + $0x1b0] sm:$0xff] %vm1841_vm2, %v4394_v43  ;;  %v3916_v17 = vadd.f32 %v3796_v57, %v6399_v24  ;;  %v4156_v55 = vadd.f32 %v4036_v31, %v6399_v24  ;;  %v3437_v2 = vmul.f32 %v6389_v28, %v2829_v21  ;;  %v3797_v41 = vmul.f32 %v6389_v28, %v2949_v1  ;;  %v2953_v8 = vld [vmem:[#allocation2 + $0x968] sm:$0xff] }
 0x36a   : > { %v4395_v6 = vmax.f32 %v3675_v42, %v4275_v23  ;;  %v3676_v35 = vmax.f32 %v3316_v44, %v3556_v20  ;;  %v3317_v19 = vadd.f32 %v6399_v24, %v3193_v62  ;;  %v4037_v3 = vmul.f32 %v6389_v28, %v3069_v54  ;;  %v3073_v57 = vld [vmem:[#allocation2 + $0xd28] sm:$0xff]  ;;  %v2714_v20 = vld [vmem:[#allocation2 + $0x1f0] sm:$0xff] }
 0x36b   : > { %v4276_v53 = vmax.f32 %v3916_v17, %v4156_v55  ;;  %v3557_v30 = vadd.f32 %v3437_v2, %v6399_v24  ;;  %v3917_v45 = vadd.f32 %v3797_v41, %v6399_v24  ;;  %v3194_v51 = vmul.f32 %v6389_v28, %v2710_v25  ;;  %v2834_v2 = vld [vmem:[#allocation2 + $0x5b0] sm:$0xff] }
 0x36c   : > { %4515 = vst.msk [vmem:[%s7840_s3 + $0x1b8] sm:$0xff] %vm1841_vm2, %v4395_v6  ;;  %v4157_v32 = vadd.f32 %v4037_v3, %v6399_v24  ;;  %v3438_v12 = vmul.f32 %v6389_v28, %v2830_v37  ;;  %v3798_v46 = vmul.f32 %v6389_v28, %v2950_v29  ;;  %v4038_v15 = vmul.f32 %v6389_v28, %v3070_v36  ;;  %v2954_v41 = vld [vmem:[#allocation2 + $0x970] sm:$0xff] }
 0x36d   : > { %v4396_v33 = vmax.f32 %v3676_v35, %v4276_v53  ;;  %v3677_v40 = vmax.f32 %v3317_v19, %v3557_v30  ;;  %v3318_v39 = vadd.f32 %v6399_v24, %v3194_v51  ;;  %v3195_v26 = vmul.f32 %v6389_v28, %v2711_v50  ;;  %v3074_v37 = vld [vmem:[#allocation2 + $0xd30] sm:$0xff]  ;;  %v2715_v19 = vld [vmem:[#allocation2 + $0x1f8] sm:$0xff] }
 0x36e   : > { %v4277_v9 = vmax.f32 %v3917_v45, %v4157_v32  ;;  %v3558_v56 = vadd.f32 %v3438_v12, %v6399_v24  ;;  %v3918_v59 = vadd.f32 %v3798_v46, %v6399_v24  ;;  %v4158_v13 = vadd.f32 %v4038_v15, %v6399_v24  ;;  %v2835_v46 = vld [vmem:[#allocation2 + $0x5b8] sm:$0xff] }
 0x36f   : > { %4516 = vst.msk [vmem:[%s7840_s3 + $0x1c0] sm:$0xff] %vm1841_vm2, %v4396_v33  ;;  %v3319_v48 = vadd.f32 %v6399_v24, %v3195_v26  ;;  %v3439_v47 = vmul.f32 %v6389_v28, %v2831_v52  ;;  %v3799_v60 = vmul.f32 %v6389_v28, %v2951_v4  ;;  %v4039_v0 = vmul.f32 %v6389_v28, %v3071_v61  ;;  %v2955_v15 = vld [vmem:[#allocation2 + $0x978] sm:$0xff] }
 0x370   : > { %v4397_v27 = vmax.f32 %v3677_v40, %v4277_v9  ;;  %v3678_v16 = vmax.f32 %v3318_v39, %v3558_v56  ;;  %v4278_v14 = vmax.f32 %v3918_v59, %v4158_v13  ;;  %v3196_v58 = vmul.f32 %v6389_v28, %v2712_v38  ;;  %v3075_v52 = vld [vmem:[#allocation2 + $0xd38] sm:$0xff]  ;;  %v2716_v39 = vld [vmem:[#allocation2 + $0x200] sm:$0xff] }
 0x371   : > { %v3559_v49 = vadd.f32 %v3439_v47, %v6399_v24  ;;  %v3919_v10 = vadd.f32 %v3799_v60, %v6399_v24  ;;  %v4159_v7 = vadd.f32 %v4039_v0, %v6399_v24  ;;  %v3440_v34 = vmul.f32 %v6389_v28, %v2832_v63  ;;  %v2836_v59 = vld [vmem:[#allocation2 + $0x5c0] sm:$0xff] }
 0x372   : > { %4517 = vst.msk [vmem:[%s7840_s3 + $0x1c8] sm:$0xff] %vm1841_vm2, %v4397_v27  ;;  %v4398_v21 = vmax.f32 %v3678_v16, %v4278_v14  ;;  %v3320_v1 = vadd.f32 %v6399_v24, %v3196_v58  ;;  %v3800_v43 = vmul.f32 %v6389_v28, %v2952_v5  ;;  %v4040_v44 = vmul.f32 %v6389_v28, %v3072_v11  ;;  %v2956_v60 = vld [vmem:[#allocation2 + $0x980] sm:$0xff]  ;;  %v2717_v14 = vld [vmem:[#allocation2 + $0x208] sm:$0xff] }
 0x373   : > { %v3679_v31 = vmax.f32 %v3319_v48, %v3559_v49  ;;  %v4279_v54 = vmax.f32 %v3919_v10, %v4159_v7  ;;  %v3560_v42 = vadd.f32 %v3440_v34, %v6399_v24  ;;  %v3197_v23 = vmul.f32 %v6389_v28, %v2713_v18  ;;  %v3076_v0 = vld [vmem:[#allocation2 + $0xd40] sm:$0xff]  ;;  %v2837_v7 = vld [vmem:[#allocation2 + $0x5c8] sm:$0xff] }
 0x374   : > { %4518 = vst.msk [vmem:[%s7840_s3 + $0x1d0] sm:$0xff] %vm1841_vm2, %v4398_v21  ;;  %v3920_v62 = vadd.f32 %v3800_v43, %v6399_v24  ;;  %v4160_v25 = vadd.f32 %v4040_v44, %v6399_v24  ;;  %v3441_v17 = vmul.f32 %v6389_v28, %v2833_v22  ;;  %v3801_v55 = vmul.f32 %v6389_v28, %v2953_v8  ;;  %v2957_v34 = vld [vmem:[#allocation2 + $0x988] sm:$0xff] }
 0x375   : > { %v4399_v29 = vmax.f32 %v3679_v31, %v4279_v54  ;;  %v3680_v36 = vmax.f32 %v3320_v1, %v3560_v42  ;;  %v3321_v6 = vadd.f32 %v6399_v24, %v3197_v23  ;;  %v4041_v35 = vmul.f32 %v6389_v28, %v3073_v57  ;;  %v3077_v43 = vld [vmem:[#allocation2 + $0xd48] sm:$0xff]  ;;  %v2718_v42 = vld [vmem:[#allocation2 + $0x210] sm:$0xff] }
 0x376   : > { %v4280_v3 = vmax.f32 %v3920_v62, %v4160_v25  ;;  %v3561_v50 = vadd.f32 %v3441_v17, %v6399_v24  ;;  %v3921_v53 = vadd.f32 %v3801_v55, %v6399_v24  ;;  %v3198_v30 = vmul.f32 %v6389_v28, %v2714_v20  ;;  %v2838_v17 = vld [vmem:[#allocation2 + $0x5d0] sm:$0xff] }
 0x377   : > { %4519 = vst.msk [vmem:[%s7840_s3 + $0x1d8] sm:$0xff] %vm1841_vm2, %v4399_v29  ;;  %v4161_v45 = vadd.f32 %v4041_v35, %v6399_v24  ;;  %v3442_v51 = vmul.f32 %v6389_v28, %v2834_v2  ;;  %v3802_v32 = vmul.f32 %v6389_v28, %v2954_v41  ;;  %v4042_v12 = vmul.f32 %v6389_v28, %v3074_v37  ;;  %v2958_v55 = vld [vmem:[#allocation2 + $0x990] sm:$0xff] }
 0x378   : > { %v4400_v4 = vmax.f32 %v3680_v36, %v4280_v3  ;;  %v3681_v61 = vmax.f32 %v3321_v6, %v3561_v50  ;;  %v3322_v33 = vadd.f32 %v6399_v24, %v3198_v30  ;;  %v3199_v40 = vmul.f32 %v6389_v28, %v2715_v19  ;;  %v3078_v2 = vld [vmem:[#allocation2 + $0xd50] sm:$0xff]  ;;  %v2719_v6 = vld [vmem:[#allocation2 + $0x218] sm:$0xff] }
 0x379   : > { %v4281_v26 = vmax.f32 %v3921_v53, %v4161_v45  ;;  %v3562_v38 = vadd.f32 %v3442_v51, %v6399_v24  ;;  %v3922_v9 = vadd.f32 %v3802_v32, %v6399_v24  ;;  %v4162_v56 = vadd.f32 %v4042_v12, %v6399_v24  ;;  %v2839_v32 = vld [vmem:[#allocation2 + $0x5d8] sm:$0xff] }
 0x37a   : > { %4520 = vst.msk [vmem:[%s7840_s3 + $0x1e0] sm:$0xff] %vm1841_vm2, %v4400_v4  ;;  %v3323_v13 = vadd.f32 %v6399_v24, %v3199_v40  ;;  %v3443_v63 = vmul.f32 %v6389_v28, %v2835_v46  ;;  %v3803_v48 = vmul.f32 %v6389_v28, %v2955_v15  ;;  %v4043_v47 = vmul.f32 %v6389_v28, %v3075_v52  ;;  %v2959_v12 = vld [vmem:[#allocation2 + $0x998] sm:$0xff] }
 0x37b   : > { %v4401_v5 = vmax.f32 %v3681_v61, %v4281_v26  ;;  %v3682_v11 = vmax.f32 %v3322_v33, %v3562_v38  ;;  %v4282_v27 = vmax.f32 %v3922_v9, %v4162_v56  ;;  %v3200_v16 = vmul.f32 %v6389_v28, %v2716_v39  ;;  %v3079_v46 = vld [vmem:[#allocation2 + $0xd58] sm:$0xff]  ;;  %v2720_v33 = vld [vmem:[#allocation2 + $0x220] sm:$0xff] }
 0x37c   : > { %v3563_v58 = vadd.f32 %v3443_v63, %v6399_v24  ;;  %v3923_v18 = vadd.f32 %v3803_v48, %v6399_v24  ;;  %v4163_v49 = vadd.f32 %v4043_v47, %v6399_v24  ;;  %v3444_v10 = vmul.f32 %v6389_v28, %v2836_v59  ;;  %v2840_v9 = vld [vmem:[#allocation2 + $0x5e0] sm:$0xff] }
 0x37d   : > { %4521 = vst.msk [vmem:[%s7840_s3 + $0x1e8] sm:$0xff] %vm1841_vm2, %v4401_v5  ;;  %v4402_v22 = vmax.f32 %v3682_v11, %v4282_v27  ;;  %v3324_v8 = vadd.f32 %v6399_v24, %v3200_v16  ;;  %v3804_v21 = vmul.f32 %v6389_v28, %v2956_v60  ;;  %v4044_v1 = vmul.f32 %v6389_v28, %v3076_v0  ;;  %v2960_v48 = vld [vmem:[#allocation2 + $0x9a0] sm:$0xff]  ;;  %v2721_v27 = vld [vmem:[#allocation2 + $0x228] sm:$0xff] }
 0x37e   : > { %v3683_v44 = vmax.f32 %v3323_v13, %v3563_v58  ;;  %v4283_v57 = vmax.f32 %v3923_v18, %v4163_v49  ;;  %v3564_v31 = vadd.f32 %v3444_v10, %v6399_v24  ;;  %v3201_v54 = vmul.f32 %v6389_v28, %v2717_v14  ;;  %v3080_v47 = vld [vmem:[#allocation2 + $0xd60] sm:$0xff]  ;;  %v2841_v49 = vld [vmem:[#allocation2 + $0x5e8] sm:$0xff] }
 0x37f   : > { %4522 = vst.msk [vmem:[%s7840_s3 + $0x1f0] sm:$0xff] %vm1841_vm2, %v4402_v22  ;;  %v3924_v23 = vadd.f32 %v3804_v21, %v6399_v24  ;;  %v4164_v20 = vadd.f32 %v4044_v1, %v6399_v24  ;;  %v3445_v62 = vmul.f32 %v6389_v28, %v2837_v7  ;;  %v3805_v25 = vmul.f32 %v6389_v28, %v2957_v34  ;;  %v2961_v10 = vld [vmem:[#allocation2 + $0x9a8] sm:$0xff] }
 0x380   : > { %v4403_v41 = vmax.f32 %v3683_v44, %v4283_v57  ;;  %v3684_v37 = vmax.f32 %v3324_v8, %v3564_v31  ;;  %v3325_v29 = vadd.f32 %v6399_v24, %v3201_v54  ;;  %v4045_v36 = vmul.f32 %v6389_v28, %v3077_v43  ;;  %v3081_v21 = vld [vmem:[#allocation2 + $0xd68] sm:$0xff]  ;;  %v2722_v31 = vld [vmem:[#allocation2 + $0x230] sm:$0xff] }
 0x381   : > { %v4284_v35 = vmax.f32 %v3924_v23, %v4164_v20  ;;  %v3565_v19 = vadd.f32 %v3445_v62, %v6399_v24  ;;  %v3925_v3 = vadd.f32 %v3805_v25, %v6399_v24  ;;  %v3202_v50 = vmul.f32 %v6389_v28, %v2718_v42  ;;  %v2842_v62 = vld [vmem:[#allocation2 + $0x5f0] sm:$0xff] }
 0x382   : > { %4523 = vst.msk [vmem:[%s7840_s3 + $0x1f8] sm:$0xff] %vm1841_vm2, %v4403_v41  ;;  %v4165_v53 = vadd.f32 %v4045_v36, %v6399_v24  ;;  %v3446_v30 = vmul.f32 %v6389_v28, %v2838_v17  ;;  %v3806_v45 = vmul.f32 %v6389_v28, %v2958_v55  ;;  %v4046_v51 = vmul.f32 %v6389_v28, %v3078_v2  ;;  %v2962_v25 = vld [vmem:[#allocation2 + $0x9b0] sm:$0xff] }
 0x383   : > { %v4404_v15 = vmax.f32 %v3684_v37, %v4284_v35  ;;  %v3685_v52 = vmax.f32 %v3325_v29, %v3565_v19  ;;  %v3326_v4 = vadd.f32 %v6399_v24, %v3202_v50  ;;  %v3203_v61 = vmul.f32 %v6389_v28, %v2719_v6  ;;  %v3082_v17 = vld [vmem:[#allocation2 + $0xd70] sm:$0xff]  ;;  %v2723_v29 = vld [vmem:[#allocation2 + $0x238] sm:$0xff] }
 0x384   : > { %v4285_v40 = vmax.f32 %v3925_v3, %v4165_v53  ;;  %v3566_v39 = vadd.f32 %v3446_v30, %v6399_v24  ;;  %v3926_v26 = vadd.f32 %v3806_v45, %v6399_v24  ;;  %v4166_v38 = vadd.f32 %v4046_v51, %v6399_v24  ;;  %v2843_v45 = vld [vmem:[#allocation2 + $0x5f8] sm:$0xff] }
 0x385   : > { %4524 = vst.msk [vmem:[%s7840_s3 + $0x200] sm:$0xff] %vm1841_vm2, %v4404_v15  ;;  %v3327_v56 = vadd.f32 %v6399_v24, %v3203_v61  ;;  %v3447_v59 = vmul.f32 %v6389_v28, %v2839_v32  ;;  %v3807_v13 = vmul.f32 %v6389_v28, %v2959_v12  ;;  %v4047_v63 = vmul.f32 %v6389_v28, %v3079_v46  ;;  %v2963_v51 = vld [vmem:[#allocation2 + $0x9b8] sm:$0xff] }
 0x386   : > { %v4405_v60 = vmax.f32 %v3685_v52, %v4285_v40  ;;  %v3686_v0 = vmax.f32 %v3326_v4, %v3566_v39  ;;  %v4286_v5 = vmax.f32 %v3926_v26, %v4166_v38  ;;  %v3204_v11 = vmul.f32 %v6389_v28, %v2720_v33  ;;  %v3083_v32 = vld [vmem:[#allocation2 + $0xd78] sm:$0xff]  ;;  %v2724_v4 = vld [vmem:[#allocation2 + $0x240] sm:$0xff] }
 0x387   : > { %v3567_v16 = vadd.f32 %v3447_v59, %v6399_v24  ;;  %v3927_v14 = vadd.f32 %v3807_v13, %v6399_v24  ;;  %v4167_v58 = vadd.f32 %v4047_v63, %v6399_v24  ;;  %v3448_v18 = vmul.f32 %v6389_v28, %v2840_v9  ;;  %v2844_v26 = vld [vmem:[#allocation2 + $0x600] sm:$0xff] }
 0x388   : > { %4525 = vst.msk [vmem:[%s7840_s3 + $0x208] sm:$0xff] %vm1841_vm2, %v4405_v60  ;;  %v4406_v7 = vmax.f32 %v3686_v0, %v4286_v5  ;;  %v3328_v34 = vadd.f32 %v6399_v24, %v3204_v11  ;;  %v3808_v22 = vmul.f32 %v6389_v28, %v2960_v48  ;;  %v4048_v8 = vmul.f32 %v6389_v28, %v3080_v47  ;;  %v2964_v13 = vld [vmem:[#allocation2 + $0x9c0] sm:$0xff]  ;;  %v2725_v5 = vld [vmem:[#allocation2 + $0x248] sm:$0xff] }
 0x389   : > { %v3687_v1 = vmax.f32 %v3327_v56, %v3567_v16  ;;  %v4287_v43 = vmax.f32 %v3927_v14, %v4167_v58  ;;  %v3568_v44 = vadd.f32 %v3448_v18, %v6399_v24  ;;  %v3205_v57 = vmul.f32 %v6389_v28, %v2721_v27  ;;  %v3084_v63 = vld [vmem:[#allocation2 + $0xd80] sm:$0xff]  ;;  %v2845_v58 = vld [vmem:[#allocation2 + $0x608] sm:$0xff] }
 0x38a   : > { %4526 = vst.msk [vmem:[%s7840_s3 + $0x210] sm:$0xff] %vm1841_vm2, %v4406_v7  ;;  %v3928_v54 = vadd.f32 %v3808_v22, %v6399_v24  ;;  %v4168_v42 = vadd.f32 %v4048_v8, %v6399_v24  ;;  %v3449_v23 = vmul.f32 %v6389_v28, %v2841_v49  ;;  %v3809_v20 = vmul.f32 %v6389_v28, %v2961_v10  ;;  %v2965_v18 = vld [vmem:[#allocation2 + $0x9c8] sm:$0xff] }
 0x38b   : > { %v4407_v55 = vmax.f32 %v3687_v1, %v4287_v43  ;;  %v3688_v2 = vmax.f32 %v3328_v34, %v3568_v44  ;;  %v3329_v41 = vadd.f32 %v6399_v24, %v3205_v57  ;;  %v4049_v37 = vmul.f32 %v6389_v28, %v3081_v21  ;;  %v3085_v22 = vld [vmem:[#allocation2 + $0xd88] sm:$0xff]  ;;  %v2726_v44 = vld [vmem:[#allocation2 + $0x250] sm:$0xff] }
 0x38c   : > { %v4288_v36 = vmax.f32 %v3928_v54, %v4168_v42  ;;  %v3569_v6 = vadd.f32 %v3449_v23, %v6399_v24  ;;  %v3929_v35 = vadd.f32 %v3809_v20, %v6399_v24  ;;  %v3206_v19 = vmul.f32 %v6389_v28, %v2722_v31  ;;  %v2846_v23 = vld [vmem:[#allocation2 + $0x610] sm:$0xff] }
 0x38d   : > { %4527 = vst.msk [vmem:[%s7840_s3 + $0x218] sm:$0xff] %vm1841_vm2, %v4407_v55  ;;  %v4169_v3 = vadd.f32 %v4049_v37, %v6399_v24  ;;  %v3450_v50 = vmul.f32 %v6389_v28, %v2842_v62  ;;  %v3810_v53 = vmul.f32 %v6389_v28, %v2962_v25  ;;  %v4050_v30 = vmul.f32 %v6389_v28, %v3082_v17  ;;  %v2966_v20 = vld [vmem:[#allocation2 + $0x9d0] sm:$0xff] }
 0x38e   : > { %v4408_v12 = vmax.f32 %v3688_v2, %v4288_v36  ;;  %v3689_v46 = vmax.f32 %v3329_v41, %v3569_v6  ;;  %v3330_v15 = vadd.f32 %v6399_v24, %v3206_v19  ;;  %v3207_v52 = vmul.f32 %v6389_v28, %v2723_v29  ;;  %v3086_v62 = vld [vmem:[#allocation2 + $0xd90] sm:$0xff]  ;;  %v2727_v41 = vld [vmem:[#allocation2 + $0x258] sm:$0xff] }
 0x38f   : > { %v4289_v61 = vmax.f32 %v3929_v35, %v4169_v3  ;;  %v3570_v33 = vadd.f32 %v3450_v50, %v6399_v24  ;;  %v3930_v40 = vadd.f32 %v3810_v53, %v6399_v24  ;;  %v4170_v39 = vadd.f32 %v4050_v30, %v6399_v24  ;;  %v2847_v53 = vld [vmem:[#allocation2 + $0x618] sm:$0xff] }
 0x390   : > { %4528 = vst.msk [vmem:[%s7840_s3 + $0x220] sm:$0xff] %vm1841_vm2, %v4408_v12  ;;  %v3331_v38 = vadd.f32 %v6399_v24, %v3207_v52  ;;  %v3451_v9 = vmul.f32 %v6389_v28, %v2843_v45  ;;  %v3811_v56 = vmul.f32 %v6389_v28, %v2963_v51  ;;  %v4051_v59 = vmul.f32 %v6389_v28, %v3083_v32  ;;  %v2967_v30 = vld [vmem:[#allocation2 + $0x9d8] sm:$0xff] }
 0x391   : > { %v4409_v48 = vmax.f32 %v3689_v46, %v4289_v61  ;;  %v3690_v47 = vmax.f32 %v3330_v15, %v3570_v33  ;;  %v4290_v60 = vmax.f32 %v3930_v40, %v4170_v39  ;;  %v3208_v0 = vmul.f32 %v6389_v28, %v2724_v4  ;;  %v3087_v45 = vld [vmem:[#allocation2 + $0xd98] sm:$0xff]  ;;  %v2728_v15 = vld [vmem:[#allocation2 + $0x260] sm:$0xff] }
 0x392   : > { %v3571_v11 = vadd.f32 %v3451_v9, %v6399_v24  ;;  %v3931_v27 = vadd.f32 %v3811_v56, %v6399_v24  ;;  %v4171_v16 = vadd.f32 %v4051_v59, %v6399_v24  ;;  %v3452_v14 = vmul.f32 %v6389_v28, %v2844_v26  ;;  %v2848_v40 = vld [vmem:[#allocation2 + $0x620] sm:$0xff] }
 0x393   : > { %4529 = vst.msk [vmem:[%s7840_s3 + $0x228] sm:$0xff] %vm1841_vm2, %v4409_v48  ;;  %v4410_v49 = vmax.f32 %v3690_v47, %v4290_v60  ;;  %v3332_v10 = vadd.f32 %v6399_v24, %v3208_v0  ;;  %v3812_v7 = vmul.f32 %v6389_v28, %v2964_v13  ;;  %v4052_v34 = vmul.f32 %v6389_v28, %v3084_v63  ;;  %v2968_v56 = vld [vmem:[#allocation2 + $0x9e0] sm:$0xff]  ;;  %v2729_v60 = vld [vmem:[#allocation2 + $0x268] sm:$0xff] }
 0x394   : > { %v3691_v8 = vmax.f32 %v3331_v38, %v3571_v11  ;;  %v4291_v21 = vmax.f32 %v3931_v27, %v4171_v16  ;;  %v3572_v1 = vadd.f32 %v3452_v14, %v6399_v24  ;;  %v3209_v43 = vmul.f32 %v6389_v28, %v2725_v5  ;;  %v3088_v59 = vld [vmem:[#allocation2 + $0xda0] sm:$0xff]  ;;  %v2849_v16 = vld [vmem:[#allocation2 + $0x628] sm:$0xff] }
 0x395   : > { %4530 = vst.msk [vmem:[%s7840_s3 + $0x230] sm:$0xff] %vm1841_vm2, %v4410_v49  ;;  %v3932_v57 = vadd.f32 %v3812_v7, %v6399_v24  ;;  %v4172_v31 = vadd.f32 %v4052_v34, %v6399_v24  ;;  %v3453_v54 = vmul.f32 %v6389_v28, %v2845_v58  ;;  %v3813_v42 = vmul.f32 %v6389_v28, %v2965_v18  ;;  %v2969_v14 = vld [vmem:[#allocation2 + $0x9e8] sm:$0xff] }
 0x396   : > { %v4411_v25 = vmax.f32 %v3691_v8, %v4291_v21  ;;  %v3692_v17 = vmax.f32 %v3332_v10, %v3572_v1  ;;  %v3333_v55 = vadd.f32 %v6399_v24, %v3209_v43  ;;  %v4053_v2 = vmul.f32 %v6389_v28, %v3085_v22  ;;  %v3089_v7 = vld [vmem:[#allocation2 + $0xda8] sm:$0xff]  ;;  %v2730_v1 = vld [vmem:[#allocation2 + $0x270] sm:$0xff] }
 0x397   : > { %v4292_v37 = vmax.f32 %v3932_v57, %v4172_v31  ;;  %v3573_v29 = vadd.f32 %v3453_v54, %v6399_v24  ;;  %v3933_v36 = vadd.f32 %v3813_v42, %v6399_v24  ;;  %v3210_v6 = vmul.f32 %v6389_v28, %v2726_v44  ;;  %v2850_v54 = vld [vmem:[#allocation2 + $0x630] sm:$0xff] }
 0x398   : > { %4531 = vst.msk [vmem:[%s7840_s3 + $0x238] sm:$0xff] %vm1841_vm2, %v4411_v25  ;;  %v4173_v35 = vadd.f32 %v4053_v2, %v6399_v24  ;;  %v3454_v19 = vmul.f32 %v6389_v28, %v2846_v23  ;;  %v3814_v3 = vmul.f32 %v6389_v28, %v2966_v20  ;;  %v4054_v50 = vmul.f32 %v6389_v28, %v3086_v62  ;;  %v2970_v42 = vld [vmem:[#allocation2 + $0x9f0] sm:$0xff] }
 0x399   : > { %v4412_v51 = vmax.f32 %v3692_v17, %v4292_v37  ;;  %v3693_v32 = vmax.f32 %v3333_v55, %v3573_v29  ;;  %v3334_v12 = vadd.f32 %v6399_v24, %v3210_v6  ;;  %v3211_v46 = vmul.f32 %v6389_v28, %v2727_v41  ;;  %v3090_v23 = vld [vmem:[#allocation2 + $0xdb0] sm:$0xff]  ;;  %v2731_v55 = vld [vmem:[#allocation2 + $0x278] sm:$0xff] }
 0x39a   : > { %v4293_v52 = vmax.f32 %v3933_v36, %v4173_v35  ;;  %v3574_v4 = vadd.f32 %v3454_v19, %v6399_v24  ;;  %v3934_v61 = vadd.f32 %v3814_v3, %v6399_v24  ;;  %v4174_v33 = vadd.f32 %v4054_v50, %v6399_v24  ;;  %v2851_v3 = vld [vmem:[#allocation2 + $0x638] sm:$0xff] }
 0x39b   : > { %4532 = vst.msk [vmem:[%s7840_s3 + $0x240] sm:$0xff] %vm1841_vm2, %v4412_v51  ;;  %v3335_v39 = vadd.f32 %v6399_v24, %v3211_v46  ;;  %v3455_v26 = vmul.f32 %v6389_v28, %v2847_v53  ;;  %v3815_v38 = vmul.f32 %v6389_v28, %v2967_v30  ;;  %v4055_v9 = vmul.f32 %v6389_v28, %v3087_v45  ;;  %v2971_v50 = vld [vmem:[#allocation2 + $0x9f8] sm:$0xff] }
 0x39c   : > { %v4413_v13 = vmax.f32 %v3693_v32, %v4293_v52  ;;  %v3694_v63 = vmax.f32 %v3334_v12, %v3574_v4  ;;  %v4294_v48 = vmax.f32 %v3934_v61, %v4174_v33  ;;  %v3212_v47 = vmul.f32 %v6389_v28, %v2728_v15  ;;  %v3091_v53 = vld [vmem:[#allocation2 + $0xdb8] sm:$0xff]  ;;  %v2732_v12 = vld [vmem:[#allocation2 + $0x280] sm:$0xff] }
 0x39d   : > { %v3575_v0 = vadd.f32 %v3455_v26, %v6399_v24  ;;  %v3935_v5 = vadd.f32 %v3815_v38, %v6399_v24  ;;  %v4175_v11 = vadd.f32 %v4055_v9, %v6399_v24  ;;  %v3456_v27 = vmul.f32 %v6389_v28, %v2848_v40  ;;  %v2852_v61 = vld [vmem:[#allocation2 + $0x640] sm:$0xff] }
 0x39e   : > { %4533 = vst.msk [vmem:[%s7840_s3 + $0x248] sm:$0xff] %vm1841_vm2, %v4413_v13  ;;  %v4414_v58 = vmax.f32 %v3694_v63, %v4294_v48  ;;  %v3336_v18 = vadd.f32 %v6399_v24, %v3212_v47  ;;  %v3816_v49 = vmul.f32 %v6389_v28, %v2968_v56  ;;  %v4056_v10 = vmul.f32 %v6389_v28, %v3088_v59  ;;  %v2972_v38 = vld [vmem:[#allocation2 + $0xa00] sm:$0xff]  ;;  %v2733_v48 = vld [vmem:[#allocation2 + $0x288] sm:$0xff] }
 0x39f   : > { %v3695_v34 = vmax.f32 %v3335_v39, %v3575_v0  ;;  %v4295_v22 = vmax.f32 %v3935_v5, %v4175_v11  ;;  %v3576_v8 = vadd.f32 %v3456_v27, %v6399_v24  ;;  %v3213_v21 = vmul.f32 %v6389_v28, %v2729_v60  ;;  %v3092_v9 = vld [vmem:[#allocation2 + $0xdc0] sm:$0xff]  ;;  %v2853_v11 = vld [vmem:[#allocation2 + $0x648] sm:$0xff] }
 0x3a0   : > { %4534 = vst.msk [vmem:[%s7840_s3 + $0x250] sm:$0xff] %vm1841_vm2, %v4414_v58  ;;  %v3936_v43 = vadd.f32 %v3816_v49, %v6399_v24  ;;  %v4176_v44 = vadd.f32 %v4056_v10, %v6399_v24  ;;  %v3457_v57 = vmul.f32 %v6389_v28, %v2849_v16  ;;  %v3817_v31 = vmul.f32 %v6389_v28, %v2969_v14  ;;  %v2973_v27 = vld [vmem:[#allocation2 + $0xa08] sm:$0xff] }
 0x3a1   : > { %v4415_v20 = vmax.f32 %v3695_v34, %v4295_v22  ;;  %v3696_v62 = vmax.f32 %v3336_v18, %v3576_v8  ;;  %v3337_v25 = vadd.f32 %v6399_v24, %v3213_v21  ;;  %v4057_v17 = vmul.f32 %v6389_v28, %v3089_v7  ;;  %v3093_v49 = vld [vmem:[#allocation2 + $0xdc8] sm:$0xff]  ;;  %v2734_v8 = vld [vmem:[#allocation2 + $0x290] sm:$0xff] }
 0x3a2   : > { %v4296_v2 = vmax.f32 %v3936_v43, %v4176_v44  ;;  %v3577_v41 = vadd.f32 %v3457_v57, %v6399_v24  ;;  %v3937_v37 = vadd.f32 %v3817_v31, %v6399_v24  ;;  %v3214_v29 = vmul.f32 %v6389_v28, %v2730_v1  ;;  %v2854_v57 = vld [vmem:[#allocation2 + $0x650] sm:$0xff] }
 0x3a3   : > { %4535 = vst.msk [vmem:[%s7840_s3 + $0x258] sm:$0xff] %vm1841_vm2, %v4415_v20  ;;  %v4177_v36 = vadd.f32 %v4057_v17, %v6399_v24  ;;  %v3458_v6 = vmul.f32 %v6389_v28, %v2850_v54  ;;  %v3818_v35 = vmul.f32 %v6389_v28, %v2970_v42  ;;  %v4058_v19 = vmul.f32 %v6389_v28, %v3090_v23  ;;  %v2974_v31 = vld [vmem:[#allocation2 + $0xa10] sm:$0xff] }
 0x3a4   : > { %v4416_v30 = vmax.f32 %v3696_v62, %v4296_v2  ;;  %v3697_v45 = vmax.f32 %v3337_v25, %v3577_v41  ;;  %v3338_v51 = vadd.f32 %v6399_v24, %v3214_v29  ;;  %v3215_v32 = vmul.f32 %v6389_v28, %v2731_v55  ;;  %v3094_v54 = vld [vmem:[#allocation2 + $0xdd0] sm:$0xff]  ;;  %v2735_v25 = vld [vmem:[#allocation2 + $0x298] sm:$0xff] }
 0x3a5   : > { %v4297_v46 = vmax.f32 %v3937_v37, %v4177_v36  ;;  %v3578_v15 = vadd.f32 %v3458_v6, %v6399_v24  ;;  %v3938_v52 = vadd.f32 %v3818_v35, %v6399_v24  ;;  %v4178_v4 = vadd.f32 %v4058_v19, %v6399_v24  ;;  %v2855_v35 = vld [vmem:[#allocation2 + $0x658] sm:$0xff] }
 0x3a6   : > { %4536 = vst.msk [vmem:[%s7840_s3 + $0x260] sm:$0xff] %vm1841_vm2, %v4416_v30  ;;  %v3339_v33 = vadd.f32 %v6399_v24, %v3215_v32  ;;  %v3459_v40 = vmul.f32 %v6389_v28, %v2851_v3  ;;  %v3819_v39 = vmul.f32 %v6389_v28, %v2971_v50  ;;  %v4059_v26 = vmul.f32 %v6389_v28, %v3091_v53  ;;  %v2975_v19 = vld [vmem:[#allocation2 + $0xa18] sm:$0xff] }
 0x3a7   : > { %v4417_v56 = vmax.f32 %v3697_v45, %v4297_v46  ;;  %v3698_v59 = vmax.f32 %v3338_v51, %v3578_v15  ;;  %v4298_v13 = vmax.f32 %v3938_v52, %v4178_v4  ;;  %v3216_v63 = vmul.f32 %v6389_v28, %v2732_v12  ;;  %v3095_v3 = vld [vmem:[#allocation2 + $0xdd8] sm:$0xff]  ;;  %v2736_v51 = vld [vmem:[#allocation2 + $0x2a0] sm:$0xff] }
 0x3a8   : > { %v3579_v47 = vadd.f32 %v3459_v40, %v6399_v24  ;;  %v3939_v60 = vadd.f32 %v3819_v39, %v6399_v24  ;;  %v4179_v0 = vadd.f32 %v4059_v26, %v6399_v24  ;;  %v3460_v5 = vmul.f32 %v6389_v28, %v2852_v61  ;;  %v2856_v52 = vld [vmem:[#allocation2 + $0x660] sm:$0xff] }
 0x3a9   : > { %4537 = vst.msk [vmem:[%s7840_s3 + $0x268] sm:$0xff] %vm1841_vm2, %v4417_v56  ;;  %v4418_v16 = vmax.f32 %v3698_v59, %v4298_v13  ;;  %v3340_v14 = vadd.f32 %v6399_v24, %v3216_v63  ;;  %v3820_v58 = vmul.f32 %v6389_v28, %v2972_v38  ;;  %v4060_v18 = vmul.f32 %v6389_v28, %v3092_v9  ;;  %v2976_v39 = vld [vmem:[#allocation2 + $0xa20] sm:$0xff]  ;;  %v2737_v13 = vld [vmem:[#allocation2 + $0x2a8] sm:$0xff] }
 0x3aa   : > { %v3699_v10 = vmax.f32 %v3339_v33, %v3579_v47  ;;  %v4299_v7 = vmax.f32 %v3939_v60, %v4179_v0  ;;  %v3580_v34 = vadd.f32 %v3460_v5, %v6399_v24  ;;  %v3217_v22 = vmul.f32 %v6389_v28, %v2733_v48  ;;  %v3096_v26 = vld [vmem:[#allocation2 + $0xde0] sm:$0xff]  ;;  %v2857_v0 = vld [vmem:[#allocation2 + $0x668] sm:$0xff] }
 0x3ab   : > { %4538 = vst.msk [vmem:[%s7840_s3 + $0x270] sm:$0xff] %vm1841_vm2, %v4418_v16  ;;  %v3940_v21 = vadd.f32 %v3820_v58, %v6399_v24  ;;  %v4180_v1 = vadd.f32 %v4060_v18, %v6399_v24  ;;  %v3461_v43 = vmul.f32 %v6389_v28, %v2853_v11  ;;  %v3821_v44 = vmul.f32 %v6389_v28, %v2973_v27  ;;  %v2977_v5 = vld [vmem:[#allocation2 + $0xa28] sm:$0xff] }
 0x3ac   : > { %v4419_v42 = vmax.f32 %v3699_v10, %v4299_v7  ;;  %v3700_v23 = vmax.f32 %v3340_v14, %v3580_v34  ;;  %v3341_v20 = vadd.f32 %v6399_v24, %v3217_v22  ;;  %v4061_v62 = vmul.f32 %v6389_v28, %v3093_v49  ;;  %v3097_v58 = vld [vmem:[#allocation2 + $0xde8] sm:$0xff]  ;;  %v2738_v34 = vld [vmem:[#allocation2 + $0x2b0] sm:$0xff] }
 0x3ad   : > { %v4300_v17 = vmax.f32 %v3940_v21, %v4180_v1  ;;  %v3581_v55 = vadd.f32 %v3461_v43, %v6399_v24  ;;  %v3941_v2 = vadd.f32 %v3821_v44, %v6399_v24  ;;  %v3218_v41 = vmul.f32 %v6389_v28, %v2734_v8  ;;  %v2858_v43 = vld [vmem:[#allocation2 + $0x670] sm:$0xff] }
 0x3ae   : > { %4539 = vst.msk [vmem:[%s7840_s3 + $0x278] sm:$0xff] %vm1841_vm2, %v4419_v42  ;;  %v4181_v37 = vadd.f32 %v4061_v62, %v6399_v24  ;;  %v3462_v29 = vmul.f32 %v6389_v28, %v2854_v57  ;;  %v3822_v36 = vmul.f32 %v6389_v28, %v2974_v31  ;;  %v4062_v6 = vmul.f32 %v6389_v28, %v3094_v54  ;;  %v2978_v44 = vld [vmem:[#allocation2 + $0xa30] sm:$0xff] }
 0x3af   : > { %v4420_v50 = vmax.f32 %v3700_v23, %v4300_v17  ;;  %v3701_v53 = vmax.f32 %v3341_v20, %v3581_v55  ;;  %v3342_v30 = vadd.f32 %v6399_v24, %v3218_v41  ;;  %v3219_v45 = vmul.f32 %v6389_v28, %v2735_v25  ;;  %v3098_v57 = vld [vmem:[#allocation2 + $0xdf0] sm:$0xff]  ;;  %v2739_v20 = vld [vmem:[#allocation2 + $0x2b8] sm:$0xff] }
 0x3b0   : > { %v4301_v32 = vmax.f32 %v3941_v2, %v4181_v37  ;;  %v3582_v12 = vadd.f32 %v3462_v29, %v6399_v24  ;;  %v3942_v46 = vadd.f32 %v3822_v36, %v6399_v24  ;;  %v4182_v15 = vadd.f32 %v4062_v6, %v6399_v24  ;;  %v2859_v36 = vld [vmem:[#allocation2 + $0x678] sm:$0xff] }
 0x3b1   : > { %4540 = vst.msk [vmem:[%s7840_s3 + $0x280] sm:$0xff] %vm1841_vm2, %v4420_v50  ;;  %v3343_v4 = vadd.f32 %v6399_v24, %v3219_v45  ;;  %v3463_v61 = vmul.f32 %v6389_v28, %v2855_v35  ;;  %v3823_v33 = vmul.f32 %v6389_v28, %v2975_v19  ;;  %v4063_v40 = vmul.f32 %v6389_v28, %v3095_v3  ;;  %v2979_v6 = vld [vmem:[#allocation2 + $0xa38] sm:$0xff] }
 0x3b2   : > { %v4421_v38 = vmax.f32 %v3701_v53, %v4301_v32  ;;  %v3702_v9 = vmax.f32 %v3342_v30, %v3582_v12  ;;  %v4302_v56 = vmax.f32 %v3942_v46, %v4182_v15  ;;  %v3220_v59 = vmul.f32 %v6389_v28, %v2736_v51  ;;  %v3099_v35 = vld [vmem:[#allocation2 + $0xdf8] sm:$0xff]  ;;  %v2740_v30 = vld [vmem:[#allocation2 + $0x2c0] sm:$0xff] }
 0x3b3   : > { %v3583_v63 = vadd.f32 %v3463_v61, %v6399_v24  ;;  %v3943_v48 = vadd.f32 %v3823_v33, %v6399_v24  ;;  %v4183_v47 = vadd.f32 %v4063_v40, %v6399_v24  ;;  %v3464_v60 = vmul.f32 %v6389_v28, %v2856_v52  ;;  %v2860_v46 = vld [vmem:[#allocation2 + $0x680] sm:$0xff] }
 0x3b4   : > { %4541 = vst.msk [vmem:[%s7840_s3 + $0x288] sm:$0xff] %vm1841_vm2, %v4421_v38  ;;  %v4422_v11 = vmax.f32 %v3702_v9, %v4302_v56  ;;  %v3344_v27 = vadd.f32 %v6399_v24, %v3220_v59  ;;  %v3824_v16 = vmul.f32 %v6389_v28, %v2976_v39  ;;  %v4064_v14 = vmul.f32 %v6389_v28, %v3096_v26  ;;  %v2980_v33 = vld [vmem:[#allocation2 + $0xa40] sm:$0xff]  ;;  %v2741_v56 = vld [vmem:[#allocation2 + $0x2c8] sm:$0xff] }
 0x3b5   : > { %v3703_v18 = vmax.f32 %v3343_v4, %v3583_v63  ;;  %v4303_v49 = vmax.f32 %v3943_v48, %v4183_v47  ;;  %v3584_v10 = vadd.f32 %v3464_v60, %v6399_v24  ;;  %v3221_v7 = vmul.f32 %v6389_v28, %v2737_v13  ;;  %v3100_v40 = vld [vmem:[#allocation2 + $0xe00] sm:$0xff]  ;;  %v2861_v47 = vld [vmem:[#allocation2 + $0x688] sm:$0xff] }
 0x3b6   : > { %4542 = vst.msk [vmem:[%s7840_s3 + $0x290] sm:$0xff] %vm1841_vm2, %v4422_v11  ;;  %v3944_v22 = vadd.f32 %v3824_v16, %v6399_v24  ;;  %v4184_v8 = vadd.f32 %v4064_v14, %v6399_v24  ;;  %v3465_v21 = vmul.f32 %v6389_v28, %v2857_v0  ;;  %v3825_v1 = vmul.f32 %v6389_v28, %v2977_v5  ;;  %v2981_v60 = vld [vmem:[#allocation2 + $0xa48] sm:$0xff] }
 0x3b7   : > { %v4423_v31 = vmax.f32 %v3703_v18, %v4303_v49  ;;  %v3704_v54 = vmax.f32 %v3344_v27, %v3584_v10  ;;  %v3345_v42 = vadd.f32 %v6399_v24, %v3221_v7  ;;  %v4065_v23 = vmul.f32 %v6389_v28, %v3097_v58  ;;  %v3101_v16 = vld [vmem:[#allocation2 + $0xe08] sm:$0xff]  ;;  %v2742_v10 = vld [vmem:[#allocation2 + $0x2d0] sm:$0xff] }
 0x3b8   : > { %v4304_v62 = vmax.f32 %v3944_v22, %v4184_v8  ;;  %v3585_v25 = vadd.f32 %v3465_v21, %v6399_v24  ;;  %v3945_v17 = vadd.f32 %v3825_v1, %v6399_v24  ;;  %v3222_v55 = vmul.f32 %v6389_v28, %v2738_v34  ;;  %v2862_v21 = vld [vmem:[#allocation2 + $0x690] sm:$0xff] }
 0x3b9   : > { %4543 = vst.msk [vmem:[%s7840_s3 + $0x298] sm:$0xff] %vm1841_vm2, %v4423_v31  ;;  %v4185_v2 = vadd.f32 %v4065_v23, %v6399_v24  ;;  %v3466_v41 = vmul.f32 %v6389_v28, %v2858_v43  ;;  %v3826_v37 = vmul.f32 %v6389_v28, %v2978_v44  ;;  %v4066_v29 = vmul.f32 %v6389_v28, %v3098_v57  ;;  %v2982_v1 = vld [vmem:[#allocation2 + $0xa50] sm:$0xff] }
 0x3ba   : > { %v4424_v19 = vmax.f32 %v3704_v54, %v4304_v62  ;;  %v3705_v3 = vmax.f32 %v3345_v42, %v3585_v25  ;;  %v3346_v50 = vadd.f32 %v6399_v24, %v3222_v55  ;;  %v3223_v53 = vmul.f32 %v6389_v28, %v2739_v20  ;;  %v3102_v43 = vld [vmem:[#allocation2 + $0xe10] sm:$0xff]  ;;  %v2743_v42 = vld [vmem:[#allocation2 + $0x2d8] sm:$0xff] }
 0x3bb   : > { %v4305_v45 = vmax.f32 %v3945_v17, %v4185_v2  ;;  %v3586_v51 = vadd.f32 %v3466_v41, %v6399_v24  ;;  %v3946_v32 = vadd.f32 %v3826_v37, %v6399_v24  ;;  %v4186_v12 = vadd.f32 %v4066_v29, %v6399_v24  ;;  %v2863_v37 = vld [vmem:[#allocation2 + $0x698] sm:$0xff] }
 0x3bc   : > { %4544 = vst.msk [vmem:[%s7840_s3 + $0x2a0] sm:$0xff] %vm1841_vm2, %v4424_v19  ;;  %v3347_v15 = vadd.f32 %v6399_v24, %v3223_v53  ;;  %v3467_v52 = vmul.f32 %v6389_v28, %v2859_v36  ;;  %v3827_v4 = vmul.f32 %v6389_v28, %v2979_v6  ;;  %v4067_v61 = vmul.f32 %v6389_v28, %v3099_v35  ;;  %v2983_v29 = vld [vmem:[#allocation2 + $0xa58] sm:$0xff] }
 0x3bd   : > { %v4425_v39 = vmax.f32 %v3705_v3, %v4305_v45  ;;  %v3706_v26 = vmax.f32 %v3346_v50, %v3586_v51  ;;  %v4306_v38 = vmax.f32 %v3946_v32, %v4186_v12  ;;  %v3224_v9 = vmul.f32 %v6389_v28, %v2740_v30  ;;  %v3103_v36 = vld [vmem:[#allocation2 + $0xe18] sm:$0xff]  ;;  %v2744_v50 = vld [vmem:[#allocation2 + $0x2e0] sm:$0xff] }
 0x3be   : > { %v3587_v59 = vadd.f32 %v3467_v52, %v6399_v24  ;;  %v3947_v13 = vadd.f32 %v3827_v4, %v6399_v24  ;;  %v4187_v63 = vadd.f32 %v4067_v61, %v6399_v24  ;;  %v3468_v48 = vmul.f32 %v6389_v28, %v2860_v46  ;;  %v2864_v32 = vld [vmem:[#allocation2 + $0x6a0] sm:$0xff] }
 0x3bf   : > { %4545 = vst.msk [vmem:[%s7840_s3 + $0x2a8] sm:$0xff] %vm1841_vm2, %v4425_v39  ;;  %v4426_v0 = vmax.f32 %v3706_v26, %v4306_v38  ;;  %v3348_v5 = vadd.f32 %v6399_v24, %v3224_v9  ;;  %v3828_v11 = vmul.f32 %v6389_v28, %v2980_v33  ;;  %v4068_v27 = vmul.f32 %v6389_v28, %v3100_v40  ;;  %v2984_v4 = vld [vmem:[#allocation2 + $0xa60] sm:$0xff]  ;;  %v2745_v38 = vld [vmem:[#allocation2 + $0x2e8] sm:$0xff] }
 0x3c0   : > { %v3707_v14 = vmax.f32 %v3347_v15, %v3587_v59  ;;  %v4307_v58 = vmax.f32 %v3947_v13, %v4187_v63  ;;  %v3588_v18 = vadd.f32 %v3468_v48, %v6399_v24  ;;  %v3225_v49 = vmul.f32 %v6389_v28, %v2741_v56  ;;  %v3104_v61 = vld [vmem:[#allocation2 + $0xe20] sm:$0xff]  ;;  %v2865_v63 = vld [vmem:[#allocation2 + $0x6a8] sm:$0xff] }
 0x3c1   : > { %4546 = vst.msk [vmem:[%s7840_s3 + $0x2b0] sm:$0xff] %vm1841_vm2, %v4426_v0  ;;  %v3948_v7 = vadd.f32 %v3828_v11, %v6399_v24  ;;  %v4188_v34 = vadd.f32 %v4068_v27, %v6399_v24  ;;  %v3469_v22 = vmul.f32 %v6389_v28, %v2861_v47  ;;  %v3829_v8 = vmul.f32 %v6389_v28, %v2981_v60  ;;  %v2985_v48 = vld [vmem:[#allocation2 + $0xa68] sm:$0xff] }
 0x3c2   : > { %v4427_v44 = vmax.f32 %v3707_v14, %v4307_v58  ;;  %v3708_v57 = vmax.f32 %v3348_v5, %v3588_v18  ;;  %v3349_v31 = vadd.f32 %v6399_v24, %v3225_v49  ;;  %v4069_v54 = vmul.f32 %v6389_v28, %v3101_v16  ;;  %v3105_v11 = vld [vmem:[#allocation2 + $0xe28] sm:$0xff]  ;;  %v2746_v18 = vld [vmem:[#allocation2 + $0x2f0] sm:$0xff] }
 0x3c3   : > { %v4308_v23 = vmax.f32 %v3948_v7, %v4188_v34  ;;  %v3589_v20 = vadd.f32 %v3469_v22, %v6399_v24  ;;  %v3949_v62 = vadd.f32 %v3829_v8, %v6399_v24  ;;  %v3226_v25 = vmul.f32 %v6389_v28, %v2742_v10  ;;  %v2866_v22 = vld [vmem:[#allocation2 + $0x6b0] sm:$0xff] }
 0x3c4   : > { %4547 = vst.msk [vmem:[%s7840_s3 + $0x2b8] sm:$0xff] %vm1841_vm2, %v4427_v44  ;;  %v4189_v17 = vadd.f32 %v4069_v54, %v6399_v24  ;;  %v3470_v55 = vmul.f32 %v6389_v28, %v2862_v21  ;;  %v3830_v2 = vmul.f32 %v6389_v28, %v2982_v1  ;;  %v4070_v41 = vmul.f32 %v6389_v28, %v3102_v43  ;;  %v2986_v8 = vld [vmem:[#allocation2 + $0xa70] sm:$0xff] }
 0x3c5   : > { %v4428_v6 = vmax.f32 %v3708_v57, %v4308_v23  ;;  %v3709_v35 = vmax.f32 %v3349_v31, %v3589_v20  ;;  %v3350_v19 = vadd.f32 %v6399_v24, %v3226_v25  ;;  %v3227_v3 = vmul.f32 %v6389_v28, %v2743_v42  ;;  %v3106_v21 = vld [vmem:[#allocation2 + $0xe30] sm:$0xff]  ;;  %v2747_v31 = vld [vmem:[#allocation2 + $0x2f8] sm:$0xff] }
 0x3c6   : > { %v4309_v53 = vmax.f32 %v3949_v62, %v4189_v17  ;;  %v3590_v30 = vadd.f32 %v3470_v55, %v6399_v24  ;;  %v3950_v45 = vadd.f32 %v3830_v2, %v6399_v24  ;;  %v4190_v51 = vadd.f32 %v4070_v41, %v6399_v24  ;;  %v2867_v2 = vld [vmem:[#allocation2 + $0x6b8] sm:$0xff] }
 0x3c7   : > { %4548 = vst.msk [vmem:[%s7840_s3 + $0x2c0] sm:$0xff] %vm1841_vm2, %v4428_v6  ;;  %v3351_v12 = vadd.f32 %v6399_v24, %v3227_v3  ;;  %v3471_v46 = vmul.f32 %v6389_v28, %v2863_v37  ;;  %v3831_v15 = vmul.f32 %v6389_v28, %v2983_v29  ;;  %v4071_v52 = vmul.f32 %v6389_v28, %v3103_v36  ;;  %v2987_v41 = vld [vmem:[#allocation2 + $0xa78] sm:$0xff] }
 0x3c8   : > { %v4429_v33 = vmax.f32 %v3709_v35, %v4309_v53  ;;  %v3710_v40 = vmax.f32 %v3350_v19, %v3590_v30  ;;  %v4310_v39 = vmax.f32 %v3950_v45, %v4190_v51  ;;  %v3228_v26 = vmul.f32 %v6389_v28, %v2744_v50  ;;  %v3107_v37 = vld [vmem:[#allocation2 + $0xe38] sm:$0xff]  ;;  %v2748_v19 = vld [vmem:[#allocation2 + $0x300] sm:$0xff] }
 0x3c9   : > { %v3591_v9 = vadd.f32 %v3471_v46, %v6399_v24  ;;  %v3951_v56 = vadd.f32 %v3831_v15, %v6399_v24  ;;  %v4191_v59 = vadd.f32 %v4071_v52, %v6399_v24  ;;  %v3472_v13 = vmul.f32 %v6389_v28, %v2864_v32  ;;  %v2868_v45 = vld [vmem:[#allocation2 + $0x6c0] sm:$0xff] }
 0x3ca   : > { %4549 = vst.msk [vmem:[%s7840_s3 + $0x2c8] sm:$0xff] %vm1841_vm2, %v4429_v33  ;;  %v4430_v47 = vmax.f32 %v3710_v40, %v4310_v39  ;;  %v3352_v60 = vadd.f32 %v6399_v24, %v3228_v26  ;;  %v3832_v0 = vmul.f32 %v6389_v28, %v2984_v4  ;;  %v4072_v5 = vmul.f32 %v6389_v28, %v3104_v61  ;;  %v2988_v15 = vld [vmem:[#allocation2 + $0xa80] sm:$0xff]  ;;  %v2749_v39 = vld [vmem:[#allocation2 + $0x308] sm:$0xff] }
 0x3cb   : > { %v3711_v27 = vmax.f32 %v3351_v12, %v3591_v9  ;;  %v4311_v16 = vmax.f32 %v3951_v56, %v4191_v59  ;;  %v3592_v14 = vadd.f32 %v3472_v13, %v6399_v24  ;;  %v3229_v58 = vmul.f32 %v6389_v28, %v2745_v38  ;;  %v3108_v52 = vld [vmem:[#allocation2 + $0xe40] sm:$0xff]  ;;  %v2869_v59 = vld [vmem:[#allocation2 + $0x6c8] sm:$0xff] }
 0x3cc   : > { %4550 = vst.msk [vmem:[%s7840_s3 + $0x2d0] sm:$0xff] %vm1841_vm2, %v4430_v47  ;;  %v3952_v49 = vadd.f32 %v3832_v0, %v6399_v24  ;;  %v4192_v10 = vadd.f32 %v4072_v5, %v6399_v24  ;;  %v3473_v7 = vmul.f32 %v6389_v28, %v2865_v63  ;;  %v3833_v34 = vmul.f32 %v6389_v28, %v2985_v48  ;;  %v2989_v13 = vld [vmem:[#allocation2 + $0xa88] sm:$0xff] }
 0x3cd   : > { %v4431_v1 = vmax.f32 %v3711_v27, %v4311_v16  ;;  %v3712_v43 = vmax.f32 %v3352_v60, %v3592_v14  ;;  %v3353_v44 = vadd.f32 %v6399_v24, %v3229_v58  ;;  %v4073_v57 = vmul.f32 %v6389_v28, %v3105_v11  ;;  %v3109_v0 = vld [vmem:[#allocation2 + $0xe48] sm:$0xff]  ;;  %v2750_v14 = vld [vmem:[#allocation2 + $0x310] sm:$0xff] }
 0x3ce   : > { %v4312_v54 = vmax.f32 %v3952_v49, %v4192_v10  ;;  %v3593_v42 = vadd.f32 %v3473_v7, %v6399_v24  ;;  %v3953_v23 = vadd.f32 %v3833_v34, %v6399_v24  ;;  %v3230_v20 = vmul.f32 %v6389_v28, %v2746_v18  ;;  %v2870_v7 = vld [vmem:[#allocation2 + $0x6d0] sm:$0xff] }
 0x3cf   : > { %4551 = vst.msk [vmem:[%s7840_s3 + $0x2d8] sm:$0xff] %vm1841_vm2, %v4431_v1  ;;  %v4193_v62 = vadd.f32 %v4073_v57, %v6399_v24  ;;  %v3474_v25 = vmul.f32 %v6389_v28, %v2866_v22  ;;  %v3834_v17 = vmul.f32 %v6389_v28, %v2986_v8  ;;  %v4074_v55 = vmul.f32 %v6389_v28, %v3106_v21  ;;  %v2990_v34 = vld [vmem:[#allocation2 + $0xa90] sm:$0xff] }
 0x3d0   : > { %v4432_v29 = vmax.f32 %v3712_v43, %v4312_v54  ;;  %v3713_v36 = vmax.f32 %v3353_v44, %v3593_v42  ;;  %v3354_v6 = vadd.f32 %v6399_v24, %v3230_v20  ;;  %v3231_v35 = vmul.f32 %v6389_v28, %v2747_v31  ;;  %v3110_v22 = vld [vmem:[#allocation2 + $0xe50] sm:$0xff]  ;;  %v2751_v44 = vld [vmem:[#allocation2 + $0x318] sm:$0xff] }
 0x3d1   : > { %v4313_v3 = vmax.f32 %v3953_v23, %v4193_v62  ;;  %v3594_v50 = vadd.f32 %v3474_v25, %v6399_v24  ;;  %v3954_v53 = vadd.f32 %v3834_v17, %v6399_v24  ;;  %v4194_v30 = vadd.f32 %v4074_v55, %v6399_v24  ;;  %v2871_v17 = vld [vmem:[#allocation2 + $0x6d8] sm:$0xff] }
 0x3d2   : > { %4552 = vst.msk [vmem:[%s7840_s3 + $0x2e0] sm:$0xff] %vm1841_vm2, %v4432_v29  ;;  %v3355_v51 = vadd.f32 %v6399_v24, %v3231_v35  ;;  %v3475_v32 = vmul.f32 %v6389_v28, %v2867_v2  ;;  %v3835_v12 = vmul.f32 %v6389_v28, %v2987_v41  ;;  %v4075_v46 = vmul.f32 %v6389_v28, %v3107_v37  ;;  %v2991_v55 = vld [vmem:[#allocation2 + $0xa98] sm:$0xff] }
 0x3d3   : > { %v4433_v4 = vmax.f32 %v3713_v36, %v4313_v3  ;;  %v3714_v61 = vmax.f32 %v3354_v6, %v3594_v50  ;;  %v4314_v33 = vmax.f32 %v3954_v53, %v4194_v30  ;;  %v3232_v40 = vmul.f32 %v6389_v28, %v2748_v19  ;;  %v3111_v2 = vld [vmem:[#allocation2 + $0xe58] sm:$0xff]  ;;  %v2752_v6 = vld [vmem:[#allocation2 + $0x320] sm:$0xff] }
 0x3d4   : > { %v3595_v26 = vadd.f32 %v3475_v32, %v6399_v24  ;;  %v3955_v38 = vadd.f32 %v3835_v12, %v6399_v24  ;;  %v4195_v9 = vadd.f32 %v4075_v46, %v6399_v24  ;;  %v3476_v56 = vmul.f32 %v6389_v28, %v2868_v45  ;;  %v2872_v53 = vld [vmem:[#allocation2 + $0x6e0] sm:$0xff] }
 0x3d5   : > { %4553 = vst.msk [vmem:[%s7840_s3 + $0x2e8] sm:$0xff] %vm1841_vm2, %v4433_v4  ;;  %v4434_v63 = vmax.f32 %v3714_v61, %v4314_v33  ;;  %v3356_v48 = vadd.f32 %v6399_v24, %v3232_v40  ;;  %v3836_v47 = vmul.f32 %v6389_v28, %v2988_v15  ;;  %v4076_v60 = vmul.f32 %v6389_v28, %v3108_v52  ;;  %v2992_v12 = vld [vmem:[#allocation2 + $0xaa0] sm:$0xff]  ;;  %v2753_v33 = vld [vmem:[#allocation2 + $0x328] sm:$0xff] }
 0x3d6   : > { %v3715_v5 = vmax.f32 %v3355_v51, %v3595_v26  ;;  %v4315_v11 = vmax.f32 %v3955_v38, %v4195_v9  ;;  %v3596_v27 = vadd.f32 %v3476_v56, %v6399_v24  ;;  %v3233_v16 = vmul.f32 %v6389_v28, %v2749_v39  ;;  %v3112_v46 = vld [vmem:[#allocation2 + $0xe60] sm:$0xff]  ;;  %v2873_v9 = vld [vmem:[#allocation2 + $0x6e8] sm:$0xff] }
 0x3d7   : > { %4554 = vst.msk [vmem:[%s7840_s3 + $0x2f0] sm:$0xff] %vm1841_vm2, %v4434_v63  ;;  %v3956_v58 = vadd.f32 %v3836_v47, %v6399_v24  ;;  %v4196_v18 = vadd.f32 %v4076_v60, %v6399_v24  ;;  %v3477_v49 = vmul.f32 %v6389_v28, %v2869_v59  ;;  %v3837_v10 = vmul.f32 %v6389_v28, %v2989_v13  ;;  %v2993_v56 = vld [vmem:[#allocation2 + $0xaa8] sm:$0xff] }
 0x3d8   : > { %v4435_v8 = vmax.f32 %v3715_v5, %v4315_v11  ;;  %v3716_v21 = vmax.f32 %v3356_v48, %v3596_v27  ;;  %v3357_v1 = vadd.f32 %v6399_v24, %v3233_v16  ;;  %v4077_v43 = vmul.f32 %v6389_v28, %v3109_v0  ;;  %v3113_v47 = vld [vmem:[#allocation2 + $0xe68] sm:$0xff]  ;;  %v2754_v27 = vld [vmem:[#allocation2 + $0x330] sm:$0xff] }
 0x3d9   : > { %v4316_v57 = vmax.f32 %v3956_v58, %v4196_v18  ;;  %v3597_v31 = vadd.f32 %v3477_v49, %v6399_v24  ;;  %v3957_v54 = vadd.f32 %v3837_v10, %v6399_v24  ;;  %v3234_v42 = vmul.f32 %v6389_v28, %v2750_v14  ;;  %v2874_v49 = vld [vmem:[#allocation2 + $0x6f0] sm:$0xff] }
 0x3da   : > { %4555 = vst.msk [vmem:[%s7840_s3 + $0x2f8] sm:$0xff] %vm1841_vm2, %v4435_v8  ;;  %v4197_v23 = vadd.f32 %v4077_v43, %v6399_v24  ;;  %v3478_v20 = vmul.f32 %v6389_v28, %v2870_v7  ;;  %v3838_v62 = vmul.f32 %v6389_v28, %v2990_v34  ;;  %v4078_v25 = vmul.f32 %v6389_v28, %v3110_v22  ;;  %v2994_v10 = vld [vmem:[#allocation2 + $0xab0] sm:$0xff] }
 0x3db   : > { %v4436_v41 = vmax.f32 %v3716_v21, %v4316_v57  ;;  %v3717_v37 = vmax.f32 %v3357_v1, %v3597_v31  ;;  %v3358_v29 = vadd.f32 %v6399_v24, %v3234_v42  ;;  %v3235_v36 = vmul.f32 %v6389_v28, %v2751_v44  ;;  %v3114_v7 = vld [vmem:[#allocation2 + $0xe70] sm:$0xff]  ;;  %v2755_v1 = vld [vmem:[#allocation2 + $0x338] sm:$0xff] }
 0x3dc   : > { %v4317_v35 = vmax.f32 %v3957_v54, %v4197_v23  ;;  %v3598_v19 = vadd.f32 %v3478_v20, %v6399_v24  ;;  %v3958_v3 = vadd.f32 %v3838_v62, %v6399_v24  ;;  %v4198_v50 = vadd.f32 %v4078_v25, %v6399_v24  ;;  %v2875_v62 = vld [vmem:[#allocation2 + $0x6f8] sm:$0xff] }
 0x3dd   : > { %4556 = vst.msk [vmem:[%s7840_s3 + $0x300] sm:$0xff] %vm1841_vm2, %v4436_v41  ;;  %v3359_v30 = vadd.f32 %v6399_v24, %v3235_v36  ;;  %v3479_v45 = vmul.f32 %v6389_v28, %v2871_v17  ;;  %v3839_v51 = vmul.f32 %v6389_v28, %v2991_v55  ;;  %v4079_v32 = vmul.f32 %v6389_v28, %v3111_v2  ;;  %v2995_v25 = vld [vmem:[#allocation2 + $0xab8] sm:$0xff] }
 0x3de   : > { %v4437_v15 = vmax.f32 %v3717_v37, %v4317_v35  ;;  %v3718_v52 = vmax.f32 %v3358_v29, %v3598_v19  ;;  %v4318_v4 = vmax.f32 %v3958_v3, %v4198_v50  ;;  %v3236_v61 = vmul.f32 %v6389_v28, %v2752_v6  ;;  %v3115_v17 = vld [vmem:[#allocation2 + $0xe78] sm:$0xff]  ;;  %v2756_v29 = vld [vmem:[#allocation2 + $0x340] sm:$0xff] }
 0x3df   : > { %v3599_v40 = vadd.f32 %v3479_v45, %v6399_v24  ;;  %v3959_v39 = vadd.f32 %v3839_v51, %v6399_v24  ;;  %v4199_v26 = vadd.f32 %v4079_v32, %v6399_v24  ;;  %v3480_v38 = vmul.f32 %v6389_v28, %v2872_v53  ;;  %v2876_v3 = vld [vmem:[#allocation2 + $0x700] sm:$0xff] }
 0x3e0   : > { %4557 = vst.msk [vmem:[%s7840_s3 + $0x308] sm:$0xff] %vm1841_vm2, %v4437_v15  ;;  %v4438_v59 = vmax.f32 %v3718_v52, %v4318_v4  ;;  %v3360_v13 = vadd.f32 %v6399_v24, %v3236_v61  ;;  %v3840_v63 = vmul.f32 %v6389_v28, %v2992_v12  ;;  %v4080_v48 = vmul.f32 %v6389_v28, %v3112_v46  ;;  %v2996_v51 = vld [vmem:[#allocation2 + $0xac0] sm:$0xff]  ;;  %v2757_v4 = vld [vmem:[#allocation2 + $0x348] sm:$0xff] }
 0x3e1   : > { %v3719_v60 = vmax.f32 %v3359_v30, %v3599_v40  ;;  %v4319_v0 = vmax.f32 %v3959_v39, %v4199_v26  ;;  %v3600_v5 = vadd.f32 %v3480_v38, %v6399_v24  ;;  %v3237_v11 = vmul.f32 %v6389_v28, %v2753_v33  ;;  %v3116_v32 = vld [vmem:[#allocation2 + $0xe80] sm:$0xff]  ;;  %v2877_v26 = vld [vmem:[#allocation2 + $0x708] sm:$0xff] }
 0x3e2   : > { %4558 = vst.msk [vmem:[%s7840_s3 + $0x310] sm:$0xff] %vm1841_vm2, %v4438_v59  ;;  %v3960_v16 = vadd.f32 %v3840_v63, %v6399_v24  ;;  %v4200_v14 = vadd.f32 %v4080_v48, %v6399_v24  ;;  %v3481_v58 = vmul.f32 %v6389_v28, %v2873_v9  ;;  %v3841_v18 = vmul.f32 %v6389_v28, %v2993_v56  ;;  %v2997_v38 = vld [vmem:[#allocation2 + $0xac8] sm:$0xff] }
 0x3e3   : > { %v4439_v34 = vmax.f32 %v3719_v60, %v4319_v0  ;;  %v3720_v22 = vmax.f32 %v3360_v13, %v3600_v5  ;;  %v3361_v8 = vadd.f32 %v6399_v24, %v3237_v11  ;;  %v4081_v21 = vmul.f32 %v6389_v28, %v3113_v47  ;;  %v3117_v63 = vld [vmem:[#allocation2 + $0xe88] sm:$0xff]  ;;  %v2758_v5 = vld [vmem:[#allocation2 + $0x350] sm:$0xff] }
 0x3e4   : > { %v4320_v43 = vmax.f32 %v3960_v16, %v4200_v14  ;;  %v3601_v44 = vadd.f32 %v3481_v58, %v6399_v24  ;;  %v3961_v57 = vadd.f32 %v3841_v18, %v6399_v24  ;;  %v3238_v31 = vmul.f32 %v6389_v28, %v2754_v27  ;;  %v2878_v58 = vld [vmem:[#allocation2 + $0x710] sm:$0xff] }
 0x3e5   : > { %4559 = vst.msk [vmem:[%s7840_s3 + $0x318] sm:$0xff] %vm1841_vm2, %v4439_v34  ;;  %v4201_v54 = vadd.f32 %v4081_v21, %v6399_v24  ;;  %v3482_v42 = vmul.f32 %v6389_v28, %v2874_v49  ;;  %v3842_v23 = vmul.f32 %v6389_v28, %v2994_v10  ;;  %v4082_v20 = vmul.f32 %v6389_v28, %v3114_v7  ;;  %v2998_v18 = vld [vmem:[#allocation2 + $0xad0] sm:$0xff] }
 0x3e6   : > { %v4440_v55 = vmax.f32 %v3720_v22, %v4320_v43  ;;  %v3721_v2 = vmax.f32 %v3361_v8, %v3601_v44  ;;  %v3362_v41 = vadd.f32 %v6399_v24, %v3238_v31  ;;  %v3239_v37 = vmul.f32 %v6389_v28, %v2755_v1  ;;  %v3118_v49 = vld [vmem:[#allocation2 + $0xe90] sm:$0xff]  ;;  %v2759_v8 = vld [vmem:[#allocation2 + $0x358] sm:$0xff] }
 0x3e7   : > { %v4321_v36 = vmax.f32 %v3961_v57, %v4201_v54  ;;  %v3602_v6 = vadd.f32 %v3482_v42, %v6399_v24  ;;  %v3962_v35 = vadd.f32 %v3842_v23, %v6399_v24  ;;  %v4202_v19 = vadd.f32 %v4082_v20, %v6399_v24  ;;  %v2879_v23 = vld [vmem:[#allocation2 + $0x718] sm:$0xff] }
 0x3e8   : > { %4560 = vst.msk [vmem:[%s7840_s3 + $0x320] sm:$0xff] %vm1841_vm2, %v4440_v55  ;;  %v3363_v50 = vadd.f32 %v6399_v24, %v3239_v37  ;;  %v3483_v53 = vmul.f32 %v6389_v28, %v2875_v62  ;;  %v3843_v30 = vmul.f32 %v6389_v28, %v2995_v25  ;;  %v4083_v45 = vmul.f32 %v6389_v28, %v3115_v17  ;;  %v2999_v20 = vld [vmem:[#allocation2 + $0xad8] sm:$0xff] }
 0x3e9   : > { %v4441_v12 = vmax.f32 %v3721_v2, %v4321_v36  ;;  %v3722_v46 = vmax.f32 %v3362_v41, %v3602_v6  ;;  %v4322_v15 = vmax.f32 %v3962_v35, %v4202_v19  ;;  %v3240_v52 = vmul.f32 %v6389_v28, %v2756_v29  ;;  %v3119_v62 = vld [vmem:[#allocation2 + $0xe98] sm:$0xff]  ;;  %v2760_v41 = vld [vmem:[#allocation2 + $0x360] sm:$0xff] }
 0x3ea   : > { %v3603_v61 = vadd.f32 %v3483_v53, %v6399_v24  ;;  %v3963_v33 = vadd.f32 %v3843_v30, %v6399_v24  ;;  %v4203_v40 = vadd.f32 %v4083_v45, %v6399_v24  ;;  %v3484_v39 = vmul.f32 %v6389_v28, %v2876_v3  ;;  %v2880_v35 = vld [vmem:[#allocation2 + $0x720] sm:$0xff] }
 0x3eb   : > { %4561 = vst.msk [vmem:[%s7840_s3 + $0x328] sm:$0xff] %vm1841_vm2, %v4441_v12  ;;  %v4442_v9 = vmax.f32 %v3722_v46, %v4322_v15  ;;  %v3364_v56 = vadd.f32 %v6399_v24, %v3240_v52  ;;  %v3844_v59 = vmul.f32 %v6389_v28, %v2996_v51  ;;  %v4084_v13 = vmul.f32 %v6389_v28, %v3116_v32  ;;  %v3000_v30 = vld [vmem:[#allocation2 + $0xae0] sm:$0xff]  ;;  %v2761_v15 = vld [vmem:[#allocation2 + $0x368] sm:$0xff] }
 0x3ec   : > { %v3723_v48 = vmax.f32 %v3363_v50, %v3603_v61  ;;  %v4323_v47 = vmax.f32 %v3963_v33, %v4203_v40  ;;  %v3604_v60 = vadd.f32 %v3484_v39, %v6399_v24  ;;  %v3241_v0 = vmul.f32 %v6389_v28, %v2757_v4  ;;  %v3120_v45 = vld [vmem:[#allocation2 + $0xea0] sm:$0xff]  ;;  %v2881_v40 = vld [vmem:[#allocation2 + $0x728] sm:$0xff] }
 0x3ed   : > { %4562 = vst.msk [vmem:[%s7840_s3 + $0x330] sm:$0xff] %vm1841_vm2, %v4442_v9  ;;  %v3964_v11 = vadd.f32 %v3844_v59, %v6399_v24  ;;  %v4204_v27 = vadd.f32 %v4084_v13, %v6399_v24  ;;  %v3485_v16 = vmul.f32 %v6389_v28, %v2877_v26  ;;  %v3845_v14 = vmul.f32 %v6389_v28, %v2997_v38  ;;  %v3001_v39 = vld [vmem:[#allocation2 + $0xae8] sm:$0xff] }
 0x3ee   : > { %v4443_v10 = vmax.f32 %v3723_v48, %v4323_v47  ;;  %v3724_v7 = vmax.f32 %v3364_v56, %v3604_v60  ;;  %v3365_v34 = vadd.f32 %v6399_v24, %v3241_v0  ;;  %v4085_v22 = vmul.f32 %v6389_v28, %v3117_v63  ;;  %v3121_v59 = vld [vmem:[#allocation2 + $0xea8] sm:$0xff]  ;;  %v2762_v60 = vld [vmem:[#allocation2 + $0x370] sm:$0xff] }
 0x3ef   : > { %v4324_v21 = vmax.f32 %v3964_v11, %v4204_v27  ;;  %v3605_v1 = vadd.f32 %v3485_v16, %v6399_v24  ;;  %v3965_v43 = vadd.f32 %v3845_v14, %v6399_v24  ;;  %v3242_v44 = vmul.f32 %v6389_v28, %v2758_v5  ;;  %v2882_v16 = vld [vmem:[#allocation2 + $0x730] sm:$0xff] }
 0x3f0   : > { %4563 = vst.msk [vmem:[%s7840_s3 + $0x338] sm:$0xff] %vm1841_vm2, %v4443_v10  ;;  %v4205_v57 = vadd.f32 %v4085_v22, %v6399_v24  ;;  %v3486_v31 = vmul.f32 %v6389_v28, %v2878_v58  ;;  %v3846_v54 = vmul.f32 %v6389_v28, %v2998_v18  ;;  %v4086_v42 = vmul.f32 %v6389_v28, %v3118_v49  ;;  %v3002_v14 = vld [vmem:[#allocation2 + $0xaf0] sm:$0xff] }
 0x3f1   : > { %v4444_v25 = vmax.f32 %v3724_v7, %v4324_v21  ;;  %v3725_v17 = vmax.f32 %v3365_v34, %v3605_v1  ;;  %v3366_v55 = vadd.f32 %v6399_v24, %v3242_v44  ;;  %v3243_v2 = vmul.f32 %v6389_v28, %v2759_v8  ;;  %v3122_v58 = vld [vmem:[#allocation2 + $0xeb0] sm:$0xff]  ;;  %v2763_v34 = vld [vmem:[#allocation2 + $0x378] sm:$0xff] }
 0x3f2   : > { %v4325_v37 = vmax.f32 %v3965_v43, %v4205_v57  ;;  %v3606_v29 = vadd.f32 %v3486_v31, %v6399_v24  ;;  %v3966_v36 = vadd.f32 %v3846_v54, %v6399_v24  ;;  %v4206_v6 = vadd.f32 %v4086_v42, %v6399_v24  ;;  %v2883_v54 = vld [vmem:[#allocation2 + $0x738] sm:$0xff] }
 0x3f3   : > { %4564 = vst.msk [vmem:[%s7840_s3 + $0x340] sm:$0xff] %vm1841_vm2, %v4444_v25  ;;  %v3367_v19 = vadd.f32 %v6399_v24, %v3243_v2  ;;  %v3487_v3 = vmul.f32 %v6389_v28, %v2879_v23  ;;  %v3847_v50 = vmul.f32 %v6389_v28, %v2999_v20  ;;  %v4087_v53 = vmul.f32 %v6389_v28, %v3119_v62  ;;  %v3003_v42 = vld [vmem:[#allocation2 + $0xaf8] sm:$0xff] }
 0x3f4   : > { %v4445_v51 = vmax.f32 %v3725_v17, %v4325_v37  ;;  %v3726_v32 = vmax.f32 %v3366_v55, %v3606_v29  ;;  %v4326_v12 = vmax.f32 %v3966_v36, %v4206_v6  ;;  %v3244_v46 = vmul.f32 %v6389_v28, %v2760_v41  ;;  %v3123_v23 = vld [vmem:[#allocation2 + $0xeb8] sm:$0xff]  ;;  %v2764_v55 = vld [vmem:[#allocation2 + $0x380] sm:$0xff] }
 0x3f5   : > { %v3607_v52 = vadd.f32 %v3487_v3, %v6399_v24  ;;  %v3967_v4 = vadd.f32 %v3847_v50, %v6399_v24  ;;  %v4207_v61 = vadd.f32 %v4087_v53, %v6399_v24  ;;  %v3488_v33 = vmul.f32 %v6389_v28, %v2880_v35  ;;  %v2884_v36 = vld [vmem:[#allocation2 + $0x740] sm:$0xff] }
 0x3f6   : > { %4565 = vst.msk [vmem:[%s7840_s3 + $0x348] sm:$0xff] %vm1841_vm2, %v4445_v51  ;;  %v4446_v26 = vmax.f32 %v3726_v32, %v4326_v12  ;;  %v3368_v38 = vadd.f32 %v6399_v24, %v3244_v46  ;;  %v3848_v9 = vmul.f32 %v6389_v28, %v3000_v30  ;;  %v4088_v56 = vmul.f32 %v6389_v28, %v3120_v45  ;;  %v3004_v50 = vld [vmem:[#allocation2 + $0xb00] sm:$0xff]  ;;  %v2765_v12 = vld [vmem:[#allocation2 + $0x388] sm:$0xff] }
 0x3f7   : > { %v3727_v13 = vmax.f32 %v3367_v19, %v3607_v52  ;;  %v4327_v63 = vmax.f32 %v3967_v4, %v4207_v61  ;;  %v3608_v48 = vadd.f32 %v3488_v33, %v6399_v24  ;;  %v3245_v47 = vmul.f32 %v6389_v28, %v2761_v15  ;;  %v3124_v53 = vld [vmem:[#allocation2 + $0xec0] sm:$0xff]  ;;  %v2885_v61 = vld [vmem:[#allocation2 + $0x748] sm:$0xff] }
 0x3f8   : > { %4566 = vst.msk [vmem:[%s7840_s3 + $0x350] sm:$0xff] %vm1841_vm2, %v4446_v26  ;;  %v3968_v0 = vadd.f32 %v3848_v9, %v6399_v24  ;;  %v4208_v5 = vadd.f32 %v4088_v56, %v6399_v24  ;;  %v3489_v11 = vmul.f32 %v6389_v28, %v2881_v40  ;;  %v3849_v27 = vmul.f32 %v6389_v28, %v3001_v39  ;;  %v3005_v33 = vld [vmem:[#allocation2 + $0xb08] sm:$0xff] }
 0x3f9   : > { %v4447_v18 = vmax.f32 %v3727_v13, %v4327_v63  ;;  %v3728_v49 = vmax.f32 %v3368_v38, %v3608_v48  ;;  %v3369_v10 = vadd.f32 %v6399_v24, %v3245_v47  ;;  %v4089_v7 = vmul.f32 %v6389_v28, %v3121_v59  ;;  %v3125_v9 = vld [vmem:[#allocation2 + $0xec8] sm:$0xff]  ;;  %v2766_v48 = vld [vmem:[#allocation2 + $0x390] sm:$0xff] }
 0x3fa   : > { %v4328_v22 = vmax.f32 %v3968_v0, %v4208_v5  ;;  %v3609_v8 = vadd.f32 %v3489_v11, %v6399_v24  ;;  %v3969_v21 = vadd.f32 %v3849_v27, %v6399_v24  ;;  %v3246_v1 = vmul.f32 %v6389_v28, %v2762_v60  ;;  %v2886_v11 = vld [vmem:[#allocation2 + $0x750] sm:$0xff] }
 0x3fb   : > { %4567 = vst.msk [vmem:[%s7840_s3 + $0x358] sm:$0xff] %vm1841_vm2, %v4447_v18  ;;  %v4209_v43 = vadd.f32 %v4089_v7, %v6399_v24  ;;  %v3490_v44 = vmul.f32 %v6389_v28, %v2882_v16  ;;  %v3850_v57 = vmul.f32 %v6389_v28, %v3002_v14  ;;  %v4090_v31 = vmul.f32 %v6389_v28, %v3122_v58  ;;  %v3006_v27 = vld [vmem:[#allocation2 + $0xb10] sm:$0xff] }
 0x3fc   : > { %v4448_v20 = vmax.f32 %v3728_v49, %v4328_v22  ;;  %v3729_v62 = vmax.f32 %v3369_v10, %v3609_v8  ;;  %v3370_v25 = vadd.f32 %v6399_v24, %v3246_v1  ;;  %v3247_v17 = vmul.f32 %v6389_v28, %v2763_v34  ;;  %v3126_v16 = vld [vmem:[#allocation2 + $0xed0] sm:$0xff]  ;;  %v2767_v10 = vld [vmem:[#allocation2 + $0x398] sm:$0xff] }
 0x3fd   : > { %v4329_v2 = vmax.f32 %v3969_v21, %v4209_v43  ;;  %v3610_v41 = vadd.f32 %v3490_v44, %v6399_v24  ;;  %v3970_v37 = vadd.f32 %v3850_v57, %v6399_v24  ;;  %v4210_v29 = vadd.f32 %v4090_v31, %v6399_v24  ;;  %v2887_v57 = vld [vmem:[#allocation2 + $0x758] sm:$0xff] }
 0x3fe   : > { %4568 = vst.msk [vmem:[%s7840_s3 + $0x360] sm:$0xff] %vm1841_vm2, %v4448_v20  ;;  %v3371_v6 = vadd.f32 %v6399_v24, %v3247_v17  ;;  %v3491_v35 = vmul.f32 %v6389_v28, %v2883_v54  ;;  %v3851_v19 = vmul.f32 %v6389_v28, %v3003_v42  ;;  %v4091_v3 = vmul.f32 %v6389_v28, %v3123_v23  ;;  %v3007_v31 = vld [vmem:[#allocation2 + $0xb18] sm:$0xff] }
 0x3ff   : > { %v4449_v30 = vmax.f32 %v3729_v62, %v4329_v2  ;;  %v3730_v45 = vmax.f32 %v3370_v25, %v3610_v41  ;;  %v4330_v51 = vmax.f32 %v3970_v37, %v4210_v29  ;;  %v3248_v32 = vmul.f32 %v6389_v28, %v2764_v55  ;;  %v3127_v54 = vld [vmem:[#allocation2 + $0xed8] sm:$0xff]  ;;  %v2768_v25 = vld [vmem:[#allocation2 + $0x3a0] sm:$0xff] }
 0x400   : > { %v3611_v46 = vadd.f32 %v3491_v35, %v6399_v24  ;;  %v3971_v15 = vadd.f32 %v3851_v19, %v6399_v24  ;;  %v4211_v52 = vadd.f32 %v4091_v3, %v6399_v24  ;;  %v3492_v4 = vmul.f32 %v6389_v28, %v2884_v36  ;;  %v2888_v37 = vld [vmem:[#allocation2 + $0x760] sm:$0xff] }
 0x401   : > { %4569 = vst.msk [vmem:[%s7840_s3 + $0x368] sm:$0xff] %vm1841_vm2, %v4449_v30  ;;  %v4450_v40 = vmax.f32 %v3730_v45, %v4330_v51  ;;  %v3372_v39 = vadd.f32 %v6399_v24, %v3248_v32  ;;  %v3852_v26 = vmul.f32 %v6389_v28, %v3004_v50  ;;  %v4092_v38 = vmul.f32 %v6389_v28, %v3124_v53  ;;  %v3008_v19 = vld [vmem:[#allocation2 + $0xb20] sm:$0xff]  ;;  %v2769_v51 = vld [vmem:[#allocation2 + $0x3a8] sm:$0xff] }
 0x402   : > { %v3731_v56 = vmax.f32 %v3371_v6, %v3611_v46  ;;  %v4331_v59 = vmax.f32 %v3971_v15, %v4211_v52  ;;  %v3612_v13 = vadd.f32 %v3492_v4, %v6399_v24  ;;  %v3249_v63 = vmul.f32 %v6389_v28, %v2765_v12  ;;  %v3128_v3 = vld [vmem:[#allocation2 + $0xee0] sm:$0xff]  ;;  %v2889_v52 = vld [vmem:[#allocation2 + $0x768] sm:$0xff] }
 0x403   : > { %4570 = vst.msk [vmem:[%s7840_s3 + $0x370] sm:$0xff] %vm1841_vm2, %v4450_v40  ;;  %v3972_v47 = vadd.f32 %v3852_v26, %v6399_v24  ;;  %v4212_v60 = vadd.f32 %v4092_v38, %v6399_v24  ;;  %v3493_v0 = vmul.f32 %v6389_v28, %v2885_v61  ;;  %v3853_v5 = vmul.f32 %v6389_v28, %v3005_v33  ;;  %v3009_v4 = vld [vmem:[#allocation2 + $0xb28] sm:$0xff] }
 0x404   : > { %v4451_v14 = vmax.f32 %v3731_v56, %v4331_v59  ;;  %v3732_v58 = vmax.f32 %v3372_v39, %v3612_v13  ;;  %v3373_v18 = vadd.f32 %v6399_v24, %v3249_v63  ;;  %v4093_v49 = vmul.f32 %v6389_v28, %v3125_v9  ;;  %v3129_v26 = vld [vmem:[#allocation2 + $0xee8] sm:$0xff]  ;;  %v2770_v13 = vld [vmem:[#allocation2 + $0x3b0] sm:$0xff] }
 0x405   : > { %v4332_v7 = vmax.f32 %v3972_v47, %v4212_v60  ;;  %v3613_v34 = vadd.f32 %v3493_v0, %v6399_v24  ;;  %v3973_v22 = vadd.f32 %v3853_v5, %v6399_v24  ;;  %v3250_v8 = vmul.f32 %v6389_v28, %v2766_v48  ;;  %v2890_v0 = vld [vmem:[#allocation2 + $0x770] sm:$0xff] }
 0x406   : > { %4571 = vst.msk [vmem:[%s7840_s3 + $0x378] sm:$0xff] %vm1841_vm2, %v4451_v14  ;;  %v4213_v21 = vadd.f32 %v4093_v49, %v6399_v24  ;;  %v3494_v1 = vmul.f32 %v6389_v28, %v2886_v11  ;;  %v3854_v43 = vmul.f32 %v6389_v28, %v3006_v27  ;;  %v4094_v44 = vmul.f32 %v6389_v28, %v3126_v16  ;;  %v3010_v5 = vld [vmem:[#allocation2 + $0xb30] sm:$0xff] }
 0x407   : > { %v4452_v42 = vmax.f32 %v3732_v58, %v4332_v7  ;;  %v3733_v23 = vmax.f32 %v3373_v18, %v3613_v34  ;;  %v3374_v20 = vadd.f32 %v6399_v24, %v3250_v8  ;;  %v3251_v62 = vmul.f32 %v6389_v28, %v2767_v10  ;;  %v3130_v11 = vld [vmem:[#allocation2 + $0xef0] sm:$0xff]  ;;  %v2771_v18 = vld [vmem:[#allocation2 + $0x3b8] sm:$0xff] }
 0x408   : > { %v4333_v17 = vmax.f32 %v3973_v22, %v4213_v21  ;;  %v3614_v55 = vadd.f32 %v3494_v1, %v6399_v24  ;;  %v3974_v2 = vadd.f32 %v3854_v43, %v6399_v24  ;;  %v4214_v41 = vadd.f32 %v4094_v44, %v6399_v24  ;;  %v2891_v43 = vld [vmem:[#allocation2 + $0x778] sm:$0xff] }
 0x409   : > { %4572 = vst.msk [vmem:[%s7840_s3 + $0x380] sm:$0xff] %vm1841_vm2, %v4452_v42  ;;  %v3375_v29 = vadd.f32 %v6399_v24, %v3251_v62  ;;  %v3495_v36 = vmul.f32 %v6389_v28, %v2887_v57  ;;  %v3855_v6 = vmul.f32 %v6389_v28, %v3007_v31  ;;  %v4095_v35 = vmul.f32 %v6389_v28, %v3127_v54  ;;  %v3011_v44 = vld [vmem:[#allocation2 + $0xb38] sm:$0xff] }
 0x40a   : > { %v4453_v50 = vmax.f32 %v3733_v23, %v4333_v17  ;;  %v3734_v53 = vmax.f32 %v3374_v20, %v3614_v55  ;;  %v4334_v30 = vmax.f32 %v3974_v2, %v4214_v41  ;;  %v3252_v45 = vmul.f32 %v6389_v28, %v2768_v25  ;;  %v3131_v57 = vld [vmem:[#allocation2 + $0xef8] sm:$0xff] }
 0x40b   : > { %v3615_v32 = vadd.f32 %v3495_v36, %v6399_v24  ;;  %v3975_v12 = vadd.f32 %v3855_v6, %v6399_v24  ;;  %v4215_v46 = vadd.f32 %v4095_v35, %v6399_v24  ;;  %v3496_v15 = vmul.f32 %v6389_v28, %v2888_v37 }
 0x40c   : > { %4573 = vst.msk [vmem:[%s7840_s3 + $0x388] sm:$0xff] %vm1841_vm2, %v4453_v50  ;;  %v4454_v61 = vmax.f32 %v3734_v53, %v4334_v30  ;;  %v3376_v33 = vadd.f32 %v6399_v24, %v3252_v45  ;;  %v3856_v40 = vmul.f32 %v6389_v28, %v3008_v19  ;;  %v4096_v39 = vmul.f32 %v6389_v28, %v3128_v3 }
 0x40d   : > { %v3735_v38 = vmax.f32 %v3375_v29, %v3615_v32  ;;  %v4335_v9 = vmax.f32 %v3975_v12, %v4215_v46  ;;  %v3616_v56 = vadd.f32 %v3496_v15, %v6399_v24  ;;  %v3253_v59 = vmul.f32 %v6389_v28, %v2769_v51 }
 0x40e   : > { %4574 = vst.msk [vmem:[%s7840_s3 + $0x390] sm:$0xff] %vm1841_vm2, %v4454_v61  ;;  %v3976_v63 = vadd.f32 %v3856_v40, %v6399_v24  ;;  %v4216_v48 = vadd.f32 %v4096_v39, %v6399_v24  ;;  %v3497_v47 = vmul.f32 %v6389_v28, %v2889_v52  ;;  %v3857_v60 = vmul.f32 %v6389_v28, %v3009_v4 }
 0x40f   : > { %v4455_v27 = vmax.f32 %v3735_v38, %v4335_v9  ;;  %v3736_v16 = vmax.f32 %v3376_v33, %v3616_v56  ;;  %v3377_v14 = vadd.f32 %v6399_v24, %v3253_v59  ;;  %v4097_v58 = vmul.f32 %v6389_v28, %v3129_v26 }
 0x410   : > { %v4336_v49 = vmax.f32 %v3976_v63, %v4216_v48  ;;  %v3617_v10 = vadd.f32 %v3497_v47, %v6399_v24  ;;  %v3977_v7 = vadd.f32 %v3857_v60, %v6399_v24  ;;  %v3254_v34 = vmul.f32 %v6389_v28, %v2770_v13 }
 0x411   : > { %4575 = vst.msk [vmem:[%s7840_s3 + $0x398] sm:$0xff] %vm1841_vm2, %v4455_v27  ;;  %v4217_v22 = vadd.f32 %v4097_v58, %v6399_v24  ;;  %v3498_v8 = vmul.f32 %v6389_v28, %v2890_v0  ;;  %v3858_v21 = vmul.f32 %v6389_v28, %v3010_v5  ;;  %v4098_v1 = vmul.f32 %v6389_v28, %v3130_v11 }
 0x412   : > { %v4456_v31 = vmax.f32 %v3736_v16, %v4336_v49  ;;  %v3737_v54 = vmax.f32 %v3377_v14, %v3617_v10  ;;  %v3378_v42 = vadd.f32 %v6399_v24, %v3254_v34  ;;  %v3255_v23 = vmul.f32 %v6389_v28, %v2771_v18 }
 0x413   : > { %v4337_v20 = vmax.f32 %v3977_v7, %v4217_v22  ;;  %v3618_v62 = vadd.f32 %v3498_v8, %v6399_v24  ;;  %v3978_v25 = vadd.f32 %v3858_v21, %v6399_v24  ;;  %v4218_v17 = vadd.f32 %v4098_v1, %v6399_v24 }
 0x414   : > { %4576 = vst.msk [vmem:[%s7840_s3 + $0x3a0] sm:$0xff] %vm1841_vm2, %v4456_v31  ;;  %v3379_v55 = vadd.f32 %v6399_v24, %v3255_v23  ;;  %v3499_v2 = vmul.f32 %v6389_v28, %v2891_v43  ;;  %v3859_v41 = vmul.f32 %v6389_v28, %v3011_v44  ;;  %v4099_v37 = vmul.f32 %v6389_v28, %v3131_v57 }
 0x415   : > { %v4457_v29 = vmax.f32 %v3737_v54, %v4337_v20  ;;  %v3738_v36 = vmax.f32 %v3378_v42, %v3618_v62  ;;  %v4338_v6 = vmax.f32 %v3978_v25, %v4218_v17 }
 0x416   : > { %v3619_v35 = vadd.f32 %v3499_v2, %v6399_v24  ;;  %v3979_v19 = vadd.f32 %v3859_v41, %v6399_v24  ;;  %v4219_v3 = vadd.f32 %v4099_v37, %v6399_v24 }
 0x417   : > { %4577 = vst.msk [vmem:[%s7840_s3 + $0x3a8] sm:$0xff] %vm1841_vm2, %v4457_v29  ;;  %v4458_v50 = vmax.f32 %v3738_v36, %v4338_v6 }
 0x418   : > { %v3739_v53 = vmax.f32 %v3379_v55, %v3619_v35  ;;  %v4339_v30 = vmax.f32 %v3979_v19, %v4219_v3 }
 0x419   : > { %4578 = vst.msk [vmem:[%s7840_s3 + $0x3b0] sm:$0xff] %vm1841_vm2, %v4458_v50 }
 0x41a   : > { %v4459_v28 = vmax.f32 %v3739_v53, %v4339_v30 }
 0x41c   : > { %4579 = vst.msk [vmem:[%s7840_s3 + $0x3b8] sm:$0xff] %vm1841_vm2, %v4459_v28 }
 0x41d PF: > { %s13_s12 = sadd.s32 1, %s5052_s12  }
 0x41e   : > { %p10_p6 = scmp.ge.s32.totalorder %s13_s12, 6  }
 0x420   :  { %12 = sbr.rel (!%p10_p6) target bundleno = 1 (0x1), region = 67 }

// kernel: critic_forward.3
= control target key start
LH: loop header
LB: loop body
LE: loop exit
PB: predicated region body
PF: predicated region fallthrough
CT: control target
= control target key end

     0   :  { %vm1137_vm0 = vcmask 523264   ;;  %vm3941_vm1 = vmmov 0   ;;  %vm1396_vm2 = vcmask 1043456   ;;  %vm1392_vm3 = vcmask 326656   ;;  %s5054_s2 = inlined_call_operand.vmem [shape: bf16[512,64], index: 2, kind: input, shape index: {}]   ;;  %s5055_s0 = inlined_call_operand.vmem [shape: bf16[4,40,512], index: 0, kind: input, shape index: {}]   ;;  %s5056_s1 = inlined_call_operand.vmem [shape: bf16[16,512], index: 1, kind: input, shape index: {}]   ;;  %s5057_s3 = inlined_call_operand.vmem [shape: f32[3,64], index: 3, kind: input, shape index: {}]   ;;  %s5058_s4 = inlined_call_operand.vmem [shape: bf16[9,12,40], index: 4, kind: input, shape index: {}]   ;;  %s5059_s5 = inlined_call_operand.vmem [shape: bf16[9,64,64], index: 5, kind: input, shape index: {}]   ;;  %s5060_s7 = inlined_call_operand.vmem [shape: bf16[64,512], index: 7, kind: input, shape index: {}]   ;;  %s5061_s6 = inlined_call_operand.vmem [shape: f32[3,64], index: 6, kind: input, shape index: {}]   ;;  %s5062_s10 = inlined_call_operand.<no memory space> [shape: f32[1,1], index: 10, kind: input, shape index: {}]   ;;  %s5063_s8 = inlined_call_operand.vmem [shape: f32[1,512], index: 8, kind: input, shape index: {}]   ;;  %s5064_s9 = inlined_call_operand.vmem [shape: f32[1,512], index: 9, kind: input, shape index: {}]   ;;  %s5065_s11 = inlined_call_operand.vmem [shape: f32[2,1], index: 11, kind: output, shape index: {}]  }
   0x1   :  { %v4006_v0 = vld [vmem:[%s5054_s2 + $0x40] sm:$0xff]   ;;  %v4029_v4 = vld [vmem:[%s5054_s2 + $0x48] sm:$0xff]   ;;  %v4053_v8 = vld [vmem:[%s5054_s2 + $0x50] sm:$0xff]   ;;  %vm2581_vm4 = vcmask 519168   ;;  %vm2865_vm5 = vcmask 1041408   ;;  %vm2883_vm6 = vcmask 1024  }
   0x2   :  { %v4011_v1 = vld [vmem:[%s5054_s2 + $0xc0] sm:$0xff]   ;;  %3167 = vmatprep.subr.bf16.mxu0 %v4006_v0  ;;  %v4035_v5 = vld [vmem:[%s5054_s2 + $0xc8] sm:$0xff]   ;;  %v4059_v9 = vld [vmem:[%s5054_s2 + $0xd0] sm:$0xff]  }
   0x3   :  { %v4017_v2 = vld [vmem:[%s5054_s2] sm:$0xff]   ;;  %3201 = vmatprep.subr.bf16.mxu1 %v4011_v1  ;;  %v4041_v6 = vld [vmem:[%s5054_s2 + $0x8] sm:$0xff]   ;;  %v4065_v10 = vld [vmem:[%s5054_s2 + $0x10] sm:$0xff]  }
   0x4   :  { %v4023_v3 = vld [vmem:[%s5054_s2 + $0x80] sm:$0xff]   ;;  %3168 = vmatpush3.bf16.msra.mxu0 %v4017_v2  ;;  %v4047_v7 = vld [vmem:[%s5054_s2 + $0x88] sm:$0xff]   ;;  %v4071_v11 = vld [vmem:[%s5054_s2 + $0x90] sm:$0xff]  }
   0x5   :  { %3202 = vmatpush3.bf16.msra.mxu1 %v4023_v3  ;;  %3169 = vmatprep.subr.bf16.mxu0 %v4029_v4  ;;  %v4077_v12 = vld [vmem:[%s5054_s2 + $0x58] sm:$0xff]   ;;  %v4101_v16 = vld [vmem:[%s5054_s2 + $0x60] sm:$0xff]   ;;  %v4125_v20 = vld [vmem:[%s5054_s2 + $0x68] sm:$0xff]  }
   0x6   :  { %3203 = vmatprep.subr.bf16.mxu1 %v4035_v5  ;;  %v4083_v13 = vld [vmem:[%s5054_s2 + $0xd8] sm:$0xff]   ;;  %v4107_v17 = vld [vmem:[%s5054_s2 + $0xe0] sm:$0xff]   ;;  %v4131_v21 = vld [vmem:[%s5054_s2 + $0xe8] sm:$0xff]  }
   0x7   :  { %v4089_v14 = vld [vmem:[%s5054_s2 + $0x18] sm:$0xff]   ;;  %v4113_v18 = vld [vmem:[%s5054_s2 + $0x20] sm:$0xff]   ;;  %v4137_v22 = vld [vmem:[%s5054_s2 + $0x28] sm:$0xff]  }
   0x8   :  { %3170 = vmatpush3.bf16.msra.mxu0 %v4041_v6  ;;  %v4095_v15 = vld [vmem:[%s5054_s2 + $0x98] sm:$0xff]   ;;  %v4119_v19 = vld [vmem:[%s5054_s2 + $0xa0] sm:$0xff]   ;;  %v4143_v23 = vld [vmem:[%s5054_s2 + $0xa8] sm:$0xff]  }
   0x9   :  { %3204 = vmatpush3.bf16.msra.mxu1 %v4047_v7  ;;  %3171 = vmatprep.subr.bf16.mxu0 %v4053_v8  ;;  %v4149_v24 = vld [vmem:[%s5054_s2 + $0x70] sm:$0xff]   ;;  %v4173_v28 = vld [vmem:[%s5054_s2 + $0x78] sm:$0xff]   ;;  %v114_v39 = vld [vmem:[%s5055_s0 + $0x40] sm:$0xff] }
   0xa   :  { %3205 = vmatprep.subr.bf16.mxu1 %v4059_v9  ;;  %v4155_v25 = vld [vmem:[%s5054_s2 + $0xf0] sm:$0xff]   ;;  %v4179_v29 = vld [vmem:[%s5054_s2 + $0xf8] sm:$0xff]   ;;  %v115_v41 = vld [vmem:[%s5055_s0 + $0x48] sm:$0xff]  ;;  %v2899_v42 = vcombine.high %v114_v39, %v114_v39  ;;  %v2898_v44 = vcombine.low %v114_v39, %v114_v39 }
   0xb   :  { %v4161_v26 = vld [vmem:[%s5054_s2 + $0x30] sm:$0xff]   ;;  %v4185_v30 = vld [vmem:[%s5054_s2 + $0x38] sm:$0xff]   ;;  %v2901_v43 = vcombine.high %v115_v41, %v115_v41  ;;  %v2900_v45 = vcombine.low %v115_v41, %v115_v41 }
   0xc   :  { %3172 = vmatpush3.bf16.msra.mxu0 %v4065_v10  ;;  %v4167_v27 = vld [vmem:[%s5054_s2 + $0xb0] sm:$0xff]   ;;  %v4191_v31 = vld [vmem:[%s5054_s2 + $0xb8] sm:$0xff]  }
   0xd   :  { %3206 = vmatpush3.bf16.msra.mxu1 %v4071_v11  ;;  %3173 = vmatprep.subr.bf16.mxu0 %v4077_v12  ;;  %v3797_v32 = vld [vmem:[%s5055_s0] ss:$16 sps:$4 sm:$0xff]   ;;  %v3799_v33 = vld [vmem:[%s5055_s0 + $0x4] ss:$16 sps:$4 sm:$0xff]   ;;  %v3800_v34 = vld [vmem:[%s5055_s0 + $0x8] ss:$16 sps:$4 sm:$0xff]  }
   0xe   :  { %3207 = vmatprep.subr.bf16.mxu1 %v4083_v13  ;;  %v3802_v35 = vld [vmem:[%s5055_s0 + $0xc] ss:$16 sps:$4 sm:$0xff]   ;;  %398 = vmatprep.mubr.bf16.mxu0 %v3799_v33  ;;  %v3803_v36 = vld [vmem:[%s5055_s0 + $0x24] ss:$16 sps:$4 sm:$0xff]   ;;  %v3805_v38 = vld [vmem:[%s5055_s0 + $0x20] ss:$16 sps:$4 sm:$0xff]  }
   0xf   :  { %454 = vmatprep.mubr.bf16.mxu1 %v3802_v35  ;;  %v3806_v37 = vld [vmem:[%s5055_s0 + $0x2c] ss:$16 sps:$4 sm:$0xff]   ;;  %v3808_v40 = vld [vmem:[%s5055_s0 + $0x28] ss:$16 sps:$4 sm:$0xff]   ;;  %v3815_v46 = vld [vmem:[%s5055_s0 + $0x54] ss:$16 sps:$4 sm:$0xff]  }
  0x10   :  { %3174 = vmatpush3.bf16.msra.mxu0 %v4089_v14  ;;  %v3818_v47 = vld [vmem:[%s5055_s0 + $0x5c] ss:$16 sps:$4 sm:$0xff]   ;;  %v3813_v48 = vld [vmem:[%s5055_s0 + $0x50] ss:$16 sps:$4 sm:$0xff]   ;;  %v3816_v49 = vld [vmem:[%s5055_s0 + $0x58] ss:$16 sps:$4 sm:$0xff]  }
  0x11   :  { %3208 = vmatpush3.bf16.msra.mxu1 %v4095_v15  ;;  %3175 = vmatprep.subr.bf16.mxu0 %v4101_v16  ;;  %v3819_v50 = vld [vmem:[%s5055_s0 + $0x74] ss:$16 sps:$4 sm:$0xff]   ;;  %v3822_v51 = vld [vmem:[%s5055_s0 + $0x7c] ss:$16 sps:$4 sm:$0xff]   ;;  %v3821_v52 = vld [vmem:[%s5055_s0 + $0x70] ss:$16 sps:$4 sm:$0xff]  }
  0x12   :  { %3209 = vmatprep.subr.bf16.mxu1 %v4107_v17  ;;  %v2942_v53 = vld [vmem:[%s5055_s0 + $0x90] sm:$0xff]  ;;  %v3824_v54 = vld [vmem:[%s5055_s0 + $0x78] ss:$16 sps:$4 sm:$0xff]   ;;  %v3834_v61 = vld [vmem:[%s5055_s0 + $0xac] ss:$16 sps:$4 sm:$0xff]  }
  0x13   :  { %v2943_v55 = vld [vmem:[%s5055_s0 + $0x98] sm:$0xff]  ;;  %v2953_v56 = vcombine.high %v2942_v53, %v2942_v53  ;;  %v2952_v58 = vcombine.low %v2942_v53, %v2942_v53  ;;  %v3831_v60 = vld [vmem:[%s5055_s0 + $0xa4] ss:$16 sps:$4 sm:$0xff]   ;;  %v3829_v62 = vld [vmem:[%s5055_s0 + $0xa0] ss:$16 sps:$4 sm:$0xff]  }
  0x14   :  { %3176 = vmatpush3.bf16.msra.mxu0 %v4113_v18  ;;  %v2955_v57 = vcombine.high %v2943_v55, %v2943_v55  ;;  %v2954_v59 = vcombine.low %v2943_v55, %v2943_v55  ;;  %v3832_v63 = vld [vmem:[%s5055_s0 + $0xa8] ss:$16 sps:$4 sm:$0xff]   ;;  %v3838_v33 = vld [vmem:[%s5055_s0 + $0xcc] ss:$16 sps:$4 sm:$0xff]   ;;  %v2964_v35 = vld [vmem:[%s5055_s0 + $0xe0] sm:$0xff] }
  0x15   :  { %3210 = vmatpush3.bf16.msra.mxu1 %v4119_v19  ;;  %3177 = vmatprep.subr.bf16.mxu0 %v4125_v20 }
  0x16   :  { %3211 = vmatprep.subr.bf16.mxu1 %v4131_v21 }
  0x18   :  { %3178 = vmatpush3.bf16.msra.mxu0 %v4137_v22 }
  0x19   :  { %3212 = vmatpush3.bf16.msra.mxu1 %v4143_v23  ;;  %3179 = vmatprep.subr.bf16.mxu0 %v4149_v24 }
  0x1a   :  { %3213 = vmatprep.subr.bf16.mxu1 %v4155_v25 }
  0x1c   :  { %3180 = vmatpush3.bf16.msra.mxu0 %v4161_v26 }
  0x1d   :  { %3214 = vmatpush3.bf16.msra.mxu1 %v4167_v27  ;;  %3181 = vmatprep.subr.bf16.mxu0 %v4173_v28 }
  0x1e   :  { %3215 = vmatprep.subr.bf16.mxu1 %v4179_v29 }
  0x20   :  { %3182 = vmatpush3.bf16.msra.mxu0 %v4185_v30 }
  0x21   :  { %3216 = vmatpush3.bf16.msra.mxu1 %v4191_v31  ;;  %3235 = vmatprep.subr.bf16.mxu0 %v4006_v0 }
  0x22   :  { %3269 = vmatprep.subr.bf16.mxu1 %v4011_v1 }
  0x23   :  { %399 = vmatmul.mubr.bf16.vlgmr.msra.gmra.mrb[0].mxu0 %v3797_v32  ;;  %v3835_v32 = vld [vmem:[%s5055_s0 + $0xc4] ss:$16 sps:$4 sm:$0xff]  }
  0x24   :  { %455 = vmatmul.mubr.bf16.vlgmr.msra.gmra.mrb[0].mxu1 %v3800_v34  ;;  %3236 = vmatpush3.bf16.msra.mxu0 %v4017_v2  ;;  %v3837_v34 = vld [vmem:[%s5055_s0 + $0xc0] ss:$16 sps:$4 sm:$0xff]  }
  0x25   :  { %3270 = vmatpush3.bf16.msra.mxu1 %v4023_v3  ;;  %3237 = vmatprep.subr.bf16.mxu0 %v4029_v4 }
  0x26   :  { %3271 = vmatprep.subr.bf16.mxu1 %v4035_v5  ;;  %406 = vmatprep.mubr.bf16.mxu0 %v3803_v36  ;;  %v3840_v36 = vld [vmem:[%s5055_s0 + $0xc8] ss:$16 sps:$4 sm:$0xff]  }
  0x27   :  { %462 = vmatprep.mubr.bf16.mxu1 %v3806_v37  ;;  %v2965_v37 = vld [vmem:[%s5055_s0 + $0xe8] sm:$0xff] }
  0x28   :  { %3238 = vmatpush3.bf16.msra.mxu0 %v4041_v6  ;;  %v2977_v39 = vcombine.high %v2965_v37, %v2965_v37  ;;  %v2976_v41 = vcombine.low %v2965_v37, %v2965_v37 }
  0x29   :  { %3272 = vmatpush3.bf16.msra.mxu1 %v4047_v7  ;;  %3239 = vmatprep.subr.bf16.mxu0 %v4053_v8 }
  0x2a   :  { %3273 = vmatprep.subr.bf16.mxu1 %v4059_v9 }
  0x2b   :  { %407 = vmatmul.mubr.bf16.gmra.mrb[4].mxu0 %v3805_v38  ;;  %v2975_v38 = vcombine.high %v2964_v35, %v2964_v35 }
  0x2c   :  { %3240 = vmatpush3.bf16.msra.mxu0 %v4065_v10  ;;  %463 = vmatmul.mubr.bf16.gmra.mrb[4].mxu1 %v3808_v40  ;;  %v2974_v40 = vcombine.low %v2964_v35, %v2964_v35 }
  0x2d   :  { %3274 = vmatpush3.bf16.msra.mxu1 %v4071_v11  ;;  %3241 = vmatprep.subr.bf16.mxu0 %v4077_v12 }
  0x2e   :  { %3275 = vmatprep.subr.bf16.mxu1 %v4083_v13  ;;  %414 = vmatprep.mubr.bf16.mxu0 %v2899_v42  ;;  %v3847_v42 = vld [vmem:[%s5055_s0 + $0xf4] ss:$16 sps:$4 sm:$0xff]  }
  0x2f   :  { %470 = vmatprep.mubr.bf16.mxu1 %v2901_v43  ;;  %v3850_v43 = vld [vmem:[%s5055_s0 + $0xfc] ss:$16 sps:$4 sm:$0xff]  }
  0x30   :  { %3242 = vmatpush3.bf16.msra.mxu0 %v4089_v14 }
  0x31   :  { %3276 = vmatpush3.bf16.msra.mxu1 %v4095_v15  ;;  %3243 = vmatprep.subr.bf16.mxu0 %v4101_v16 }
  0x32   :  { %3277 = vmatprep.subr.bf16.mxu1 %v4107_v17 }
  0x33   :  { %415 = vmatmul.mubr.bf16.gmra.mrb[8].mxu0 %v2898_v44  ;;  %v3845_v44 = vld [vmem:[%s5055_s0 + $0xf0] ss:$16 sps:$4 sm:$0xff]  }
  0x34   :  { %3244 = vmatpush3.bf16.msra.mxu0 %v4113_v18  ;;  %471 = vmatmul.mubr.bf16.gmra.mrb[8].mxu1 %v2900_v45  ;;  %v3848_v45 = vld [vmem:[%s5055_s0 + $0xf8] ss:$16 sps:$4 sm:$0xff]  }
  0x35   :  { %3278 = vmatpush3.bf16.msra.mxu1 %v4119_v19  ;;  %3245 = vmatprep.subr.bf16.mxu0 %v4125_v20 }
  0x36   :  { %3279 = vmatprep.subr.bf16.mxu1 %v4131_v21  ;;  %580 = vmatprep.mubr.bf16.mxu0 %v3815_v46  ;;  %v3851_v46 = vld [vmem:[%s5055_s0 + $0x114] ss:$16 sps:$4 sm:$0xff]  }
  0x37   :  { %636 = vmatprep.mubr.bf16.mxu1 %v3818_v47  ;;  %v3854_v47 = vld [vmem:[%s5055_s0 + $0x11c] ss:$16 sps:$4 sm:$0xff]  }
  0x38   :  { %3246 = vmatpush3.bf16.msra.mxu0 %v4137_v22 }
  0x39   :  { %3280 = vmatpush3.bf16.msra.mxu1 %v4143_v23  ;;  %3247 = vmatprep.subr.bf16.mxu0 %v4149_v24 }
  0x3a   :  { %3281 = vmatprep.subr.bf16.mxu1 %v4155_v25 }
  0x3c   :  { %3248 = vmatpush3.bf16.msra.mxu0 %v4161_v26 }
  0x3d   :  { %3282 = vmatpush3.bf16.msra.mxu1 %v4167_v27  ;;  %3249 = vmatprep.subr.bf16.mxu0 %v4173_v28 }
  0x3e   :  { %3283 = vmatprep.subr.bf16.mxu1 %v4179_v29 }
  0x40   :  { %3250 = vmatpush3.bf16.msra.mxu0 %v4185_v30 }
  0x41   :  { %3284 = vmatpush3.bf16.msra.mxu1 %v4191_v31  ;;  %3303 = vmatprep.subr.bf16.mxu0 %v4006_v0 }
  0x42   :  { %3337 = vmatprep.subr.bf16.mxu1 %v4011_v1 }
  0x43   :  { %581 = vmatmul.mubr.bf16.vlgmr.msra.gmra.mrb[12].mxu0 %v3813_v48 }
  0x44   :  { %637 = vmatmul.mubr.bf16.vlgmr.msra.gmra.mrb[12].mxu1 %v3816_v49  ;;  %3304 = vmatpush3.bf16.msra.mxu0 %v4017_v2 }
  0x45   :  { %3338 = vmatpush3.bf16.msra.mxu1 %v4023_v3  ;;  %3305 = vmatprep.subr.bf16.mxu0 %v4029_v4 }
  0x46   :  { %3339 = vmatprep.subr.bf16.mxu1 %v4035_v5  ;;  %588 = vmatprep.mubr.bf16.mxu0 %v3819_v50 }
  0x47   :  { %644 = vmatprep.mubr.bf16.mxu1 %v3822_v51 }
  0x48   :  { %3306 = vmatpush3.bf16.msra.mxu0 %v4041_v6 }
  0x49   :  { %3340 = vmatpush3.bf16.msra.mxu1 %v4047_v7  ;;  %3307 = vmatprep.subr.bf16.mxu0 %v4053_v8 }
  0x4a   :  { %3341 = vmatprep.subr.bf16.mxu1 %v4059_v9 }
  0x4b   :  { %589 = vmatmul.mubr.bf16.gmra.mrb[16].mxu0 %v3821_v52 }
  0x4c   :  { %3308 = vmatpush3.bf16.msra.mxu0 %v4065_v10  ;;  %645 = vmatmul.mubr.bf16.gmra.mrb[16].mxu1 %v3824_v54 }
  0x4d   :  { %3342 = vmatpush3.bf16.msra.mxu1 %v4071_v11  ;;  %3309 = vmatprep.subr.bf16.mxu0 %v4077_v12 }
  0x4e   :  { %3343 = vmatprep.subr.bf16.mxu1 %v4083_v13  ;;  %596 = vmatprep.mubr.bf16.mxu0 %v2953_v56 }
  0x4f   :  { %652 = vmatprep.mubr.bf16.mxu1 %v2955_v57 }
  0x50   :  { %3310 = vmatpush3.bf16.msra.mxu0 %v4089_v14 }
  0x51   :  { %3344 = vmatpush3.bf16.msra.mxu1 %v4095_v15  ;;  %3311 = vmatprep.subr.bf16.mxu0 %v4101_v16 }
  0x52   :  { %3345 = vmatprep.subr.bf16.mxu1 %v4107_v17 }
  0x53   :  { %597 = vmatmul.mubr.bf16.gmra.mrb[20].mxu0 %v2952_v58 }
  0x54   :  { %3312 = vmatpush3.bf16.msra.mxu0 %v4113_v18  ;;  %653 = vmatmul.mubr.bf16.gmra.mrb[20].mxu1 %v2954_v59 }
  0x55   :  { %3346 = vmatpush3.bf16.msra.mxu1 %v4119_v19  ;;  %3313 = vmatprep.subr.bf16.mxu0 %v4125_v20 }
  0x56   :  { %3347 = vmatprep.subr.bf16.mxu1 %v4131_v21  ;;  %762 = vmatprep.mubr.bf16.mxu0 %v3831_v60 }
  0x57   :  { %818 = vmatprep.mubr.bf16.mxu1 %v3834_v61 }
  0x58   :  { %3314 = vmatpush3.bf16.msra.mxu0 %v4137_v22 }
  0x59   :  { %3348 = vmatpush3.bf16.msra.mxu1 %v4143_v23  ;;  %3315 = vmatprep.subr.bf16.mxu0 %v4149_v24 }
  0x5a   :  { %3349 = vmatprep.subr.bf16.mxu1 %v4155_v25 }
  0x5c   :  { %3316 = vmatpush3.bf16.msra.mxu0 %v4161_v26 }
  0x5d   :  { %3350 = vmatpush3.bf16.msra.mxu1 %v4167_v27  ;;  %3317 = vmatprep.subr.bf16.mxu0 %v4173_v28 }
  0x5e   :  { %3351 = vmatprep.subr.bf16.mxu1 %v4179_v29 }
  0x60   :  { %3318 = vmatpush3.bf16.msra.mxu0 %v4185_v30 }
  0x61   :  { %3352 = vmatpush3.bf16.msra.mxu1 %v4191_v31  ;;  %3371 = vmatprep.subr.bf16.mxu0 %v4006_v0 }
  0x62   :  { %3405 = vmatprep.subr.bf16.mxu1 %v4011_v1 }
  0x63   :  { %763 = vmatmul.mubr.bf16.vlgmr.msra.gmra.mrb[24].mxu0 %v3829_v62 }
  0x64   :  { %819 = vmatmul.mubr.bf16.vlgmr.msra.gmra.mrb[24].mxu1 %v3832_v63  ;;  %3372 = vmatpush3.bf16.msra.mxu0 %v4017_v2 }
  0x65   :  { %3406 = vmatpush3.bf16.msra.mxu1 %v4023_v3  ;;  %3373 = vmatprep.subr.bf16.mxu0 %v4029_v4 }
  0x66   :  { %3407 = vmatprep.subr.bf16.mxu1 %v4035_v5  ;;  %770 = vmatprep.mubr.bf16.mxu0 %v3835_v32 }
  0x67   :  { %826 = vmatprep.mubr.bf16.mxu1 %v3838_v33 }
  0x68   :  { %3374 = vmatpush3.bf16.msra.mxu0 %v4041_v6 }
  0x69   :  { %3408 = vmatpush3.bf16.msra.mxu1 %v4047_v7  ;;  %3375 = vmatprep.subr.bf16.mxu0 %v4053_v8 }
  0x6a   :  { %3409 = vmatprep.subr.bf16.mxu1 %v4059_v9 }
  0x6b   :  { %771 = vmatmul.mubr.bf16.gmra.mrb[28].mxu0 %v3837_v34 }
  0x6c   :  { %3376 = vmatpush3.bf16.msra.mxu0 %v4065_v10  ;;  %827 = vmatmul.mubr.bf16.gmra.mrb[28].mxu1 %v3840_v36 }
  0x6d   :  { %3410 = vmatpush3.bf16.msra.mxu1 %v4071_v11  ;;  %3377 = vmatprep.subr.bf16.mxu0 %v4077_v12 }
  0x6e   :  { %3411 = vmatprep.subr.bf16.mxu1 %v4083_v13  ;;  %778 = vmatprep.mubr.bf16.mxu0 %v2975_v38 }
  0x6f   :  { %834 = vmatprep.mubr.bf16.mxu1 %v2977_v39 }
  0x70   :  { %3378 = vmatpush3.bf16.msra.mxu0 %v4089_v14 }
  0x71   :  { %3412 = vmatpush3.bf16.msra.mxu1 %v4095_v15  ;;  %3379 = vmatprep.subr.bf16.mxu0 %v4101_v16 }
  0x72   :  { %3413 = vmatprep.subr.bf16.mxu1 %v4107_v17 }
  0x73   :  { %779 = vmatmul.mubr.bf16.gmra.mrb[32].mxu0 %v2974_v40 }
  0x74   :  { %3380 = vmatpush3.bf16.msra.mxu0 %v4113_v18  ;;  %835 = vmatmul.mubr.bf16.gmra.mrb[32].mxu1 %v2976_v41 }
  0x75   :  { %3414 = vmatpush3.bf16.msra.mxu1 %v4119_v19  ;;  %3381 = vmatprep.subr.bf16.mxu0 %v4125_v20 }
  0x76   :  { %3415 = vmatprep.subr.bf16.mxu1 %v4131_v21  ;;  %944 = vmatprep.mubr.bf16.mxu0 %v3847_v42 }
  0x77   :  { %1000 = vmatprep.mubr.bf16.mxu1 %v3850_v43 }
  0x78   :  { %3382 = vmatpush3.bf16.msra.mxu0 %v4137_v22 }
  0x79   :  { %3416 = vmatpush3.bf16.msra.mxu1 %v4143_v23  ;;  %3383 = vmatprep.subr.bf16.mxu0 %v4149_v24 }
  0x7a   :  { %3417 = vmatprep.subr.bf16.mxu1 %v4155_v25 }
  0x7c   :  { %3384 = vmatpush3.bf16.msra.mxu0 %v4161_v26 }
  0x7d   :  { %3418 = vmatpush3.bf16.msra.mxu1 %v4167_v27  ;;  %3385 = vmatprep.subr.bf16.mxu0 %v4173_v28 }
  0x7e   :  { %3419 = vmatprep.subr.bf16.mxu1 %v4179_v29 }
  0x80   :  { %3386 = vmatpush3.bf16.msra.mxu0 %v4185_v30 }
  0x81   :  { %3420 = vmatpush3.bf16.msra.mxu1 %v4191_v31  ;;  %3439 = vmatprep.subr.bf16.mxu0 %v4006_v0  ;;  %v3853_v0 = vld [vmem:[%s5055_s0 + $0x110] ss:$16 sps:$4 sm:$0xff]  }
  0x82   :  { %3461 = vmatprep.subr.bf16.mxu1 %v4011_v1  ;;  %v2986_v1 = vld [vmem:[%s5055_s0 + $0x130] sm:$0xff] }
  0x83   :  { %945 = vmatmul.mubr.bf16.vlgmr.msra.gmra.mrb[36].mxu0 %v3845_v44 }
  0x84   :  { %1001 = vmatmul.mubr.bf16.vlgmr.msra.gmra.mrb[36].mxu1 %v3848_v45  ;;  %3440 = vmatpush3.bf16.msra.mxu0 %v4017_v2  ;;  %v3856_v2 = vld [vmem:[%s5055_s0 + $0x118] ss:$16 sps:$4 sm:$0xff]  }
  0x85   :  { %3462 = vmatpush3.bf16.msra.mxu1 %v4023_v3  ;;  %3441 = vmatprep.subr.bf16.mxu0 %v4029_v4  ;;  %v2987_v3 = vld [vmem:[%s5055_s0 + $0x138] sm:$0xff]  ;;  %v2997_v4 = vcombine.high %v2986_v1, %v2986_v1 }
  0x86   :  { %3463 = vmatprep.subr.bf16.mxu1 %v4035_v5  ;;  %952 = vmatprep.mubr.bf16.mxu0 %v3851_v46  ;;  %v2999_v5 = vcombine.high %v2987_v3, %v2987_v3 }
  0x87   :  { %1008 = vmatprep.mubr.bf16.mxu1 %v3854_v47 }
  0x88   :  { %3442 = vmatpush3.bf16.msra.mxu0 %v4041_v6  ;;  %v2996_v6 = vcombine.low %v2986_v1, %v2986_v1 }
  0x89   :  { %3464 = vmatpush3.bf16.msra.mxu1 %v4047_v7  ;;  %3443 = vmatprep.subr.bf16.mxu0 %v4053_v8  ;;  %v2998_v7 = vcombine.low %v2987_v3, %v2987_v3  ;;  %v3863_v8 = vld [vmem:[%s5056_s1 + $0x4] ss:$16 sps:$4 sm:$0xff]  }
  0x8a   :  { %3465 = vmatprep.subr.bf16.mxu1 %v4059_v9  ;;  %v3866_v9 = vld [vmem:[%s5056_s1 + $0xc] ss:$16 sps:$4 sm:$0xff]  }
  0x8b   :  { %953 = vmatmul.mubr.bf16.gmra.mrb[40].mxu0 %v3853_v0 }
  0x8c   :  { %3444 = vmatpush3.bf16.msra.mxu0 %v4065_v10  ;;  %1009 = vmatmul.mubr.bf16.gmra.mrb[40].mxu1 %v3856_v2  ;;  %v3861_v10 = vld [vmem:[%s5056_s1] ss:$16 sps:$4 sm:$0xff]  }
  0x8d   :  { %3466 = vmatpush3.bf16.msra.mxu1 %v4071_v11  ;;  %3445 = vmatprep.subr.bf16.mxu0 %v4077_v12  ;;  %v3864_v11 = vld [vmem:[%s5056_s1 + $0x8] ss:$16 sps:$4 sm:$0xff]  }
  0x8e   :  { %3467 = vmatprep.subr.bf16.mxu1 %v4083_v13  ;;  %960 = vmatprep.mubr.bf16.mxu0 %v2997_v4 }
  0x8f   :  { %1016 = vmatprep.mubr.bf16.mxu1 %v2999_v5 }
  0x90   :  { %3446 = vmatpush3.bf16.msra.mxu0 %v4089_v14  ;;  %v4458_v14 = vld [vmem:[%s5057_s3] ss:$0 sm:$0xff] }
  0x91   :  { %3468 = vmatpush3.bf16.msra.mxu1 %v4095_v15  ;;  %3447 = vmatprep.subr.bf16.mxu0 %v4101_v16 }
  0x92   :  { %3469 = vmatprep.subr.bf16.mxu1 %v4107_v17 }
  0x93   :  { %961 = vmatmul.mubr.bf16.gmra.mrb[44].mxu0 %v2996_v6 }
  0x94   :  { %3448 = vmatpush3.bf16.msra.mxu0 %v4113_v18  ;;  %1017 = vmatmul.mubr.bf16.gmra.mrb[44].mxu1 %v2998_v7 }
  0x95   :  { %3470 = vmatpush3.bf16.msra.mxu1 %v4119_v19  ;;  %3449 = vmatprep.subr.bf16.mxu0 %v4125_v20 }
  0x96   :  { %3471 = vmatprep.subr.bf16.mxu1 %v4131_v21  ;;  %1085 = vmatprep.mubr.bf16.mxu0 %v3863_v8 }
  0x97   :  { %1126 = vmatprep.mubr.bf16.mxu1 %v3866_v9 }
  0x98   :  { %3450 = vmatpush3.bf16.msra.mxu0 %v4137_v22 }
  0x99   :  { %3472 = vmatpush3.bf16.msra.mxu1 %v4143_v23  ;;  %3451 = vmatprep.subr.bf16.mxu0 %v4149_v24 }
  0x9a   :  { %3473 = vmatprep.subr.bf16.mxu1 %v4155_v25 }
  0x9c   :  { %3452 = vmatpush3.bf16.msra.mxu0 %v4161_v26 }
  0x9d   :  { %3474 = vmatpush3.bf16.msra.mxu1 %v4167_v27  ;;  %3453 = vmatprep.subr.bf16.mxu0 %v4173_v28 }
  0x9e   :  { %3475 = vmatprep.subr.bf16.mxu1 %v4179_v29 }
  0xa0   :  { %3454 = vmatpush3.bf16.msra.mxu0 %v4185_v30 }
  0xa1   :  { %3476 = vmatpush3.bf16.msra.mxu1 %v4191_v31 }
  0xa3   :  { %1086 = vmatmul.mubr.bf16.vlgmr.msra.gmra.mrb[48].mxu0 %v3861_v10 }
  0xa4   :  { %1127 = vmatmul.mubr.bf16.vlgmr.msra.gmra.mrb[48].mxu1 %v3864_v11 }
  0xf6   :  { %v3183_v12 = vpop.f32.mrb[0].mxu0 }
  0xf7   :  { %v3217_v13 = vpop.f32.mrb[0].mxu1  ;;  %v3184_v15 = vpop.f32.mrb[1].mxu0 }
  0xf8   :  { %v3185_v16 = vadd.f32 %v3184_v15, %v3183_v12  ;;  %v3218_v17 = vpop.f32.mrb[1].mxu1  ;;  %v3186_v18 = vpop.f32.mrb[2].mxu0 }
  0xf9   :  { %v3219_v19 = vadd.f32 %v3218_v17, %v3217_v13  ;;  %v3220_v20 = vpop.f32.mrb[2].mxu1  ;;  %v3187_v21 = vpop.f32.mrb[3].mxu0 }
  0xfa   :  { %v401_v22 = vadd.f32 %v3185_v16, %v4458_v14  ;;  %v3188_v23 = vadd.f32 %v3187_v21, %v3186_v18  ;;  %v3221_v24 = vpop.f32.mrb[3].mxu1 }
  0xfb   :  { %v3222_v25 = vadd.f32 %v3221_v24, %v3220_v20 }
  0xfc   :  { %v457_v26 = vadd.f32 %v3219_v19, %v401_v22  ;;  %v404_v27 = vadd.f32 %v3188_v23, %v4458_v14 }
  0xfe   :  { %v4462_v28 = vmax.f32 %v457_v26, 0.0  ;;  %v460_v29 = vadd.f32 %v3222_v25, %v404_v27  ;;  %v3189_v30 = vpop.f32.mrb[4].mxu0 }
  0xff   :  { %v3190_v31 = vpop.f32.mrb[5].mxu0  ;;  %v3223_v48 = vpop.f32.mrb[4].mxu1 }
 0x100   :  { %v1174_v49 = vmul.f32 %v4462_v28, %v4462_v28  ;;  %v4466_v50 = vmax.f32 %v460_v29, 0.0  ;;  %v3191_v51 = vadd.f32 %v3190_v31, %v3189_v30  ;;  %v3192_v52 = vpop.f32.mrb[6].mxu0  ;;  %v3224_v53 = vpop.f32.mrb[5].mxu1  ;;  %v1158_v57 = vsel %vm1137_vm0, %v4462_v28, 0.0 }
 0x101   :  { %v3193_v54 = vpop.f32.mrb[7].mxu0  ;;  %v3225_v55 = vadd.f32 %v3224_v53, %v3223_v48  ;;  %v3226_v56 = vpop.f32.mrb[6].mxu1 }
 0x102   :  { %v1159_v58 = vsel %vm1137_vm0, %v4466_v50, 0.0  ;;  %v1175_v59 = vmul.f32 %v4466_v50, %v4466_v50  ;;  %v409_v60 = vadd.f32 %v3191_v51, %v4458_v14  ;;  %v3227_v61 = vpop.f32.mrb[7].mxu1  ;;  %v3194_v63 = vadd.f32 %v3193_v54, %v3192_v52 }
 0x103   :  { %v1160_v62 = vadd.f32 %v1159_v58, %v1158_v57  ;;  %v3228_v32 = vadd.f32 %v3227_v61, %v3226_v56  ;;  %v1179_v33 = vsel %vm1137_vm0, %v1174_v49, 0.0 }
 0x104   :  { %v1180_v34 = vsel %vm1137_vm0, %v1175_v59, 0.0  ;;  %v465_v35 = vadd.f32 %v3225_v55, %v409_v60  ;;  %v412_v37 = vadd.f32 %v3194_v63, %v4458_v14 }
 0x105   :  { %v1181_v36 = vadd.f32 %v1180_v34, %v1179_v33 }
 0x106   :  { %v4478_v38 = vmax.f32 %v465_v35, 0.0  ;;  %v3195_v39 = vpop.f32.mrb[8].mxu0  ;;  %v468_v40 = vadd.f32 %v3228_v32, %v412_v37 }
 0x107   :  { %v3196_v41 = vpop.f32.mrb[9].mxu0  ;;  %v3229_v42 = vpop.f32.mrb[8].mxu1 }
 0x108   :  { %v1161_v43 = vsel %vm1137_vm0, %v4478_v38, 0.0  ;;  %v1176_v44 = vmul.f32 %v4478_v38, %v4478_v38  ;;  %v3197_v45 = vadd.f32 %v3196_v41, %v3195_v39  ;;  %v3230_v46 = vpop.f32.mrb[9].mxu1  ;;  %v3198_v47 = vpop.f32.mrb[10].mxu0  ;;  %v4484_v1 = vmax.f32 %v468_v40, 0.0 }
 0x109   :  { %v1162_v0 = vadd.f32 %v1161_v43, %v1160_v62  ;;  %v3231_v2 = vadd.f32 %v3230_v46, %v3229_v42  ;;  %v3199_v3 = vpop.f32.mrb[11].mxu0  ;;  %v3232_v4 = vpop.f32.mrb[10].mxu1 }
 0x10a   :  { %v1182_v5 = vsel %vm1137_vm0, %v1176_v44, 0.0  ;;  %v417_v6 = vadd.f32 %v3197_v45, %v4458_v14  ;;  %v3233_v7 = vpop.f32.mrb[11].mxu1  ;;  %v1163_v9 = vsel %vm1137_vm0, %v4484_v1, 0.0  ;;  %v1177_v10 = vmul.f32 %v4484_v1, %v4484_v1 }
 0x10b   :  { %v1183_v8 = vadd.f32 %v1182_v5, %v1181_v36  ;;  %v1164_v11 = vadd.f32 %v1163_v9, %v1162_v0 }
 0x10c   :  { %v473_v12 = vadd.f32 %v3231_v2, %v417_v6  ;;  %v1184_v13 = vsel %vm1137_vm0, %v1177_v10, 0.0 }
 0x10d   :  { %v1185_v15 = vadd.f32 %v1184_v13, %v1183_v8 }
 0x10e   :  { %v4493_v16 = vmax.f32 %v473_v12, 0.0 }
 0x110   :  { %v1165_v17 = vsel %vm1137_vm0, %v4493_v16, 0.0  ;;  %v1178_v18 = vmul.f32 %v4493_v16, %v4493_v16 }
 0x111   :  { %v4499_v19 = vadd.f32 %v1165_v17, %v1164_v11 }
 0x112   :  { %v1186_v20 = vsel %vm1137_vm0, %v1178_v18, 0.0 }
 0x113   :  { %v4502_v21 = vadd.f32 %v1186_v20, %v1185_v15 }
 0x116   :  { %v3251_v22 = vpop.f32.mrb[12].mxu0 }
 0x117   :  { %v3285_v23 = vpop.f32.mrb[12].mxu1  ;;  %v3252_v24 = vpop.f32.mrb[13].mxu0 }
 0x118   :  { %v3253_v25 = vadd.f32 %v3252_v24, %v3251_v22  ;;  %v3286_v26 = vpop.f32.mrb[13].mxu1  ;;  %v3254_v27 = vpop.f32.mrb[14].mxu0 }
 0x119   :  { %v3287_v29 = vadd.f32 %v3286_v26, %v3285_v23  ;;  %v3288_v30 = vpop.f32.mrb[14].mxu1  ;;  %v3255_v31 = vpop.f32.mrb[15].mxu0 }
 0x11a   :  { %v583_v48 = vadd.f32 %v3253_v25, %v4458_v14  ;;  %v3256_v49 = vadd.f32 %v3255_v31, %v3254_v27  ;;  %v3289_v51 = vpop.f32.mrb[15].mxu1 }
 0x11b   :  { %v3290_v52 = vadd.f32 %v3289_v51, %v3288_v30 }
 0x11c   :  { %v639_v53 = vadd.f32 %v3287_v29, %v583_v48  ;;  %v586_v54 = vadd.f32 %v3256_v49, %v4458_v14 }
 0x11e   :  { %v4506_v55 = vmax.f32 %v639_v53, 0.0  ;;  %v642_v56 = vadd.f32 %v3290_v52, %v586_v54  ;;  %v3257_v57 = vpop.f32.mrb[16].mxu0 }
 0x11f   :  { %v3258_v58 = vpop.f32.mrb[17].mxu0  ;;  %v3291_v59 = vpop.f32.mrb[16].mxu1 }
 0x120   :  { %v1211_v60 = vmul.f32 %v4506_v55, %v4506_v55  ;;  %v4510_v61 = vmax.f32 %v642_v56, 0.0  ;;  %v3259_v62 = vadd.f32 %v3258_v58, %v3257_v57  ;;  %v3260_v63 = vpop.f32.mrb[18].mxu0  ;;  %v3292_v32 = vpop.f32.mrb[17].mxu1  ;;  %v1195_v36 = vsel %vm1137_vm0, %v4506_v55, 0.0 }
 0x121   :  { %v3261_v33 = vpop.f32.mrb[19].mxu0  ;;  %v3293_v34 = vadd.f32 %v3292_v32, %v3291_v59  ;;  %v3294_v35 = vpop.f32.mrb[18].mxu1  ;;  %v3940_v57 = vmov 0.0  }
 0x122   :  { %v1196_v37 = vsel %vm1137_vm0, %v4510_v61, 0.0  ;;  %v1212_v39 = vmul.f32 %v4510_v61, %v4510_v61  ;;  %v591_v40 = vadd.f32 %v3259_v62, %v4458_v14  ;;  %v3295_v41 = vpop.f32.mrb[19].mxu1  ;;  %v3262_v43 = vadd.f32 %v3261_v33, %v3260_v63  ;;  %3564 = vmatprep.subr.bf16.mxu0 %v3940_v57  ;;  %3574 = vmatprep.subr.bf16.mxu1 %v3940_v57 }
 0x123   :  { %v1197_v42 = vadd.f32 %v1196_v37, %v1195_v36  ;;  %v3296_v44 = vadd.f32 %v3295_v41, %v3294_v35  ;;  %v1216_v45 = vsel %vm1137_vm0, %v1211_v60, 0.0  ;;  %3570 = vmatprep.mubr.msk.bf16.mxu0 %vm3941_vm1, %v3940_v57  ;;  %3580 = vmatprep.mubr.msk.bf16.mxu1 %vm3941_vm1, %v3940_v57 }
 0x124   :  { %v1217_v46 = vsel %vm1137_vm0, %v1212_v39, 0.0  ;;  %v647_v47 = vadd.f32 %v3293_v34, %v591_v40  ;;  %v594_v2 = vadd.f32 %v3262_v43, %v4458_v14 }
 0x125   :  { %v1218_v0 = vadd.f32 %v1217_v46, %v1216_v45 }
 0x126   :  { %v4522_v3 = vmax.f32 %v647_v47, 0.0  ;;  %v3263_v4 = vpop.f32.mrb[20].mxu0  ;;  %v650_v5 = vadd.f32 %v3296_v44, %v594_v2 }
 0x127   :  { %v3264_v6 = vpop.f32.mrb[21].mxu0  ;;  %v3297_v7 = vpop.f32.mrb[20].mxu1 }
 0x128   :  { %v1198_v8 = vsel %vm1137_vm0, %v4522_v3, 0.0  ;;  %v1213_v9 = vmul.f32 %v4522_v3, %v4522_v3  ;;  %v3265_v10 = vadd.f32 %v3264_v6, %v3263_v4  ;;  %v3298_v11 = vpop.f32.mrb[21].mxu1  ;;  %v3266_v12 = vpop.f32.mrb[22].mxu0  ;;  %v4528_v15 = vmax.f32 %v650_v5, 0.0 }
 0x129   :  { %v1199_v13 = vadd.f32 %v1198_v8, %v1197_v42  ;;  %v3299_v17 = vadd.f32 %v3298_v11, %v3297_v7  ;;  %v3267_v18 = vpop.f32.mrb[23].mxu0  ;;  %v3300_v20 = vpop.f32.mrb[22].mxu1 }
 0x12a   :  { %v1219_v22 = vsel %vm1137_vm0, %v1213_v9, 0.0  ;;  %v599_v23 = vadd.f32 %v3265_v10, %v4458_v14  ;;  %v3301_v24 = vpop.f32.mrb[23].mxu1  ;;  %v1200_v26 = vsel %vm1137_vm0, %v4528_v15, 0.0  ;;  %v1214_v27 = vmul.f32 %v4528_v15, %v4528_v15 }
 0x12b   :  { %v1220_v25 = vadd.f32 %v1219_v22, %v1218_v0  ;;  %v1201_v29 = vadd.f32 %v1200_v26, %v1199_v13 }
 0x12c   :  { %v655_v30 = vadd.f32 %v3299_v17, %v599_v23  ;;  %v1221_v31 = vsel %vm1137_vm0, %v1214_v27, 0.0 }
 0x12d   :  { %v1222_v48 = vadd.f32 %v1221_v31, %v1220_v25 }
 0x12e   :  { %v4537_v49 = vmax.f32 %v655_v30, 0.0 }
 0x130   :  { %v1202_v51 = vsel %vm1137_vm0, %v4537_v49, 0.0  ;;  %v1215_v52 = vmul.f32 %v4537_v49, %v4537_v49 }
 0x131   :  { %v4543_v53 = vadd.f32 %v1202_v51, %v1201_v29 }
 0x132   :  { %v1223_v54 = vsel %vm1137_vm0, %v1215_v52, 0.0 }
 0x133   :  { %v4546_v56 = vadd.f32 %v1223_v54, %v1222_v48 }
 0x136   :  { %v3319_v58 = vpop.f32.mrb[24].mxu0 }
 0x137   :  { %v3353_v59 = vpop.f32.mrb[24].mxu1  ;;  %v3320_v60 = vpop.f32.mrb[25].mxu0 }
 0x138   :  { %v3321_v62 = vadd.f32 %v3320_v60, %v3319_v58  ;;  %v3354_v63 = vpop.f32.mrb[25].mxu1  ;;  %v3322_v32 = vpop.f32.mrb[26].mxu0 }
 0x139   :  { %v3355_v33 = vadd.f32 %v3354_v63, %v3353_v59  ;;  %v3356_v34 = vpop.f32.mrb[26].mxu1  ;;  %v3323_v35 = vpop.f32.mrb[27].mxu0 }
 0x13a   :  { %v765_v36 = vadd.f32 %v3321_v62, %v4458_v14  ;;  %v3324_v37 = vadd.f32 %v3323_v35, %v3322_v32  ;;  %v3357_v39 = vpop.f32.mrb[27].mxu1 }
 0x13b   :  { %v3358_v40 = vadd.f32 %v3357_v39, %v3356_v34 }
 0x13c   :  { %v821_v41 = vadd.f32 %v3355_v33, %v765_v36  ;;  %v768_v42 = vadd.f32 %v3324_v37, %v4458_v14 }
 0x13e   :  { %v4552_v43 = vmax.f32 %v821_v41, 0.0  ;;  %v824_v44 = vadd.f32 %v3358_v40, %v768_v42  ;;  %v3325_v45 = vpop.f32.mrb[28].mxu0 }
 0x13f   :  { %v3326_v46 = vpop.f32.mrb[29].mxu0  ;;  %v3359_v47 = vpop.f32.mrb[28].mxu1 }
 0x140   :  { %v1248_v0 = vmul.f32 %v4552_v43, %v4552_v43  ;;  %v4556_v2 = vmax.f32 %v824_v44, 0.0  ;;  %v3327_v4 = vadd.f32 %v3326_v46, %v3325_v45  ;;  %v3328_v5 = vpop.f32.mrb[30].mxu0  ;;  %v3360_v6 = vpop.f32.mrb[29].mxu1  ;;  %v1232_v10 = vsel %vm1137_vm0, %v4552_v43, 0.0 }
 0x141   :  { %v3329_v7 = vpop.f32.mrb[31].mxu0  ;;  %v3361_v8 = vadd.f32 %v3360_v6, %v3359_v47  ;;  %v3362_v9 = vpop.f32.mrb[30].mxu1 }
 0x142   :  { %v1233_v11 = vsel %vm1137_vm0, %v4556_v2, 0.0  ;;  %v1249_v12 = vmul.f32 %v4556_v2, %v4556_v2  ;;  %v773_v13 = vadd.f32 %v3327_v4, %v4458_v14  ;;  %v3363_v17 = vpop.f32.mrb[31].mxu1  ;;  %v3330_v20 = vadd.f32 %v3329_v7, %v3328_v5 }
 0x143   :  { %v1234_v18 = vadd.f32 %v1233_v11, %v1232_v10  ;;  %v3364_v22 = vadd.f32 %v3363_v17, %v3362_v9  ;;  %v1253_v23 = vsel %vm1137_vm0, %v1248_v0, 0.0 }
 0x144   :  { %v1254_v24 = vsel %vm1137_vm0, %v1249_v12, 0.0  ;;  %v829_v25 = vadd.f32 %v3361_v8, %v773_v13  ;;  %v776_v27 = vadd.f32 %v3330_v20, %v4458_v14 }
 0x145   :  { %v1255_v26 = vadd.f32 %v1254_v24, %v1253_v23 }
 0x146   :  { %v4568_v29 = vmax.f32 %v829_v25, 0.0  ;;  %v3331_v30 = vpop.f32.mrb[32].mxu0  ;;  %v832_v31 = vadd.f32 %v3364_v22, %v776_v27 }
 0x147   :  { %v3332_v48 = vpop.f32.mrb[33].mxu0  ;;  %v3365_v51 = vpop.f32.mrb[32].mxu1 }
 0x148   :  { %v1235_v52 = vsel %vm1137_vm0, %v4568_v29, 0.0  ;;  %v1250_v54 = vmul.f32 %v4568_v29, %v4568_v29  ;;  %v3333_v58 = vadd.f32 %v3332_v48, %v3331_v30  ;;  %v3366_v59 = vpop.f32.mrb[33].mxu1  ;;  %v3334_v60 = vpop.f32.mrb[34].mxu0  ;;  %v4574_v63 = vmax.f32 %v832_v31, 0.0 }
 0x149   :  { %v1236_v62 = vadd.f32 %v1235_v52, %v1234_v18  ;;  %v3367_v32 = vadd.f32 %v3366_v59, %v3365_v51  ;;  %v3335_v33 = vpop.f32.mrb[35].mxu0  ;;  %v3368_v34 = vpop.f32.mrb[34].mxu1 }
 0x14a   :  { %v1256_v35 = vsel %vm1137_vm0, %v1250_v54, 0.0  ;;  %v781_v36 = vadd.f32 %v3333_v58, %v4458_v14  ;;  %v3369_v37 = vpop.f32.mrb[35].mxu1  ;;  %v1237_v40 = vsel %vm1137_vm0, %v4574_v63, 0.0  ;;  %v1251_v41 = vmul.f32 %v4574_v63, %v4574_v63 }
 0x14b   :  { %v1257_v39 = vadd.f32 %v1256_v35, %v1255_v26  ;;  %v1238_v42 = vadd.f32 %v1237_v40, %v1236_v62 }
 0x14c   :  { %v837_v44 = vadd.f32 %v3367_v32, %v781_v36  ;;  %v1258_v45 = vsel %vm1137_vm0, %v1251_v41, 0.0 }
 0x14d   :  { %v1259_v46 = vadd.f32 %v1258_v45, %v1257_v39 }
 0x14e   :  { %v4587_v47 = vmax.f32 %v837_v44, 0.0 }
 0x150   :  { %v1239_v0 = vsel %vm1137_vm0, %v4587_v47, 0.0  ;;  %v1252_v4 = vmul.f32 %v4587_v47, %v4587_v47 }
 0x151   :  { %v4593_v5 = vadd.f32 %v1239_v0, %v1238_v42 }
 0x152   :  { %v1260_v6 = vsel %vm1137_vm0, %v1252_v4, 0.0 }
 0x153   :  { %v4596_v7 = vadd.f32 %v1260_v6, %v1259_v46 }
 0x156   :  { %v3387_v8 = vpop.f32.mrb[36].mxu0 }
 0x157   :  { %v3421_v9 = vpop.f32.mrb[36].mxu1  ;;  %v3388_v10 = vpop.f32.mrb[37].mxu0 }
 0x158   :  { %v3389_v11 = vadd.f32 %v3388_v10, %v3387_v8  ;;  %v3422_v12 = vpop.f32.mrb[37].mxu1  ;;  %v3390_v13 = vpop.f32.mrb[38].mxu0 }
 0x159   :  { %v3423_v17 = vadd.f32 %v3422_v12, %v3421_v9  ;;  %v3424_v18 = vpop.f32.mrb[38].mxu1  ;;  %v3391_v20 = vpop.f32.mrb[39].mxu0 }
 0x15a   :  { %v947_v22 = vadd.f32 %v3389_v11, %v4458_v14  ;;  %v3392_v23 = vadd.f32 %v3391_v20, %v3390_v13  ;;  %v3425_v24 = vpop.f32.mrb[39].mxu1 }
 0x15b   :  { %v3426_v25 = vadd.f32 %v3425_v24, %v3424_v18 }
 0x15c   :  { %v1003_v26 = vadd.f32 %v3423_v17, %v947_v22  ;;  %v950_v27 = vadd.f32 %v3392_v23, %v4458_v14 }
 0x15e   :  { %v4600_v30 = vmax.f32 %v1003_v26, 0.0  ;;  %v1006_v31 = vadd.f32 %v3426_v25, %v950_v27  ;;  %v3393_v48 = vpop.f32.mrb[40].mxu0 }
 0x15f   :  { %v3394_v51 = vpop.f32.mrb[41].mxu0  ;;  %v3427_v52 = vpop.f32.mrb[40].mxu1 }
 0x160   :  { %v1285_v54 = vmul.f32 %v4600_v30, %v4600_v30  ;;  %v4604_v58 = vmax.f32 %v1006_v31, 0.0  ;;  %v3395_v59 = vadd.f32 %v3394_v51, %v3393_v48  ;;  %v3396_v60 = vpop.f32.mrb[42].mxu0  ;;  %v3428_v62 = vpop.f32.mrb[41].mxu1  ;;  %v1269_v35 = vsel %vm1137_vm0, %v4600_v30, 0.0 }
 0x161   :  { %v3397_v32 = vpop.f32.mrb[43].mxu0  ;;  %v3429_v33 = vadd.f32 %v3428_v62, %v3427_v52  ;;  %v3430_v34 = vpop.f32.mrb[42].mxu1 }
 0x162   :  { %v1270_v36 = vsel %vm1137_vm0, %v4604_v58, 0.0  ;;  %v1286_v37 = vmul.f32 %v4604_v58, %v4604_v58  ;;  %v955_v39 = vadd.f32 %v3395_v59, %v4458_v14  ;;  %v3431_v40 = vpop.f32.mrb[43].mxu1  ;;  %v3398_v42 = vadd.f32 %v3397_v32, %v3396_v60 }
 0x163   :  { %v1271_v41 = vadd.f32 %v1270_v36, %v1269_v35  ;;  %v3432_v44 = vadd.f32 %v3431_v40, %v3430_v34  ;;  %v1290_v45 = vsel %vm1137_vm0, %v1285_v54, 0.0 }
 0x164   :  { %v1291_v46 = vsel %vm1137_vm0, %v1286_v37, 0.0  ;;  %v1011_v0 = vadd.f32 %v3429_v33, %v955_v39  ;;  %v958_v6 = vadd.f32 %v3398_v42, %v4458_v14 }
 0x165   :  { %v1292_v4 = vadd.f32 %v1291_v46, %v1290_v45 }
 0x166   :  { %v4616_v8 = vmax.f32 %v1011_v0, 0.0  ;;  %v3399_v9 = vpop.f32.mrb[44].mxu0  ;;  %v1014_v10 = vadd.f32 %v3432_v44, %v958_v6 }
 0x167   :  { %v3400_v11 = vpop.f32.mrb[45].mxu0  ;;  %v3433_v12 = vpop.f32.mrb[44].mxu1 }
 0x168   :  { %v1272_v13 = vsel %vm1137_vm0, %v4616_v8, 0.0  ;;  %v1287_v17 = vmul.f32 %v4616_v8, %v4616_v8  ;;  %v3401_v18 = vadd.f32 %v3400_v11, %v3399_v9  ;;  %v3434_v20 = vpop.f32.mrb[45].mxu1  ;;  %v3402_v22 = vpop.f32.mrb[46].mxu0  ;;  %v4622_v24 = vmax.f32 %v1014_v10, 0.0 }
 0x169   :  { %v1273_v23 = vadd.f32 %v1272_v13, %v1271_v41  ;;  %v3435_v25 = vadd.f32 %v3434_v20, %v3433_v12  ;;  %v3403_v26 = vpop.f32.mrb[47].mxu0  ;;  %v3436_v27 = vpop.f32.mrb[46].mxu1  ;;  %v1204_v20 = vrot.slane %v4543_v53, 4 }
 0x16a   :  { %v1293_v31 = vsel %vm1137_vm0, %v1287_v17, 0.0  ;;  %v963_v48 = vadd.f32 %v3401_v18, %v4458_v14  ;;  %v3437_v51 = vpop.f32.mrb[47].mxu1  ;;  %v1274_v54 = vsel %vm1137_vm0, %v4622_v24, 0.0  ;;  %v1288_v59 = vmul.f32 %v4622_v24, %v4622_v24 }
 0x16b   :  { %v1294_v52 = vadd.f32 %v1293_v31, %v1292_v4  ;;  %v1275_v60 = vadd.f32 %v1274_v54, %v1273_v23  ;;  %v1167_v4 = vrot.slane %v4499_v19, 4  ;;  %v1188_v18 = vrot.slane %v4502_v21, 4 }
 0x16c   :  { %v1019_v62 = vadd.f32 %v3435_v25, %v963_v48  ;;  %v1295_v32 = vsel %vm1137_vm0, %v1288_v59, 0.0  ;;  %v1225_v26 = vrot.slane %v4546_v56, 4  ;;  %v1241_v48 = vrot.slane %v4593_v5, 4 }
 0x16d   :  { %v1296_v33 = vadd.f32 %v1295_v32, %v1294_v52  ;;  %v1168_v25 = vadd.f32 %v1167_v4, %v4499_v19  ;;  %v1189_v51 = vadd.f32 %v1188_v18, %v4502_v21  ;;  %v1205_v52 = vadd.f32 %v1204_v20, %v4543_v53 }
 0x16e   :  { %v4631_v34 = vmax.f32 %v1019_v62, 0.0  ;;  %v1262_v62 = vrot.slane %v4596_v7, 4 }
 0x16f   :  { %v1190_v21 = vrot.slane %v1189_v51, 2 }
 0x170   :  { %v1276_v35 = vsel %vm1137_vm0, %v4631_v34, 0.0  ;;  %v1289_v36 = vmul.f32 %v4631_v34, %v4631_v34 }
 0x171   :  { %v1277_v37 = vadd.f32 %v1276_v35, %v1275_v60  ;;  %v1169_v60 = vrot.slane %v1168_v25, 2 }
 0x172   :  { %v1297_v39 = vsel %vm1137_vm0, %v1289_v36, 0.0  ;;  %v1242_v36 = vadd.f32 %v1241_v48, %v4593_v5  ;;  %v1191_v5 = vadd.f32 %v1190_v21, %v1189_v51 }
 0x173   :  { %v1298_v40 = vadd.f32 %v1297_v39, %v1296_v33  ;;  %v1278_v32 = vrot.slane %v1277_v37, 4  ;;  %v1170_v4 = vadd.f32 %v1169_v60, %v1168_v25 }
 0x174   :  { %v1192_v48 = vrot.slane %v1191_v5, 1 }
 0x175   :  { %v1299_v39 = vrot.slane %v1298_v40, 4 }
 0x176   :  { %v3455_v41 = vpop.f32.mrb[48].mxu0 }
 0x177   :  { %v3477_v42 = vpop.f32.mrb[48].mxu1  ;;  %v3456_v44 = vpop.f32.mrb[49].mxu0 }
 0x178   :  { %v3457_v45 = vadd.f32 %v3456_v44, %v3455_v41  ;;  %v3478_v46 = vpop.f32.mrb[49].mxu1  ;;  %v3458_v0 = vpop.f32.mrb[50].mxu0 }
 0x179   :  { %v3479_v6 = vadd.f32 %v3478_v46, %v3477_v42  ;;  %v3480_v9 = vpop.f32.mrb[50].mxu1  ;;  %v3459_v10 = vpop.f32.mrb[51].mxu0  ;;  %v1206_v42 = vrot.slane %v1205_v52, 2  ;;  %v1279_v46 = vadd.f32 %v1278_v32, %v1277_v37 }
 0x17a   :  { %v1088_v11 = vadd.f32 %v3457_v45, %v4458_v14  ;;  %v3460_v12 = vadd.f32 %v3459_v10, %v3458_v0  ;;  %v3481_v13 = vpop.f32.mrb[51].mxu1  ;;  %v1263_v45 = vadd.f32 %v1262_v62, %v4596_v7  ;;  %v1300_v10 = vadd.f32 %v1299_v39, %v1298_v40 }
 0x17b   :  { %v3482_v17 = vadd.f32 %v3481_v13, %v3480_v9  ;;  %v1243_v9 = vrot.slane %v1242_v36, 2  ;;  %v1207_v13 = vadd.f32 %v1206_v42, %v1205_v52  ;;  %v1280_v18 = vrot.slane %v1279_v46, 2 }
 0x17c   :  { %v1129_v22 = vadd.f32 %v3479_v6, %v1088_v11  ;;  %v1091_v23 = vadd.f32 %v3460_v12, %v4458_v14  ;;  %v1226_v14 = vadd.f32 %v1225_v26, %v4546_v56 }
 0x17e   :  { %v1135_v27 = vmax.f32 %v1129_v22, 0.0  ;;  %v1132_v31 = vadd.f32 %v3482_v17, %v1091_v23  ;;  %v1227_v6 = vrot.slane %v1226_v14, 2  ;;  %v1264_v17 = vrot.slane %v1263_v45, 2 }
 0x17f   :  { %v1171_v23 = vrot.slane %v1170_v4, 1 }
 0x180   :  { %v1147_v54 = vmul.f32 %v1135_v27, %v1135_v27  ;;  %v1136_v59 = vmax.f32 %v1132_v31, 0.0  ;;  %v1138_v19 = vsel %vm1137_vm0, %v1135_v27, 0.0  ;;  %v1228_v26 = vadd.f32 %v1227_v6, %v1226_v14 }
 0x181   :  { %v1244_v27 = vadd.f32 %v1243_v9, %v1242_v36  ;;  %v1301_v31 = vrot.slane %v1300_v10, 2  ;;  %v1265_v25 = vadd.f32 %v1264_v17, %v1263_v45  ;;  %v1172_v62 = vadd.f32 %v1171_v23, %v1170_v4 }
 0x182   :  { %v1139_v33 = vsel %vm1137_vm0, %v1136_v59, 0.0  ;;  %v1148_v35 = vmul.f32 %v1136_v59, %v1136_v59  ;;  %v1149_v53 = vsel %vm1137_vm0, %v1147_v54, 0.0  ;;  %v1208_v54 = vrot.slane %v1207_v13, 1 }
 0x183   :  { %v1140_v41 = vadd.f32 %v1139_v33, %v1138_v19  ;;  %v1281_v59 = vadd.f32 %v1280_v18, %v1279_v46  ;;  %v1229_v32 = vrot.slane %v1228_v26, 1  ;;  %v1245_v51 = vrot.slane %v1244_v27, 1 }
 0x184   :  { %v1150_v44 = vsel %vm1137_vm0, %v1148_v35, 0.0  ;;  %v1302_v52 = vadd.f32 %v1301_v31, %v1300_v10  ;;  %v1193_v35 = vadd.f32 %v1192_v48, %v1191_v5  ;;  %v1209_v39 = vadd.f32 %v1208_v54, %v1207_v13  ;;  %v1315_v48 = vld [vmem:[%s5057_s3 + $0x2] sm:$0x1] }
 0x185   :  { %v1141_v0 = vrot.slane %v1140_v41, 4  ;;  %v1151_v56 = vadd.f32 %v1150_v44, %v1149_v53  ;;  %v1282_v14 = vrot.slane %v1281_v59, 1  ;;  %v1230_v42 = vadd.f32 %v1229_v32, %v1228_v26 }
 0x186   :  { %v1246_v53 = vadd.f32 %v1245_v51, %v1244_v27  ;;  %v1303_v44 = vrot.slane %v1302_v52, 1  ;;  %v1318_v23 = vlaneseq  ;;  %v1311_v27 = vld [vmem:[%s5057_s3 + $0x1] sm:$0x1] }
 0x187   :  { %v1142_v11 = vadd.f32 %v1141_v0, %v1140_v41  ;;  %v1152_v12 = vrot.slane %v1151_v56, 4  ;;  %v1266_v41 = vrot.slane %v1265_v25, 1 }
 0x188   :  { %v1304_v9 = vadd.f32 %v1303_v44, %v1302_v52  ;;  %v4656_v26 = vshrl.u32 %v1318_v23, 7 }
 0x189   :  { %v1143_v20 = vrot.slane %v1142_v11, 2  ;;  %v1153_v22 = vadd.f32 %v1152_v12, %v1151_v56  ;;  %v1267_v46 = vadd.f32 %v1266_v41, %v1265_v25  ;;  %v1283_v56 = vadd.f32 %v1282_v14, %v1281_v59 }
 0x18a   :  { %v4662_v31 = vsub.s32 0, %v4656_v26 }
 0x18b   :  { %v1144_v7 = vadd.f32 %v1143_v20, %v1142_v11  ;;  %v1154_v37 = vrot.slane %v1153_v22, 2 }
 0x18d   :  { %v1145_v60 = vrot.slane %v1144_v7, 1  ;;  %v1155_v40 = vadd.f32 %v1154_v37, %v1153_v22 }
 0x18f   :  { %v1146_v19 = vadd.f32 %v1145_v60, %v1144_v7  ;;  %v1156_v33 = vrot.slane %v1155_v40, 1 }
 0x191   :  { %v1157_v36 = vadd.f32 %v1156_v33, %v1155_v40  ;;  %v1173_v21 = vadd.f32 %v1172_v62, %v1146_v19 }
 0x193   :  { %v1194_v0 = vadd.f32 %v1193_v35, %v1157_v36  ;;  %v1210_v45 = vadd.f32 %v1209_v39, %v1173_v21 }
 0x195   :  { %v1231_v6 = vadd.f32 %v1230_v42, %v1194_v0  ;;  %v1247_v4 = vadd.f32 %v1246_v53, %v1210_v45 }
 0x197   :  { %v1268_v11 = vadd.f32 %v1267_v46, %v1231_v6  ;;  %v1284_v10 = vadd.f32 %v1283_v56, %v1247_v4 }
 0x199   :  { %v1305_v12 = vadd.f32 %v1304_v9, %v1268_v11  ;;  %v1306_v17 = vmul.f32 0.0056818184, %v1284_v10 }
 0x19b   :  { %v1307_v5 = vmul.f32 0.0056818184, %v1305_v12  ;;  %v1308_v13 = vmul.f32 %v1306_v17, %v1306_v17 }
 0x19d   :  { %v1309_v18 = vsub.f32 %v1307_v5, %v1308_v13 }
 0x19f   :  { %v1310_v20 = vmax.f32 %v1309_v18, 0.0 }
 0x1a1   :  { %v1312_v22 = vadd.f32 1e-05, %v1310_v20 }
 0x1a3   :  { %3936 = vrsqrt.f32 %v1312_v22 }
 0x1ad   :  { %v3937_v7 = vpop.eup %3936 }
 0x1ae   :  { %v1314_v37 = vmul.f32 %v3937_v7, %v1311_v27 }
 0x1b0   :  { %v1316_v54 = vmul.f32 %v1314_v37, %v1306_v17  ;;  %v1321_v25 = vrot.slane %v1314_v37, %v4662_v31 }
 0x1b2   :  { %v1317_v59 = vsub.f32 %v1315_v48, %v1316_v54  ;;  %v1322_v60 = vmul.f32 %v1321_v25, %v4462_v28  ;;  %v1323_v40 = vmul.f32 %v1321_v25, %v4466_v50  ;;  %v1336_v62 = vmul.f32 %v1321_v25, %v4506_v55 }
 0x1b3   :  { %v1337_v32 = vmul.f32 %v1321_v25, %v4510_v61  ;;  %v1351_v51 = vmul.f32 %v1321_v25, %v4552_v43  ;;  %v1352_v52 = vmul.f32 %v1321_v25, %v4556_v2  ;;  %v1361_v19 = vmul.f32 %v1321_v25, %v4600_v30 }
 0x1b4   :  { %v1330_v33 = vrot.slane %v1317_v59, %v4662_v31  ;;  %v1362_v35 = vmul.f32 %v1321_v25, %v4604_v58  ;;  %v1324_v39 = vmul.f32 %v1321_v25, %v4478_v38  ;;  %v1325_v28 = vmul.f32 %v1321_v25, %v4484_v1  ;;  %v3867_v59 = vld [vmem:[%s5058_s4] sm:$0x3f]  }
 0x1b5   :  { %v1338_v50 = vmul.f32 %v1321_v25, %v4522_v3  ;;  %v1339_v55 = vmul.f32 %v1321_v25, %v4528_v15  ;;  %v1353_v61 = vmul.f32 %v1321_v25, %v4568_v29  ;;  %v1354_v43 = vmul.f32 %v1321_v25, %v4574_v63 }
 0x1b6   :  { %v1331_v41 = vadd.f32 %v1330_v33, %v1322_v60  ;;  %v1332_v2 = vadd.f32 %v1330_v33, %v1323_v40  ;;  %v1341_v14 = vadd.f32 %v1336_v62, %v1330_v33  ;;  %v1342_v30 = vadd.f32 %v1337_v32, %v1330_v33  ;;  %v3868_v60 = vld [vmem:[%s5058_s4 + $0x8] sm:$0x3f]   ;;  %v3869_v40 = vld [vmem:[%s5059_s5 + $0x20] sm:$0xff]  }
 0x1b7   :  { %v1356_v36 = vadd.f32 %v1351_v51, %v1330_v33  ;;  %v1357_v21 = vadd.f32 %v1352_v52, %v1330_v33  ;;  %v1366_v42 = vadd.f32 %v1361_v19, %v1330_v33  ;;  %v1367_v58 = vadd.f32 %v1362_v35, %v1330_v33  ;;  %v3870_v62 = vld [vmem:[%s5059_s5] sm:$0xff]   ;;  %v3871_v32 = vld [vmem:[%s5059_s5 + $0x28] sm:$0xff]   ;;  %v3873_v52 = vld [vmem:[%s5059_s5 + $0x30] sm:$0xff]  }
 0x1b8   :  { %v1346_v53 = vmax.f32 %v1331_v41, %v1341_v14  ;;  %v1347_v38 = vmax.f32 %v1332_v2, %v1342_v30  ;;  %v1333_v44 = vadd.f32 %v1330_v33, %v1324_v39  ;;  %v1334_v1 = vadd.f32 %v1330_v33, %v1325_v28  ;;  %v3872_v51 = vld [vmem:[%s5059_s5 + $0x8] sm:$0xff]   ;;  %v3874_v19 = vld [vmem:[%s5059_s5 + $0x10] sm:$0xff]   ;;  %v3876_v35 = vld [vmem:[%s5059_s5 + $0x18] sm:$0xff]  }
 0x1b9   :  { %v1371_v0 = vmax.f32 %v1356_v36, %v1366_v42  ;;  %v1372_v3 = vmax.f32 %v1357_v21, %v1367_v58  ;;  %v1343_v45 = vadd.f32 %v1338_v50, %v1330_v33  ;;  %v1344_v15 = vadd.f32 %v1339_v55, %v1330_v33  ;;  %v3877_v36 = vld [vmem:[%s5058_s4 + $0x10] sm:$0x3f]   ;;  %v3878_v21 = vld [vmem:[%s5058_s4 + $0x18] sm:$0x3f]   ;;  %v3879_v42 = vld [vmem:[%s5058_s4 + $0x20] sm:$0x3f]  }
 0x1ba   :  { %v1358_v46 = vadd.f32 %v1353_v61, %v1330_v33  ;;  %v1359_v29 = vadd.f32 %v1354_v43, %v1330_v33  ;;  %v1363_v63 = vmul.f32 %v1321_v25, %v4616_v8  ;;  %v1364_v56 = vmul.f32 %v1321_v25, %v4622_v24  ;;  %v3880_v58 = vld [vmem:[%s5058_s4 + $0x28] sm:$0x3f]  }
 0x1bb   :  { %v1376_v6 = vmax.f32 %v1346_v53, %v1371_v0  ;;  %v1377_v4 = vmax.f32 %v1347_v38, %v1372_v3  ;;  %v1348_v9 = vmax.f32 %v1333_v44, %v1343_v45  ;;  %v1349_v11 = vmax.f32 %v1334_v1, %v1344_v15  ;;  %v3881_v53 = vld [vmem:[%s5059_s5 + $0x40] sm:$0xff]   ;;  %v3882_v38 = vld [vmem:[%s5059_s5 + $0x48] sm:$0xff]   ;;  %v3883_v44 = vld [vmem:[%s5059_s5 + $0x50] sm:$0xff]  }
 0x1bc   :  { %v1368_v10 = vadd.f32 %v1363_v63, %v1330_v33  ;;  %v1369_v12 = vadd.f32 %v1364_v56, %v1330_v33  ;;  %v1326_v17 = vmul.f32 %v1321_v25, %v4493_v16  ;;  %v1340_v5 = vmul.f32 %v1321_v25, %v4537_v49  ;;  %v3884_v1 = vld [vmem:[%s5059_s5 + $0x58] sm:$0xff]   ;;  %v3891_v0 = vld [vmem:[%s5059_s5 + $0xa0] sm:$0xff]   ;;  %v3893_v3 = vld [vmem:[%s5059_s5 + $0xa8] sm:$0xff]  }
 0x1bd   :  { %v4687_v13 = vpack.c.bf16 %v1377_v4, %v1376_v6  ;;  %v1355_v18 = vmul.f32 %v1321_v25, %v4587_v47  ;;  %v1365_v20 = vmul.f32 %v1321_v25, %v4631_v34  ;;  %v3895_v45 = vld [vmem:[%s5059_s5 + $0xb0] sm:$0xff]   ;;  %v3896_v15 = vld [vmem:[%s5059_s5 + $0xb8] sm:$0xff]  }
 0x1be   :  { %v1373_v22 = vmax.f32 %v1358_v46, %v1368_v10  ;;  %v1374_v8 = vmax.f32 %v1359_v29, %v1369_v12  ;;  %v1335_v23 = vadd.f32 %v1330_v33, %v1326_v17  ;;  %v1345_v24 = vadd.f32 %v1340_v5, %v1330_v33 }
 0x1bf   :  { %3565 = vmatpush3.bf16.msra.mxu0 %v4687_v13  ;;  %3575 = vmatpush3.bf16.msra.mxu1 %v4687_v13  ;;  %v1360_v27 = vadd.f32 %v1355_v18, %v1330_v33  ;;  %v1370_v7 = vadd.f32 %v1365_v20, %v1330_v33  ;;  %v3875_v33 = vld [vmem:[%s5059_s5 + $0x38] sm:$0xff]   ;;  %v3885_v20 = vld [vmem:[%s5059_s5 + $0x60] sm:$0xff]  }
 0x1c0   :  { %3566 = vmatprep.subr.bf16.mxu0 %v3940_v57  ;;  %3576 = vmatprep.subr.bf16.mxu1 %v3940_v57  ;;  %v1378_v16 = vmax.f32 %v1348_v9, %v1373_v22  ;;  %v1379_v49 = vmax.f32 %v1349_v11, %v1374_v8  ;;  %v1350_v37 = vmax.f32 %v1335_v23, %v1345_v24  ;;  %v3886_v23 = vld [vmem:[%s5059_s5 + $0x68] sm:$0xff]   ;;  %v3887_v24 = vld [vmem:[%s5059_s5 + $0x70] sm:$0xff]  }
 0x1c1   :  { %v1375_v47 = vmax.f32 %v1360_v27, %v1370_v7 }
 0x1c2   :  { %v4695_v48 = vpack.c.bf16 %v1379_v49, %v1378_v16  ;;  %v3888_v49 = vld [vmem:[%s5059_s5 + $0x78] sm:$0xff]  }
 0x1c3   :  { %v1380_v34 = vmax.f32 %v1350_v37, %v1375_v47 }
 0x1c4   :  { %3567 = vmatpush3.bf16.msra.mxu0 %v4695_v48  ;;  %3577 = vmatpush3.bf16.msra.mxu1 %v4695_v48 }
 0x1c5   :  { %3568 = vmatprep.subr.bf16.mxu0 %v3940_v57  ;;  %3578 = vmatprep.subr.bf16.mxu1 %v3940_v57  ;;  %v1383_v54 = vpack.c.bf16 %v1380_v34, %v1380_v34  ;;  %v3889_v34 = vld [vmem:[%s5059_s5 + $0x80] sm:$0xff]  }
 0x1c7   :  { %v4701_v25 = vsel %vm1396_vm2, %v1383_v54, 0  ;;  %v3890_v54 = vld [vmem:[%s5059_s5 + $0x88] sm:$0xff]  }
 0x1c8   :  { %3569 = vmatpush3.bf16.msra.mxu0 %v4701_v25  ;;  %3579 = vmatpush3.bf16.msra.mxu1 %v4701_v25 }
 0x1c9   :  { %3584 = vmatprep.subr.bf16.mxu0 %v3940_v57  ;;  %3596 = vmatprep.subr.bf16.mxu1 %v3940_v57 }
 0x1cb   :  { %3571 = vmatmul.mubr.msk.bf16.vlgmr.msra.gmra.mrb[52].mxu0 %vm1392_vm3, %v3867_v59  ;;  %3581 = vmatmul.mubr.msk.bf16.vlgmr.msra.gmra.mrb[52].mxu1 %vm1392_vm3, %v3868_v60 }
 0x1cc   :  { %3585 = vmatpush3.bf16.msra.mxu0 %v3869_v40  ;;  %3597 = vmatpush3.bf16.msra.mxu1 %v3870_v62  ;;  %v3892_v40 = vld [vmem:[%s5059_s5 + $0x90] sm:$0xff]  }
 0x1cd   :  { %3586 = vmatprep.subr.bf16.mxu0 %v3940_v57  ;;  %3598 = vmatprep.subr.bf16.mxu1 %v3940_v57 }
 0x1ce   :  { %3592 = vmatprep.mubr.msk.bf16.mxu0 %vm3941_vm1, %v3940_v57  ;;  %3604 = vmatprep.mubr.msk.bf16.mxu1 %vm3941_vm1, %v3940_v57 }
 0x1d0   :  { %3587 = vmatpush3.bf16.msra.mxu0 %v3871_v32  ;;  %3599 = vmatpush3.bf16.msra.mxu1 %v3872_v51 }
 0x1d1   :  { %3588 = vmatprep.subr.bf16.mxu0 %v3940_v57  ;;  %3600 = vmatprep.subr.bf16.mxu1 %v3940_v57 }
 0x1d4   :  { %3589 = vmatpush3.bf16.msra.mxu0 %v3873_v52  ;;  %3601 = vmatpush3.bf16.msra.mxu1 %v3874_v19  ;;  %v3894_v52 = vld [vmem:[%s5059_s5 + $0x98] sm:$0xff]  }
 0x1d5   :  { %3590 = vmatprep.subr.bf16.mxu0 %v3940_v57  ;;  %3602 = vmatprep.subr.bf16.mxu1 %v3940_v57 }
 0x1d8   :  { %3591 = vmatpush3.bf16.msra.mxu0 %v3875_v33  ;;  %3603 = vmatpush3.bf16.msra.mxu1 %v3876_v35 }
 0x1d9   :  { %3608 = vmatprep.subr.bf16.mxu0 %v3940_v57  ;;  %3618 = vmatprep.subr.bf16.mxu1 %v3940_v57 }
 0x29e   :  { %v1434_v39 = vpop.f32.mrb[52].mxu0  ;;  %v1495_v28 = vpop.f32.mrb[52].mxu1 }
 0x29f   :  { %v3572_v50 = vpop.f32.mrb[53].mxu0  ;;  %v3582_v55 = vpop.f32.mrb[53].mxu1 }
 0x2a0   :  { %v1437_v61 = vpop.f32.mrb[54].mxu0  ;;  %v1498_v43 = vpop.f32.mrb[54].mxu1  ;;  %v3897_v50 = vld [vmem:[%s5058_s4 + $0x30] sm:$0x3f]   ;;  %v3898_v55 = vld [vmem:[%s5058_s4 + $0x38] sm:$0x3f]  }
 0x2a1   :  { %v1441_v41 = vpack.c.bf16 %v1437_v61, %v1434_v39  ;;  %v1502_v2 = vpack.c.bf16 %v1498_v43, %v1495_v28  ;;  %v3583_v14 = vpop.f32.mrb[55].mxu1  ;;  %v3573_v30 = vpop.f32.mrb[55].mxu0  ;;  %v3899_v61 = vld [vmem:[%s5059_s5 + $0xc0] sm:$0xff]   ;;  %v3900_v43 = vld [vmem:[%s5059_s5 + $0xc8] sm:$0xff]  }
 0x2a2   :  { %v3903_v14 = vld [vmem:[%s5059_s5 + $0xe8] sm:$0xff]   ;;  %v3904_v30 = vld [vmem:[%s5059_s5 + $0xd8] sm:$0xff]  }
 0x2a3   :  { %3593 = vmatmul.mubr.msk.bf16.vlgmr.msra.gmra.mrb[56].mxu0 %vm1137_vm0, %v1502_v2  ;;  %3605 = vmatmul.mubr.msk.bf16.vlgmr.msra.gmra.mrb[56].mxu1 %vm1137_vm0, %v1441_v41  ;;  %v3901_v41 = vld [vmem:[%s5059_s5 + $0xe0] sm:$0xff]   ;;  %v3902_v2 = vld [vmem:[%s5059_s5 + $0xd0] sm:$0xff]  }
 0x2a4   :  { %3609 = vmatpush3.bf16.msra.mxu0 %v4687_v13  ;;  %3614 = vmatprep.mubr.msk.bf16.mxu0 %vm3941_vm1, %v3940_v57 }
 0x2a5   :  { %3610 = vmatprep.subr.bf16.mxu0 %v3940_v57  ;;  %3626 = vmatprep.mubr.msk.bf16.mxu1 %vm3941_vm1, %v3940_v57 }
 0x2a6   :  { %3619 = vmatpush3.bf16.msra.mxu1 %v3881_v53 }
 0x2a7   :  { %3620 = vmatprep.subr.bf16.mxu1 %v3940_v57 }
 0x2a8   :  { %3611 = vmatpush3.bf16.msra.mxu0 %v4695_v48 }
 0x2a9   :  { %3612 = vmatprep.subr.bf16.mxu0 %v3940_v57 }
 0x2aa   :  { %3621 = vmatpush3.bf16.msra.mxu1 %v3882_v38 }
 0x2ab   :  { %3622 = vmatprep.subr.bf16.mxu1 %v3940_v57 }
 0x2ac   :  { %3613 = vmatpush3.bf16.msra.mxu0 %v4701_v25 }
 0x2ad   :  { %3630 = vmatprep.subr.bf16.mxu0 %v3940_v57 }
 0x2ae   :  { %3623 = vmatpush3.bf16.msra.mxu1 %v3883_v44 }
 0x2af   :  { %3615 = vmatmul.mubr.msk.bf16.vlgmr.msra.gmra.mrb[60].mxu0 %vm1392_vm3, %v3877_v36  ;;  %3624 = vmatprep.subr.bf16.mxu1 %v3940_v57  ;;  %v3905_v36 = vld [vmem:[%s5059_s5 + $0xf0] sm:$0xff]  }
 0x2b0   :  { %3631 = vmatpush3.bf16.msra.mxu0 %v4687_v13  ;;  %3636 = vmatprep.mubr.msk.bf16.mxu0 %vm3941_vm1, %v3940_v57 }
 0x2b1   :  { %3632 = vmatprep.subr.bf16.mxu0 %v3940_v57 }
 0x2b2   :  { %3625 = vmatpush3.bf16.msra.mxu1 %v3884_v1 }
 0x2b3   :  { %3640 = vmatprep.subr.bf16.mxu1 %v3940_v57 }
 0x2b4   :  { %3633 = vmatpush3.bf16.msra.mxu0 %v4695_v48 }
 0x2b5   :  { %3634 = vmatprep.subr.bf16.mxu0 %v3940_v57 }
 0x2b8   :  { %3635 = vmatpush3.bf16.msra.mxu0 %v4701_v25 }
 0x2b9   :  { %3652 = vmatprep.subr.bf16.mxu0 %v3940_v57 }
 0x2bb   :  { %3637 = vmatmul.mubr.msk.bf16.vlgmr.msra.gmra.mrb[64].mxu0 %vm1392_vm3, %v3878_v21  ;;  %v3906_v21 = vld [vmem:[%s5059_s5 + $0xf8] sm:$0xff]  }
 0x2bc   :  { %3653 = vmatpush3.bf16.msra.mxu0 %v4687_v13  ;;  %3658 = vmatprep.mubr.msk.bf16.mxu0 %vm3941_vm1, %v3940_v57 }
 0x2bd   :  { %3654 = vmatprep.subr.bf16.mxu0 %v3940_v57 }
 0x2c0   :  { %3655 = vmatpush3.bf16.msra.mxu0 %v4695_v48 }
 0x2c1   :  { %3656 = vmatprep.subr.bf16.mxu0 %v3940_v57 }
 0x2c4   :  { %3657 = vmatpush3.bf16.msra.mxu0 %v4701_v25 }
 0x2c5   :  { %3674 = vmatprep.subr.bf16.mxu0 %v3940_v57 }
 0x2c7   :  { %3659 = vmatmul.mubr.msk.bf16.vlgmr.msra.gmra.mrb[68].mxu0 %vm1392_vm3, %v3879_v42 }
 0x2c8   :  { %3675 = vmatpush3.bf16.msra.mxu0 %v4687_v13  ;;  %3680 = vmatprep.mubr.msk.bf16.mxu0 %vm3941_vm1, %v3940_v57 }
 0x2c9   :  { %3676 = vmatprep.subr.bf16.mxu0 %v3940_v57 }
 0x2cc   :  { %3677 = vmatpush3.bf16.msra.mxu0 %v4695_v48 }
 0x2cd   :  { %3678 = vmatprep.subr.bf16.mxu0 %v3940_v57 }
 0x2d0   :  { %3679 = vmatpush3.bf16.msra.mxu0 %v4701_v25 }
 0x2d1   :  { %3684 = vmatprep.subr.bf16.mxu0 %v3940_v57 }
 0x2d3   :  { %3681 = vmatmul.mubr.msk.bf16.vlgmr.msra.gmra.mrb[72].mxu0 %vm1392_vm3, %v3880_v58 }
 0x2d4   :  { %3692 = vmatprep.mubr.msk.bf16.mxu0 %vm3941_vm1, %v3940_v57  ;;  %3685 = vmatpush3.bf16.msra.mxu0 %v3891_v0 }
 0x2d5   :  { %3686 = vmatprep.subr.bf16.mxu0 %v3940_v57 }
 0x2d8   :  { %3687 = vmatpush3.bf16.msra.mxu0 %v3893_v3 }
 0x2d9   :  { %3688 = vmatprep.subr.bf16.mxu0 %v3940_v57 }
 0x2dc   :  { %3689 = vmatpush3.bf16.msra.mxu0 %v3895_v45 }
 0x2dd   :  { %3690 = vmatprep.subr.bf16.mxu0 %v3940_v57 }
 0x2e0   :  { %3691 = vmatpush3.bf16.msra.mxu0 %v3896_v15 }
 0x2e1   :  { %3718 = vmatprep.subr.bf16.mxu0 %v3940_v57 }
 0x376   :  { %v1573_v46 = vpop.f32.mrb[56].mxu0  ;;  %v1641_v29 = vpop.f32.mrb[56].mxu1 }
 0x377   :  { %v4837_v63 = vadd.f32 %v1641_v29, %v1573_v46  ;;  %v3594_v56 = vpop.f32.mrb[57].mxu0  ;;  %v3606_v6 = vpop.f32.mrb[57].mxu1 }
 0x378   :  { %v1576_v4 = vpop.f32.mrb[58].mxu0  ;;  %v1644_v9 = vpop.f32.mrb[58].mxu1 }
 0x379   :  { %v4839_v11 = vadd.f32 %v1644_v9, %v1576_v4  ;;  %v3595_v10 = vpop.f32.mrb[59].mxu0  ;;  %v3607_v12 = vpop.f32.mrb[59].mxu1 }
 0x382   :  { %v1693_v17 = vpop.f32.mrb[60].mxu0 }
 0x383   :  { %v3616_v5 = vpop.f32.mrb[61].mxu0 }
 0x384   :  { %v1696_v18 = vpop.f32.mrb[62].mxu0 }
 0x385   :  { %v1700_v22 = vpack.c.bf16 %v1696_v18, %v1693_v17  ;;  %v3617_v8 = vpop.f32.mrb[63].mxu0 }
 0x387   :  { %3627 = vmatmul.mubr.msk.bf16.vlgmr.msra.gmra.mrb[60].mxu1 %vm1137_vm0, %v1700_v22 }
 0x388   :  { %3641 = vmatpush3.bf16.msra.mxu1 %v3885_v20  ;;  %3648 = vmatprep.mubr.msk.bf16.mxu1 %vm3941_vm1, %v3940_v57 }
 0x389   :  { %3642 = vmatprep.subr.bf16.mxu1 %v3940_v57 }
 0x38c   :  { %3643 = vmatpush3.bf16.msra.mxu1 %v3886_v23 }
 0x38d   :  { %3644 = vmatprep.subr.bf16.mxu1 %v3940_v57 }
 0x38e   :  { %v1825_v27 = vpop.f32.mrb[64].mxu0 }
 0x38f   :  { %v3638_v7 = vpop.f32.mrb[65].mxu0 }
 0x390   :  { %3645 = vmatpush3.bf16.msra.mxu1 %v3887_v24  ;;  %v1828_v16 = vpop.f32.mrb[66].mxu0 }
 0x391   :  { %v1832_v37 = vpack.c.bf16 %v1828_v16, %v1825_v27  ;;  %v3639_v47 = vpop.f32.mrb[67].mxu0  ;;  %3646 = vmatprep.subr.bf16.mxu1 %v3940_v57 }
 0x394   :  { %3647 = vmatpush3.bf16.msra.mxu1 %v3888_v49 }
 0x395   :  { %3662 = vmatprep.subr.bf16.mxu1 %v3940_v57 }
 0x397   :  { %3649 = vmatmul.mubr.msk.bf16.vlgmr.msra.gmra.mrb[64].mxu1 %vm1137_vm0, %v1832_v37 }
 0x398   :  { %3663 = vmatpush3.bf16.msra.mxu1 %v3889_v34  ;;  %3670 = vmatprep.mubr.msk.bf16.mxu1 %vm3941_vm1, %v3940_v57  ;;  %v3907_v34 = vld [vmem:[%s5058_s4 + $0x40] sm:$0x3f]  }
 0x399   :  { %3664 = vmatprep.subr.bf16.mxu1 %v3940_v57 }
 0x39a   :  { %v1957_v59 = vpop.f32.mrb[68].mxu0 }
 0x39b   :  { %v3660_v60 = vpop.f32.mrb[69].mxu0 }
 0x39c   :  { %3665 = vmatpush3.bf16.msra.mxu1 %v3890_v54  ;;  %v1960_v62 = vpop.f32.mrb[70].mxu0  ;;  %v3911_v54 = vld [vmem:[%s5059_s5 + $0x118] sm:$0xff]  }
 0x39d   :  { %3666 = vmatprep.subr.bf16.mxu1 %v3940_v57  ;;  %v1964_v32 = vpack.c.bf16 %v1960_v62, %v1957_v59  ;;  %v3661_v51 = vpop.f32.mrb[71].mxu0 }
 0x3a0   :  { %3667 = vmatpush3.bf16.msra.mxu1 %v3892_v40 }
 0x3a1   :  { %3668 = vmatprep.subr.bf16.mxu1 %v3940_v57 }
 0x3a4   :  { %3669 = vmatpush3.bf16.msra.mxu1 %v3894_v52 }
 0x3a5   :  { %3696 = vmatprep.subr.bf16.mxu1 %v3940_v57 }
 0x3a6   :  { %v2089_v19 = vpop.f32.mrb[72].mxu0 }
 0x3a7   :  { %3671 = vmatmul.mubr.msk.bf16.vlgmr.msra.gmra.mrb[68].mxu1 %vm1137_vm0, %v1964_v32  ;;  %v3682_v33 = vpop.f32.mrb[73].mxu0 }
 0x3a8   :  { %3697 = vmatpush3.bf16.msra.mxu1 %v4687_v13  ;;  %v2092_v35 = vpop.f32.mrb[74].mxu0  ;;  %3702 = vmatprep.mubr.msk.bf16.mxu1 %vm3941_vm1, %v3940_v57 }
 0x3a9   :  { %v2096_v39 = vpack.c.bf16 %v2092_v35, %v2089_v19  ;;  %3698 = vmatprep.subr.bf16.mxu1 %v3940_v57  ;;  %v3683_v28 = vpop.f32.mrb[75].mxu0 }
 0x3ab   :  { %3693 = vmatmul.mubr.msk.bf16.vlgmr.msra.gmra.mrb[76].mxu0 %vm1137_vm0, %v2096_v39 }
 0x3ac   :  { %3699 = vmatpush3.bf16.msra.mxu1 %v4695_v48  ;;  %3719 = vmatpush3.bf16.msra.mxu0 %v4687_v13 }
 0x3ad   :  { %3700 = vmatprep.subr.bf16.mxu1 %v3940_v57  ;;  %3720 = vmatprep.subr.bf16.mxu0 %v3940_v57 }
 0x3ae   :  { %3724 = vmatprep.mubr.msk.bf16.mxu0 %vm3941_vm1, %v3940_v57 }
 0x3b0   :  { %3701 = vmatpush3.bf16.msra.mxu1 %v4701_v25  ;;  %3721 = vmatpush3.bf16.msra.mxu0 %v4695_v48 }
 0x3b1   :  { %3722 = vmatprep.subr.bf16.mxu0 %v3940_v57  ;;  %3706 = vmatprep.subr.bf16.mxu1 %v3940_v57 }
 0x3b3   :  { %3703 = vmatmul.mubr.msk.bf16.vlgmr.msra.gmra.mrb[72].mxu1 %vm1392_vm3, %v3897_v50 }
 0x3b4   :  { %3723 = vmatpush3.bf16.msra.mxu0 %v4701_v25  ;;  %3714 = vmatprep.mubr.msk.bf16.mxu1 %vm3941_vm1, %v3940_v57 }
 0x3b5   :  { %3728 = vmatprep.subr.bf16.mxu0 %v3940_v57  ;;  %3707 = vmatpush3.bf16.msra.mxu1 %v3899_v61 }
 0x3b6   :  { %3708 = vmatprep.subr.bf16.mxu1 %v3940_v57 }
 0x3b7   :  { %3725 = vmatmul.mubr.msk.bf16.vlgmr.msra.gmra.mrb[80].mxu0 %vm1392_vm3, %v3898_v55 }
 0x3b8   :  { %3736 = vmatprep.mubr.msk.bf16.mxu0 %vm3941_vm1, %v3940_v57  ;;  %3729 = vmatpush3.bf16.msra.mxu0 %v3901_v41  ;;  %v3912_v41 = vld [vmem:[%s5060_s7] ss:$16 sps:$4 sm:$0xff]  }
 0x3b9   :  { %3709 = vmatpush3.bf16.msra.mxu1 %v3900_v43  ;;  %3730 = vmatprep.subr.bf16.mxu0 %v3940_v57 }
 0x3ba   :  { %3710 = vmatprep.subr.bf16.mxu1 %v3940_v57 }
 0x3bc   :  { %3731 = vmatpush3.bf16.msra.mxu0 %v3903_v14  ;;  %v3914_v14 = vld [vmem:[%s5060_s7 + $0x4] ss:$16 sps:$4 sm:$0xff]  }
 0x3bd   :  { %3711 = vmatpush3.bf16.msra.mxu1 %v3902_v2  ;;  %3732 = vmatprep.subr.bf16.mxu0 %v3940_v57  ;;  %v3942_v2 = vmov 0  }
 0x3be   :  { %3712 = vmatprep.subr.bf16.mxu1 %v3940_v57 }
 0x3c0   :  { %3733 = vmatpush3.bf16.msra.mxu0 %v3905_v36  ;;  %v3917_v36 = vld [vmem:[%s5060_s7 + $0xc] ss:$16 sps:$4 sm:$0xff]  }
 0x3c1   :  { %3713 = vmatpush3.bf16.msra.mxu1 %v3904_v30  ;;  %3734 = vmatprep.subr.bf16.mxu0 %v3940_v57  ;;  %v3915_v30 = vld [vmem:[%s5060_s7 + $0x8] ss:$16 sps:$4 sm:$0xff]  }
 0x3c2   :  { %3740 = vmatprep.subr.bf16.mxu1 %v3940_v57 }
 0x3c4   :  { %3735 = vmatpush3.bf16.msra.mxu0 %v3906_v21  ;;  %v3918_v21 = vld [vmem:[%s5060_s7 + $0x20] ss:$16 sps:$4 sm:$0xff]  }
 0x3c5   :  { %2753 = vmatprep.subr.bf16.mxu0 %v3914_v14 }
 0x45a   :  { %v1771_v42 = vpop.f32.mrb[60].mxu1 }
 0x45b   :  { %v1778_v58 = vadd.f32 %v1771_v42, %v4837_v63  ;;  %v3628_v53 = vpop.f32.mrb[61].mxu1  ;;  %v3920_v42 = vld [vmem:[%s5060_s7 + $0x24] ss:$16 sps:$4 sm:$0xff]  }
 0x45c   :  { %v1774_v38 = vpop.f32.mrb[62].mxu1  ;;  %v3923_v53 = vld [vmem:[%s5060_s7 + $0x2c] ss:$16 sps:$4 sm:$0xff]  }
 0x45d   :  { %v1779_v44 = vadd.f32 %v1774_v38, %v4839_v11  ;;  %v3629_v1 = vpop.f32.mrb[63].mxu1  ;;  %v3926_v38 = vld [vmem:[%s5060_s7 + $0x44] ss:$16 sps:$4 sm:$0xff]  }
 0x45e   :  { %v3929_v1 = vld [vmem:[%s5060_s7 + $0x4c] ss:$16 sps:$4 sm:$0xff]  }
 0x46a   :  { %v1903_v0 = vpop.f32.mrb[64].mxu1 }
 0x46b   :  { %v1910_v3 = vadd.f32 %v1903_v0, %v1778_v58  ;;  %v3650_v45 = vpop.f32.mrb[65].mxu1  ;;  %v3921_v58 = vld [vmem:[%s5060_s7 + $0x28] ss:$16 sps:$4 sm:$0xff]  }
 0x46c   :  { %v1906_v15 = vpop.f32.mrb[66].mxu1  ;;  %v3927_v0 = vld [vmem:[%s5060_s7 + $0x48] ss:$16 sps:$4 sm:$0xff]   ;;  %v3935_v45 = vld [vmem:[%s5060_s7 + $0x6c] ss:$16 sps:$4 sm:$0xff]  }
 0x46d   :  { %v1911_v46 = vadd.f32 %v1906_v15, %v1779_v44  ;;  %v3651_v29 = vpop.f32.mrb[67].mxu1  ;;  %v3924_v44 = vld [vmem:[%s5060_s7 + $0x40] ss:$16 sps:$4 sm:$0xff]  }
 0x46e   :  { %v3930_v15 = vld [vmem:[%s5060_s7 + $0x60] ss:$16 sps:$4 sm:$0xff]  }
 0x46f   :  { %v3147_v29 = vld [vmem:[%s5061_s6] ss:$0 sm:$0xff] }
 0x47a   :  { %v2035_v56 = vpop.f32.mrb[68].mxu1 }
 0x47b   :  { %v2042_v6 = vadd.f32 %v2035_v56, %v1910_v3  ;;  %v3672_v4 = vpop.f32.mrb[69].mxu1  ;;  %v3932_v3 = vld [vmem:[%s5060_s7 + $0x64] ss:$16 sps:$4 sm:$0xff]  }
 0x47c   :  { %v2038_v9 = vpop.f32.mrb[70].mxu1 }
 0x47d   :  { %v2043_v10 = vadd.f32 %v2038_v9, %v1911_v46  ;;  %v3673_v12 = vpop.f32.mrb[71].mxu1  ;;  %v3933_v46 = vld [vmem:[%s5060_s7 + $0x68] ss:$16 sps:$4 sm:$0xff]  }
 0x47e   :  { %v2167_v17 = vpop.f32.mrb[76].mxu0 }
 0x47f   :  { %v2174_v5 = vadd.f32 %v2167_v17, %v2042_v6  ;;  %v3694_v63 = vpop.f32.mrb[77].mxu0 }
 0x480   :  { %v2170_v18 = vpop.f32.mrb[78].mxu0 }
 0x481   :  { %v2175_v20 = vadd.f32 %v2170_v18, %v2043_v10  ;;  %v3695_v22 = vpop.f32.mrb[79].mxu0 }
 0x486   :  { %v2221_v11 = vpop.f32.mrb[72].mxu1 }
 0x487   :  { %v3704_v8 = vpop.f32.mrb[73].mxu1 }
 0x488   :  { %v2224_v23 = vpop.f32.mrb[74].mxu1 }
 0x489   :  { %v2228_v24 = vpack.c.bf16 %v2224_v23, %v2221_v11  ;;  %v3705_v27 = vpop.f32.mrb[75].mxu1 }
 0x48a   :  { %v2353_v7 = vpop.f32.mrb[80].mxu0 }
 0x48b   :  { %3715 = vmatmul.mubr.msk.bf16.vlgmr.msra.gmra.mrb[76].mxu1 %vm1137_vm0, %v2228_v24  ;;  %v3726_v16 = vpop.f32.mrb[81].mxu0 }
 0x48c   :  { %3741 = vmatpush3.bf16.msra.mxu1 %v4687_v13  ;;  %v2356_v49 = vpop.f32.mrb[82].mxu0  ;;  %3746 = vmatprep.mubr.msk.bf16.mxu1 %vm3941_vm1, %v3940_v57  ;;  %v3908_v13 = vld [vmem:[%s5059_s5 + $0x100] sm:$0xff]  }
 0x48d   :  { %v2360_v37 = vpack.c.bf16 %v2356_v49, %v2353_v7  ;;  %3742 = vmatprep.subr.bf16.mxu1 %v3940_v57  ;;  %v3727_v47 = vpop.f32.mrb[83].mxu0 }
 0x48f   :  { %3737 = vmatmul.mubr.msk.bf16.vlgmr.msra.gmra.mrb[84].mxu0 %vm1137_vm0, %v2360_v37 }
 0x490   :  { %3743 = vmatpush3.bf16.msra.mxu1 %v4695_v48  ;;  %v3909_v48 = vld [vmem:[%s5059_s5 + $0x108] sm:$0xff]   ;;  %2785 = vmatprep.mubr.bf16.mxu0 %v3942_v2 }
 0x491   :  { %3744 = vmatprep.subr.bf16.mxu1 %v3940_v57  ;;  %2754 = vmatpush1.bf16.msra.mxu0 %v3912_v41 }
 0x492   :  { %2755 = vmatprep.subr.bf16.mxu0 %v3920_v42 }
 0x494   :  { %3745 = vmatpush3.bf16.msra.mxu1 %v4701_v25  ;;  %v3910_v25 = vld [vmem:[%s5059_s5 + $0x110] sm:$0xff]  }
 0x495   :  { %3750 = vmatprep.subr.bf16.mxu1 %v3940_v57  ;;  %2756 = vmatpush1.bf16.msra.mxu0 %v3918_v21 }
 0x496   :  { %2757 = vmatprep.subr.bf16.mxu0 %v3926_v38  ;;  %v2648_v38 = vld [vmem:[%s5063_s8] sm:$0xf] }
 0x497   :  { %3747 = vmatmul.mubr.msk.bf16.vlgmr.msra.gmra.mrb[80].mxu1 %vm1392_vm3, %v3907_v34 }
 0x498   :  { %3758 = vmatprep.mubr.msk.bf16.mxu1 %vm3941_vm1, %v3940_v57  ;;  %3751 = vmatpush3.bf16.msra.mxu1 %v3908_v13 }
 0x499   :  { %3752 = vmatprep.subr.bf16.mxu1 %v3940_v57  ;;  %2758 = vmatpush1.bf16.msra.mxu0 %v3924_v44  ;;  %v2656_v44 = vsub.s32 1, %v4656_v26 }
 0x49a   :  { %2759 = vmatprep.subr.bf16.mxu0 %v3932_v3 }
 0x49c   :  { %3753 = vmatpush3.bf16.msra.mxu1 %v3909_v48 }
 0x49d   :  { %3754 = vmatprep.subr.bf16.mxu1 %v3940_v57  ;;  %2760 = vmatpush1.bf16.msra.mxu0 %v3930_v15  ;;  %v2657_v15 = vrot.slane %v2648_v38, %v2656_v44 }
 0x4a0   :  { %3755 = vmatpush3.bf16.msra.mxu1 %v3910_v25 }
 0x4a1   :  { %3756 = vmatprep.subr.bf16.mxu1 %v3940_v57 }
 0x4a4   :  { %3757 = vmatpush3.bf16.msra.mxu1 %v3911_v54 }
 0x4a5   :  { %2794 = vmatprep.subr.bf16.mxu1 %v3917_v36 }
 0x55e   :  { %v2299_v59 = vpop.f32.mrb[76].mxu1 }
 0x55f   :  { %v2306_v60 = vadd.f32 %v2299_v59, %v2174_v5  ;;  %v3716_v40 = vpop.f32.mrb[77].mxu1 }
 0x560   :  { %v2302_v62 = vpop.f32.mrb[78].mxu1 }
 0x561   :  { %v2307_v32 = vadd.f32 %v2302_v62, %v2175_v20  ;;  %v3717_v51 = vpop.f32.mrb[79].mxu1 }
 0x562   :  { %v2431_v52 = vpop.f32.mrb[84].mxu0 }
 0x563   :  { %v2438_v19 = vadd.f32 %v2431_v52, %v2306_v60  ;;  %v3738_v33 = vpop.f32.mrb[85].mxu0 }
 0x564   :  { %v2434_v35 = vpop.f32.mrb[86].mxu0 }
 0x565   :  { %v2439_v39 = vadd.f32 %v2434_v35, %v2307_v32  ;;  %v3739_v28 = vpop.f32.mrb[87].mxu0  ;;  %v2606_v35 = vld [vmem:[%s5061_s6 + $0x1] sm:$0x1] }
 0x56a   :  { %v2485_v50 = vpop.f32.mrb[80].mxu1 }
 0x56b   :  { %v3748_v55 = vpop.f32.mrb[81].mxu1 }
 0x56c   :  { %v2488_v57 = vpop.f32.mrb[82].mxu1 }
 0x56d   :  { %v2492_v61 = vpack.c.bf16 %v2488_v57, %v2485_v50  ;;  %v3749_v43 = vpop.f32.mrb[83].mxu1  ;;  %v2610_v50 = vld [vmem:[%s5061_s6 + $0x2] sm:$0x1] }
 0x56f   :  { %3759 = vmatmul.mubr.msk.bf16.vlgmr.msra.gmra.mrb[84].mxu1 %vm1137_vm0, %v2492_v61 }
 0x570   :  { %2826 = vmatprep.mubr.bf16.mxu1 %v3942_v2  ;;  %2795 = vmatpush1.bf16.msra.mxu1 %v3915_v30 }
 0x571   :  { %2796 = vmatprep.subr.bf16.mxu1 %v3923_v53  ;;  %v2660_v53 = vsub.s32 2, %v4656_v26 }
 0x573   :  { %v2661_v3 = vrot.slane %v2648_v38, %v2660_v53 }
 0x574   :  { %2797 = vmatpush1.bf16.msra.mxu1 %v3921_v58  ;;  %v16_v58 = vstv %s5062_s10 }
 0x575   :  { %2798 = vmatprep.subr.bf16.mxu1 %v3929_v1  ;;  %17 = vst [vmem:[#allocation2] sm:$0x1] %v16_v58  ;;  %v2664_v1 = vsub.s32 3, %v4656_v26 }
 0x578   :  { %2799 = vmatpush1.bf16.msra.mxu1 %v3927_v0  ;;  %v2653_v0 = vrot.slane %v2648_v38, %v4662_v31 }
 0x579   :  { %2800 = vmatprep.subr.bf16.mxu1 %v3935_v45  ;;  %v2839_v45 = vld [vmem:[%s5064_s9] sm:$0xf] }
 0x57a   :  { %v2848_v26 = vrot.slane %v2839_v45, %v2656_v44 }
 0x57c   :  { %2801 = vmatpush1.bf16.msra.mxu1 %v3933_v46  ;;  %v2665_v46 = vrot.slane %v2648_v38, %v2664_v1 }
 0x642   :  { %v2563_v56 = vpop.f32.mrb[84].mxu1 }
 0x643   :  { %v2570_v6 = vadd.f32 %v2563_v56, %v2438_v19  ;;  %v3760_v4 = vpop.f32.mrb[85].mxu1 }
 0x644   :  { %v2566_v9 = vpop.f32.mrb[86].mxu1  ;;  %v2844_v4 = vrot.slane %v2839_v45, %v4662_v31 }
 0x645   :  { %v2576_v10 = vadd.f32 %v3147_v29, %v2570_v6  ;;  %v2571_v12 = vadd.f32 %v2566_v9, %v2439_v39  ;;  %v3761_v17 = vpop.f32.mrb[87].mxu1 }
 0x646   :  { %v2852_v17 = vrot.slane %v2839_v45, %v2660_v53 }
 0x647   :  { %v2578_v5 = vmax.f32 %v2576_v10, 0.0  ;;  %v2577_v63 = vadd.f32 %v3147_v29, %v2571_v12 }
 0x649   :  { %v2591_v18 = vmul.f32 %v2578_v5, %v2578_v5  ;;  %v2579_v20 = vmax.f32 %v2577_v63, 0.0  ;;  %v2580_v22 = vsel %vm1137_vm0, %v2578_v5, 0.0 }
 0x64b   :  { %v2582_v11 = vsel %vm2581_vm4, %v2579_v20, 0.0  ;;  %v2592_v8 = vmul.f32 %v2579_v20, %v2579_v20  ;;  %v2593_v24 = vsel %vm1137_vm0, %v2591_v18, 0.0 }
 0x64c   :  { %v2583_v23 = vadd.f32 %v2582_v11, %v2580_v22 }
 0x64d   :  { %v2594_v27 = vsel %vm2581_vm4, %v2592_v8, 0.0 }
 0x64e   :  { %v2584_v7 = vrot.slane %v2583_v23, 4  ;;  %v2595_v16 = vadd.f32 %v2594_v27, %v2593_v24 }
 0x650   :  { %v2585_v49 = vadd.f32 %v2584_v7, %v2583_v23  ;;  %v2596_v37 = vrot.slane %v2595_v16, 4  ;;  %v2856_v7 = vrot.slane %v2839_v45, %v2664_v1 }
 0x652   :  { %v2586_v47 = vrot.slane %v2585_v49, 2  ;;  %v2597_v34 = vadd.f32 %v2596_v37, %v2595_v16 }
 0x654   :  { %v2587_v13 = vadd.f32 %v2586_v47, %v2585_v49  ;;  %v2598_v48 = vrot.slane %v2597_v34, 2 }
 0x656   :  { %v2588_v25 = vrot.slane %v2587_v13, 1  ;;  %v2599_v54 = vadd.f32 %v2598_v48, %v2597_v34 }
 0x658   :  { %v2589_v59 = vadd.f32 %v2588_v25, %v2587_v13  ;;  %v2600_v60 = vrot.slane %v2599_v54, 1 }
 0x65a   :  { %v2590_v40 = vmul.f32 0.083333336, %v2589_v59  ;;  %v2601_v62 = vadd.f32 %v2600_v60, %v2599_v54  ;;  %v3166_v60 = vld [vmem:[#allocation2] ss:$0 sm:$0xff] }
 0x65c   :  { %v2602_v32 = vmul.f32 0.083333336, %v2601_v62  ;;  %v2603_v51 = vmul.f32 %v2590_v40, %v2590_v40 }
 0x65e   :  { %v2604_v52 = vsub.f32 %v2602_v32, %v2603_v51 }
 0x660   :  { %v2605_v19 = vmax.f32 %v2604_v52, 0.0 }
 0x662   :  { %v2607_v33 = vadd.f32 1e-05, %v2605_v19 }
 0x664   :  { %3938 = vrsqrt.f32 %v2607_v33 }
 0x66e   :  { %v3939_v39 = vpop.eup %3938 }
 0x66f   :  { %v2609_v28 = vmul.f32 %v3939_v39, %v2606_v35 }
 0x671   :  { %v2611_v55 = vmul.f32 %v2609_v28, %v2590_v40  ;;  %v2616_v57 = vrot.slane %v2609_v28, %v4662_v31 }
 0x673   :  { %v2612_v61 = vsub.f32 %v2610_v50, %v2611_v55  ;;  %v2617_v43 = vmul.f32 %v2616_v57, %v2578_v5 }
 0x675   :  { %v2621_v41 = vrot.slane %v2612_v61, %v4662_v31 }
 0x677   :  { %v2622_v2 = vadd.f32 %v2621_v41, %v2617_v43 }
 0x679   :  { %v2624_v14 = vrot.slane %v2622_v2, 2 }
 0x67b   :  { %v2626_v30 = vmax.f32 %v2622_v2, %v2624_v14 }
 0x67d   :  { %v2628_v36 = vrot.slane %v2626_v30, 4 }
 0x67f   :  { %v2630_v21 = vmax.f32 %v2626_v30, %v2628_v36 }
 0x681   :  { %v2631_v42 = vpack.c.bf16 %v2630_v21, %v2630_v21 }
 0x683   :  { %3164 = vmatmul.mubr.msk.bf16.vlgmr.msra.gmra.mrb[88].mxu0 %vm1137_vm0, %v2631_v42  ;;  %3165 = vmatmul.mubr.msk.bf16.vlgmr.msra.gmra.mrb[88].mxu1 %vm1137_vm0, %v2631_v42 }
 0x756   :  { %v2787_v29 = vpop.f32.mrb[88].mxu0  ;;  %v2828_v56 = vpop.f32.mrb[88].mxu1 }
 0x757   :  { %v2788_v6 = vadd.f32 %v2787_v29, %v2653_v0  ;;  %v2829_v9 = vadd.f32 %v2828_v56, %v2661_v3  ;;  %v2789_v10 = vpop.f32.mrb[89].mxu0  ;;  %v2830_v12 = vpop.f32.mrb[89].mxu1 }
 0x758   :  { %v2790_v5 = vadd.f32 %v2789_v10, %v2657_v15  ;;  %v2831_v63 = vadd.f32 %v2830_v12, %v2665_v46  ;;  %v2791_v18 = vpop.f32.mrb[90].mxu0  ;;  %v2832_v20 = vpop.f32.mrb[90].mxu1 }
 0x759   :  { %v2835_v22 = vmax.f32 %v2788_v6, 0.0  ;;  %v2837_v11 = vmax.f32 %v2829_v9, 0.0  ;;  %v2792_v8 = vpop.f32.mrb[91].mxu0  ;;  %v2833_v23 = vpop.f32.mrb[91].mxu1 }
 0x75a   :  { %v2836_v24 = vmax.f32 %v2790_v5, 0.0  ;;  %v2838_v27 = vmax.f32 %v2831_v63, 0.0 }
 0x75b   :  { %v2861_v16 = vmul.f32 %v2844_v4, %v2835_v22  ;;  %v2863_v49 = vmul.f32 %v2852_v17, %v2837_v11 }
 0x75c   :  { %v2862_v31 = vmul.f32 %v2848_v26, %v2836_v24  ;;  %v2864_v47 = vmul.f32 %v2856_v7, %v2838_v27 }
 0x75d   :  { %v2866_v37 = vsel %vm2865_vm5, %v2861_v16, 0.0  ;;  %v2869_v48 = vsel %vm2865_vm5, %v2863_v49, 0.0 }
 0x75e   :  { %v2867_v34 = vsel %vm2865_vm5, %v2862_v31, 0.0  ;;  %v2871_v54 = vsel %vm2865_vm5, %v2864_v47, 0.0 }
 0x75f   :  { %v2868_v13 = vadd.f32 %v2867_v34, %v2866_v37 }
 0x761   :  { %v2870_v25 = vadd.f32 %v2869_v48, %v2868_v13 }
 0x763   :  { %v2872_v59 = vadd.f32 %v2871_v54, %v2870_v25 }
 0x765   :  { %2873 = vadd.xlane.f32.xlu0 %v2872_v59 }
 0x7f2   :  { %v2874_v40 = vpop.xlane.xlu0 %2873 }
 0x7f3   :  { %v2882_v62 = vadd.f32 %v3166_v60, %v2874_v40 }
 0x7f5   :  { %2884 = vst.msk [vmem:[%s5065_s11] sm:$0x3] %vm2883_vm6, %v2882_v62 }

</bundles_post_ra>
